<compile_context>
chip_gen: v7x
topology: tpu7x:2x2x1
jax: 0.10.0
libtpu: 0.0.40
codegen_flags: <defaults>
</compile_context>

<pallas_src>
import functools

import numpy as np
import jax
import jax.numpy as jnp
from jax.experimental import pallas as pl
from jax.experimental.pallas import tpu as pltpu


# --------------------------------- kernel -----------------------------------

def lenet_kernel(x_ref, w1_ref, b1_ref, w2_ref, b2_ref, w3_ref, b3_ref,
                 fa_ref, fbe_ref, fw1_ref, fb1_ref, fw2_ref, fb2_ref, o_ref):
    B = o_ref.shape[1]                      # batch tile (multiple of 128)
    f32 = jnp.float32

    def conv3taps(rhs, w_ref, b_ref):
        # rhs(k) -> (Cin, Lout*B) bf16 tap slice.  Returns relu(conv + b), f32.
        acc = jnp.dot(w_ref[0], rhs(0), preferred_element_type=f32)
        acc = acc + jnp.dot(w_ref[1], rhs(1), preferred_element_type=f32)
        acc = acc + jnp.dot(w_ref[2], rhs(2), preferred_element_type=f32)
        return jnp.maximum(acc + b_ref[...], 0.0)

    def pool_len(m, npairs):
        # MaxPool over the position axis: adjacent B-wide lane segments.
        return [jnp.maximum(m[:, (2 * j) * B:(2 * j + 1) * B],
                            m[:, (2 * j + 1) * B:(2 * j + 2) * B])
                for j in range(npairs)]

    # conv1: (32,196)@(196,18B) per tap; taps are aligned lane slices of x.
    h1 = conv3taps(lambda k: x_ref[:, k * B:(k + 18) * B], w1_ref, b1_ref)
    h1 = h1.astype(jnp.bfloat16)                                    # (32, 18B)

    # conv2 (output channels pre-permuted [evens|odds] for the pool below).
    h2 = conv3taps(lambda k: h1[:, k * B:(k + 16) * B], w2_ref, b2_ref)  # (48,16B)

    # pool1: channel pair (2i,2i+1) == rows (i, 24+i); then length pairs.
    mc1 = jnp.maximum(h2[:24, :], h2[24:, :])                       # (24, 16B)
    q1 = jnp.concatenate(pool_len(mc1, 8), axis=1).astype(jnp.bfloat16)  # (24, 8B)

    # conv3 (output rows packed [60 even ch | 4 zero | 60 odd ch | 4 zero]).
    h3 = conv3taps(lambda k: q1[:, k * B:(k + 6) * B], w3_ref, b3_ref)   # (128, 6B)

    # pool2: channel pair (2i,2i+1) == rows (i, 64+i); padding rows stay 0.
    mc2 = jnp.maximum(h3[:64, :], h3[64:, :])                       # (64, 6B)
    q2 = pool_len(mc2, 3)                                           # 3 x (64, B)

    # Custom layernorm over the 180 real features, per batch lane, in f32.
    ssum = q2[0] + q2[1] + q2[2]
    mean = jnp.sum(ssum, axis=0, keepdims=True) * (1.0 / 180.0)     # (1, B)
    d = [q - mean for q in q2]
    sq = d[0] * d[0] + d[1] * d[1] + d[2] * d[2]
    # The 4 zero padding rows of each slot contribute exactly mean^2 each to
    # the sum of squares (3 slots x 4 rows = 12); remove them, unbiased 1/179.
    var = (jnp.sum(sq, axis=0, keepdims=True) - 12.0 * mean * mean) * (1.0 / 179.0)
    var = jnp.maximum(var, 0.0)
    inv = 1.0 / (jnp.sqrt(var) + 1e-9)                              # (1, B)

    # fc1: three dots of (64,64)@(64,B), one per flatten position slot.
    z = fb1_ref[...]                                                # (64, 1)
    for l in range(3):
        hn = (fa_ref[l] * d[l] * inv + fbe_ref[l]).astype(jnp.bfloat16)
        z = z + jnp.dot(fw1_ref[l], hn, preferred_element_type=f32)
    z = jnp.maximum(z, 0.0).astype(jnp.bfloat16)                    # (64, B)

    z2 = jnp.dot(fw2_ref[...], z, preferred_element_type=f32) + fb2_ref[...]
    o_ref[...] = jnp.maximum(z2, 0.0)                               # (2, B) lane-dense


# -------------------------------- wrapper ------------------------------------

def _round_up(x, m):
    return -(-x // m) * m


def _const_spec(shape):
    if len(shape) == 2:
        return pl.BlockSpec(shape, lambda i: (0, 0))
    return pl.BlockSpec(shape, lambda i: (0, 0, 0))


def _default_batch_block():
    try:
        kind = jax.devices()[0].device_kind.lower()
    except Exception:
        return 256
    return 256 if "v5" in kind else 512        # v5e: 16 MiB scoped-VMEM default


def _pack_params(p):
    f32, bf16 = jnp.float32, jnp.bfloat16
    # conv taps -> (3, Cout, Cin); matmul weights bf16, biases f32 columns.
    w1 = jnp.transpose(p['w1'], (2, 0, 1)).astype(bf16)                 # (3, 32, 196)
    b1 = p['b1'].astype(f32)[:, None]                                   # (32, 1)

    # conv2 output channels reordered [evens | odds]: MaxPool2d's channel
    # pairing becomes max(rows 0:24, rows 24:48) in-kernel (no selector dot).
    perm2 = jnp.concatenate([jnp.arange(0, 48, 2), jnp.arange(1, 48, 2)])
    w2 = jnp.transpose(p['w2'], (2, 0, 1))[:, perm2, :].astype(bf16)    # (3, 48, 32)
    b2 = p['b2'][perm2].astype(f32)[:, None]                            # (48, 1)

    # conv3 output channels packed [60 evens | 4 zeros | 60 odds | 4 zeros] so
    # pool2's channel pairing is max(rows 0:64, rows 64:128); zero rows stay 0.
    w3 = jnp.transpose(p['w3'], (2, 0, 1)).astype(f32)                  # (3, 120, 24)
    w3p = jnp.zeros((3, 128, 24), f32)
    w3p = w3p.at[:, 0:60, :].set(w3[:, 0::2, :])
    w3p = w3p.at[:, 64:124, :].set(w3[:, 1::2, :]).astype(bf16)         # (3, 128, 24)
    b3p = jnp.zeros((128,), f32).at[0:60].set(p['b3'][0::2])
    b3p = b3p.at[64:124].set(p['b3'][1::2])[:, None]                    # (128, 1)

    # layernorm affine + fc1, split per flatten position slot (f = c*3 + l);
    # channel axis padded 60 -> 64 with zeros to match the pooled slab rows.
    al = p['alpha'].reshape(60, 3).T                                    # (3, 60)
    be = p['beta'].reshape(60, 3).T
    fa = jnp.zeros((3, 64, 1), f32).at[:, :60, 0].set(al)
    fbe = jnp.zeros((3, 64, 1), f32).at[:, :60, 0].set(be)
    fw1 = jnp.transpose(p['fw1'].reshape(64, 60, 3), (2, 0, 1))         # (3, 64, 60)
    fw1p = jnp.zeros((3, 64, 64), f32).at[:, :, :60].set(fw1).astype(bf16)
    fb1 = p['fb1'].astype(f32)[:, None]                                 # (64, 1)
    fw2 = p['fw2'].astype(bf16)                                         # (2, 64)
    fb2 = p['fb2'].astype(f32)[:, None]                                 # (2, 1)
    return (w1, b1, w2, b2, w3p, b3p, fa, fbe, fw1p, fb1, fw2, fb2)


@functools.partial(jax.jit, static_argnames=("batch_block",))
def lenet_forward(x, p, *, batch_block=None):
    n, cin, lin = x.shape
    assert (cin, lin) == (196, 20), "expected input (N, 196, 20)"
    if batch_block is None:
        batch_block = _default_batch_block()
    assert batch_block % 128 == 0

    # Batch tile: multiple of 128 (lane width).  If a single step would cover
    # the whole padded batch, split it so v7x's two TensorCores both get work.
    n128 = _round_up(max(n, 1), 128)
    b = min(batch_block, n128)
    if n128 == b and b % 256 == 0:
        b //= 2
    n_pad = _round_up(n, b)
    nb = n_pad // b

    # One fused XLA pass under this jit: pad + relayout to per-block slabs
    # (nb, 196, 20*b) with lane index = position*b + batch, cast to bf16.
    # (Replaces the old f32 transpose HBM round-trip; write is half-width.)
    xp = x if n_pad == n else jnp.pad(x, ((0, n_pad - n), (0, 0), (0, 0)))
    xt = xp.reshape(nb, b, cin, lin).transpose(0, 2, 3, 1)
    xt = xt.reshape(nb, cin, lin * b).astype(jnp.bfloat16)

    weights = _pack_params(p)

    out = pl.pallas_call(
        lenet_kernel,
        out_shape=jax.ShapeDtypeStruct((2, n_pad), jnp.float32),
        grid=(nb,),
        in_specs=[pl.BlockSpec((None, cin, lin * b), lambda i: (i, 0, 0))]
                 + [_const_spec(w.shape) for w in weights],
        out_specs=pl.BlockSpec((2, b), lambda i: (0, i)),
        compiler_params=pltpu.CompilerParams(
            dimension_semantics=("parallel",),
            vmem_limit_bytes=48 * 1024 * 1024),
    )(xt, *weights)

    return jnp.transpose(out[:, :n], (1, 0))                            # (N, 2)


# --------------------------- params & reference ------------------------------

def init_params(key):
    ks = jax.random.split(key, 10)

    def u(k, shape, fan_in):
        bound = 1.0 / np.sqrt(fan_in)
        return jax.random.uniform(k, shape, jnp.float32, -bound, bound)

    return dict(
        w1=u(ks[0], (32, 196, 3), 196 * 3), b1=u(ks[1], (32,), 196 * 3),
        w2=u(ks[2], (48, 32, 3), 32 * 3),   b2=u(ks[3], (48,), 32 * 3),
        w3=u(ks[4], (120, 24, 3), 24 * 3),  b3=u(ks[5], (120,), 24 * 3),
        alpha=jnp.ones((180,), jnp.float32), beta=jnp.zeros((180,), jnp.float32),
        fw1=u(ks[6], (64, 180), 180),       fb1=u(ks[7], (64,), 180),
        fw2=u(ks[8], (2, 64), 64),          fb2=u(ks[9], (2,), 64),
    )


def lenet_ref(x, p):
    # Pure-JAX reference mirroring the PyTorch forward exactly.
    def conv1d(h, w, b):
        lout = h.shape[-1] - 2
        out = b[None, :, None]
        for k in range(3):
            out = out + jnp.einsum('oc,ncl->nol', w[:, :, k], h[:, :, k:k + lout])
        return out

    def pool(h):  # MaxPool2d(2,2) on (N, C, L): pools the last two dims
        nb, c, l = h.shape
        return jnp.max(h.reshape(nb, c // 2, 2, l // 2, 2), axis=(2, 4))

    h = jax.nn.relu(conv1d(x, p['w1'], p['b1']))
    h = jax.nn.relu(conv1d(h, p['w2'], p['b2']))
    h = pool(h)
    h = jax.nn.relu(conv1d(h, p['w3'], p['b3']))
    h = pool(h)
    f = h.reshape(h.shape[0], -1)                                    # (N, 180)
    mean = jnp.mean(f, axis=-1, keepdims=True)
    std = jnp.sqrt(jnp.sum((f - mean) ** 2, axis=-1, keepdims=True) / (f.shape[-1] - 1))
    f = p['alpha'] * (f - mean) / (std + 1e-9) + p['beta']
    f = jax.nn.relu(f @ p['fw1'].T + p['fb1'])
    f = jax.nn.relu(f @ p['fw2'].T + p['fb2'])
    return f


if __name__ == "__main__":
    key = jax.random.PRNGKey(0)
    kx, kp = jax.random.split(key)
    # PyTorch Conv1d(196, ...) input is NCL; L=20 makes the flattened size 180.
    x = jax.random.normal(kx, (2, 196, 20), jnp.float32)
    params = init_params(kp)

    out = jax.block_until_ready(lenet_forward(x, params))

    # Reference on the bf16-rounded input (the kernel streams x as bf16);
    # conv/fc matmuls in the kernel are bf16 with f32 accumulation.
    x_r = x.astype(jnp.bfloat16).astype(jnp.float32)
    ref = jax.block_until_ready(lenet_ref(x_r, params))
    np.testing.assert_allclose(np.asarray(out), np.asarray(ref), rtol=1e-2, atol=1e-2)
    print("KERNEL_OK")
</pallas_src>

<mosaic_0001>
module attributes {stable_mosaic.version = 11 : i64} {
  func.func @lenet_kernel(%arg0: i32, %arg1: memref<1x196x2560xbf16, #tpu.memory_space<vmem>>, %arg2: memref<3x32x196xbf16, #tpu.memory_space<vmem>>, %arg3: memref<32x1xf32, #tpu.memory_space<vmem>>, %arg4: memref<3x48x32xbf16, #tpu.memory_space<vmem>>, %arg5: memref<48x1xf32, #tpu.memory_space<vmem>>, %arg6: memref<3x128x24xbf16, #tpu.memory_space<vmem>>, %arg7: memref<128x1xf32, #tpu.memory_space<vmem>>, %arg8: memref<3x64x1xf32, #tpu.memory_space<vmem>>, %arg9: memref<3x64x1xf32, #tpu.memory_space<vmem>>, %arg10: memref<3x64x64xbf16, #tpu.memory_space<vmem>>, %arg11: memref<64x1xf32, #tpu.memory_space<vmem>>, %arg12: memref<2x64xbf16, #tpu.memory_space<vmem>>, %arg13: memref<2x1xf32, #tpu.memory_space<vmem>>, %arg14: memref<2x128xf32, #tpu.memory_space<vmem>>) attributes {dimension_semantics = [#tpu.dimension_semantics<parallel>], iteration_bounds = array<i64: 1>, scalar_prefetch = 0 : i64, scratch_operands = 0 : i64, tpu.core_type = #tpu.core_type<tc>, window_params = [{transform_indices = @transform_0, window_bounds = array<i64: 1, 196, 2560>}, {pipeline_mode = #tpu.pipeline_mode<synchronous>, transform_indices = @transform_1, window_bounds = array<i64: 3, 32, 196>}, {pipeline_mode = #tpu.pipeline_mode<synchronous>, transform_indices = @transform_2, window_bounds = array<i64: 32, 1>}, {pipeline_mode = #tpu.pipeline_mode<synchronous>, transform_indices = @transform_3, window_bounds = array<i64: 3, 48, 32>}, {pipeline_mode = #tpu.pipeline_mode<synchronous>, transform_indices = @transform_4, window_bounds = array<i64: 48, 1>}, {pipeline_mode = #tpu.pipeline_mode<synchronous>, transform_indices = @transform_5, window_bounds = array<i64: 3, 128, 24>}, {pipeline_mode = #tpu.pipeline_mode<synchronous>, transform_indices = @transform_6, window_bounds = array<i64: 128, 1>}, {pipeline_mode = #tpu.pipeline_mode<synchronous>, transform_indices = @transform_7, window_bounds = array<i64: 3, 64, 1>}, {pipeline_mode = #tpu.pipeline_mode<synchronous>, transform_indices = @transform_8, window_bounds = array<i64: 3, 64, 1>}, {pipeline_mode = #tpu.pipeline_mode<synchronous>, transform_indices = @transform_9, window_bounds = array<i64: 3, 64, 64>}, {pipeline_mode = #tpu.pipeline_mode<synchronous>, transform_indices = @transform_10, window_bounds = array<i64: 64, 1>}, {pipeline_mode = #tpu.pipeline_mode<synchronous>, transform_indices = @transform_11, window_bounds = array<i64: 2, 64>}, {pipeline_mode = #tpu.pipeline_mode<synchronous>, transform_indices = @transform_12, window_bounds = array<i64: 2, 1>}, {transform_indices = @transform_13, window_bounds = array<i64: 2, 128>}]} {
    %c0 = arith.constant 0 : index
    %c0_0 = arith.constant 0 : index
    %c0_1 = arith.constant 0 : index
    %0 = vector.load %arg2[%c0, %c0_0, %c0_1] : memref<3x32x196xbf16, #tpu.memory_space<vmem>>, vector<1x32x196xbf16>
    %1 = vector.shape_cast %0 : vector<1x32x196xbf16> to vector<32x196xbf16>
    %c0_2 = arith.constant 0 : index
    %c0_3 = arith.constant 0 : index
    %c0_4 = arith.constant 0 : index
    %2 = vector.load %arg1[%c0_2, %c0_3, %c0_4] : memref<1x196x2560xbf16, #tpu.memory_space<vmem>>, vector<1x196x2304xbf16>
    %3 = vector.shape_cast %2 : vector<1x196x2304xbf16> to vector<196x2304xbf16>
    %cst = arith.constant dense<0.000000e+00> : vector<32x2304xf32>
    %4 = tpu.matmul %1, %3, %cst {dimension_numbers = #tpu.dot_dimension_numbers<[1], [0], [0], [1], [0, 0, 1, 1], [], []>} : vector<32x196xbf16>, vector<196x2304xbf16>, vector<32x2304xf32> -> vector<32x2304xf32>
    %c1 = arith.constant 1 : index
    %c0_5 = arith.constant 0 : index
    %c0_6 = arith.constant 0 : index
    %5 = vector.load %arg2[%c1, %c0_5, %c0_6] : memref<3x32x196xbf16, #tpu.memory_space<vmem>>, vector<1x32x196xbf16>
    %6 = vector.shape_cast %5 : vector<1x32x196xbf16> to vector<32x196xbf16>
    %c0_7 = arith.constant 0 : index
    %c0_8 = arith.constant 0 : index
    %c128 = arith.constant 128 : index
    %7 = vector.load %arg1[%c0_7, %c0_8, %c128] : memref<1x196x2560xbf16, #tpu.memory_space<vmem>>, vector<1x196x2304xbf16>
    %8 = vector.shape_cast %7 : vector<1x196x2304xbf16> to vector<196x2304xbf16>
    %cst_9 = arith.constant dense<0.000000e+00> : vector<32x2304xf32>
    %9 = tpu.matmul %6, %8, %cst_9 {dimension_numbers = #tpu.dot_dimension_numbers<[1], [0], [0], [1], [0, 0, 1, 1], [], []>} : vector<32x196xbf16>, vector<196x2304xbf16>, vector<32x2304xf32> -> vector<32x2304xf32>
    %10 = arith.addf %4, %9 : vector<32x2304xf32>
    %c2 = arith.constant 2 : index
    %c0_10 = arith.constant 0 : index
    %c0_11 = arith.constant 0 : index
    %11 = vector.load %arg2[%c2, %c0_10, %c0_11] : memref<3x32x196xbf16, #tpu.memory_space<vmem>>, vector<1x32x196xbf16>
    %12 = vector.shape_cast %11 : vector<1x32x196xbf16> to vector<32x196xbf16>
    %c0_12 = arith.constant 0 : index
    %c0_13 = arith.constant 0 : index
    %c256 = arith.constant 256 : index
    %13 = vector.load %arg1[%c0_12, %c0_13, %c256] : memref<1x196x2560xbf16, #tpu.memory_space<vmem>>, vector<1x196x2304xbf16>
    %14 = vector.shape_cast %13 : vector<1x196x2304xbf16> to vector<196x2304xbf16>
    %cst_14 = arith.constant dense<0.000000e+00> : vector<32x2304xf32>
    %15 = tpu.matmul %12, %14, %cst_14 {dimension_numbers = #tpu.dot_dimension_numbers<[1], [0], [0], [1], [0, 0, 1, 1], [], []>} : vector<32x196xbf16>, vector<196x2304xbf16>, vector<32x2304xf32> -> vector<32x2304xf32>
    %16 = arith.addf %10, %15 : vector<32x2304xf32>
    %c0_15 = arith.constant 0 : index
    %c0_16 = arith.constant 0 : index
    %17 = vector.load %arg3[%c0_15, %c0_16] : memref<32x1xf32, #tpu.memory_space<vmem>>, vector<32x1xf32>
    %18 = vector.broadcast %17 : vector<32x1xf32> to vector<32x2304xf32>
    %19 = arith.addf %16, %18 : vector<32x2304xf32>
    %cst_17 = arith.constant 0.000000e+00 : f32
    %20 = vector.broadcast %cst_17 : f32 to vector<32x2304xf32>
    %21 = arith.maximumf %19, %20 : vector<32x2304xf32>
    %22 = arith.truncf %21 : vector<32x2304xf32> to vector<32x2304xbf16>
    %c0_18 = arith.constant 0 : index
    %c0_19 = arith.constant 0 : index
    %c0_20 = arith.constant 0 : index
    %23 = vector.load %arg4[%c0_18, %c0_19, %c0_20] : memref<3x48x32xbf16, #tpu.memory_space<vmem>>, vector<1x48x32xbf16>
    %24 = vector.shape_cast %23 : vector<1x48x32xbf16> to vector<48x32xbf16>
    %25 = vector.extract_strided_slice %22 {offsets = [0, 0], sizes = [32, 2048], strides = [1, 1]} : vector<32x2304xbf16> to vector<32x2048xbf16>
    %cst_21 = arith.constant dense<0.000000e+00> : vector<48x2048xf32>
    %26 = tpu.matmul %24, %25, %cst_21 {dimension_numbers = #tpu.dot_dimension_numbers<[1], [0], [0], [1], [0, 0, 1, 1], [], []>} : vector<48x32xbf16>, vector<32x2048xbf16>, vector<48x2048xf32> -> vector<48x2048xf32>
    %c1_22 = arith.constant 1 : index
    %c0_23 = arith.constant 0 : index
    %c0_24 = arith.constant 0 : index
    %27 = vector.load %arg4[%c1_22, %c0_23, %c0_24] : memref<3x48x32xbf16, #tpu.memory_space<vmem>>, vector<1x48x32xbf16>
    %28 = vector.shape_cast %27 : vector<1x48x32xbf16> to vector<48x32xbf16>
    %29 = vector.extract_strided_slice %22 {offsets = [0, 128], sizes = [32, 2048], strides = [1, 1]} : vector<32x2304xbf16> to vector<32x2048xbf16>
    %cst_25 = arith.constant dense<0.000000e+00> : vector<48x2048xf32>
    %30 = tpu.matmul %28, %29, %cst_25 {dimension_numbers = #tpu.dot_dimension_numbers<[1], [0], [0], [1], [0, 0, 1, 1], [], []>} : vector<48x32xbf16>, vector<32x2048xbf16>, vector<48x2048xf32> -> vector<48x2048xf32>
    %31 = arith.addf %26, %30 : vector<48x2048xf32>
    %c2_26 = arith.constant 2 : index
    %c0_27 = arith.constant 0 : index
    %c0_28 = arith.constant 0 : index
    %32 = vector.load %arg4[%c2_26, %c0_27, %c0_28] : memref<3x48x32xbf16, #tpu.memory_space<vmem>>, vector<1x48x32xbf16>
    %33 = vector.shape_cast %32 : vector<1x48x32xbf16> to vector<48x32xbf16>
    %34 = vector.extract_strided_slice %22 {offsets = [0, 256], sizes = [32, 2048], strides = [1, 1]} : vector<32x2304xbf16> to vector<32x2048xbf16>
    %cst_29 = arith.constant dense<0.000000e+00> : vector<48x2048xf32>
    %35 = tpu.matmul %33, %34, %cst_29 {dimension_numbers = #tpu.dot_dimension_numbers<[1], [0], [0], [1], [0, 0, 1, 1], [], []>} : vector<48x32xbf16>, vector<32x2048xbf16>, vector<48x2048xf32> -> vector<48x2048xf32>
    %36 = arith.addf %31, %35 : vector<48x2048xf32>
    %c0_30 = arith.constant 0 : index
    %c0_31 = arith.constant 0 : index
    %37 = vector.load %arg5[%c0_30, %c0_31] : memref<48x1xf32, #tpu.memory_space<vmem>>, vector<48x1xf32>
    %38 = vector.broadcast %37 : vector<48x1xf32> to vector<48x2048xf32>
    %39 = arith.addf %36, %38 : vector<48x2048xf32>
    %cst_32 = arith.constant 0.000000e+00 : f32
    %40 = vector.broadcast %cst_32 : f32 to vector<48x2048xf32>
    %41 = arith.maximumf %39, %40 : vector<48x2048xf32>
    %42 = vector.extract_strided_slice %41 {offsets = [0, 0], sizes = [24, 2048], strides = [1, 1]} : vector<48x2048xf32> to vector<24x2048xf32>
    %43 = vector.extract_strided_slice %41 {offsets = [24, 0], sizes = [24, 2048], strides = [1, 1]} : vector<48x2048xf32> to vector<24x2048xf32>
    %44 = arith.maximumf %42, %43 : vector<24x2048xf32>
    %45 = vector.extract_strided_slice %44 {offsets = [0, 0], sizes = [24, 128], strides = [1, 1]} : vector<24x2048xf32> to vector<24x128xf32>
    %46 = vector.extract_strided_slice %44 {offsets = [0, 128], sizes = [24, 128], strides = [1, 1]} : vector<24x2048xf32> to vector<24x128xf32>
    %47 = arith.maximumf %45, %46 : vector<24x128xf32>
    %48 = vector.extract_strided_slice %44 {offsets = [0, 256], sizes = [24, 128], strides = [1, 1]} : vector<24x2048xf32> to vector<24x128xf32>
    %49 = vector.extract_strided_slice %44 {offsets = [0, 384], sizes = [24, 128], strides = [1, 1]} : vector<24x2048xf32> to vector<24x128xf32>
    %50 = arith.maximumf %48, %49 : vector<24x128xf32>
    %51 = vector.extract_strided_slice %44 {offsets = [0, 512], sizes = [24, 128], strides = [1, 1]} : vector<24x2048xf32> to vector<24x128xf32>
    %52 = vector.extract_strided_slice %44 {offsets = [0, 640], sizes = [24, 128], strides = [1, 1]} : vector<24x2048xf32> to vector<24x128xf32>
    %53 = arith.maximumf %51, %52 : vector<24x128xf32>
    %54 = vector.extract_strided_slice %44 {offsets = [0, 768], sizes = [24, 128], strides = [1, 1]} : vector<24x2048xf32> to vector<24x128xf32>
    %55 = vector.extract_strided_slice %44 {offsets = [0, 896], sizes = [24, 128], strides = [1, 1]} : vector<24x2048xf32> to vector<24x128xf32>
    %56 = arith.maximumf %54, %55 : vector<24x128xf32>
    %57 = vector.extract_strided_slice %44 {offsets = [0, 1024], sizes = [24, 128], strides = [1, 1]} : vector<24x2048xf32> to vector<24x128xf32>
    %58 = vector.extract_strided_slice %44 {offsets = [0, 1152], sizes = [24, 128], strides = [1, 1]} : vector<24x2048xf32> to vector<24x128xf32>
    %59 = arith.maximumf %57, %58 : vector<24x128xf32>
    %60 = vector.extract_strided_slice %44 {offsets = [0, 1280], sizes = [24, 128], strides = [1, 1]} : vector<24x2048xf32> to vector<24x128xf32>
    %61 = vector.extract_strided_slice %44 {offsets = [0, 1408], sizes = [24, 128], strides = [1, 1]} : vector<24x2048xf32> to vector<24x128xf32>
    %62 = arith.maximumf %60, %61 : vector<24x128xf32>
    %63 = vector.extract_strided_slice %44 {offsets = [0, 1536], sizes = [24, 128], strides = [1, 1]} : vector<24x2048xf32> to vector<24x128xf32>
    %64 = vector.extract_strided_slice %44 {offsets = [0, 1664], sizes = [24, 128], strides = [1, 1]} : vector<24x2048xf32> to vector<24x128xf32>
    %65 = arith.maximumf %63, %64 : vector<24x128xf32>
    %66 = vector.extract_strided_slice %44 {offsets = [0, 1792], sizes = [24, 128], strides = [1, 1]} : vector<24x2048xf32> to vector<24x128xf32>
    %67 = vector.extract_strided_slice %44 {offsets = [0, 1920], sizes = [24, 128], strides = [1, 1]} : vector<24x2048xf32> to vector<24x128xf32>
    %68 = arith.maximumf %66, %67 : vector<24x128xf32>
    %69 = tpu.concatenate %47, %50, %53, %56, %59, %62, %65, %68 in 1 : vector<24x128xf32>, vector<24x128xf32>, vector<24x128xf32>, vector<24x128xf32>, vector<24x128xf32>, vector<24x128xf32>, vector<24x128xf32>, vector<24x128xf32> -> vector<24x1024xf32>
    %70 = arith.truncf %69 : vector<24x1024xf32> to vector<24x1024xbf16>
    %c0_33 = arith.constant 0 : index
    %c0_34 = arith.constant 0 : index
    %c0_35 = arith.constant 0 : index
    %71 = vector.load %arg6[%c0_33, %c0_34, %c0_35] : memref<3x128x24xbf16, #tpu.memory_space<vmem>>, vector<1x128x24xbf16>
    %72 = vector.shape_cast %71 : vector<1x128x24xbf16> to vector<128x24xbf16>
    %73 = vector.extract_strided_slice %70 {offsets = [0, 0], sizes = [24, 768], strides = [1, 1]} : vector<24x1024xbf16> to vector<24x768xbf16>
    %cst_36 = arith.constant dense<0.000000e+00> : vector<128x768xf32>
    %74 = tpu.matmul %72, %73, %cst_36 {dimension_numbers = #tpu.dot_dimension_numbers<[1], [0], [0], [1], [0, 0, 1, 1], [], []>} : vector<128x24xbf16>, vector<24x768xbf16>, vector<128x768xf32> -> vector<128x768xf32>
    %c1_37 = arith.constant 1 : index
    %c0_38 = arith.constant 0 : index
    %c0_39 = arith.constant 0 : index
    %75 = vector.load %arg6[%c1_37, %c0_38, %c0_39] : memref<3x128x24xbf16, #tpu.memory_space<vmem>>, vector<1x128x24xbf16>
    %76 = vector.shape_cast %75 : vector<1x128x24xbf16> to vector<128x24xbf16>
    %77 = vector.extract_strided_slice %70 {offsets = [0, 128], sizes = [24, 768], strides = [1, 1]} : vector<24x1024xbf16> to vector<24x768xbf16>
    %cst_40 = arith.constant dense<0.000000e+00> : vector<128x768xf32>
    %78 = tpu.matmul %76, %77, %cst_40 {dimension_numbers = #tpu.dot_dimension_numbers<[1], [0], [0], [1], [0, 0, 1, 1], [], []>} : vector<128x24xbf16>, vector<24x768xbf16>, vector<128x768xf32> -> vector<128x768xf32>
    %79 = arith.addf %74, %78 : vector<128x768xf32>
    %c2_41 = arith.constant 2 : index
    %c0_42 = arith.constant 0 : index
    %c0_43 = arith.constant 0 : index
    %80 = vector.load %arg6[%c2_41, %c0_42, %c0_43] : memref<3x128x24xbf16, #tpu.memory_space<vmem>>, vector<1x128x24xbf16>
    %81 = vector.shape_cast %80 : vector<1x128x24xbf16> to vector<128x24xbf16>
    %82 = vector.extract_strided_slice %70 {offsets = [0, 256], sizes = [24, 768], strides = [1, 1]} : vector<24x1024xbf16> to vector<24x768xbf16>
    %cst_44 = arith.constant dense<0.000000e+00> : vector<128x768xf32>
    %83 = tpu.matmul %81, %82, %cst_44 {dimension_numbers = #tpu.dot_dimension_numbers<[1], [0], [0], [1], [0, 0, 1, 1], [], []>} : vector<128x24xbf16>, vector<24x768xbf16>, vector<128x768xf32> -> vector<128x768xf32>
    %84 = arith.addf %79, %83 : vector<128x768xf32>
    %c0_45 = arith.constant 0 : index
    %c0_46 = arith.constant 0 : index
    %85 = vector.load %arg7[%c0_45, %c0_46] : memref<128x1xf32, #tpu.memory_space<vmem>>, vector<128x1xf32>
    %86 = vector.broadcast %85 : vector<128x1xf32> to vector<128x768xf32>
    %87 = arith.addf %84, %86 : vector<128x768xf32>
    %cst_47 = arith.constant 0.000000e+00 : f32
    %88 = vector.broadcast %cst_47 : f32 to vector<128x768xf32>
    %89 = arith.maximumf %87, %88 : vector<128x768xf32>
    %90 = vector.extract_strided_slice %89 {offsets = [0, 0], sizes = [64, 768], strides = [1, 1]} : vector<128x768xf32> to vector<64x768xf32>
    %91 = vector.extract_strided_slice %89 {offsets = [64, 0], sizes = [64, 768], strides = [1, 1]} : vector<128x768xf32> to vector<64x768xf32>
    %92 = arith.maximumf %90, %91 : vector<64x768xf32>
    %93 = vector.extract_strided_slice %92 {offsets = [0, 0], sizes = [64, 128], strides = [1, 1]} : vector<64x768xf32> to vector<64x128xf32>
    %94 = vector.extract_strided_slice %92 {offsets = [0, 128], sizes = [64, 128], strides = [1, 1]} : vector<64x768xf32> to vector<64x128xf32>
    %95 = arith.maximumf %93, %94 : vector<64x128xf32>
    %96 = vector.extract_strided_slice %92 {offsets = [0, 256], sizes = [64, 128], strides = [1, 1]} : vector<64x768xf32> to vector<64x128xf32>
    %97 = vector.extract_strided_slice %92 {offsets = [0, 384], sizes = [64, 128], strides = [1, 1]} : vector<64x768xf32> to vector<64x128xf32>
    %98 = arith.maximumf %96, %97 : vector<64x128xf32>
    %99 = vector.extract_strided_slice %92 {offsets = [0, 512], sizes = [64, 128], strides = [1, 1]} : vector<64x768xf32> to vector<64x128xf32>
    %100 = vector.extract_strided_slice %92 {offsets = [0, 640], sizes = [64, 128], strides = [1, 1]} : vector<64x768xf32> to vector<64x128xf32>
    %101 = arith.maximumf %99, %100 : vector<64x128xf32>
    %102 = arith.addf %95, %98 : vector<64x128xf32>
    %103 = arith.addf %102, %101 : vector<64x128xf32>
    %cst_48 = arith.constant dense<0.000000e+00> : vector<128xf32>
    %104 = vector.multi_reduction <add>, %103, %cst_48 [0] : vector<64x128xf32> to vector<128xf32>
    %105 = vector.shape_cast %104 : vector<128xf32> to vector<1x128xf32>
    %cst_49 = arith.constant 0.00555555569 : f32
    %106 = vector.broadcast %cst_49 : f32 to vector<1x128xf32>
    %107 = arith.mulf %105, %106 : vector<1x128xf32>
    %108 = vector.broadcast %107 : vector<1x128xf32> to vector<64x128xf32>
    %109 = arith.subf %95, %108 : vector<64x128xf32>
    %110 = vector.broadcast %107 : vector<1x128xf32> to vector<64x128xf32>
    %111 = arith.subf %98, %110 : vector<64x128xf32>
    %112 = vector.broadcast %107 : vector<1x128xf32> to vector<64x128xf32>
    %113 = arith.subf %101, %112 : vector<64x128xf32>
    %114 = arith.mulf %109, %109 : vector<64x128xf32>
    %115 = arith.mulf %111, %111 : vector<64x128xf32>
    %116 = arith.addf %114, %115 : vector<64x128xf32>
    %117 = arith.mulf %113, %113 : vector<64x128xf32>
    %118 = arith.addf %116, %117 : vector<64x128xf32>
    %cst_50 = arith.constant dense<0.000000e+00> : vector<128xf32>
    %119 = vector.multi_reduction <add>, %118, %cst_50 [0] : vector<64x128xf32> to vector<128xf32>
    %120 = vector.shape_cast %119 : vector<128xf32> to vector<1x128xf32>
    %cst_51 = arith.constant 1.200000e+01 : f32
    %121 = vector.broadcast %cst_51 : f32 to vector<1x128xf32>
    %122 = arith.mulf %121, %107 : vector<1x128xf32>
    %123 = arith.mulf %122, %107 : vector<1x128xf32>
    %124 = arith.subf %120, %123 : vector<1x128xf32>
    %cst_52 = arith.constant 0.00558659201 : f32
    %125 = vector.broadcast %cst_52 : f32 to vector<1x128xf32>
    %126 = arith.mulf %124, %125 : vector<1x128xf32>
    %cst_53 = arith.constant 0.000000e+00 : f32
    %127 = vector.broadcast %cst_53 : f32 to vector<1x128xf32>
    %128 = arith.maximumf %126, %127 : vector<1x128xf32>
    %129 = math.sqrt %128 : vector<1x128xf32>
    %cst_54 = arith.constant 9.99999971E-10 : f32
    %130 = vector.broadcast %cst_54 : f32 to vector<1x128xf32>
    %131 = arith.addf %129, %130 : vector<1x128xf32>
    %cst_55 = arith.constant 1.000000e+00 : f32
    %132 = vector.broadcast %cst_55 : f32 to vector<1x128xf32>
    %133 = arith.divf %132, %131 : vector<1x128xf32>
    %c0_56 = arith.constant 0 : index
    %c0_57 = arith.constant 0 : index
    %134 = vector.load %arg11[%c0_56, %c0_57] : memref<64x1xf32, #tpu.memory_space<vmem>>, vector<64x1xf32>
    %c0_58 = arith.constant 0 : index
    %c0_59 = arith.constant 0 : index
    %c0_60 = arith.constant 0 : index
    %135 = vector.load %arg8[%c0_58, %c0_59, %c0_60] : memref<3x64x1xf32, #tpu.memory_space<vmem>>, vector<1x64x1xf32>
    %136 = vector.shape_cast %135 : vector<1x64x1xf32> to vector<64x1xf32>
    %137 = vector.broadcast %136 : vector<64x1xf32> to vector<64x128xf32>
    %138 = arith.mulf %137, %109 : vector<64x128xf32>
    %139 = vector.broadcast %133 : vector<1x128xf32> to vector<64x128xf32>
    %140 = arith.mulf %138, %139 : vector<64x128xf32>
    %c0_61 = arith.constant 0 : index
    %c0_62 = arith.constant 0 : index
    %c0_63 = arith.constant 0 : index
    %141 = vector.load %arg9[%c0_61, %c0_62, %c0_63] : memref<3x64x1xf32, #tpu.memory_space<vmem>>, vector<1x64x1xf32>
    %142 = vector.shape_cast %141 : vector<1x64x1xf32> to vector<64x1xf32>
    %143 = vector.broadcast %142 : vector<64x1xf32> to vector<64x128xf32>
    %144 = arith.addf %140, %143 : vector<64x128xf32>
    %145 = arith.truncf %144 : vector<64x128xf32> to vector<64x128xbf16>
    %c0_64 = arith.constant 0 : index
    %c0_65 = arith.constant 0 : index
    %c0_66 = arith.constant 0 : index
    %146 = vector.load %arg10[%c0_64, %c0_65, %c0_66] : memref<3x64x64xbf16, #tpu.memory_space<vmem>>, vector<1x64x64xbf16>
    %147 = vector.shape_cast %146 : vector<1x64x64xbf16> to vector<64x64xbf16>
    %cst_67 = arith.constant dense<0.000000e+00> : vector<64x128xf32>
    %148 = tpu.matmul %147, %145, %cst_67 {dimension_numbers = #tpu.dot_dimension_numbers<[1], [0], [0], [1], [0, 0, 1, 1], [], []>} : vector<64x64xbf16>, vector<64x128xbf16>, vector<64x128xf32> -> vector<64x128xf32>
    %149 = vector.broadcast %134 : vector<64x1xf32> to vector<64x128xf32>
    %150 = arith.addf %149, %148 : vector<64x128xf32>
    %c1_68 = arith.constant 1 : index
    %c0_69 = arith.constant 0 : index
    %c0_70 = arith.constant 0 : index
    %151 = vector.load %arg8[%c1_68, %c0_69, %c0_70] : memref<3x64x1xf32, #tpu.memory_space<vmem>>, vector<1x64x1xf32>
    %152 = vector.shape_cast %151 : vector<1x64x1xf32> to vector<64x1xf32>
    %153 = vector.broadcast %152 : vector<64x1xf32> to vector<64x128xf32>
    %154 = arith.mulf %153, %111 : vector<64x128xf32>
    %155 = vector.broadcast %133 : vector<1x128xf32> to vector<64x128xf32>
    %156 = arith.mulf %154, %155 : vector<64x128xf32>
    %c1_71 = arith.constant 1 : index
    %c0_72 = arith.constant 0 : index
    %c0_73 = arith.constant 0 : index
    %157 = vector.load %arg9[%c1_71, %c0_72, %c0_73] : memref<3x64x1xf32, #tpu.memory_space<vmem>>, vector<1x64x1xf32>
    %158 = vector.shape_cast %157 : vector<1x64x1xf32> to vector<64x1xf32>
    %159 = vector.broadcast %158 : vector<64x1xf32> to vector<64x128xf32>
    %160 = arith.addf %156, %159 : vector<64x128xf32>
    %161 = arith.truncf %160 : vector<64x128xf32> to vector<64x128xbf16>
    %c1_74 = arith.constant 1 : index
    %c0_75 = arith.constant 0 : index
    %c0_76 = arith.constant 0 : index
    %162 = vector.load %arg10[%c1_74, %c0_75, %c0_76] : memref<3x64x64xbf16, #tpu.memory_space<vmem>>, vector<1x64x64xbf16>
    %163 = vector.shape_cast %162 : vector<1x64x64xbf16> to vector<64x64xbf16>
    %cst_77 = arith.constant dense<0.000000e+00> : vector<64x128xf32>
    %164 = tpu.matmul %163, %161, %cst_77 {dimension_numbers = #tpu.dot_dimension_numbers<[1], [0], [0], [1], [0, 0, 1, 1], [], []>} : vector<64x64xbf16>, vector<64x128xbf16>, vector<64x128xf32> -> vector<64x128xf32>
    %165 = arith.addf %150, %164 : vector<64x128xf32>
    %c2_78 = arith.constant 2 : index
    %c0_79 = arith.constant 0 : index
    %c0_80 = arith.constant 0 : index
    %166 = vector.load %arg8[%c2_78, %c0_79, %c0_80] : memref<3x64x1xf32, #tpu.memory_space<vmem>>, vector<1x64x1xf32>
    %167 = vector.shape_cast %166 : vector<1x64x1xf32> to vector<64x1xf32>
    %168 = vector.broadcast %167 : vector<64x1xf32> to vector<64x128xf32>
    %169 = arith.mulf %168, %113 : vector<64x128xf32>
    %170 = vector.broadcast %133 : vector<1x128xf32> to vector<64x128xf32>
    %171 = arith.mulf %169, %170 : vector<64x128xf32>
    %c2_81 = arith.constant 2 : index
    %c0_82 = arith.constant 0 : index
    %c0_83 = arith.constant 0 : index
    %172 = vector.load %arg9[%c2_81, %c0_82, %c0_83] : memref<3x64x1xf32, #tpu.memory_space<vmem>>, vector<1x64x1xf32>
    %173 = vector.shape_cast %172 : vector<1x64x1xf32> to vector<64x1xf32>
    %174 = vector.broadcast %173 : vector<64x1xf32> to vector<64x128xf32>
    %175 = arith.addf %171, %174 : vector<64x128xf32>
    %176 = arith.truncf %175 : vector<64x128xf32> to vector<64x128xbf16>
    %c2_84 = arith.constant 2 : index
    %c0_85 = arith.constant 0 : index
    %c0_86 = arith.constant 0 : index
    %177 = vector.load %arg10[%c2_84, %c0_85, %c0_86] : memref<3x64x64xbf16, #tpu.memory_space<vmem>>, vector<1x64x64xbf16>
    %178 = vector.shape_cast %177 : vector<1x64x64xbf16> to vector<64x64xbf16>
    %cst_87 = arith.constant dense<0.000000e+00> : vector<64x128xf32>
    %179 = tpu.matmul %178, %176, %cst_87 {dimension_numbers = #tpu.dot_dimension_numbers<[1], [0], [0], [1], [0, 0, 1, 1], [], []>} : vector<64x64xbf16>, vector<64x128xbf16>, vector<64x128xf32> -> vector<64x128xf32>
    %180 = arith.addf %165, %179 : vector<64x128xf32>
    %cst_88 = arith.constant 0.000000e+00 : f32
    %181 = vector.broadcast %cst_88 : f32 to vector<64x128xf32>
    %182 = arith.maximumf %180, %181 : vector<64x128xf32>
    %183 = arith.truncf %182 : vector<64x128xf32> to vector<64x128xbf16>
    %c0_89 = arith.constant 0 : index
    %c0_90 = arith.constant 0 : index
    %184 = vector.load %arg12[%c0_89, %c0_90] : memref<2x64xbf16, #tpu.memory_space<vmem>>, vector<2x64xbf16>
    %cst_91 = arith.constant dense<0.000000e+00> : vector<2x128xf32>
    %185 = tpu.matmul %184, %183, %cst_91 {dimension_numbers = #tpu.dot_dimension_numbers<[1], [0], [0], [1], [0, 0, 1, 1], [], []>} : vector<2x64xbf16>, vector<64x128xbf16>, vector<2x128xf32> -> vector<2x128xf32>
    %c0_92 = arith.constant 0 : index
    %c0_93 = arith.constant 0 : index
    %186 = vector.load %arg13[%c0_92, %c0_93] : memref<2x1xf32, #tpu.memory_space<vmem>>, vector<2x1xf32>
    %187 = vector.broadcast %186 : vector<2x1xf32> to vector<2x128xf32>
    %188 = arith.addf %185, %187 : vector<2x128xf32>
    %cst_94 = arith.constant 0.000000e+00 : f32
    %189 = vector.broadcast %cst_94 : f32 to vector<2x128xf32>
    %190 = arith.maximumf %188, %189 : vector<2x128xf32>
    %c0_95 = arith.constant 0 : index
    %c0_96 = arith.constant 0 : index
    %191 = vector.load %arg14[%c0_95, %c0_96] : memref<2x128xf32, #tpu.memory_space<vmem>>, vector<2x128xf32>
    tpu.vector_store %arg14[%c0_95, %c0_96], %190 {strides = array<i32>} : memref<2x128xf32, #tpu.memory_space<vmem>>, vector<2x128xf32>,
    return
  }
  func.func @transform_0(%arg0: i32) -> (i32, i32, i32) {
    %c0_i32 = arith.constant 0 : i32
    %c0_i32_0 = arith.constant 0 : i32
    %c0_i32_1 = arith.constant 0 : i32
    return %arg0, %c0_i32, %c0_i32_0 : i32, i32, i32
  }
  func.func @transform_1(%arg0: i32) -> (i32, i32, i32) {
    %c0_i32 = arith.constant 0 : i32
    %c0_i32_0 = arith.constant 0 : i32
    %c0_i32_1 = arith.constant 0 : i32
    %c0_i32_2 = arith.constant 0 : i32
    return %c0_i32, %c0_i32_0, %c0_i32_1 : i32, i32, i32
  }
  func.func @transform_2(%arg0: i32) -> (i32, i32) {
    %c0_i32 = arith.constant 0 : i32
    %c0_i32_0 = arith.constant 0 : i32
    %c0_i32_1 = arith.constant 0 : i32
    return %c0_i32, %c0_i32_0 : i32, i32
  }
  func.func @transform_3(%arg0: i32) -> (i32, i32, i32) {
    %c0_i32 = arith.constant 0 : i32
    %c0_i32_0 = arith.constant 0 : i32
    %c0_i32_1 = arith.constant 0 : i32
    %c0_i32_2 = arith.constant 0 : i32
    return %c0_i32, %c0_i32_0, %c0_i32_1 : i32, i32, i32
  }
  func.func @transform_4(%arg0: i32) -> (i32, i32) {
    %c0_i32 = arith.constant 0 : i32
    %c0_i32_0 = arith.constant 0 : i32
    %c0_i32_1 = arith.constant 0 : i32
    return %c0_i32, %c0_i32_0 : i32, i32
  }
  func.func @transform_5(%arg0: i32) -> (i32, i32, i32) {
    %c0_i32 = arith.constant 0 : i32
    %c0_i32_0 = arith.constant 0 : i32
    %c0_i32_1 = arith.constant 0 : i32
    %c0_i32_2 = arith.constant 0 : i32
    return %c0_i32, %c0_i32_0, %c0_i32_1 : i32, i32, i32
  }
  func.func @transform_6(%arg0: i32) -> (i32, i32) {
    %c0_i32 = arith.constant 0 : i32
    %c0_i32_0 = arith.constant 0 : i32
    %c0_i32_1 = arith.constant 0 : i32
    return %c0_i32, %c0_i32_0 : i32, i32
  }
  func.func @transform_7(%arg0: i32) -> (i32, i32, i32) {
    %c0_i32 = arith.constant 0 : i32
    %c0_i32_0 = arith.constant 0 : i32
    %c0_i32_1 = arith.constant 0 : i32
    %c0_i32_2 = arith.constant 0 : i32
    return %c0_i32, %c0_i32_0, %c0_i32_1 : i32, i32, i32
  }
  func.func @transform_8(%arg0: i32) -> (i32, i32, i32) {
    %c0_i32 = arith.constant 0 : i32
    %c0_i32_0 = arith.constant 0 : i32
    %c0_i32_1 = arith.constant 0 : i32
    %c0_i32_2 = arith.constant 0 : i32
    return %c0_i32, %c0_i32_0, %c0_i32_1 : i32, i32, i32
  }
  func.func @transform_9(%arg0: i32) -> (i32, i32, i32) {
    %c0_i32 = arith.constant 0 : i32
    %c0_i32_0 = arith.constant 0 : i32
    %c0_i32_1 = arith.constant 0 : i32
    %c0_i32_2 = arith.constant 0 : i32
    return %c0_i32, %c0_i32_0, %c0_i32_1 : i32, i32, i32
  }
  func.func @transform_10(%arg0: i32) -> (i32, i32) {
    %c0_i32 = arith.constant 0 : i32
    %c0_i32_0 = arith.constant 0 : i32
    %c0_i32_1 = arith.constant 0 : i32
    return %c0_i32, %c0_i32_0 : i32, i32
  }
  func.func @transform_11(%arg0: i32) -> (i32, i32) {
    %c0_i32 = arith.constant 0 : i32
    %c0_i32_0 = arith.constant 0 : i32
    %c0_i32_1 = arith.constant 0 : i32
    return %c0_i32, %c0_i32_0 : i32, i32
  }
  func.func @transform_12(%arg0: i32) -> (i32, i32) {
    %c0_i32 = arith.constant 0 : i32
    %c0_i32_0 = arith.constant 0 : i32
    %c0_i32_1 = arith.constant 0 : i32
    return %c0_i32, %c0_i32_0 : i32, i32
  }
  func.func @transform_13(%arg0: i32) -> (i32, i32) {
    %c0_i32 = arith.constant 0 : i32
    %c0_i32_0 = arith.constant 0 : i32
    return %c0_i32, %arg0 : i32, i32
  }
}

</mosaic_0001>

<bundles_post_ra>
// kernel: lenet_forward.1
= control target key start
LH: loop header
LB: loop body
LE: loop exit
PB: predicated region body
PF: predicated region fallthrough
CT: control target
= control target key end

     0   :  { %vm1647_vm0 = vcmask 556032   ;;  %vm1654_vm1 = vcmask 1041408   ;;  %vm6080_vm2 = vcmask 261120   ;;  %vm8167_vm3 = vcmask 1043456   ;;  %s18080_s0 = inlined_call_operand.vmem [shape: bf16[1,196,2560], index: 0, kind: input, shape index: {}]   ;;  %s18081_s1 = inlined_call_operand.vmem [shape: bf16[3,32,196], index: 1, kind: input, shape index: {}]   ;;  %s18082_s2 = inlined_call_operand.vmem [shape: f32[32,1], index: 2, kind: input, shape index: {}]   ;;  %s18083_s4 = inlined_call_operand.vmem [shape: f32[48,1], index: 4, kind: input, shape index: {}]   ;;  %s18084_s6 = inlined_call_operand.vmem [shape: f32[128,1], index: 6, kind: input, shape index: {}]   ;;  %s18085_s7 = inlined_call_operand.vmem [shape: f32[3,64,1], index: 7, kind: input, shape index: {}]   ;;  %s18086_s8 = inlined_call_operand.vmem [shape: f32[3,64,1], index: 8, kind: input, shape index: {}]   ;;  %s18087_s10 = inlined_call_operand.vmem [shape: f32[64,1], index: 10, kind: input, shape index: {}]   ;;  %s18088_s12 = inlined_call_operand.vmem [shape: f32[2,1], index: 12, kind: input, shape index: {}]   ;;  %s18089_s3 = inlined_call_operand.vmem [shape: bf16[3,48,32], index: 3, kind: input, shape index: {}]   ;;  %s18090_s5 = inlined_call_operand.vmem [shape: bf16[3,128,24], index: 5, kind: input, shape index: {}]   ;;  %s18091_s9 = inlined_call_operand.vmem [shape: bf16[3,64,64], index: 9, kind: input, shape index: {}]   ;;  %s18092_s11 = inlined_call_operand.vmem [shape: bf16[2,64], index: 11, kind: input, shape index: {}]   ;;  %s18093_s13 = inlined_call_operand.vmem [shape: f32[2,128], index: 13, kind: output, shape index: {}]  }
   0x1   :  { %v12522_v0 = vld [vmem:[%s18080_s0 + $0x8] ss:$80 sps:$4 sm:$0xff]   ;;  %v12524_v1 = vld [vmem:[%s18080_s0 + $0x10] ss:$80 sps:$4 sm:$0xff]   ;;  %v12526_v2 = vld [vmem:[%s18080_s0 + $0x4] ss:$80 sps:$4 sm:$0xff]  }
   0x2   :  { %1709 = vmatprep.subr.bf16.mxu0 %v12522_v0  ;;  %v12527_v3 = vld [vmem:[%s18080_s0 + $0xc] ss:$80 sps:$4 sm:$0xff]   ;;  %1762 = vmatprep.subr.bf16.mxu1 %v12524_v1  ;;  %v12528_v4 = vld [vmem:[%s18080_s0 + $0xa8] ss:$80 sps:$4 sm:$0xff]   ;;  %v12530_v5 = vld [vmem:[%s18080_s0 + $0xb0] ss:$80 sps:$4 sm:$0xff]  }
   0x3   :  { %1710 = vmatpush1.bf16.msra.mxu0 %v12526_v2  ;;  %1763 = vmatpush1.bf16.msra.mxu1 %v12527_v3  ;;  %v12532_v6 = vld [vmem:[%s18080_s0 + $0xa4] ss:$80 sps:$4 sm:$0xff]   ;;  %v12533_v7 = vld [vmem:[%s18080_s0 + $0xac] ss:$80 sps:$4 sm:$0xff]   ;;  %v12534_v8 = vld [vmem:[%s18080_s0 + $0x148] ss:$80 sps:$4 sm:$0xff]  }
   0x4   :  { %1711 = vmatprep.subr.bf16.mxu0 %v12528_v4  ;;  %1764 = vmatprep.subr.bf16.mxu1 %v12530_v5  ;;  %v12536_v9 = vld [vmem:[%s18080_s0 + $0x150] ss:$80 sps:$4 sm:$0xff]   ;;  %v12538_v10 = vld [vmem:[%s18080_s0 + $0x144] ss:$80 sps:$4 sm:$0xff]   ;;  %v12539_v11 = vld [vmem:[%s18080_s0 + $0x14c] ss:$80 sps:$4 sm:$0xff]  }
   0x5   :  { %v12540_v12 = vld [vmem:[%s18080_s0 + $0x1e8] ss:$80 sps:$4 sm:$0xff]   ;;  %v12542_v13 = vld [vmem:[%s18080_s0 + $0x1f0] ss:$80 sps:$4 sm:$0xff]   ;;  %v12544_v14 = vld [vmem:[%s18080_s0 + $0x1e4] ss:$80 sps:$4 sm:$0xff]  }
   0x6   :  { %v12545_v15 = vld [vmem:[%s18080_s0 + $0x1ec] ss:$80 sps:$4 sm:$0xff]   ;;  %v12546_v16 = vld [vmem:[%s18080_s0 + $0x288] ss:$80 sps:$4 sm:$0xff]   ;;  %v12548_v17 = vld [vmem:[%s18080_s0 + $0x290] ss:$80 sps:$4 sm:$0xff]  }
   0x7   :  { %1712 = vmatpush1.bf16.msra.mxu0 %v12532_v6  ;;  %1765 = vmatpush1.bf16.msra.mxu1 %v12533_v7  ;;  %v12550_v18 = vld [vmem:[%s18080_s0 + $0x284] ss:$80 sps:$4 sm:$0xff]   ;;  %v12551_v19 = vld [vmem:[%s18080_s0 + $0x28c] ss:$80 sps:$4 sm:$0xff]   ;;  %v12552_v20 = vld [vmem:[%s18080_s0 + $0x328] ss:$80 sps:$4 sm:$0xff]  }
   0x8   :  { %1713 = vmatprep.subr.bf16.mxu0 %v12534_v8  ;;  %1766 = vmatprep.subr.bf16.mxu1 %v12536_v9  ;;  %v12554_v21 = vld [vmem:[%s18080_s0 + $0x330] ss:$80 sps:$4 sm:$0xff]   ;;  %v12556_v22 = vld [vmem:[%s18080_s0 + $0x324] ss:$80 sps:$4 sm:$0xff]   ;;  %v12557_v23 = vld [vmem:[%s18080_s0 + $0x32c] ss:$80 sps:$4 sm:$0xff]  }
   0x9   :  { %v12558_v24 = vld [vmem:[%s18080_s0 + $0x3c8] ss:$80 sps:$4 sm:$0xff]   ;;  %v12560_v25 = vld [vmem:[%s18080_s0 + $0x3d0] ss:$80 sps:$4 sm:$0xff]   ;;  %v12562_v26 = vld [vmem:[%s18080_s0 + $0x3c4] ss:$80 sps:$4 sm:$0xff]  }
   0xa   :  { %v12563_v27 = vld [vmem:[%s18080_s0 + $0x3cc] ss:$80 sps:$4 sm:$0xff]   ;;  %v12564_v28 = vld [vmem:[%s18080_s0 + $0x468] ss:$80 sps:$4 sm:$0xff]   ;;  %v12566_v29 = vld [vmem:[%s18080_s0 + $0x470] ss:$80 sps:$4 sm:$0xff]  }
   0xb   :  { %1714 = vmatpush1.bf16.msra.mxu0 %v12538_v10  ;;  %1767 = vmatpush1.bf16.msra.mxu1 %v12539_v11  ;;  %v12568_v30 = vld [vmem:[%s18080_s0 + $0x464] ss:$80 sps:$4 sm:$0xff]   ;;  %v12569_v31 = vld [vmem:[%s18080_s0 + $0x46c] ss:$80 sps:$4 sm:$0xff]   ;;  %v12570_v32 = vld [vmem:[%s18080_s0 + $0x508] ss:$80 sps:$4 sm:$0xff]  }
   0xc   :  { %1715 = vmatprep.subr.bf16.mxu0 %v12540_v12  ;;  %1768 = vmatprep.subr.bf16.mxu1 %v12542_v13  ;;  %v12572_v33 = vld [vmem:[%s18080_s0 + $0x510] ss:$80 sps:$4 sm:$0xff]   ;;  %v12574_v34 = vld [vmem:[%s18080_s0 + $0x504] ss:$80 sps:$4 sm:$0xff]   ;;  %v12575_v35 = vld [vmem:[%s18080_s0 + $0x50c] ss:$80 sps:$4 sm:$0xff]  }
   0xd   :  { %v12576_v36 = vld [vmem:[%s18080_s0 + $0x5a8] ss:$80 sps:$4 sm:$0xff]   ;;  %v12578_v37 = vld [vmem:[%s18080_s0 + $0x5b0] ss:$80 sps:$4 sm:$0xff]   ;;  %v13673_v38 = vld [vmem:[%s18081_s1 + $0x24] ss:$8 sps:$4 sm:$0xff]  }
   0xe   :  { %11009 = vmatprep.mubr.msk.bf16.mxu0 %vm1647_vm0, %v13673_v38  ;;  %11012 = vmatprep.mubr.msk.bf16.mxu1 %vm1647_vm0, %v13673_v38  ;;  %v12580_v39 = vld [vmem:[%s18080_s0 + $0x5a4] ss:$80 sps:$4 sm:$0xff]   ;;  %v12581_v40 = vld [vmem:[%s18080_s0 + $0x5ac] ss:$80 sps:$4 sm:$0xff]   ;;  %v12582_v41 = vld [vmem:[%s18080_s0 + $0x648] ss:$80 sps:$4 sm:$0xff]  }
   0xf   :  { %1716 = vmatpush1.bf16.msra.mxu0 %v12544_v14  ;;  %1769 = vmatpush1.bf16.msra.mxu1 %v12545_v15  ;;  %v12584_v42 = vld [vmem:[%s18080_s0 + $0x650] ss:$80 sps:$4 sm:$0xff]   ;;  %v12586_v43 = vld [vmem:[%s18080_s0 + $0x644] ss:$80 sps:$4 sm:$0xff]   ;;  %v12587_v44 = vld [vmem:[%s18080_s0 + $0x64c] ss:$80 sps:$4 sm:$0xff]  }
  0x10   :  { %1717 = vmatprep.subr.bf16.mxu0 %v12546_v16  ;;  %1770 = vmatprep.subr.bf16.mxu1 %v12548_v17  ;;  %v12588_v45 = vld [vmem:[%s18080_s0 + $0x6e8] ss:$80 sps:$4 sm:$0xff]   ;;  %v12590_v46 = vld [vmem:[%s18080_s0 + $0x6f0] ss:$80 sps:$4 sm:$0xff]   ;;  %v12592_v49 = vld [vmem:[%s18080_s0 + $0x6e4] ss:$80 sps:$4 sm:$0xff]  }
  0x11   :  { %v495_v47 = vld [vmem:[%s18080_s0 + $0x784] sm:$0x33]  ;;  %v496_v48 = vld [vmem:[%s18080_s0 + $0x78c] sm:$0x33]  ;;  %v13777_v10 = vld [vmem:[%s18081_s1 + $0x34] ss:$8 sps:$4 sm:$0xff]  }
  0x12   :  { %v12593_v50 = vld [vmem:[%s18080_s0 + $0x6ec] ss:$80 sps:$4 sm:$0xff]   ;;  %v10991_v51 = vcombine.high %v495_v47, %v495_v47  ;;  %v10993_v52 = vcombine.high %v496_v48, %v496_v48  ;;  %v10990_v53 = vcombine.low %v495_v47, %v495_v47  ;;  %v10992_v54 = vcombine.low %v496_v48, %v496_v48  ;;  %v12602_v55 = vld [vmem:[%s18080_s0 + $0x18] ss:$80 sps:$4 sm:$0xff]   ;;  %v12605_v58 = vld [vmem:[%s18080_s0 + $0x20] ss:$80 sps:$4 sm:$0xff]  }
  0x13   :  { %1718 = vmatpush1.bf16.msra.mxu0 %v12550_v18  ;;  %1771 = vmatpush1.bf16.msra.mxu1 %v12551_v19  ;;  %v13728_v59 = vld [vmem:[%s18081_s1 + $0x20] ss:$8 sps:$4 sm:$0xff]   ;;  %v12600_v60 = vld [vmem:[%s18080_s0 + $0x14] ss:$80 sps:$4 sm:$0xff]   ;;  %v12603_v61 = vld [vmem:[%s18080_s0 + $0x1c] ss:$80 sps:$4 sm:$0xff]  }
  0x14   :  { %1719 = vmatprep.subr.bf16.mxu0 %v12552_v20  ;;  %1772 = vmatprep.subr.bf16.mxu1 %v12554_v21  ;;  %v1656_v56 = vsel %vm1654_vm1, %v10990_v53, 0  ;;  %v1662_v57 = vsel %vm1654_vm1, %v10992_v54, 0  ;;  %v12609_v62 = vld [vmem:[%s18080_s0 + $0xb8] ss:$80 sps:$4 sm:$0xff]   ;;  %v12612_v63 = vld [vmem:[%s18080_s0 + $0xc0] ss:$80 sps:$4 sm:$0xff]  }
  0x15   :  { %v12607_v0 = vld [vmem:[%s18080_s0 + $0xb4] ss:$80 sps:$4 sm:$0xff]   ;;  %v12610_v1 = vld [vmem:[%s18080_s0 + $0xbc] ss:$80 sps:$4 sm:$0xff]   ;;  %v12615_v2 = vld [vmem:[%s18080_s0 + $0x158] ss:$80 sps:$4 sm:$0xff]  }
  0x16   :  { %v12618_v3 = vld [vmem:[%s18080_s0 + $0x160] ss:$80 sps:$4 sm:$0xff]   ;;  %v12613_v4 = vld [vmem:[%s18080_s0 + $0x154] ss:$80 sps:$4 sm:$0xff]   ;;  %v12616_v5 = vld [vmem:[%s18080_s0 + $0x15c] ss:$80 sps:$4 sm:$0xff]  }
  0x17   :  { %1720 = vmatpush1.bf16.msra.mxu0 %v12556_v22  ;;  %1773 = vmatpush1.bf16.msra.mxu1 %v12557_v23  ;;  %v12621_v6 = vld [vmem:[%s18080_s0 + $0x1f8] ss:$80 sps:$4 sm:$0xff]   ;;  %v12624_v7 = vld [vmem:[%s18080_s0 + $0x200] ss:$80 sps:$4 sm:$0xff]   ;;  %v12619_v8 = vld [vmem:[%s18080_s0 + $0x1f4] ss:$80 sps:$4 sm:$0xff]  }
  0x18   :  { %1721 = vmatprep.subr.bf16.mxu0 %v12558_v24  ;;  %1774 = vmatprep.subr.bf16.mxu1 %v12560_v25  ;;  %v12622_v9 = vld [vmem:[%s18080_s0 + $0x1fc] ss:$80 sps:$4 sm:$0xff]   ;;  %v12627_v11 = vld [vmem:[%s18080_s0 + $0x298] ss:$80 sps:$4 sm:$0xff]   ;;  %v12630_v12 = vld [vmem:[%s18080_s0 + $0x2a0] ss:$80 sps:$4 sm:$0xff]  }
  0x19   :  { %v12625_v13 = vld [vmem:[%s18080_s0 + $0x294] ss:$80 sps:$4 sm:$0xff]   ;;  %v12628_v14 = vld [vmem:[%s18080_s0 + $0x29c] ss:$80 sps:$4 sm:$0xff]   ;;  %v13798_v15 = vld [vmem:[%s18081_s1 + $0x30] ss:$8 sps:$4 sm:$0xff]  }
  0x1a   :  { %v12633_v16 = vld [vmem:[%s18080_s0 + $0x338] ss:$80 sps:$4 sm:$0xff]   ;;  %v12636_v17 = vld [vmem:[%s18080_s0 + $0x340] ss:$80 sps:$4 sm:$0xff]   ;;  %v12631_v18 = vld [vmem:[%s18080_s0 + $0x334] ss:$80 sps:$4 sm:$0xff]  }
  0x1b   :  { %1722 = vmatpush1.bf16.msra.mxu0 %v12562_v26  ;;  %1775 = vmatpush1.bf16.msra.mxu1 %v12563_v27  ;;  %v12634_v19 = vld [vmem:[%s18080_s0 + $0x33c] ss:$80 sps:$4 sm:$0xff]   ;;  %v12639_v20 = vld [vmem:[%s18080_s0 + $0x3d8] ss:$80 sps:$4 sm:$0xff]   ;;  %v12642_v21 = vld [vmem:[%s18080_s0 + $0x3e0] ss:$80 sps:$4 sm:$0xff]  }
  0x1c   :  { %1723 = vmatprep.subr.bf16.mxu0 %v12564_v28  ;;  %1776 = vmatprep.subr.bf16.mxu1 %v12566_v29  ;;  %v12637_v22 = vld [vmem:[%s18080_s0 + $0x3d4] ss:$80 sps:$4 sm:$0xff]   ;;  %v12640_v23 = vld [vmem:[%s18080_s0 + $0x3dc] ss:$80 sps:$4 sm:$0xff]   ;;  %v12645_v24 = vld [vmem:[%s18080_s0 + $0x478] ss:$80 sps:$4 sm:$0xff]  }
  0x1d   :  { %v12648_v25 = vld [vmem:[%s18080_s0 + $0x480] ss:$80 sps:$4 sm:$0xff]   ;;  %v12643_v26 = vld [vmem:[%s18080_s0 + $0x474] ss:$80 sps:$4 sm:$0xff]   ;;  %v12646_v27 = vld [vmem:[%s18080_s0 + $0x47c] ss:$80 sps:$4 sm:$0xff]  }
  0x1e   :  { %v12651_v28 = vld [vmem:[%s18080_s0 + $0x518] ss:$80 sps:$4 sm:$0xff]   ;;  %v12654_v29 = vld [vmem:[%s18080_s0 + $0x520] ss:$80 sps:$4 sm:$0xff]   ;;  %vm8142_vm4 = vcmask 195584   ;;  %vm10092_vm5 = vcmask 523264  }
  0x1f   :  { %1724 = vmatpush1.bf16.msra.mxu0 %v12568_v30  ;;  %1777 = vmatpush1.bf16.msra.mxu1 %v12569_v31  ;;  %v12649_v30 = vld [vmem:[%s18080_s0 + $0x514] ss:$80 sps:$4 sm:$0xff]   ;;  %v12652_v31 = vld [vmem:[%s18080_s0 + $0x51c] ss:$80 sps:$4 sm:$0xff]   ;;  %v12685_v54 = vld [vmem:[%s18080_s0 + $0x30] ss:$80 sps:$4 sm:$0xff]  }
  0x20   :  { %1725 = vmatprep.subr.bf16.mxu0 %v12570_v32  ;;  %1778 = vmatprep.subr.bf16.mxu1 %v12572_v33  ;;  %v12657_v32 = vld [vmem:[%s18080_s0 + $0x5b8] ss:$80 sps:$4 sm:$0xff]   ;;  %v12660_v33 = vld [vmem:[%s18080_s0 + $0x5c0] ss:$80 sps:$4 sm:$0xff]   ;;  %vm13485_vm8 = vmmov 0  }
  0x23   :  { %1726 = vmatpush1.bf16.msra.mxu0 %v12574_v34  ;;  %1779 = vmatpush1.bf16.msra.mxu1 %v12575_v35  ;;  %v12655_v34 = vld [vmem:[%s18080_s0 + $0x5b4] ss:$80 sps:$4 sm:$0xff]   ;;  %v12658_v35 = vld [vmem:[%s18080_s0 + $0x5bc] ss:$80 sps:$4 sm:$0xff]  }
  0x24   :  { %1727 = vmatprep.subr.bf16.mxu0 %v12576_v36  ;;  %1780 = vmatprep.subr.bf16.mxu1 %v12578_v37  ;;  %v12663_v36 = vld [vmem:[%s18080_s0 + $0x658] ss:$80 sps:$4 sm:$0xff]   ;;  %v12666_v37 = vld [vmem:[%s18080_s0 + $0x660] ss:$80 sps:$4 sm:$0xff]  }
  0x27   :  { %1728 = vmatpush1.bf16.msra.mxu0 %v12580_v39  ;;  %1781 = vmatpush1.bf16.msra.mxu1 %v12581_v40  ;;  %v12661_v39 = vld [vmem:[%s18080_s0 + $0x654] ss:$80 sps:$4 sm:$0xff]   ;;  %v12664_v40 = vld [vmem:[%s18080_s0 + $0x65c] ss:$80 sps:$4 sm:$0xff]  }
  0x28   :  { %1729 = vmatprep.subr.bf16.mxu0 %v12582_v41  ;;  %1782 = vmatprep.subr.bf16.mxu1 %v12584_v42  ;;  %v12671_v41 = vld [vmem:[%s18080_s0 + $0x6f8] ss:$80 sps:$4 sm:$0xff]   ;;  %v12674_v42 = vld [vmem:[%s18080_s0 + $0x700] ss:$80 sps:$4 sm:$0xff]  }
  0x2b   :  { %1730 = vmatpush1.bf16.msra.mxu0 %v12586_v43  ;;  %1783 = vmatpush1.bf16.msra.mxu1 %v12587_v44  ;;  %v497_v43 = vld [vmem:[%s18080_s0 + $0x794] sm:$0x33]  ;;  %v498_v44 = vld [vmem:[%s18080_s0 + $0x79c] sm:$0x33] }
  0x2c   :  { %1731 = vmatprep.subr.bf16.mxu0 %v12588_v45  ;;  %1784 = vmatprep.subr.bf16.mxu1 %v12590_v46  ;;  %v12669_v45 = vld [vmem:[%s18080_s0 + $0x6f4] ss:$80 sps:$4 sm:$0xff]   ;;  %v12672_v46 = vld [vmem:[%s18080_s0 + $0x6fc] ss:$80 sps:$4 sm:$0xff]   ;;  %v10995_v47 = vcombine.high %v497_v43, %v497_v43  ;;  %v10997_v48 = vcombine.high %v498_v44, %v498_v44 }
  0x2f   :  { %1732 = vmatpush1.bf16.msra.mxu0 %v12592_v49  ;;  %1785 = vmatpush1.bf16.msra.mxu1 %v12593_v50  ;;  %v10994_v49 = vcombine.low %v497_v43, %v497_v43  ;;  %v10996_v50 = vcombine.low %v498_v44, %v498_v44 }
  0x30   :  { %11008 = vmatprep.subr.msk.bf16.mxu0 %vm1654_vm1, %v10991_v51  ;;  %11011 = vmatprep.subr.msk.bf16.mxu1 %vm1654_vm1, %v10993_v52  ;;  %v12682_v51 = vld [vmem:[%s18080_s0 + $0x28] ss:$80 sps:$4 sm:$0xff]  }
  0x31   :  { %v1668_v52 = vsel %vm1654_vm1, %v10994_v49, 0  ;;  %v1674_v53 = vsel %vm1654_vm1, %v10996_v50, 0  ;;  %v12761_v49 = vld [vmem:[%s18080_s0 + $0x40] ss:$80 sps:$4 sm:$0xff]   ;;  %v12756_v50 = vld [vmem:[%s18080_s0 + $0x34] ss:$80 sps:$4 sm:$0xff]  }
  0x33   :  { %1734 = vmatpush1.bf16.msra.mxu0 %v1656_v56  ;;  %1787 = vmatpush1.bf16.msra.mxu1 %v1662_v57  ;;  %v12683_v56 = vld [vmem:[%s18080_s0 + $0x2c] ss:$80 sps:$4 sm:$0xff]   ;;  %v12688_v57 = vld [vmem:[%s18080_s0 + $0xc8] ss:$80 sps:$4 sm:$0xff]  }
  0x34   :  { %1815 = vmatprep.subr.bf16.mxu0 %v12602_v55  ;;  %1868 = vmatprep.subr.bf16.mxu1 %v12605_v58  ;;  %v12680_v55 = vld [vmem:[%s18080_s0 + $0x24] ss:$80 sps:$4 sm:$0xff]   ;;  %v12691_v58 = vld [vmem:[%s18080_s0 + $0xd0] ss:$80 sps:$4 sm:$0xff]  }
  0x36   :  { %1742 = vmatmul.mubr.bf16.vlgmr.msra.gmra.mrb[0].mxu0 %v13728_v59  ;;  %1795 = vmatmul.mubr.bf16.vlgmr.msra.gmra.mrb[0].mxu1 %v13728_v59 }
  0x37   :  { %1816 = vmatpush1.bf16.msra.mxu0 %v12600_v60  ;;  %1869 = vmatpush1.bf16.msra.mxu1 %v12603_v61  ;;  %v12686_v60 = vld [vmem:[%s18080_s0 + $0xc4] ss:$80 sps:$4 sm:$0xff]   ;;  %v12689_v61 = vld [vmem:[%s18080_s0 + $0xcc] ss:$80 sps:$4 sm:$0xff]  }
  0x38   :  { %1817 = vmatprep.subr.bf16.mxu0 %v12609_v62  ;;  %1870 = vmatprep.subr.bf16.mxu1 %v12612_v63  ;;  %v12694_v62 = vld [vmem:[%s18080_s0 + $0x168] ss:$80 sps:$4 sm:$0xff]   ;;  %v12697_v63 = vld [vmem:[%s18080_s0 + $0x170] ss:$80 sps:$4 sm:$0xff]  }
  0x39   :  { %11010 = vmatprep.mubr.msk.bf16.mxu0 %vm1647_vm0, %v13777_v10  ;;  %11013 = vmatprep.mubr.msk.bf16.mxu1 %vm1647_vm0, %v13777_v10 }
  0x3b   :  { %1818 = vmatpush1.bf16.msra.mxu0 %v12607_v0  ;;  %1871 = vmatpush1.bf16.msra.mxu1 %v12610_v1  ;;  %v12692_v0 = vld [vmem:[%s18080_s0 + $0x164] ss:$80 sps:$4 sm:$0xff]   ;;  %v12695_v1 = vld [vmem:[%s18080_s0 + $0x16c] ss:$80 sps:$4 sm:$0xff]  }
  0x3c   :  { %1819 = vmatprep.subr.bf16.mxu0 %v12615_v2  ;;  %1872 = vmatprep.subr.bf16.mxu1 %v12618_v3  ;;  %v12700_v2 = vld [vmem:[%s18080_s0 + $0x208] ss:$80 sps:$4 sm:$0xff]   ;;  %v12703_v3 = vld [vmem:[%s18080_s0 + $0x210] ss:$80 sps:$4 sm:$0xff]  }
  0x3e   :  { %1752 = vmatmul.mubr.bf16.gmra.mrb[4].mxu0 %v13798_v15  ;;  %1805 = vmatmul.mubr.bf16.gmra.mrb[4].mxu1 %v13798_v15 }
  0x3f   :  { %1820 = vmatpush1.bf16.msra.mxu0 %v12613_v4  ;;  %1873 = vmatpush1.bf16.msra.mxu1 %v12616_v5  ;;  %v12698_v4 = vld [vmem:[%s18080_s0 + $0x204] ss:$80 sps:$4 sm:$0xff]   ;;  %v12701_v5 = vld [vmem:[%s18080_s0 + $0x20c] ss:$80 sps:$4 sm:$0xff]  }
  0x40   :  { %1821 = vmatprep.subr.bf16.mxu0 %v12621_v6  ;;  %1874 = vmatprep.subr.bf16.mxu1 %v12624_v7  ;;  %v12706_v6 = vld [vmem:[%s18080_s0 + $0x2a8] ss:$80 sps:$4 sm:$0xff]   ;;  %v12709_v7 = vld [vmem:[%s18080_s0 + $0x2b0] ss:$80 sps:$4 sm:$0xff]  }
  0x41   :  { %11015 = vmatprep.mubr.msk.bf16.mxu0 %vm1647_vm0, %v13673_v38  ;;  %11018 = vmatprep.mubr.msk.bf16.mxu1 %vm1647_vm0, %v13673_v38 }
  0x43   :  { %1822 = vmatpush1.bf16.msra.mxu0 %v12619_v8  ;;  %1875 = vmatpush1.bf16.msra.mxu1 %v12622_v9  ;;  %v12704_v8 = vld [vmem:[%s18080_s0 + $0x2a4] ss:$80 sps:$4 sm:$0xff]   ;;  %v12707_v9 = vld [vmem:[%s18080_s0 + $0x2ac] ss:$80 sps:$4 sm:$0xff]  }
  0x44   :  { %1823 = vmatprep.subr.bf16.mxu0 %v12627_v11  ;;  %1876 = vmatprep.subr.bf16.mxu1 %v12630_v12  ;;  %v12712_v11 = vld [vmem:[%s18080_s0 + $0x348] ss:$80 sps:$4 sm:$0xff]   ;;  %v12710_v12 = vld [vmem:[%s18080_s0 + $0x344] ss:$80 sps:$4 sm:$0xff]  }
  0x47   :  { %1824 = vmatpush1.bf16.msra.mxu0 %v12625_v13  ;;  %1877 = vmatpush1.bf16.msra.mxu1 %v12628_v14  ;;  %v12713_v13 = vld [vmem:[%s18080_s0 + $0x34c] ss:$80 sps:$4 sm:$0xff]   ;;  %v12718_v14 = vld [vmem:[%s18080_s0 + $0x3e8] ss:$80 sps:$4 sm:$0xff]  }
  0x48   :  { %1825 = vmatprep.subr.bf16.mxu0 %v12633_v16  ;;  %1878 = vmatprep.subr.bf16.mxu1 %v12636_v17  ;;  %v12721_v16 = vld [vmem:[%s18080_s0 + $0x3f0] ss:$80 sps:$4 sm:$0xff]   ;;  %v12716_v17 = vld [vmem:[%s18080_s0 + $0x3e4] ss:$80 sps:$4 sm:$0xff]  }
  0x4b   :  { %1826 = vmatpush1.bf16.msra.mxu0 %v12631_v18  ;;  %1879 = vmatpush1.bf16.msra.mxu1 %v12634_v19  ;;  %v12719_v18 = vld [vmem:[%s18080_s0 + $0x3ec] ss:$80 sps:$4 sm:$0xff]   ;;  %v12724_v19 = vld [vmem:[%s18080_s0 + $0x488] ss:$80 sps:$4 sm:$0xff]  }
  0x4c   :  { %1827 = vmatprep.subr.bf16.mxu0 %v12639_v20  ;;  %1880 = vmatprep.subr.bf16.mxu1 %v12642_v21  ;;  %v12727_v20 = vld [vmem:[%s18080_s0 + $0x490] ss:$80 sps:$4 sm:$0xff]   ;;  %v12722_v21 = vld [vmem:[%s18080_s0 + $0x484] ss:$80 sps:$4 sm:$0xff]  }
  0x4f   :  { %1828 = vmatpush1.bf16.msra.mxu0 %v12637_v22  ;;  %1881 = vmatpush1.bf16.msra.mxu1 %v12640_v23  ;;  %v12725_v22 = vld [vmem:[%s18080_s0 + $0x48c] ss:$80 sps:$4 sm:$0xff]   ;;  %v12730_v23 = vld [vmem:[%s18080_s0 + $0x528] ss:$80 sps:$4 sm:$0xff]  }
  0x50   :  { %1829 = vmatprep.subr.bf16.mxu0 %v12645_v24  ;;  %1882 = vmatprep.subr.bf16.mxu1 %v12648_v25  ;;  %v12733_v24 = vld [vmem:[%s18080_s0 + $0x530] ss:$80 sps:$4 sm:$0xff]   ;;  %v12728_v25 = vld [vmem:[%s18080_s0 + $0x524] ss:$80 sps:$4 sm:$0xff]  }
  0x53   :  { %1830 = vmatpush1.bf16.msra.mxu0 %v12643_v26  ;;  %1883 = vmatpush1.bf16.msra.mxu1 %v12646_v27  ;;  %v12731_v26 = vld [vmem:[%s18080_s0 + $0x52c] ss:$80 sps:$4 sm:$0xff]   ;;  %v12736_v27 = vld [vmem:[%s18080_s0 + $0x5c8] ss:$80 sps:$4 sm:$0xff]  }
  0x54   :  { %1831 = vmatprep.subr.bf16.mxu0 %v12651_v28  ;;  %1884 = vmatprep.subr.bf16.mxu1 %v12654_v29  ;;  %v12739_v28 = vld [vmem:[%s18080_s0 + $0x5d0] ss:$80 sps:$4 sm:$0xff]   ;;  %v12734_v29 = vld [vmem:[%s18080_s0 + $0x5c4] ss:$80 sps:$4 sm:$0xff]  }
  0x57   :  { %1832 = vmatpush1.bf16.msra.mxu0 %v12649_v30  ;;  %1885 = vmatpush1.bf16.msra.mxu1 %v12652_v31  ;;  %v12737_v30 = vld [vmem:[%s18080_s0 + $0x5cc] ss:$80 sps:$4 sm:$0xff]   ;;  %v12742_v31 = vld [vmem:[%s18080_s0 + $0x668] ss:$80 sps:$4 sm:$0xff]  }
  0x58   :  { %1833 = vmatprep.subr.bf16.mxu0 %v12657_v32  ;;  %1886 = vmatprep.subr.bf16.mxu1 %v12660_v33  ;;  %v12745_v32 = vld [vmem:[%s18080_s0 + $0x670] ss:$80 sps:$4 sm:$0xff]   ;;  %v12740_v33 = vld [vmem:[%s18080_s0 + $0x664] ss:$80 sps:$4 sm:$0xff]  }
  0x5b   :  { %1834 = vmatpush1.bf16.msra.mxu0 %v12655_v34  ;;  %1887 = vmatpush1.bf16.msra.mxu1 %v12658_v35  ;;  %v12743_v34 = vld [vmem:[%s18080_s0 + $0x66c] ss:$80 sps:$4 sm:$0xff]   ;;  %v12748_v35 = vld [vmem:[%s18080_s0 + $0x708] ss:$80 sps:$4 sm:$0xff]  }
  0x5c   :  { %1835 = vmatprep.subr.bf16.mxu0 %v12663_v36  ;;  %1888 = vmatprep.subr.bf16.mxu1 %v12666_v37  ;;  %v12751_v36 = vld [vmem:[%s18080_s0 + $0x710] ss:$80 sps:$4 sm:$0xff]   ;;  %v499_v37 = vld [vmem:[%s18080_s0 + $0x7a4] sm:$0x33] }
  0x5d   :  { %v10998_v44 = vcombine.low %v499_v37, %v499_v37 }
  0x5f   :  { %1836 = vmatpush1.bf16.msra.mxu0 %v12661_v39  ;;  %1889 = vmatpush1.bf16.msra.mxu1 %v12664_v40  ;;  %v500_v39 = vld [vmem:[%s18080_s0 + $0x7ac] sm:$0x33]  ;;  %v12746_v40 = vld [vmem:[%s18080_s0 + $0x704] ss:$80 sps:$4 sm:$0xff]  }
  0x60   :  { %1837 = vmatprep.subr.bf16.mxu0 %v12671_v41  ;;  %1890 = vmatprep.subr.bf16.mxu1 %v12674_v42  ;;  %v12749_v41 = vld [vmem:[%s18080_s0 + $0x70c] ss:$80 sps:$4 sm:$0xff]   ;;  %v10999_v42 = vcombine.high %v499_v37, %v499_v37  ;;  %v11001_v43 = vcombine.high %v500_v39, %v500_v39 }
  0x63   :  { %1838 = vmatpush1.bf16.msra.mxu0 %v12669_v45  ;;  %1891 = vmatpush1.bf16.msra.mxu1 %v12672_v46  ;;  %v11000_v45 = vcombine.low %v500_v39, %v500_v39  ;;  %v12758_v46 = vld [vmem:[%s18080_s0 + $0x38] ss:$80 sps:$4 sm:$0xff]  }
  0x64   :  { %11014 = vmatprep.subr.msk.bf16.mxu0 %vm1654_vm1, %v10995_v47  ;;  %11017 = vmatprep.subr.msk.bf16.mxu1 %vm1654_vm1, %v10997_v48  ;;  %v1680_v47 = vsel %vm1654_vm1, %v10998_v44, 0  ;;  %v12834_v39 = vld [vmem:[%s18080_s0 + $0x48] ss:$80 sps:$4 sm:$0xff]  }
  0x65   :  { %v1686_v48 = vsel %vm1654_vm1, %v11000_v45, 0  ;;  %v12835_v44 = vld [vmem:[%s18080_s0 + $0x8] ss:$80 sps:$4 sm:$0xff]  }
  0x66   :  { %v12840_v45 = vld [vmem:[%s18080_s0 + $0xe8] ss:$80 sps:$4 sm:$0xff]  }
  0x67   :  { %1840 = vmatpush1.bf16.msra.mxu0 %v1668_v52  ;;  %1893 = vmatpush1.bf16.msra.mxu1 %v1674_v53  ;;  %v12764_v52 = vld [vmem:[%s18080_s0 + $0xd8] ss:$80 sps:$4 sm:$0xff]   ;;  %v12767_v53 = vld [vmem:[%s18080_s0 + $0xe0] ss:$80 sps:$4 sm:$0xff]  }
  0x68   :  { %1921 = vmatprep.subr.bf16.mxu0 %v12682_v51  ;;  %1974 = vmatprep.subr.bf16.mxu1 %v12685_v54  ;;  %v12759_v51 = vld [vmem:[%s18080_s0 + $0x3c] ss:$80 sps:$4 sm:$0xff]   ;;  %v12762_v54 = vld [vmem:[%s18080_s0 + $0xd4] ss:$80 sps:$4 sm:$0xff]  }
  0x6a   :  { %1848 = vmatmul.mubr.bf16.vlgmr.msra.gmra.mrb[8].mxu0 %v13728_v59  ;;  %1901 = vmatmul.mubr.bf16.vlgmr.msra.gmra.mrb[8].mxu1 %v13728_v59 }
  0x6b   :  { %1922 = vmatpush1.bf16.msra.mxu0 %v12680_v55  ;;  %1975 = vmatpush1.bf16.msra.mxu1 %v12683_v56  ;;  %v12765_v55 = vld [vmem:[%s18080_s0 + $0xdc] ss:$80 sps:$4 sm:$0xff]   ;;  %v12770_v56 = vld [vmem:[%s18080_s0 + $0x178] ss:$80 sps:$4 sm:$0xff]  }
  0x6c   :  { %1923 = vmatprep.subr.bf16.mxu0 %v12688_v57  ;;  %1976 = vmatprep.subr.bf16.mxu1 %v12691_v58  ;;  %v12768_v57 = vld [vmem:[%s18080_s0 + $0x174] ss:$80 sps:$4 sm:$0xff]   ;;  %v12771_v58 = vld [vmem:[%s18080_s0 + $0x17c] ss:$80 sps:$4 sm:$0xff]  }
  0x6d   :  { %11016 = vmatprep.mubr.msk.bf16.mxu0 %vm1647_vm0, %v13777_v10  ;;  %11019 = vmatprep.mubr.msk.bf16.mxu1 %vm1647_vm0, %v13777_v10 }
  0x6f   :  { %1924 = vmatpush1.bf16.msra.mxu0 %v12686_v60  ;;  %1977 = vmatpush1.bf16.msra.mxu1 %v12689_v61  ;;  %v12776_v60 = vld [vmem:[%s18080_s0 + $0x218] ss:$80 sps:$4 sm:$0xff]   ;;  %v12774_v61 = vld [vmem:[%s18080_s0 + $0x214] ss:$80 sps:$4 sm:$0xff]  }
  0x70   :  { %1925 = vmatprep.subr.bf16.mxu0 %v12694_v62  ;;  %1978 = vmatprep.subr.bf16.mxu1 %v12697_v63  ;;  %v12777_v62 = vld [vmem:[%s18080_s0 + $0x21c] ss:$80 sps:$4 sm:$0xff]   ;;  %v12782_v63 = vld [vmem:[%s18080_s0 + $0x2b8] ss:$80 sps:$4 sm:$0xff]  }
  0x72   :  { %1858 = vmatmul.mubr.bf16.gmra.mrb[12].mxu0 %v13798_v15  ;;  %1911 = vmatmul.mubr.bf16.gmra.mrb[12].mxu1 %v13798_v15 }
  0x73   :  { %1926 = vmatpush1.bf16.msra.mxu0 %v12692_v0  ;;  %1979 = vmatpush1.bf16.msra.mxu1 %v12695_v1  ;;  %v12785_v0 = vld [vmem:[%s18080_s0 + $0x2c0] ss:$80 sps:$4 sm:$0xff]   ;;  %v12780_v1 = vld [vmem:[%s18080_s0 + $0x2b4] ss:$80 sps:$4 sm:$0xff]  }
  0x74   :  { %1927 = vmatprep.subr.bf16.mxu0 %v12700_v2  ;;  %1980 = vmatprep.subr.bf16.mxu1 %v12703_v3  ;;  %v12783_v2 = vld [vmem:[%s18080_s0 + $0x2bc] ss:$80 sps:$4 sm:$0xff]   ;;  %v12788_v3 = vld [vmem:[%s18080_s0 + $0x358] ss:$80 sps:$4 sm:$0xff]  }
  0x75   :  { %11021 = vmatprep.mubr.msk.bf16.mxu0 %vm1647_vm0, %v13673_v38  ;;  %11024 = vmatprep.mubr.msk.bf16.mxu1 %vm1647_vm0, %v13673_v38  ;;  %v12715_v38 = vld [vmem:[%s18080_s0 + $0x350] ss:$80 sps:$4 sm:$0xff]  }
  0x77   :  { %1928 = vmatpush1.bf16.msra.mxu0 %v12698_v4  ;;  %1981 = vmatpush1.bf16.msra.mxu1 %v12701_v5  ;;  %v12791_v4 = vld [vmem:[%s18080_s0 + $0x360] ss:$80 sps:$4 sm:$0xff]   ;;  %v12786_v5 = vld [vmem:[%s18080_s0 + $0x354] ss:$80 sps:$4 sm:$0xff]  }
  0x78   :  { %1929 = vmatprep.subr.bf16.mxu0 %v12706_v6  ;;  %1982 = vmatprep.subr.bf16.mxu1 %v12709_v7  ;;  %v12789_v6 = vld [vmem:[%s18080_s0 + $0x35c] ss:$80 sps:$4 sm:$0xff]   ;;  %v12794_v7 = vld [vmem:[%s18080_s0 + $0x3f8] ss:$80 sps:$4 sm:$0xff]  }
  0x7b   :  { %1930 = vmatpush1.bf16.msra.mxu0 %v12704_v8  ;;  %1983 = vmatpush1.bf16.msra.mxu1 %v12707_v9  ;;  %v12797_v8 = vld [vmem:[%s18080_s0 + $0x400] ss:$80 sps:$4 sm:$0xff]   ;;  %v12792_v9 = vld [vmem:[%s18080_s0 + $0x3f4] ss:$80 sps:$4 sm:$0xff]  }
  0x7c   :  { %1931 = vmatprep.subr.bf16.mxu0 %v12712_v11  ;;  %1984 = vmatprep.subr.bf16.mxu1 %v12715_v38  ;;  %v12795_v11 = vld [vmem:[%s18080_s0 + $0x3fc] ss:$80 sps:$4 sm:$0xff]   ;;  %v12800_v38 = vld [vmem:[%s18080_s0 + $0x498] ss:$80 sps:$4 sm:$0xff]  }
  0x7f   :  { %1932 = vmatpush1.bf16.msra.mxu0 %v12710_v12  ;;  %1985 = vmatpush1.bf16.msra.mxu1 %v12713_v13  ;;  %v12803_v12 = vld [vmem:[%s18080_s0 + $0x4a0] ss:$80 sps:$4 sm:$0xff]   ;;  %v12798_v13 = vld [vmem:[%s18080_s0 + $0x494] ss:$80 sps:$4 sm:$0xff]  }
  0x80   :  { %1933 = vmatprep.subr.bf16.mxu0 %v12718_v14  ;;  %1986 = vmatprep.subr.bf16.mxu1 %v12721_v16  ;;  %v12801_v14 = vld [vmem:[%s18080_s0 + $0x49c] ss:$80 sps:$4 sm:$0xff]   ;;  %v12806_v16 = vld [vmem:[%s18080_s0 + $0x538] ss:$80 sps:$4 sm:$0xff]  }
  0x83   :  { %1934 = vmatpush1.bf16.msra.mxu0 %v12716_v17  ;;  %1987 = vmatpush1.bf16.msra.mxu1 %v12719_v18  ;;  %v12809_v17 = vld [vmem:[%s18080_s0 + $0x540] ss:$80 sps:$4 sm:$0xff]   ;;  %v12804_v18 = vld [vmem:[%s18080_s0 + $0x534] ss:$80 sps:$4 sm:$0xff]  }
  0x84   :  { %1935 = vmatprep.subr.bf16.mxu0 %v12724_v19  ;;  %1988 = vmatprep.subr.bf16.mxu1 %v12727_v20  ;;  %v12807_v19 = vld [vmem:[%s18080_s0 + $0x53c] ss:$80 sps:$4 sm:$0xff]   ;;  %v12812_v20 = vld [vmem:[%s18080_s0 + $0x5d8] ss:$80 sps:$4 sm:$0xff]  }
  0x87   :  { %1936 = vmatpush1.bf16.msra.mxu0 %v12722_v21  ;;  %1989 = vmatpush1.bf16.msra.mxu1 %v12725_v22  ;;  %v12815_v21 = vld [vmem:[%s18080_s0 + $0x5e0] ss:$80 sps:$4 sm:$0xff]   ;;  %v12810_v22 = vld [vmem:[%s18080_s0 + $0x5d4] ss:$80 sps:$4 sm:$0xff]  }
  0x88   :  { %1937 = vmatprep.subr.bf16.mxu0 %v12730_v23  ;;  %1990 = vmatprep.subr.bf16.mxu1 %v12733_v24  ;;  %v12813_v23 = vld [vmem:[%s18080_s0 + $0x5dc] ss:$80 sps:$4 sm:$0xff]   ;;  %v12818_v24 = vld [vmem:[%s18080_s0 + $0x678] ss:$80 sps:$4 sm:$0xff]  }
  0x8b   :  { %1938 = vmatpush1.bf16.msra.mxu0 %v12728_v25  ;;  %1991 = vmatpush1.bf16.msra.mxu1 %v12731_v26  ;;  %v12821_v25 = vld [vmem:[%s18080_s0 + $0x680] ss:$80 sps:$4 sm:$0xff]   ;;  %v12816_v26 = vld [vmem:[%s18080_s0 + $0x674] ss:$80 sps:$4 sm:$0xff]  }
  0x8c   :  { %1939 = vmatprep.subr.bf16.mxu0 %v12736_v27  ;;  %1992 = vmatprep.subr.bf16.mxu1 %v12739_v28  ;;  %v12819_v27 = vld [vmem:[%s18080_s0 + $0x67c] ss:$80 sps:$4 sm:$0xff]   ;;  %v12824_v28 = vld [vmem:[%s18080_s0 + $0x718] ss:$80 sps:$4 sm:$0xff]  }
  0x8f   :  { %1940 = vmatpush1.bf16.msra.mxu0 %v12734_v29  ;;  %1993 = vmatpush1.bf16.msra.mxu1 %v12737_v30  ;;  %v12827_v29 = vld [vmem:[%s18080_s0 + $0x720] ss:$80 sps:$4 sm:$0xff]   ;;  %v501_v30 = vld [vmem:[%s18080_s0 + $0x7b4] sm:$0x33] }
  0x90   :  { %1941 = vmatprep.subr.bf16.mxu0 %v12742_v31  ;;  %1994 = vmatprep.subr.bf16.mxu1 %v12745_v32  ;;  %v502_v31 = vld [vmem:[%s18080_s0 + $0x7bc] sm:$0x33]  ;;  %v12822_v32 = vld [vmem:[%s18080_s0 + $0x714] ss:$80 sps:$4 sm:$0xff]  }
  0x91   :  { %v11004_v37 = vcombine.low %v502_v31, %v502_v31 }
  0x93   :  { %1942 = vmatpush1.bf16.msra.mxu0 %v12740_v33  ;;  %1995 = vmatpush1.bf16.msra.mxu1 %v12743_v34  ;;  %v12825_v33 = vld [vmem:[%s18080_s0 + $0x71c] ss:$80 sps:$4 sm:$0xff]   ;;  %v11003_v34 = vcombine.high %v501_v30, %v501_v30 }
  0x94   :  { %1943 = vmatprep.subr.bf16.mxu0 %v12748_v35  ;;  %1996 = vmatprep.subr.bf16.mxu1 %v12751_v36  ;;  %v11005_v35 = vcombine.high %v502_v31, %v502_v31  ;;  %v11002_v36 = vcombine.low %v501_v30, %v501_v30 }
  0x97   :  { %1944 = vmatpush1.bf16.msra.mxu0 %v12746_v40  ;;  %1997 = vmatpush1.bf16.msra.mxu1 %v12749_v41  ;;  %v1692_v40 = vsel %vm1654_vm1, %v11002_v36, 0  ;;  %v1698_v41 = vsel %vm1654_vm1, %v11004_v37, 0  ;;  %v12915_v37 = vld [vmem:[%s18080_s0 + $0x1c] ss:$80 sps:$4 sm:$0xff]  }
  0x98   :  { %11020 = vmatprep.subr.msk.bf16.mxu0 %vm1654_vm1, %v10999_v42  ;;  %11023 = vmatprep.subr.msk.bf16.mxu1 %vm1654_vm1, %v11001_v43  ;;  %v12837_v42 = vld [vmem:[%s18080_s0 + $0xc] ss:$80 sps:$4 sm:$0xff]   ;;  %v12832_v43 = vld [vmem:[%s18080_s0 + $0x44] ss:$80 sps:$4 sm:$0xff]  }
  0x9b   :  { %1946 = vmatpush1.bf16.msra.mxu0 %v1680_v47  ;;  %1999 = vmatpush1.bf16.msra.mxu1 %v1686_v48  ;;  %v14258_v47 = vld [vmem:[%s18081_s1 + $0x20] ss:$8 sps:$4 sm:$0xff]   ;;  %v12838_v48 = vld [vmem:[%s18080_s0 + $0xe4] ss:$80 sps:$4 sm:$0xff]  }
  0x9c   :  { %2027 = vmatprep.subr.bf16.mxu0 %v12758_v46  ;;  %2080 = vmatprep.subr.bf16.mxu1 %v12761_v49  ;;  %v12843_v46 = vld [vmem:[%s18080_s0 + $0xac] ss:$80 sps:$4 sm:$0xff]   ;;  %v12841_v49 = vld [vmem:[%s18080_s0 + $0xa8] ss:$80 sps:$4 sm:$0xff]  }
  0x9e   :  { %1954 = vmatmul.mubr.bf16.vlgmr.msra.gmra.mrb[16].mxu0 %v13728_v59  ;;  %2007 = vmatmul.mubr.bf16.vlgmr.msra.gmra.mrb[16].mxu1 %v13728_v59  ;;  %v12773_v59 = vld [vmem:[%s18080_s0 + $0x180] ss:$80 sps:$4 sm:$0xff]  }
  0x9f   :  { %2028 = vmatpush1.bf16.msra.mxu0 %v12756_v50  ;;  %2081 = vmatpush1.bf16.msra.mxu1 %v12759_v51  ;;  %v12846_v50 = vld [vmem:[%s18080_s0 + $0x188] ss:$80 sps:$4 sm:$0xff]   ;;  %v12849_v51 = vld [vmem:[%s18080_s0 + $0x14c] ss:$80 sps:$4 sm:$0xff]  }
  0xa0   :  { %2029 = vmatprep.subr.bf16.mxu0 %v12764_v52  ;;  %2082 = vmatprep.subr.bf16.mxu1 %v12767_v53  ;;  %v14277_v52 = vld [vmem:[%s18081_s1 + $0x34] ss:$8 sps:$4 sm:$0xff]  }
  0xa1   :  { %11022 = vmatprep.mubr.msk.bf16.mxu0 %vm1647_vm0, %v13777_v10  ;;  %11025 = vmatprep.mubr.msk.bf16.mxu1 %vm1647_vm0, %v13777_v10  ;;  %v12779_v10 = vld [vmem:[%s18080_s0 + $0x220] ss:$80 sps:$4 sm:$0xff]   ;;  %v12844_v53 = vld [vmem:[%s18080_s0 + $0x184] ss:$80 sps:$4 sm:$0xff]  }
  0xa3   :  { %2030 = vmatpush1.bf16.msra.mxu0 %v12762_v54  ;;  %2083 = vmatpush1.bf16.msra.mxu1 %v12765_v55  ;;  %v12847_v54 = vld [vmem:[%s18080_s0 + $0x148] ss:$80 sps:$4 sm:$0xff]  }
  0xa4   :  { %2031 = vmatprep.subr.bf16.mxu0 %v12770_v56  ;;  %2084 = vmatprep.subr.bf16.mxu1 %v12773_v59  ;;  %v12852_v55 = vld [vmem:[%s18080_s0 + $0x228] ss:$80 sps:$4 sm:$0xff]   ;;  %v12855_v56 = vld [vmem:[%s18080_s0 + $0x1ec] ss:$80 sps:$4 sm:$0xff]  }
  0xa5   :  { %v14298_v59 = vld [vmem:[%s18081_s1 + $0x4] ss:$8 sps:$4 sm:$0xff]  }
  0xa6   :  { %1964 = vmatmul.mubr.bf16.gmra.mrb[20].mxu0 %v13798_v15  ;;  %2017 = vmatmul.mubr.bf16.gmra.mrb[20].mxu1 %v13798_v15  ;;  %v14131_v15 = vld [vmem:[%s18081_s1 + $0x24] ss:$8 sps:$4 sm:$0xff]  }
  0xa7   :  { %2032 = vmatpush1.bf16.msra.mxu0 %v12768_v57  ;;  %2085 = vmatpush1.bf16.msra.mxu1 %v12771_v58  ;;  %v12850_v57 = vld [vmem:[%s18080_s0 + $0x224] ss:$80 sps:$4 sm:$0xff]   ;;  %v12853_v58 = vld [vmem:[%s18080_s0 + $0x1e8] ss:$80 sps:$4 sm:$0xff]  }
  0xa8   :  { %2033 = vmatprep.subr.bf16.mxu0 %v12776_v60  ;;  %2086 = vmatprep.subr.bf16.mxu1 %v12779_v10  ;;  %v14309_v60 = vld [vmem:[%s18081_s1 + $0x30] ss:$8 sps:$4 sm:$0xff]  }
  0xa9   :  { %11027 = vmatprep.mubr.msk.bf16.mxu0 %vm1647_vm0, %v14131_v15  ;;  %11030 = vmatprep.mubr.msk.bf16.mxu1 %vm1647_vm0, %v14131_v15  ;;  %v12858_v10 = vld [vmem:[%s18080_s0 + $0x2c8] ss:$80 sps:$4 sm:$0xff]  }
  0xab   :  { %2034 = vmatpush1.bf16.msra.mxu0 %v12774_v61  ;;  %2087 = vmatpush1.bf16.msra.mxu1 %v12777_v62  ;;  %v12861_v61 = vld [vmem:[%s18080_s0 + $0x28c] ss:$80 sps:$4 sm:$0xff]   ;;  %v12856_v62 = vld [vmem:[%s18080_s0 + $0x2c4] ss:$80 sps:$4 sm:$0xff]  }
  0xac   :  { %2035 = vmatprep.subr.bf16.mxu0 %v12782_v63  ;;  %2088 = vmatprep.subr.bf16.mxu1 %v12785_v0  ;;  %v12859_v63 = vld [vmem:[%s18080_s0 + $0x288] ss:$80 sps:$4 sm:$0xff]  }
  0xad   :  { %v12864_v0 = vld [vmem:[%s18080_s0 + $0x368] ss:$80 sps:$4 sm:$0xff]  }
  0xaf   :  { %2036 = vmatpush1.bf16.msra.mxu0 %v12780_v1  ;;  %2089 = vmatpush1.bf16.msra.mxu1 %v12783_v2  ;;  %v12862_v1 = vld [vmem:[%s18080_s0 + $0x364] ss:$80 sps:$4 sm:$0xff]   ;;  %v12865_v2 = vld [vmem:[%s18080_s0 + $0x328] ss:$80 sps:$4 sm:$0xff]  }
  0xb0   :  { %2037 = vmatprep.subr.bf16.mxu0 %v12788_v3  ;;  %2090 = vmatprep.subr.bf16.mxu1 %v12791_v4  ;;  %v12870_v3 = vld [vmem:[%s18080_s0 + $0x408] ss:$80 sps:$4 sm:$0xff]   ;;  %v12873_v4 = vld [vmem:[%s18080_s0 + $0x3cc] ss:$80 sps:$4 sm:$0xff]  }
  0xb3   :  { %2038 = vmatpush1.bf16.msra.mxu0 %v12786_v5  ;;  %2091 = vmatpush1.bf16.msra.mxu1 %v12789_v6  ;;  %v12868_v5 = vld [vmem:[%s18080_s0 + $0x404] ss:$80 sps:$4 sm:$0xff]   ;;  %v12871_v6 = vld [vmem:[%s18080_s0 + $0x3c8] ss:$80 sps:$4 sm:$0xff]  }
  0xb4   :  { %2039 = vmatprep.subr.bf16.mxu0 %v12794_v7  ;;  %2092 = vmatprep.subr.bf16.mxu1 %v12797_v8  ;;  %v12876_v7 = vld [vmem:[%s18080_s0 + $0x4a8] ss:$80 sps:$4 sm:$0xff]   ;;  %v12879_v8 = vld [vmem:[%s18080_s0 + $0x46c] ss:$80 sps:$4 sm:$0xff]  }
  0xb7   :  { %2040 = vmatpush1.bf16.msra.mxu0 %v12792_v9  ;;  %2093 = vmatpush1.bf16.msra.mxu1 %v12795_v11  ;;  %v12874_v9 = vld [vmem:[%s18080_s0 + $0x4a4] ss:$80 sps:$4 sm:$0xff]   ;;  %v12877_v11 = vld [vmem:[%s18080_s0 + $0x468] ss:$80 sps:$4 sm:$0xff]  }
  0xb8   :  { %2041 = vmatprep.subr.bf16.mxu0 %v12800_v38  ;;  %2094 = vmatprep.subr.bf16.mxu1 %v12803_v12  ;;  %v12882_v38 = vld [vmem:[%s18080_s0 + $0x548] ss:$80 sps:$4 sm:$0xff]   ;;  %v12885_v12 = vld [vmem:[%s18080_s0 + $0x50c] ss:$80 sps:$4 sm:$0xff]  }
  0xbb   :  { %2042 = vmatpush1.bf16.msra.mxu0 %v12798_v13  ;;  %2095 = vmatpush1.bf16.msra.mxu1 %v12801_v14  ;;  %v12880_v13 = vld [vmem:[%s18080_s0 + $0x544] ss:$80 sps:$4 sm:$0xff]   ;;  %v12883_v14 = vld [vmem:[%s18080_s0 + $0x508] ss:$80 sps:$4 sm:$0xff]  }
  0xbc   :  { %2043 = vmatprep.subr.bf16.mxu0 %v12806_v16  ;;  %2096 = vmatprep.subr.bf16.mxu1 %v12809_v17  ;;  %v12888_v16 = vld [vmem:[%s18080_s0 + $0x5e8] ss:$80 sps:$4 sm:$0xff]   ;;  %v12891_v17 = vld [vmem:[%s18080_s0 + $0x5ac] ss:$80 sps:$4 sm:$0xff]  }
  0xbf   :  { %2044 = vmatpush1.bf16.msra.mxu0 %v12804_v18  ;;  %2097 = vmatpush1.bf16.msra.mxu1 %v12807_v19  ;;  %v12886_v18 = vld [vmem:[%s18080_s0 + $0x5e4] ss:$80 sps:$4 sm:$0xff]   ;;  %v12889_v19 = vld [vmem:[%s18080_s0 + $0x5a8] ss:$80 sps:$4 sm:$0xff]  }
  0xc0   :  { %2045 = vmatprep.subr.bf16.mxu0 %v12812_v20  ;;  %2098 = vmatprep.subr.bf16.mxu1 %v12815_v21  ;;  %v12894_v20 = vld [vmem:[%s18080_s0 + $0x688] ss:$80 sps:$4 sm:$0xff]   ;;  %v12897_v21 = vld [vmem:[%s18080_s0 + $0x64c] ss:$80 sps:$4 sm:$0xff]  }
  0xc3   :  { %2046 = vmatpush1.bf16.msra.mxu0 %v12810_v22  ;;  %2099 = vmatpush1.bf16.msra.mxu1 %v12813_v23  ;;  %v12892_v22 = vld [vmem:[%s18080_s0 + $0x684] ss:$80 sps:$4 sm:$0xff]   ;;  %v12895_v23 = vld [vmem:[%s18080_s0 + $0x648] ss:$80 sps:$4 sm:$0xff]  }
  0xc4   :  { %2047 = vmatprep.subr.bf16.mxu0 %v12818_v24  ;;  %2100 = vmatprep.subr.bf16.mxu1 %v12821_v25  ;;  %v12900_v24 = vld [vmem:[%s18080_s0 + $0x728] ss:$80 sps:$4 sm:$0xff]   ;;  %v12903_v25 = vld [vmem:[%s18080_s0 + $0x6ec] ss:$80 sps:$4 sm:$0xff]  }
  0xc7   :  { %2048 = vmatpush1.bf16.msra.mxu0 %v12816_v26  ;;  %2101 = vmatpush1.bf16.msra.mxu1 %v12819_v27  ;;  %v503_v26 = vld [vmem:[%s18080_s0 + $0x7c4] sm:$0x33] }
  0xc8   :  { %2049 = vmatprep.subr.bf16.mxu0 %v12824_v28  ;;  %2102 = vmatprep.subr.bf16.mxu1 %v12827_v29  ;;  %v266_v27 = vld [vmem:[%s18080_s0 + $0x788] sm:$0x33]  ;;  %v12898_v28 = vld [vmem:[%s18080_s0 + $0x724] ss:$80 sps:$4 sm:$0xff]   ;;  %v11006_v30 = vcombine.low %v503_v26, %v503_v26  ;;  %v11007_v31 = vcombine.high %v503_v26, %v503_v26 }
  0xc9   :  { %v12901_v29 = vld [vmem:[%s18080_s0 + $0x6e8] ss:$80 sps:$4 sm:$0xff]  }
  0xcb   :  { %2050 = vmatpush1.bf16.msra.mxu0 %v12822_v32  ;;  %2103 = vmatpush1.bf16.msra.mxu1 %v12825_v33  ;;  %v11258_v32 = vcombine.high %v266_v27, %v266_v27  ;;  %v11257_v33 = vcombine.low %v266_v27, %v266_v27 }
  0xcc   :  { %11026 = vmatprep.subr.msk.bf16.mxu0 %vm1654_vm1, %v11003_v34  ;;  %11029 = vmatprep.subr.msk.bf16.mxu1 %vm1654_vm1, %v11005_v35  ;;  %v1704_v34 = vsel %vm1654_vm1, %v11006_v30, 0  ;;  %v12910_v35 = vld [vmem:[%s18080_s0 + $0x4] ss:$80 sps:$4 sm:$0xff]  }
  0xcd   :  { %v3342_v36 = vsel %vm1654_vm1, %v11257_v33, 0  ;;  %v14603_v30 = vld [vmem:[%s18080_s0 + $0x14] ss:$80 sps:$4 sm:$0xff]  }
  0xcf   :  { %2052 = vmatpush1.bf16.msra.mxu0 %v1692_v40  ;;  %2105 = vmatpush1.bf16.msra.mxu1 %v1698_v41  ;;  %v12908_v40 = vld [vmem:[%s18080_s0] ss:$80 sps:$4 sm:$0xff]   ;;  %v12913_v41 = vld [vmem:[%s18080_s0 + $0x18] ss:$80 sps:$4 sm:$0xff]  }
  0xd0   :  { %2133 = vmatprep.subr.bf16.mxu0 %v12834_v39  ;;  %3442 = vmatprep.subr.bf16.mxu1 %v12837_v42  ;;  %v14432_v39 = vld [vmem:[%s18081_s1] ss:$8 sps:$4 sm:$0xff]   ;;  %v12919_v42 = vld [vmem:[%s18080_s0 + $0xa4] ss:$80 sps:$4 sm:$0xff]  }
  0xd2   :  { %2060 = vmatmul.mubr.bf16.vlgmr.msra.gmra.mrb[24].mxu0 %v14258_v47  ;;  %2113 = vmatmul.mubr.bf16.vlgmr.msra.gmra.mrb[24].mxu1 %v14258_v47 }
  0xd3   :  { %2134 = vmatpush1.bf16.msra.mxu0 %v12832_v43  ;;  %3443 = vmatpush1.bf16.msra.mxu1 %v12835_v44  ;;  %v12922_v43 = vld [vmem:[%s18080_s0 + $0xbc] ss:$80 sps:$4 sm:$0xff]  }
  0xd4   :  { %2135 = vmatprep.subr.bf16.mxu0 %v12840_v45  ;;  %3444 = vmatprep.subr.bf16.mxu1 %v12843_v46  ;;  %v14449_v44 = vld [vmem:[%s18081_s1 + $0x14] ss:$8 sps:$4 sm:$0xff]   ;;  %v12917_v45 = vld [vmem:[%s18080_s0 + $0xa0] ss:$80 sps:$4 sm:$0xff]   ;;  %v12920_v46 = vld [vmem:[%s18080_s0 + $0xb8] ss:$80 sps:$4 sm:$0xff]  }
  0xd5   :  { %11028 = vmatprep.mubr.msk.bf16.mxu0 %vm1647_vm0, %v14277_v52  ;;  %11031 = vmatprep.mubr.msk.bf16.mxu1 %vm1647_vm0, %v14277_v52 }
  0xd7   :  { %2136 = vmatpush1.bf16.msra.mxu0 %v12838_v48  ;;  %3445 = vmatpush1.bf16.msra.mxu1 %v12841_v49  ;;  %v12925_v48 = vld [vmem:[%s18080_s0 + $0x144] ss:$80 sps:$4 sm:$0xff]   ;;  %v12928_v49 = vld [vmem:[%s18080_s0 + $0x15c] ss:$80 sps:$4 sm:$0xff]  }
  0xd8   :  { %2137 = vmatprep.subr.bf16.mxu0 %v12846_v50  ;;  %3446 = vmatprep.subr.bf16.mxu1 %v12849_v51  ;;  %v12923_v50 = vld [vmem:[%s18080_s0 + $0x140] ss:$80 sps:$4 sm:$0xff]   ;;  %v12926_v51 = vld [vmem:[%s18080_s0 + $0x158] ss:$80 sps:$4 sm:$0xff]  }
  0xda   :  { %2070 = vmatmul.mubr.bf16.gmra.mrb[28].mxu0 %v14309_v60  ;;  %2123 = vmatmul.mubr.bf16.gmra.mrb[28].mxu1 %v14309_v60 }
  0xdb   :  { %2138 = vmatpush1.bf16.msra.mxu0 %v12844_v53  ;;  %3447 = vmatpush1.bf16.msra.mxu1 %v12847_v54  ;;  %v12931_v53 = vld [vmem:[%s18080_s0 + $0x1e4] ss:$80 sps:$4 sm:$0xff]   ;;  %v12929_v54 = vld [vmem:[%s18080_s0 + $0x1e0] ss:$80 sps:$4 sm:$0xff]  }
  0xdc   :  { %2139 = vmatprep.subr.bf16.mxu0 %v12852_v55  ;;  %3448 = vmatprep.subr.bf16.mxu1 %v12855_v56  ;;  %v12932_v55 = vld [vmem:[%s18080_s0 + $0x1f8] ss:$80 sps:$4 sm:$0xff]   ;;  %v12937_v56 = vld [vmem:[%s18080_s0 + $0x284] ss:$80 sps:$4 sm:$0xff]  }
  0xdd   :  { %11033 = vmatprep.mubr.msk.bf16.mxu0 %vm1647_vm0, %v14131_v15  ;;  %11277 = vmatprep.mubr.msk.bf16.mxu1 %vm1647_vm0, %v14298_v59  ;;  %v12867_v15 = vld [vmem:[%s18080_s0 + $0x32c] ss:$80 sps:$4 sm:$0xff]  }
  0xdf   :  { %2140 = vmatpush1.bf16.msra.mxu0 %v12850_v57  ;;  %3449 = vmatpush1.bf16.msra.mxu1 %v12853_v58  ;;  %v12940_v57 = vld [vmem:[%s18080_s0 + $0x29c] ss:$80 sps:$4 sm:$0xff]   ;;  %v12935_v58 = vld [vmem:[%s18080_s0 + $0x280] ss:$80 sps:$4 sm:$0xff]  }
  0xe0   :  { %2141 = vmatprep.subr.bf16.mxu0 %v12858_v10  ;;  %3450 = vmatprep.subr.bf16.mxu1 %v12861_v61  ;;  %v12943_v10 = vld [vmem:[%s18080_s0 + $0x324] ss:$80 sps:$4 sm:$0xff]   ;;  %v12946_v61 = vld [vmem:[%s18080_s0 + $0x33c] ss:$80 sps:$4 sm:$0xff]  }
  0xe3   :  { %2142 = vmatpush1.bf16.msra.mxu0 %v12856_v62  ;;  %3451 = vmatpush1.bf16.msra.mxu1 %v12859_v63  ;;  %v12941_v62 = vld [vmem:[%s18080_s0 + $0x320] ss:$80 sps:$4 sm:$0xff]   ;;  %v12944_v63 = vld [vmem:[%s18080_s0 + $0x338] ss:$80 sps:$4 sm:$0xff]  }
  0xe4   :  { %2143 = vmatprep.subr.bf16.mxu0 %v12864_v0  ;;  %3452 = vmatprep.subr.bf16.mxu1 %v12867_v15  ;;  %v12949_v0 = vld [vmem:[%s18080_s0 + $0x3c4] ss:$80 sps:$4 sm:$0xff]   ;;  %v12952_v15 = vld [vmem:[%s18080_s0 + $0x3dc] ss:$80 sps:$4 sm:$0xff]  }
  0xe7   :  { %2144 = vmatpush1.bf16.msra.mxu0 %v12862_v1  ;;  %3453 = vmatpush1.bf16.msra.mxu1 %v12865_v2  ;;  %v12947_v1 = vld [vmem:[%s18080_s0 + $0x3c0] ss:$80 sps:$4 sm:$0xff]   ;;  %v12950_v2 = vld [vmem:[%s18080_s0 + $0x3d8] ss:$80 sps:$4 sm:$0xff]  }
  0xe8   :  { %2145 = vmatprep.subr.bf16.mxu0 %v12870_v3  ;;  %3454 = vmatprep.subr.bf16.mxu1 %v12873_v4  ;;  %v12955_v3 = vld [vmem:[%s18080_s0 + $0x464] ss:$80 sps:$4 sm:$0xff]   ;;  %v12958_v4 = vld [vmem:[%s18080_s0 + $0x47c] ss:$80 sps:$4 sm:$0xff]  }
  0xeb   :  { %2146 = vmatpush1.bf16.msra.mxu0 %v12868_v5  ;;  %3455 = vmatpush1.bf16.msra.mxu1 %v12871_v6  ;;  %v12953_v5 = vld [vmem:[%s18080_s0 + $0x460] ss:$80 sps:$4 sm:$0xff]   ;;  %v12956_v6 = vld [vmem:[%s18080_s0 + $0x478] ss:$80 sps:$4 sm:$0xff]  }
  0xec   :  { %2147 = vmatprep.subr.bf16.mxu0 %v12876_v7  ;;  %3456 = vmatprep.subr.bf16.mxu1 %v12879_v8  ;;  %v12961_v7 = vld [vmem:[%s18080_s0 + $0x504] ss:$80 sps:$4 sm:$0xff]   ;;  %v12964_v8 = vld [vmem:[%s18080_s0 + $0x51c] ss:$80 sps:$4 sm:$0xff]  }
  0xef   :  { %2148 = vmatpush1.bf16.msra.mxu0 %v12874_v9  ;;  %3457 = vmatpush1.bf16.msra.mxu1 %v12877_v11  ;;  %v12959_v9 = vld [vmem:[%s18080_s0 + $0x500] ss:$80 sps:$4 sm:$0xff]   ;;  %v12962_v11 = vld [vmem:[%s18080_s0 + $0x518] ss:$80 sps:$4 sm:$0xff]  }
  0xf0   :  { %2149 = vmatprep.subr.bf16.mxu0 %v12882_v38  ;;  %3458 = vmatprep.subr.bf16.mxu1 %v12885_v12  ;;  %v12967_v38 = vld [vmem:[%s18080_s0 + $0x5a4] ss:$80 sps:$4 sm:$0xff]   ;;  %v12970_v12 = vld [vmem:[%s18080_s0 + $0x5bc] ss:$80 sps:$4 sm:$0xff]  }
  0xf3   :  { %2150 = vmatpush1.bf16.msra.mxu0 %v12880_v13  ;;  %3459 = vmatpush1.bf16.msra.mxu1 %v12883_v14  ;;  %v12965_v13 = vld [vmem:[%s18080_s0 + $0x5a0] ss:$80 sps:$4 sm:$0xff]   ;;  %v12968_v14 = vld [vmem:[%s18080_s0 + $0x5b8] ss:$80 sps:$4 sm:$0xff]  }
  0xf4   :  { %2151 = vmatprep.subr.bf16.mxu0 %v12888_v16  ;;  %3460 = vmatprep.subr.bf16.mxu1 %v12891_v17  ;;  %v12973_v16 = vld [vmem:[%s18080_s0 + $0x644] ss:$80 sps:$4 sm:$0xff]   ;;  %v12976_v17 = vld [vmem:[%s18080_s0 + $0x65c] ss:$80 sps:$4 sm:$0xff]  }
  0xf7   :  { %2152 = vmatpush1.bf16.msra.mxu0 %v12886_v18  ;;  %3461 = vmatpush1.bf16.msra.mxu1 %v12889_v19  ;;  %v12971_v18 = vld [vmem:[%s18080_s0 + $0x640] ss:$80 sps:$4 sm:$0xff]   ;;  %v12974_v19 = vld [vmem:[%s18080_s0 + $0x658] ss:$80 sps:$4 sm:$0xff]  }
  0xf8   :  { %2153 = vmatprep.subr.bf16.mxu0 %v12894_v20  ;;  %3462 = vmatprep.subr.bf16.mxu1 %v12897_v21  ;;  %v12979_v20 = vld [vmem:[%s18080_s0 + $0x6e4] ss:$80 sps:$4 sm:$0xff]   ;;  %v12984_v21 = vld [vmem:[%s18080_s0 + $0x6fc] ss:$80 sps:$4 sm:$0xff]  }
  0xfb   :  { %2154 = vmatpush1.bf16.msra.mxu0 %v12892_v22  ;;  %3463 = vmatpush1.bf16.msra.mxu1 %v12895_v23  ;;  %v265_v22 = vld [vmem:[%s18080_s0 + $0x780] sm:$0x33]  ;;  %v268_v23 = vld [vmem:[%s18080_s0 + $0x798] sm:$0x33] }
  0xfc   :  { %2155 = vmatprep.subr.bf16.mxu0 %v12900_v24  ;;  %3464 = vmatprep.subr.bf16.mxu1 %v12903_v25  ;;  %v12977_v24 = vld [vmem:[%s18080_s0 + $0x6e0] ss:$80 sps:$4 sm:$0xff]   ;;  %v12982_v25 = vld [vmem:[%s18080_s0 + $0x6f8] ss:$80 sps:$4 sm:$0xff]   ;;  %v11256_v26 = vcombine.high %v265_v22, %v265_v22  ;;  %v11262_v27 = vcombine.high %v268_v23, %v268_v23 }
  0xff   :  { %2156 = vmatpush1.bf16.msra.mxu0 %v12898_v28  ;;  %3465 = vmatpush1.bf16.msra.mxu1 %v12901_v29  ;;  %v11255_v28 = vcombine.low %v265_v22, %v265_v22  ;;  %v11261_v29 = vcombine.low %v268_v23, %v268_v23 }
 0x100   :  { %11032 = vmatprep.subr.msk.bf16.mxu0 %vm1654_vm1, %v11007_v31  ;;  %11276 = vmatprep.subr.msk.bf16.mxu1 %vm1654_vm1, %v11258_v32  ;;  %v12995_v31 = vld [vmem:[%s18080_s0 + $0x2c] ss:$80 sps:$4 sm:$0xff]  }
 0x101   :  { %v3336_v32 = vsel %vm1654_vm1, %v11255_v28, 0  ;;  %v3354_v33 = vsel %vm1654_vm1, %v11261_v29, 0  ;;  %v13071_v28 = vld [vmem:[%s18080_s0 + $0x3c] ss:$80 sps:$4 sm:$0xff]   ;;  %v14853_v29 = vld [vmem:[%s18080_s0 + $0x20] ss:$80 sps:$4 sm:$0xff]  }
 0x103   :  { %2158 = vmatpush1.bf16.msra.mxu0 %v1704_v34  ;;  %3467 = vmatpush1.bf16.msra.mxu1 %v3342_v36  ;;  %v14615_v34 = vld [vmem:[%s18080_s0 + $0x10] ss:$80 sps:$4 sm:$0xff]   ;;  %v14623_v36 = vld [vmem:[%s18080_s0 + $0xb4] ss:$80 sps:$4 sm:$0xff]  }
 0x104   :  { %3389 = vmatprep.subr.bf16.mxu0 %v12910_v35  ;;  %3548 = vmatprep.subr.bf16.mxu1 %v12915_v37  ;;  %v12993_v35 = vld [vmem:[%s18080_s0 + $0x28] ss:$80 sps:$4 sm:$0xff]   ;;  %v13001_v37 = vld [vmem:[%s18080_s0 + $0xcc] ss:$80 sps:$4 sm:$0xff]  }
 0x106   :  { %2166 = vmatmul.mubr.bf16.vlgmr.msra.gmra.mrb[32].mxu0 %v14258_v47  ;;  %3475 = vmatmul.mubr.bf16.vlgmr.msra.gmra.mrb[0].mxu1 %v14432_v39  ;;  %v14468_v47 = vld [vmem:[%s18081_s1 + $0x10] ss:$8 sps:$4 sm:$0xff]  }
 0x107   :  { %3390 = vmatpush1.bf16.msra.mxu0 %v12908_v40  ;;  %3549 = vmatpush1.bf16.msra.mxu1 %v12913_v41  ;;  %v14632_v40 = vld [vmem:[%s18080_s0 + $0xb0] ss:$80 sps:$4 sm:$0xff]   ;;  %v12999_v41 = vld [vmem:[%s18080_s0 + $0xc8] ss:$80 sps:$4 sm:$0xff]  }
 0x108   :  { %3391 = vmatprep.subr.bf16.mxu0 %v12919_v42  ;;  %3550 = vmatprep.subr.bf16.mxu1 %v12922_v43  ;;  %v14643_v42 = vld [vmem:[%s18080_s0 + $0x154] ss:$80 sps:$4 sm:$0xff]   ;;  %v13007_v43 = vld [vmem:[%s18080_s0 + $0x16c] ss:$80 sps:$4 sm:$0xff]  }
 0x109   :  { %11034 = vmatprep.mubr.msk.bf16.mxu0 %vm1647_vm0, %v14277_v52  ;;  %11278 = vmatprep.mubr.msk.bf16.mxu1 %vm1647_vm0, %v14449_v44  ;;  %v12934_v52 = vld [vmem:[%s18080_s0 + $0x1fc] ss:$80 sps:$4 sm:$0xff]  }
 0x10b   :  { %3392 = vmatpush1.bf16.msra.mxu0 %v12917_v45  ;;  %3551 = vmatpush1.bf16.msra.mxu1 %v12920_v46  ;;  %v14652_v45 = vld [vmem:[%s18080_s0 + $0x150] ss:$80 sps:$4 sm:$0xff]   ;;  %v13005_v46 = vld [vmem:[%s18080_s0 + $0x168] ss:$80 sps:$4 sm:$0xff]  }
 0x10c   :  { %3393 = vmatprep.subr.bf16.mxu0 %v12925_v48  ;;  %3552 = vmatprep.subr.bf16.mxu1 %v12928_v49  ;;  %v14665_v48 = vld [vmem:[%s18080_s0 + $0x1f4] ss:$80 sps:$4 sm:$0xff]   ;;  %v13013_v49 = vld [vmem:[%s18080_s0 + $0x20c] ss:$80 sps:$4 sm:$0xff]  }
 0x10e   :  { %2176 = vmatmul.mubr.bf16.gmra.mrb[36].mxu0 %v14309_v60  ;;  %3485 = vmatmul.mubr.bf16.gmra.mrb[4].mxu1 %v14468_v47  ;;  %v12938_v60 = vld [vmem:[%s18080_s0 + $0x298] ss:$80 sps:$4 sm:$0xff]  }
 0x10f   :  { %3394 = vmatpush1.bf16.msra.mxu0 %v12923_v50  ;;  %3553 = vmatpush1.bf16.msra.mxu1 %v12926_v51  ;;  %v14674_v50 = vld [vmem:[%s18080_s0 + $0x1f0] ss:$80 sps:$4 sm:$0xff]   ;;  %v13011_v51 = vld [vmem:[%s18080_s0 + $0x208] ss:$80 sps:$4 sm:$0xff]  }
 0x110   :  { %3395 = vmatprep.subr.bf16.mxu0 %v12931_v53  ;;  %3554 = vmatprep.subr.bf16.mxu1 %v12934_v52  ;;  %v14685_v53 = vld [vmem:[%s18080_s0 + $0x294] ss:$80 sps:$4 sm:$0xff]   ;;  %v13019_v52 = vld [vmem:[%s18080_s0 + $0x2ac] ss:$80 sps:$4 sm:$0xff]  }
 0x111   :  { %11274 = vmatprep.mubr.msk.bf16.mxu0 %vm1647_vm0, %v14298_v59  ;;  %11283 = vmatprep.mubr.msk.bf16.mxu1 %vm1647_vm0, %v14298_v59 }
 0x113   :  { %3396 = vmatpush1.bf16.msra.mxu0 %v12929_v54  ;;  %3555 = vmatpush1.bf16.msra.mxu1 %v12932_v55  ;;  %v14694_v54 = vld [vmem:[%s18080_s0 + $0x290] ss:$80 sps:$4 sm:$0xff]   ;;  %v13017_v55 = vld [vmem:[%s18080_s0 + $0x2a8] ss:$80 sps:$4 sm:$0xff]  }
 0x114   :  { %3397 = vmatprep.subr.bf16.mxu0 %v12937_v56  ;;  %3556 = vmatprep.subr.bf16.mxu1 %v12940_v57  ;;  %v14707_v56 = vld [vmem:[%s18080_s0 + $0x334] ss:$80 sps:$4 sm:$0xff]   ;;  %v13025_v57 = vld [vmem:[%s18080_s0 + $0x34c] ss:$80 sps:$4 sm:$0xff]  }
 0x117   :  { %3398 = vmatpush1.bf16.msra.mxu0 %v12935_v58  ;;  %3557 = vmatpush1.bf16.msra.mxu1 %v12938_v60  ;;  %v13023_v58 = vld [vmem:[%s18080_s0 + $0x348] ss:$80 sps:$4 sm:$0xff]   ;;  %v14726_v60 = vld [vmem:[%s18080_s0 + $0x3d4] ss:$80 sps:$4 sm:$0xff]  }
 0x118   :  { %3399 = vmatprep.subr.bf16.mxu0 %v12943_v10  ;;  %3558 = vmatprep.subr.bf16.mxu1 %v12946_v61  ;;  %v13031_v10 = vld [vmem:[%s18080_s0 + $0x3ec] ss:$80 sps:$4 sm:$0xff]   ;;  %v14735_v61 = vld [vmem:[%s18080_s0 + $0x3d0] ss:$80 sps:$4 sm:$0xff]  }
 0x11b   :  { %3400 = vmatpush1.bf16.msra.mxu0 %v12941_v62  ;;  %3559 = vmatpush1.bf16.msra.mxu1 %v12944_v63  ;;  %v13029_v62 = vld [vmem:[%s18080_s0 + $0x3e8] ss:$80 sps:$4 sm:$0xff]   ;;  %v14744_v63 = vld [vmem:[%s18080_s0 + $0x474] ss:$80 sps:$4 sm:$0xff]  }
 0x11c   :  { %3401 = vmatprep.subr.bf16.mxu0 %v12949_v0  ;;  %3560 = vmatprep.subr.bf16.mxu1 %v12952_v15  ;;  %v13037_v0 = vld [vmem:[%s18080_s0 + $0x48c] ss:$80 sps:$4 sm:$0xff]   ;;  %v14753_v15 = vld [vmem:[%s18080_s0 + $0x470] ss:$80 sps:$4 sm:$0xff]  }
 0x11f   :  { %3402 = vmatpush1.bf16.msra.mxu0 %v12947_v1  ;;  %3561 = vmatpush1.bf16.msra.mxu1 %v12950_v2  ;;  %v13035_v1 = vld [vmem:[%s18080_s0 + $0x488] ss:$80 sps:$4 sm:$0xff]   ;;  %v14762_v2 = vld [vmem:[%s18080_s0 + $0x514] ss:$80 sps:$4 sm:$0xff]  }
 0x120   :  { %3403 = vmatprep.subr.bf16.mxu0 %v12955_v3  ;;  %3562 = vmatprep.subr.bf16.mxu1 %v12958_v4  ;;  %v13043_v3 = vld [vmem:[%s18080_s0 + $0x52c] ss:$80 sps:$4 sm:$0xff]   ;;  %v14771_v4 = vld [vmem:[%s18080_s0 + $0x510] ss:$80 sps:$4 sm:$0xff]  }
 0x123   :  { %3404 = vmatpush1.bf16.msra.mxu0 %v12953_v5  ;;  %3563 = vmatpush1.bf16.msra.mxu1 %v12956_v6  ;;  %v13041_v5 = vld [vmem:[%s18080_s0 + $0x528] ss:$80 sps:$4 sm:$0xff]   ;;  %v14780_v6 = vld [vmem:[%s18080_s0 + $0x5b4] ss:$80 sps:$4 sm:$0xff]  }
 0x124   :  { %3405 = vmatprep.subr.bf16.mxu0 %v12961_v7  ;;  %3564 = vmatprep.subr.bf16.mxu1 %v12964_v8  ;;  %v13049_v7 = vld [vmem:[%s18080_s0 + $0x5cc] ss:$80 sps:$4 sm:$0xff]   ;;  %v14789_v8 = vld [vmem:[%s18080_s0 + $0x5b0] ss:$80 sps:$4 sm:$0xff]  }
 0x127   :  { %3406 = vmatpush1.bf16.msra.mxu0 %v12959_v9  ;;  %3565 = vmatpush1.bf16.msra.mxu1 %v12962_v11  ;;  %v13047_v9 = vld [vmem:[%s18080_s0 + $0x5c8] ss:$80 sps:$4 sm:$0xff]   ;;  %v14798_v11 = vld [vmem:[%s18080_s0 + $0x654] ss:$80 sps:$4 sm:$0xff]  }
 0x128   :  { %3407 = vmatprep.subr.bf16.mxu0 %v12967_v38  ;;  %3566 = vmatprep.subr.bf16.mxu1 %v12970_v12  ;;  %v13055_v38 = vld [vmem:[%s18080_s0 + $0x66c] ss:$80 sps:$4 sm:$0xff]   ;;  %v14807_v12 = vld [vmem:[%s18080_s0 + $0x650] ss:$80 sps:$4 sm:$0xff]  }
 0x12b   :  { %3408 = vmatpush1.bf16.msra.mxu0 %v12965_v13  ;;  %3567 = vmatpush1.bf16.msra.mxu1 %v12968_v14  ;;  %v13053_v13 = vld [vmem:[%s18080_s0 + $0x668] ss:$80 sps:$4 sm:$0xff]   ;;  %v14816_v14 = vld [vmem:[%s18080_s0 + $0x6f4] ss:$80 sps:$4 sm:$0xff]  }
 0x12c   :  { %3409 = vmatprep.subr.bf16.mxu0 %v12973_v16  ;;  %3568 = vmatprep.subr.bf16.mxu1 %v12976_v17  ;;  %v13061_v16 = vld [vmem:[%s18080_s0 + $0x70c] ss:$80 sps:$4 sm:$0xff]   ;;  %v267_v17 = vld [vmem:[%s18080_s0 + $0x790] sm:$0x33] }
 0x12d   :  { %v11259_v23 = vcombine.low %v267_v17, %v267_v17 }
 0x12f   :  { %3410 = vmatpush1.bf16.msra.mxu0 %v12971_v18  ;;  %3569 = vmatpush1.bf16.msra.mxu1 %v12974_v19  ;;  %v270_v18 = vld [vmem:[%s18080_s0 + $0x7a8] sm:$0x33]  ;;  %v14831_v19 = vld [vmem:[%s18080_s0 + $0x6f0] ss:$80 sps:$4 sm:$0xff]  }
 0x130   :  { %3411 = vmatprep.subr.bf16.mxu0 %v12979_v20  ;;  %3570 = vmatprep.subr.bf16.mxu1 %v12984_v21  ;;  %v13059_v20 = vld [vmem:[%s18080_s0 + $0x708] ss:$80 sps:$4 sm:$0xff]   ;;  %v11260_v21 = vcombine.high %v267_v17, %v267_v17  ;;  %v11266_v22 = vcombine.high %v270_v18, %v270_v18  ;;  %v14996_v17 = vld [vmem:[%s18080_s0 + $0x480] ss:$80 sps:$4 sm:$0xff]  }
 0x133   :  { %3412 = vmatpush1.bf16.msra.mxu0 %v12977_v24  ;;  %3571 = vmatpush1.bf16.msra.mxu1 %v12982_v25  ;;  %v11265_v24 = vcombine.low %v270_v18, %v270_v18  ;;  %v3348_v25 = vsel %vm1654_vm1, %v11259_v23, 0  ;;  %v13111_v18 = vld [vmem:[%s18080_s0 + $0x498] ss:$80 sps:$4 sm:$0xff]  }
 0x134   :  { %11273 = vmatprep.subr.msk.bf16.mxu0 %vm1654_vm1, %v11256_v26  ;;  %11282 = vmatprep.subr.msk.bf16.mxu1 %vm1654_vm1, %v11262_v27  ;;  %v14845_v27 = vld [vmem:[%s18080_s0 + $0x24] ss:$80 sps:$4 sm:$0xff]   ;;  %v13117_v23 = vld [vmem:[%s18080_s0 + $0x538] ss:$80 sps:$4 sm:$0xff]  }
 0x135   :  { %v3366_v26 = vsel %vm1654_vm1, %v11265_v24, 0  ;;  %v15023_v24 = vld [vmem:[%s18080_s0 + $0x5c4] ss:$80 sps:$4 sm:$0xff]  }
 0x137   :  { %3414 = vmatpush1.bf16.msra.mxu0 %v3336_v32  ;;  %3573 = vmatpush1.bf16.msra.mxu1 %v3354_v33  ;;  %v14862_v32 = vld [vmem:[%s18080_s0 + $0xc4] ss:$80 sps:$4 sm:$0xff]   ;;  %v13077_v33 = vld [vmem:[%s18080_s0 + $0xdc] ss:$80 sps:$4 sm:$0xff]  }
 0x138   :  { %3495 = vmatprep.subr.bf16.mxu0 %v14603_v30  ;;  %3654 = vmatprep.subr.bf16.mxu1 %v12995_v31  ;;  %v13069_v31 = vld [vmem:[%s18080_s0 + $0x38] ss:$80 sps:$4 sm:$0xff]  }
 0x13a   :  { %3422 = vmatmul.mubr.bf16.vlgmr.msra.gmra.mrb[0].mxu0 %v14432_v39  ;;  %3581 = vmatmul.mubr.bf16.vlgmr.msra.gmra.mrb[8].mxu1 %v14432_v39 }
 0x13b   :  { %3496 = vmatpush1.bf16.msra.mxu0 %v14615_v34  ;;  %3655 = vmatpush1.bf16.msra.mxu1 %v12993_v35  ;;  %v14873_v35 = vld [vmem:[%s18080_s0 + $0xc0] ss:$80 sps:$4 sm:$0xff]  }
 0x13c   :  { %3497 = vmatprep.subr.bf16.mxu0 %v14623_v36  ;;  %3656 = vmatprep.subr.bf16.mxu1 %v13001_v37  ;;  %v13075_v37 = vld [vmem:[%s18080_s0 + $0xd8] ss:$80 sps:$4 sm:$0xff]  }
 0x13d   :  { %11275 = vmatprep.mubr.msk.bf16.mxu0 %vm1647_vm0, %v14449_v44  ;;  %11284 = vmatprep.mubr.msk.bf16.mxu1 %vm1647_vm0, %v14449_v44 }
 0x13f   :  { %3498 = vmatpush1.bf16.msra.mxu0 %v14632_v40  ;;  %3657 = vmatpush1.bf16.msra.mxu1 %v12999_v41  ;;  %v14882_v41 = vld [vmem:[%s18080_s0 + $0x164] ss:$80 sps:$4 sm:$0xff]  }
 0x140   :  { %3499 = vmatprep.subr.bf16.mxu0 %v14643_v42  ;;  %3658 = vmatprep.subr.bf16.mxu1 %v13007_v43  ;;  %v14895_v43 = vld [vmem:[%s18080_s0 + $0x160] ss:$80 sps:$4 sm:$0xff]  }
 0x142   :  { %3432 = vmatmul.mubr.bf16.gmra.mrb[4].mxu0 %v14468_v47  ;;  %3591 = vmatmul.mubr.bf16.gmra.mrb[12].mxu1 %v14468_v47 }
 0x143   :  { %3500 = vmatpush1.bf16.msra.mxu0 %v14652_v45  ;;  %3659 = vmatpush1.bf16.msra.mxu1 %v13005_v46  ;;  %v13081_v46 = vld [vmem:[%s18080_s0 + $0x178] ss:$80 sps:$4 sm:$0xff]  }
 0x144   :  { %3501 = vmatprep.subr.bf16.mxu0 %v14665_v48  ;;  %3660 = vmatprep.subr.bf16.mxu1 %v13013_v49  ;;  %v14904_v49 = vld [vmem:[%s18080_s0 + $0x204] ss:$80 sps:$4 sm:$0xff]  }
 0x145   :  { %11280 = vmatprep.mubr.msk.bf16.mxu0 %vm1647_vm0, %v14298_v59  ;;  %11289 = vmatprep.mubr.msk.bf16.mxu1 %vm1647_vm0, %v14298_v59  ;;  %v14717_v59 = vld [vmem:[%s18080_s0 + $0x330] ss:$80 sps:$4 sm:$0xff]  }
 0x147   :  { %3502 = vmatpush1.bf16.msra.mxu0 %v14674_v50  ;;  %3661 = vmatpush1.bf16.msra.mxu1 %v13011_v51  ;;  %v14915_v51 = vld [vmem:[%s18080_s0 + $0x200] ss:$80 sps:$4 sm:$0xff]  }
 0x148   :  { %3503 = vmatprep.subr.bf16.mxu0 %v14685_v53  ;;  %3662 = vmatprep.subr.bf16.mxu1 %v13019_v52  ;;  %v13087_v52 = vld [vmem:[%s18080_s0 + $0x218] ss:$80 sps:$4 sm:$0xff]  }
 0x14b   :  { %3504 = vmatpush1.bf16.msra.mxu0 %v14694_v54  ;;  %3663 = vmatpush1.bf16.msra.mxu1 %v13017_v55  ;;  %v14924_v55 = vld [vmem:[%s18080_s0 + $0x2a4] ss:$80 sps:$4 sm:$0xff]  }
 0x14c   :  { %3505 = vmatprep.subr.bf16.mxu0 %v14707_v56  ;;  %3664 = vmatprep.subr.bf16.mxu1 %v13025_v57  ;;  %v14932_v57 = vld [vmem:[%s18081_s1 + $0x4] ss:$8 sps:$4 sm:$0xff]  }
 0x14f   :  { %3506 = vmatpush1.bf16.msra.mxu0 %v14717_v59  ;;  %3665 = vmatpush1.bf16.msra.mxu1 %v13023_v58  ;;  %v14942_v58 = vld [vmem:[%s18080_s0 + $0x2a0] ss:$80 sps:$4 sm:$0xff]  }
 0x150   :  { %3507 = vmatprep.subr.bf16.mxu0 %v14726_v60  ;;  %3666 = vmatprep.subr.bf16.mxu1 %v13031_v10  ;;  %v13093_v10 = vld [vmem:[%s18080_s0 + $0x2b8] ss:$80 sps:$4 sm:$0xff]  }
 0x153   :  { %3508 = vmatpush1.bf16.msra.mxu0 %v14735_v61  ;;  %3667 = vmatpush1.bf16.msra.mxu1 %v13029_v62  ;;  %v14951_v62 = vld [vmem:[%s18080_s0 + $0x344] ss:$80 sps:$4 sm:$0xff]  }
 0x154   :  { %3509 = vmatprep.subr.bf16.mxu0 %v14744_v63  ;;  %3668 = vmatprep.subr.bf16.mxu1 %v13037_v0  ;;  %v13101_v0 = vld [vmem:[%s18080_s0 + $0x35c] ss:$80 sps:$4 sm:$0xff]  }
 0x157   :  { %3510 = vmatpush1.bf16.msra.mxu0 %v14753_v15  ;;  %3669 = vmatpush1.bf16.msra.mxu1 %v13035_v1  ;;  %v14960_v1 = vld [vmem:[%s18080_s0 + $0x340] ss:$80 sps:$4 sm:$0xff]  }
 0x158   :  { %3511 = vmatprep.subr.bf16.mxu0 %v14762_v2  ;;  %3670 = vmatprep.subr.bf16.mxu1 %v13043_v3  ;;  %v13099_v3 = vld [vmem:[%s18080_s0 + $0x358] ss:$80 sps:$4 sm:$0xff]  }
 0x15b   :  { %3512 = vmatpush1.bf16.msra.mxu0 %v14771_v4  ;;  %3671 = vmatpush1.bf16.msra.mxu1 %v13041_v5  ;;  %v14969_v5 = vld [vmem:[%s18080_s0 + $0x3e4] ss:$80 sps:$4 sm:$0xff]  }
 0x15c   :  { %3513 = vmatprep.subr.bf16.mxu0 %v14780_v6  ;;  %3672 = vmatprep.subr.bf16.mxu1 %v13049_v7  ;;  %v13107_v7 = vld [vmem:[%s18080_s0 + $0x3fc] ss:$80 sps:$4 sm:$0xff]  }
 0x15f   :  { %3514 = vmatpush1.bf16.msra.mxu0 %v14789_v8  ;;  %3673 = vmatpush1.bf16.msra.mxu1 %v13047_v9  ;;  %v14978_v9 = vld [vmem:[%s18080_s0 + $0x3e0] ss:$80 sps:$4 sm:$0xff]  }
 0x160   :  { %3515 = vmatprep.subr.bf16.mxu0 %v14798_v11  ;;  %3674 = vmatprep.subr.bf16.mxu1 %v13055_v38  ;;  %v13105_v38 = vld [vmem:[%s18080_s0 + $0x3f8] ss:$80 sps:$4 sm:$0xff]  }
 0x163   :  { %3516 = vmatpush1.bf16.msra.mxu0 %v14807_v12  ;;  %3675 = vmatpush1.bf16.msra.mxu1 %v13053_v13  ;;  %v14987_v13 = vld [vmem:[%s18080_s0 + $0x484] ss:$80 sps:$4 sm:$0xff]  }
 0x164   :  { %3517 = vmatprep.subr.bf16.mxu0 %v14816_v14  ;;  %3676 = vmatprep.subr.bf16.mxu1 %v13061_v16  ;;  %v13113_v16 = vld [vmem:[%s18080_s0 + $0x49c] ss:$80 sps:$4 sm:$0xff]  }
 0x167   :  { %3518 = vmatpush1.bf16.msra.mxu0 %v14831_v19  ;;  %3677 = vmatpush1.bf16.msra.mxu1 %v13059_v20  ;;  %v15005_v20 = vld [vmem:[%s18080_s0 + $0x524] ss:$80 sps:$4 sm:$0xff]  }
 0x168   :  { %11279 = vmatprep.subr.msk.bf16.mxu0 %vm1654_vm1, %v11260_v21  ;;  %11288 = vmatprep.subr.msk.bf16.mxu1 %vm1654_vm1, %v11266_v22  ;;  %v13119_v21 = vld [vmem:[%s18080_s0 + $0x53c] ss:$80 sps:$4 sm:$0xff]   ;;  %v15014_v22 = vld [vmem:[%s18080_s0 + $0x520] ss:$80 sps:$4 sm:$0xff]  }
 0x16b   :  { %3520 = vmatpush1.bf16.msra.mxu0 %v3348_v25  ;;  %3679 = vmatpush1.bf16.msra.mxu1 %v3366_v26  ;;  %v13125_v25 = vld [vmem:[%s18080_s0 + $0x5dc] ss:$80 sps:$4 sm:$0xff]   ;;  %v15032_v26 = vld [vmem:[%s18080_s0 + $0x5c0] ss:$80 sps:$4 sm:$0xff]  }
 0x16c   :  { %3601 = vmatprep.subr.bf16.mxu0 %v14845_v27  ;;  %3760 = vmatprep.subr.bf16.mxu1 %v13071_v28  ;;  %v13123_v28 = vld [vmem:[%s18080_s0 + $0x5d8] ss:$80 sps:$4 sm:$0xff]  }
 0x16e   :  { %3528 = vmatmul.mubr.bf16.vlgmr.msra.gmra.mrb[8].mxu0 %v14432_v39  ;;  %3687 = vmatmul.mubr.bf16.vlgmr.msra.gmra.mrb[16].mxu1 %v14432_v39  ;;  %v13083_v39 = vld [vmem:[%s18080_s0 + $0x17c] ss:$80 sps:$4 sm:$0xff]  }
 0x16f   :  { %3602 = vmatpush1.bf16.msra.mxu0 %v14853_v29  ;;  %3761 = vmatpush1.bf16.msra.mxu1 %v13069_v31  ;;  %v15041_v31 = vld [vmem:[%s18080_s0 + $0x664] ss:$80 sps:$4 sm:$0xff]  }
 0x170   :  { %3603 = vmatprep.subr.bf16.mxu0 %v14862_v32  ;;  %3762 = vmatprep.subr.bf16.mxu1 %v13077_v33  ;;  %v13131_v33 = vld [vmem:[%s18080_s0 + $0x67c] ss:$80 sps:$4 sm:$0xff]  }
 0x171   :  { %11281 = vmatprep.mubr.msk.bf16.mxu0 %vm1647_vm0, %v14449_v44  ;;  %11290 = vmatprep.mubr.msk.bf16.mxu1 %vm1647_vm0, %v14449_v44  ;;  %v13089_v44 = vld [vmem:[%s18080_s0 + $0x21c] ss:$80 sps:$4 sm:$0xff]  }
 0x173   :  { %3604 = vmatpush1.bf16.msra.mxu0 %v14873_v35  ;;  %3763 = vmatpush1.bf16.msra.mxu1 %v13075_v37  ;;  %v15050_v37 = vld [vmem:[%s18080_s0 + $0x660] ss:$80 sps:$4 sm:$0xff]  }
 0x174   :  { %3605 = vmatprep.subr.bf16.mxu0 %v14882_v41  ;;  %3764 = vmatprep.subr.bf16.mxu1 %v13083_v39  ;;  %v13129_v39 = vld [vmem:[%s18080_s0 + $0x678] ss:$80 sps:$4 sm:$0xff]  }
 0x176   :  { %3538 = vmatmul.mubr.bf16.gmra.mrb[12].mxu0 %v14468_v47  ;;  %3697 = vmatmul.mubr.bf16.gmra.mrb[20].mxu1 %v14468_v47  ;;  %v13095_v47 = vld [vmem:[%s18080_s0 + $0x2bc] ss:$80 sps:$4 sm:$0xff]  }
 0x177   :  { %3606 = vmatpush1.bf16.msra.mxu0 %v14895_v43  ;;  %3765 = vmatpush1.bf16.msra.mxu1 %v13081_v46  ;;  %v5848_v46 = vld [vmem:[%s18082_s2] sm:$0xff] }
 0x178   :  { %3607 = vmatprep.subr.bf16.mxu0 %v14904_v49  ;;  %3766 = vmatprep.subr.bf16.mxu1 %v13089_v44  ;;  %v15062_v44 = vld [vmem:[%s18080_s0 + $0x704] ss:$80 sps:$4 sm:$0xff]  }
 0x179   :  { %11286 = vmatprep.mubr.msk.bf16.mxu0 %vm1647_vm0, %v14932_v57  ;;  %11295 = vmatprep.mubr.msk.bf16.mxu1 %vm1647_vm0, %v14932_v57 }
 0x17b   :  { %3608 = vmatpush1.bf16.msra.mxu0 %v14915_v51  ;;  %3767 = vmatpush1.bf16.msra.mxu1 %v13087_v52  ;;  %v13137_v52 = vld [vmem:[%s18080_s0 + $0x71c] ss:$80 sps:$4 sm:$0xff]  }
 0x17c   :  { %3609 = vmatprep.subr.bf16.mxu0 %v14924_v55  ;;  %3768 = vmatprep.subr.bf16.mxu1 %v13095_v47  ;;  %v269_v47 = vld [vmem:[%s18080_s0 + $0x7a0] sm:$0x33] }
 0x17f   :  { %3610 = vmatpush1.bf16.msra.mxu0 %v14942_v58  ;;  %3769 = vmatpush1.bf16.msra.mxu1 %v13093_v10  ;;  %v272_v10 = vld [vmem:[%s18080_s0 + $0x7b8] sm:$0x33] }
 0x180   :  { %3611 = vmatprep.subr.bf16.mxu0 %v14951_v62  ;;  %3770 = vmatprep.subr.bf16.mxu1 %v13101_v0  ;;  %v18094_v0 = vmov 0  }
 0x181   :  { %12520 = vset.pattern.permute.xlu0 %v18094_v0  ;;  %12521 = vset.pattern.permute.xlu1 %v18094_v0  ;;  %v9940_v0 = vld [vmem:[%s18085_s7] sm:$0xff] }
 0x182   :  { %5854 = vperm.xlu0 %12520, %v5848_v46   ;;  %v15102_v46 = vld [vmem:[%s18080_s0 + $0x34] ss:$80 sps:$4 sm:$0xff]  }
 0x183   :  { %3612 = vmatpush1.bf16.msra.mxu0 %v14960_v1  ;;  %3771 = vmatpush1.bf16.msra.mxu1 %v13099_v3  ;;  %v15079_v3 = vld [vmem:[%s18080_s0 + $0x700] ss:$80 sps:$4 sm:$0xff]  }
 0x184   :  { %3613 = vmatprep.subr.bf16.mxu0 %v14969_v5  ;;  %3772 = vmatprep.subr.bf16.mxu1 %v13107_v7  ;;  %v13135_v7 = vld [vmem:[%s18080_s0 + $0x718] ss:$80 sps:$4 sm:$0xff]  }
 0x187   :  { %3614 = vmatpush1.bf16.msra.mxu0 %v14978_v9  ;;  %3773 = vmatpush1.bf16.msra.mxu1 %v13105_v38  ;;  %v11264_v38 = vcombine.high %v269_v47, %v269_v47 }
 0x188   :  { %3615 = vmatprep.subr.bf16.mxu0 %v14987_v13  ;;  %3774 = vmatprep.subr.bf16.mxu1 %v13113_v16  ;;  %v5849_v16 = vld [vmem:[%s18082_s2 + $0x8] sm:$0xff] }
 0x189   :  { %5859 = vperm.xlu0 %12520, %v5849_v16   ;;  %v7754_v16 = vld [vmem:[%s18083_s4 + $0x8] sm:$0xff] }
 0x18b   :  { %3616 = vmatpush1.bf16.msra.mxu0 %v14996_v17  ;;  %3775 = vmatpush1.bf16.msra.mxu1 %v13111_v18  ;;  %v11270_v18 = vcombine.high %v272_v10, %v272_v10 }
 0x18c   :  { %3617 = vmatprep.subr.bf16.mxu0 %v15005_v20  ;;  %3776 = vmatprep.subr.bf16.mxu1 %v13119_v21  ;;  %v11263_v21 = vcombine.low %v269_v47, %v269_v47  ;;  %v5851_v47 = vld [vmem:[%s18082_s2 + $0x18] sm:$0xff] }
 0x18f   :  { %3618 = vmatpush1.bf16.msra.mxu0 %v15014_v22  ;;  %3777 = vmatpush1.bf16.msra.mxu1 %v13117_v23  ;;  %v11269_v23 = vcombine.low %v272_v10, %v272_v10  ;;  %v15117_v10 = vld [vmem:[%s18080_s0 + $0xd4] ss:$80 sps:$4 sm:$0xff]  }
 0x190   :  { %3619 = vmatprep.subr.bf16.mxu0 %v15023_v24  ;;  %3778 = vmatprep.subr.bf16.mxu1 %v13125_v25  ;;  %v5850_v25 = vld [vmem:[%s18082_s2 + $0x10] sm:$0xff] }
 0x191   :  { %5864 = vperm.xlu1 %12521, %v5850_v25   ;;  %v7755_v25 = vld [vmem:[%s18083_s4 + $0x10] sm:$0xff] }
 0x193   :  { %3620 = vmatpush1.bf16.msra.mxu0 %v15032_v26  ;;  %3779 = vmatpush1.bf16.msra.mxu1 %v13123_v28  ;;  %v7753_v28 = vld [vmem:[%s18083_s4] sm:$0xff] }
 0x194   :  { %3621 = vmatprep.subr.bf16.mxu0 %v15041_v31  ;;  %3780 = vmatprep.subr.bf16.mxu1 %v13131_v33  ;;  %v3360_v33 = vsel %vm1654_vm1, %v11263_v21, 0  ;;  %v15167_v21 = vld [vmem:[%s18080_s0 + $0x214] ss:$80 sps:$4 sm:$0xff]  }
 0x195   :  { %7761 = vperm.xlu0 %12520, %v7753_v28   ;;  %5869 = vperm.xlu1 %12521, %v5851_v47   ;;  %v7757_v28 = vld [vmem:[%s18083_s4 + $0x20] sm:$0xff] }
 0x196   :  { %v15230_v47 = vld [vmem:[%s18080_s0 + $0x350] ss:$80 sps:$4 sm:$0xff]  }
 0x197   :  { %3622 = vmatpush1.bf16.msra.mxu0 %v15050_v37  ;;  %3781 = vmatpush1.bf16.msra.mxu1 %v13129_v39  ;;  %v3378_v39 = vsel %vm1654_vm1, %v11269_v23, 0  ;;  %v15172_v23 = vld [vmem:[%s18081_s1 + $0x44] ss:$8 sps:$4 sm:$0xff]  }
 0x198   :  { %3623 = vmatprep.subr.bf16.mxu0 %v15062_v44  ;;  %3782 = vmatprep.subr.bf16.mxu1 %v13137_v52  ;;  %v15107_v52 = vld [vmem:[%s18080_s0 + $0x30] ss:$80 sps:$4 sm:$0xff]  }
 0x199   :  { %7766 = vperm.xlu1 %12521, %v7754_v16   ;;  %v15250_v16 = vld [vmem:[%s18080_s0 + $0x3f0] ss:$80 sps:$4 sm:$0xff]  }
 0x19b   :  { %3624 = vmatpush1.bf16.msra.mxu0 %v15079_v3  ;;  %3783 = vmatpush1.bf16.msra.mxu1 %v13135_v7  ;;  %v15122_v7 = vld [vmem:[%s18081_s1] ss:$8 sps:$4 sm:$0xff]  }
 0x19c   :  { %11285 = vmatprep.subr.msk.bf16.mxu0 %vm1654_vm1, %v11264_v38  ;;  %11294 = vmatprep.subr.msk.bf16.mxu1 %vm1654_vm1, %v11270_v18  ;;  %v7756_v38 = vld [vmem:[%s18083_s4 + $0x18] sm:$0xff] }
 0x19d   :  { %v15149_v18 = vld [vmem:[%s18081_s1 + $0x14] ss:$8 sps:$4 sm:$0xff]   ;;  %7776 = vperm.xlu0 %12520, %v7756_v38   ;;  %7781 = vperm.xlu1 %12521, %v7757_v28   ;;  %v9451_v38 = vld [vmem:[%s18084_s6 + $0x8] sm:$0xff]  ;;  %v15270_v28 = vld [vmem:[%s18080_s0 + $0x490] ss:$80 sps:$4 sm:$0xff]  }
 0x19f   :  { %3626 = vmatpush1.bf16.msra.mxu0 %v3360_v33  ;;  %3785 = vmatpush1.bf16.msra.mxu1 %v3378_v39  ;;  %v9450_v33 = vld [vmem:[%s18084_s6] sm:$0xff]  ;;  %v7758_v39 = vld [vmem:[%s18083_s4 + $0x28] sm:$0xff] }
 0x1a0   :  { %3707 = vmatprep.subr.bf16.mxu0 %v15102_v46  ;;  %5352 = vmatprep.subr.bf16.mxu1 %v14603_v30  ;;  %v15131_v30 = vld [vmem:[%s18080_s0 + $0xd0] ss:$80 sps:$4 sm:$0xff]  }
 0x1a1   :  { %7771 = vperm.xlu0 %12520, %v7755_v25   ;;  %7786 = vperm.xlu1 %12521, %v7758_v39   ;;  %v9459_v25 = vld [vmem:[%s18084_s6 + $0x48] sm:$0xff]  ;;  %v15290_v39 = vld [vmem:[%s18080_s0 + $0x530] ss:$80 sps:$4 sm:$0xff]  }
 0x1a2   :  { %3634 = vmatmul.mubr.bf16.vlgmr.msra.gmra.mrb[16].mxu0 %v15122_v7  ;;  %3793 = vmatmul.mubr.bf16.vlgmr.msra.gmra.mrb[24].mxu1 %v15122_v7 }
 0x1a3   :  { %3708 = vmatpush1.bf16.msra.mxu0 %v15107_v52  ;;  %5353 = vmatpush1.bf16.msra.mxu1 %v14615_v34  ;;  %v15144_v34 = vld [vmem:[%s18080_s0 + $0x174] ss:$80 sps:$4 sm:$0xff]  }
 0x1a4   :  { %3709 = vmatprep.subr.bf16.mxu0 %v15117_v10  ;;  %5354 = vmatprep.subr.bf16.mxu1 %v14623_v36  ;;  %v15160_v36 = vld [vmem:[%s18080_s0 + $0x170] ss:$80 sps:$4 sm:$0xff]  }
 0x1a5   :  { %11296 = vmatprep.mubr.msk.bf16.mxu1 %vm1647_vm0, %v15149_v18  ;;  %11287 = vmatprep.mubr.msk.bf16.mxu0 %vm1647_vm0, %v15149_v18 }
 0x1a6   :  { %9468 = vperm.xlu0 %12520, %v9450_v33   ;;  %9473 = vperm.xlu1 %12521, %v9451_v38   ;;  %v9460_v33 = vld [vmem:[%s18084_s6 + $0x50] sm:$0xff] }
 0x1a7   :  { %3710 = vmatpush1.bf16.msra.mxu0 %v15131_v30  ;;  %5355 = vmatpush1.bf16.msra.mxu1 %v14632_v40  ;;  %v15177_v40 = vld [vmem:[%s18081_s1 + $0x10] ss:$8 sps:$4 sm:$0xff]  }
 0x1a8   :  { %3711 = vmatprep.subr.bf16.mxu0 %v15144_v34  ;;  %5356 = vmatprep.subr.bf16.mxu1 %v14643_v42  ;;  %v15186_v42 = vld [vmem:[%s18080_s0 + $0x210] ss:$80 sps:$4 sm:$0xff]  }
 0x1a9   :  { %v15310_v38 = vld [vmem:[%s18080_s0 + $0x5d0] ss:$80 sps:$4 sm:$0xff]  }
 0x1aa   :  { %3803 = vmatmul.mubr.bf16.gmra.mrb[28].mxu1 %v15177_v40  ;;  %3644 = vmatmul.mubr.bf16.gmra.mrb[20].mxu0 %v15177_v40 }
 0x1ab   :  { %3712 = vmatpush1.bf16.msra.mxu0 %v15160_v36  ;;  %5357 = vmatpush1.bf16.msra.mxu1 %v14652_v45  ;;  %v15199_v45 = vld [vmem:[%s18080_s0 + $0x2b4] ss:$80 sps:$4 sm:$0xff]  }
 0x1ac   :  { %3713 = vmatprep.subr.bf16.mxu0 %v15167_v21  ;;  %5358 = vmatprep.subr.bf16.mxu1 %v14665_v48  ;;  %v15210_v48 = vld [vmem:[%s18080_s0 + $0x2b0] ss:$80 sps:$4 sm:$0xff]  }
 0x1ad   :  { %11546 = vmatprep.mubr.msk.bf16.mxu1 %vm1647_vm0, %v15172_v23  ;;  %11292 = vmatprep.mubr.msk.bf16.mxu0 %vm1647_vm0, %v14932_v57 }
 0x1ae   :  { %9513 = vperm.xlu1 %12521, %v9459_v25   ;;  %v15330_v25 = vld [vmem:[%s18080_s0 + $0x670] ss:$80 sps:$4 sm:$0xff]  }
 0x1af   :  { %3714 = vmatpush1.bf16.msra.mxu0 %v15186_v42  ;;  %5359 = vmatpush1.bf16.msra.mxu1 %v14674_v50  ;;  %v15223_v50 = vld [vmem:[%s18080_s0 + $0x354] ss:$80 sps:$4 sm:$0xff]   ;;  %18115 = vst [vmem:[#allocation2_spill] sm:$0xff] %v15330_v25 }
 0x1b0   :  { %3715 = vmatprep.subr.bf16.mxu0 %v15199_v45  ;;  %5360 = vmatprep.subr.bf16.mxu1 %v14685_v53  ;;  %v9458_v53 = vld [vmem:[%s18084_s6 + $0x40] sm:$0xff] }
 0x1b1   :  { %9508 = vperm.xlu0 %12520, %v9458_v53   ;;  %v9461_v53 = vld [vmem:[%s18084_s6 + $0x58] sm:$0xff] }
 0x1b2   :  { %9518 = vperm.xlu1 %12521, %v9460_v33   ;;  %v271_v33 = vld [vmem:[%s18080_s0 + $0x7b0] sm:$0x33] }
 0x1b3   :  { %3716 = vmatpush1.bf16.msra.mxu0 %v15210_v48  ;;  %5361 = vmatpush1.bf16.msra.mxu1 %v14694_v54  ;;  %v15243_v54 = vld [vmem:[%s18080_s0 + $0x3f4] ss:$80 sps:$4 sm:$0xff]  }
 0x1b4   :  { %3717 = vmatprep.subr.bf16.mxu0 %v15223_v50  ;;  %5362 = vmatprep.subr.bf16.mxu1 %v14707_v56  ;;  %v9452_v56 = vld [vmem:[%s18084_s6 + $0x10] sm:$0xff] }
 0x1b5   :  { %9478 = vperm.xlu0 %12520, %v9452_v56   ;;  %v9462_v56 = vld [vmem:[%s18084_s6 + $0x60] sm:$0xff] }
 0x1b6   :  { %9523 = vperm.xlu1 %12521, %v9461_v53   ;;  %v11268_v53 = vcombine.high %v271_v33, %v271_v33 }
 0x1b7   :  { %3718 = vmatpush1.bf16.msra.mxu0 %v15230_v47  ;;  %5363 = vmatpush1.bf16.msra.mxu1 %v14717_v59  ;;  %v15263_v59 = vld [vmem:[%s18080_s0 + $0x494] ss:$80 sps:$4 sm:$0xff]  }
 0x1b8   :  { %3719 = vmatprep.subr.bf16.mxu0 %v15243_v54  ;;  %5364 = vmatprep.subr.bf16.mxu1 %v14726_v60  ;;  %v9453_v60 = vld [vmem:[%s18084_s6 + $0x18] sm:$0xff] }
 0x1b9   :  { %9483 = vperm.xlu0 %12520, %v9453_v60   ;;  %v9463_v60 = vld [vmem:[%s18084_s6 + $0x68] sm:$0xff] }
 0x1ba   :  { %9528 = vperm.xlu1 %12521, %v9462_v56   ;;  %v9464_v56 = vld [vmem:[%s18084_s6 + $0x70] sm:$0xff] }
 0x1bb   :  { %3720 = vmatpush1.bf16.msra.mxu0 %v15250_v16  ;;  %5365 = vmatpush1.bf16.msra.mxu1 %v14735_v61  ;;  %v15283_v61 = vld [vmem:[%s18080_s0 + $0x534] ss:$80 sps:$4 sm:$0xff]  }
 0x1bc   :  { %3721 = vmatprep.subr.bf16.mxu0 %v15263_v59  ;;  %5366 = vmatprep.subr.bf16.mxu1 %v14744_v63  ;;  %v9454_v63 = vld [vmem:[%s18084_s6 + $0x20] sm:$0xff] }
 0x1bd   :  { %9488 = vperm.xlu0 %12520, %v9454_v63   ;;  %v4088_v63 = vld [vmem:[%s18080_s0 + $0x790] sm:$0x33] }
 0x1be   :  { %9533 = vperm.xlu1 %12521, %v9463_v60   ;;  %v11526_v60 = vcombine.low %v4088_v63, %v4088_v63 }
 0x1bf   :  { %3722 = vmatpush1.bf16.msra.mxu0 %v15270_v28  ;;  %5367 = vmatpush1.bf16.msra.mxu1 %v14753_v15  ;;  %v15303_v15 = vld [vmem:[%s18080_s0 + $0x5d4] ss:$80 sps:$4 sm:$0xff]  }
 0x1c0   :  { %3723 = vmatprep.subr.bf16.mxu0 %v15283_v61  ;;  %5368 = vmatprep.subr.bf16.mxu1 %v14762_v2  ;;  %v9455_v2 = vld [vmem:[%s18084_s6 + $0x28] sm:$0xff] }
 0x1c1   :  { %9493 = vperm.xlu0 %12520, %v9455_v2   ;;  %v9457_v2 = vld [vmem:[%s18084_s6 + $0x38] sm:$0xff] }
 0x1c2   :  { %9538 = vperm.xlu1 %12521, %v9464_v56   ;;  %v9941_v56 = vld [vmem:[%s18085_s7 + $0x8] sm:$0xff] }
 0x1c3   :  { %3724 = vmatpush1.bf16.msra.mxu0 %v15290_v39  ;;  %5369 = vmatpush1.bf16.msra.mxu1 %v14771_v4  ;;  %v15323_v4 = vld [vmem:[%s18080_s0 + $0x674] ss:$80 sps:$4 sm:$0xff]  }
 0x1c4   :  { %3725 = vmatprep.subr.bf16.mxu0 %v15303_v15  ;;  %5370 = vmatprep.subr.bf16.mxu1 %v14780_v6  ;;  %v9456_v6 = vld [vmem:[%s18084_s6 + $0x30] sm:$0xff] }
 0x1c5   :  { %9498 = vperm.xlu0 %12520, %v9456_v6   ;;  %v11527_v6 = vcombine.high %v4088_v63, %v4088_v63  ;;  %v15386_v63 = vld [vmem:[%s18081_s1 + $0x40] ss:$8 sps:$4 sm:$0xff]  }
 0x1c7   :  { %3726 = vmatpush1.bf16.msra.mxu0 %v15310_v38  ;;  %5371 = vmatpush1.bf16.msra.mxu1 %v14789_v8  ;;  %v15343_v8 = vld [vmem:[%s18080_s0 + $0x714] ss:$80 sps:$4 sm:$0xff]  }
 0x1c8   :  { %3727 = vmatprep.subr.bf16.mxu0 %v15323_v4  ;;  %5372 = vmatprep.subr.bf16.mxu1 %v14798_v11  ;;  %v15356_v11 = vld [vmem:[%s18080_s0 + $0x710] ss:$80 sps:$4 sm:$0xff]  }
 0x1c9   :  { %9503 = vperm.xlu0 %12520, %v9457_v2   ;;  %v15398_v2 = vld [vmem:[%s18080_s0 + $0xe4] ss:$80 sps:$4 sm:$0xff]  }
 0x1cb   :  { %3728 = vmatpush1.bf16.msra.mxu0 %v15330_v25  ;;  %5373 = vmatpush1.bf16.msra.mxu1 %v14807_v12  ;;  %v11267_v12 = vcombine.low %v271_v33, %v271_v33  ;;  %v9465_v25 = vld [vmem:[%s18084_s6 + $0x78] sm:$0xff]  ;;  %v5252_v33 = vsel %vm1654_vm1, %v11526_v60, 0 }
 0x1cc   :  { %3729 = vmatprep.subr.bf16.mxu0 %v15343_v8  ;;  %5374 = vmatprep.subr.bf16.mxu1 %v14816_v14  ;;  %v9943_v60 = vld [vmem:[%s18085_s7 + $0x18] sm:$0xff] }
 0x1cd   :  { %v3372_v14 = vsel %vm1654_vm1, %v11267_v12, 0  ;;  %9950 = vperm.xlu0 %12520, %v9940_v0   ;;  %9543 = vperm.xlu1 %12521, %v9465_v25   ;;  %v15403_v0 = vld [vmem:[%s18081_s1 + $0x54] ss:$8 sps:$4 sm:$0xff]  }
 0x1ce   :  { %v9942_v25 = vld [vmem:[%s18085_s7 + $0x10] sm:$0xff] }
 0x1cf   :  { %3730 = vmatpush1.bf16.msra.mxu0 %v15356_v11  ;;  %5375 = vmatpush1.bf16.msra.mxu1 %v14831_v19  ;;  %v15381_v19 = vld [vmem:[%s18080_s0 + $0x44] ss:$80 sps:$4 sm:$0xff]  }
 0x1d0   :  { %11291 = vmatprep.subr.msk.bf16.mxu0 %vm1654_vm1, %v11268_v53  ;;  %11545 = vmatprep.subr.msk.bf16.mxu1 %vm1654_vm1, %v11527_v6  ;;  %v15391_v53 = vld [vmem:[%s18080_s0 + $0x40] ss:$80 sps:$4 sm:$0xff]   ;;  %v15448_v12 = vld [vmem:[%s18080_s0 + $0x224] ss:$80 sps:$4 sm:$0xff]  }
 0x1d1   :  { %v15434_v6 = vld [vmem:[%s18081_s1 + $0x50] ss:$8 sps:$4 sm:$0xff]   ;;  %9960 = vperm.xlu0 %12520, %v9942_v25   ;;  %9955 = vperm.xlu1 %12521, %v9941_v56   ;;  %v9945_v25 = vld [vmem:[%s18085_s7 + $0x28] sm:$0xff] }
 0x1d2   :  { %v15521_v56 = vld [vmem:[%s18080_s0 + $0x400] ss:$80 sps:$4 sm:$0xff]  }
 0x1d3   :  { %3732 = vmatpush1.bf16.msra.mxu0 %v3372_v14  ;;  %5377 = vmatpush1.bf16.msra.mxu1 %v5252_v33  ;;  %v9944_v14 = vld [vmem:[%s18085_s7 + $0x20] sm:$0xff]  ;;  %v10005_v33 = vld [vmem:[%s18086_s8 + $0x8] sm:$0xff] }
 0x1d4   :  { %3813 = vmatprep.subr.bf16.mxu0 %v15381_v19  ;;  %5458 = vmatprep.subr.bf16.mxu1 %v14845_v27  ;;  %v15412_v27 = vld [vmem:[%s18080_s0 + $0xe0] ss:$80 sps:$4 sm:$0xff]  }
 0x1d5   :  { %9965 = vperm.xlu1 %12521, %v9943_v60   ;;  %v15541_v60 = vld [vmem:[%s18080_s0 + $0x4a0] ss:$80 sps:$4 sm:$0xff]  }
 0x1d6   :  { %5385 = vmatmul.mubr.bf16.vlgmr.msra.gmra.mrb[0].mxu1 %v15386_v63  ;;  %3740 = vmatmul.mubr.bf16.vlgmr.msra.gmra.mrb[24].mxu0 %v15122_v7 }
 0x1d7   :  { %3814 = vmatpush1.bf16.msra.mxu0 %v15391_v53  ;;  %5459 = vmatpush1.bf16.msra.mxu1 %v14853_v29  ;;  %v15425_v29 = vld [vmem:[%s18080_s0 + $0x184] ss:$80 sps:$4 sm:$0xff]  }
 0x1d8   :  { %3815 = vmatprep.subr.bf16.mxu0 %v15398_v2  ;;  %5460 = vmatprep.subr.bf16.mxu1 %v14862_v32  ;;  %v15441_v32 = vld [vmem:[%s18080_s0 + $0x180] ss:$80 sps:$4 sm:$0xff]  }
 0x1d9   :  { %11547 = vmatprep.mubr.msk.bf16.mxu1 %vm1647_vm0, %v15403_v0  ;;  %11293 = vmatprep.mubr.msk.bf16.mxu0 %vm1647_vm0, %v15149_v18 }
 0x1da   :  { %10019 = vperm.xlu1 %12521, %v10005_v33   ;;  %v15561_v33 = vld [vmem:[%s18080_s0 + $0x540] ss:$80 sps:$4 sm:$0xff]  }
 0x1db   :  { %3816 = vmatpush1.bf16.msra.mxu0 %v15412_v27  ;;  %5461 = vmatpush1.bf16.msra.mxu1 %v14873_v35  ;;  %v15457_v35 = vld [vmem:[%s18080_s0 + $0x220] ss:$80 sps:$4 sm:$0xff]  }
 0x1dc   :  { %3817 = vmatprep.subr.bf16.mxu0 %v15425_v29  ;;  %5462 = vmatprep.subr.bf16.mxu1 %v14882_v41  ;;  %v10004_v41 = vld [vmem:[%s18086_s8] sm:$0xff] }
 0x1dd   :  { %10014 = vperm.xlu0 %12520, %v10004_v41   ;;  %v10007_v41 = vld [vmem:[%s18086_s8 + $0x18] sm:$0xff] }
 0x1de   :  { %5395 = vmatmul.mubr.bf16.gmra.mrb[4].mxu1 %v15434_v6  ;;  %3750 = vmatmul.mubr.bf16.gmra.mrb[28].mxu0 %v15177_v40 }
 0x1df   :  { %3818 = vmatpush1.bf16.msra.mxu0 %v15441_v32  ;;  %5463 = vmatpush1.bf16.msra.mxu1 %v14895_v43  ;;  %v15470_v43 = vld [vmem:[%s18080_s0 + $0x2c4] ss:$80 sps:$4 sm:$0xff]  }
 0x1e0   :  { %3819 = vmatprep.subr.bf16.mxu0 %v15448_v12  ;;  %5464 = vmatprep.subr.bf16.mxu1 %v14904_v49  ;;  %v15481_v49 = vld [vmem:[%s18080_s0 + $0x2c0] ss:$80 sps:$4 sm:$0xff]  }
 0x1e1   :  { %11552 = vmatprep.mubr.msk.bf16.mxu1 %vm1647_vm0, %v15172_v23  ;;  %11298 = vmatprep.mubr.msk.bf16.mxu0 %vm1647_vm0, %v14932_v57  ;;  %v15501_v57 = vld [vmem:[%s18080_s0 + $0x360] ss:$80 sps:$4 sm:$0xff]  }
 0x1e2   :  { %9970 = vperm.xlu0 %12520, %v9944_v14   ;;  %9975 = vperm.xlu1 %12521, %v9945_v25   ;;  %v9947_v14 = vld [vmem:[%s18085_s7 + $0x38] sm:$0xff]  ;;  %v15581_v25 = vld [vmem:[%s18080_s0 + $0x5e0] ss:$80 sps:$4 sm:$0xff]  }
 0x1e3   :  { %3820 = vmatpush1.bf16.msra.mxu0 %v15457_v35  ;;  %5465 = vmatpush1.bf16.msra.mxu1 %v14915_v51  ;;  %v15494_v51 = vld [vmem:[%s18080_s0 + $0x364] ss:$80 sps:$4 sm:$0xff]  }
 0x1e4   :  { %3821 = vmatprep.subr.bf16.mxu0 %v15470_v43  ;;  %5466 = vmatprep.subr.bf16.mxu1 %v14924_v55  ;;  %v10006_v55 = vld [vmem:[%s18086_s8 + $0x10] sm:$0xff] }
 0x1e6   :  { %10024 = vperm.xlu0 %12520, %v10006_v55   ;;  %10029 = vperm.xlu1 %12521, %v10007_v41   ;;  %v10009_v55 = vld [vmem:[%s18086_s8 + $0x28] sm:$0xff]  ;;  %v15601_v41 = vld [vmem:[%s18080_s0 + $0x680] ss:$80 sps:$4 sm:$0xff]  }
 0x1e7   :  { %3822 = vmatpush1.bf16.msra.mxu0 %v15481_v49  ;;  %5467 = vmatpush1.bf16.msra.mxu1 %v14942_v58  ;;  %v15514_v58 = vld [vmem:[%s18080_s0 + $0x404] ss:$80 sps:$4 sm:$0xff]   ;;  %18117 = vst [vmem:[#allocation4_spill] sm:$0xff] %v15601_v41 }
 0x1e8   :  { %3823 = vmatprep.subr.bf16.mxu0 %v15494_v51  ;;  %5468 = vmatprep.subr.bf16.mxu1 %v14951_v62  ;;  %v9946_v62 = vld [vmem:[%s18085_s7 + $0x30] sm:$0xff] }
 0x1ea   :  { %9980 = vperm.xlu0 %12520, %v9946_v62   ;;  %9985 = vperm.xlu1 %12521, %v9947_v14   ;;  %v10011_v62 = vld [vmem:[%s18086_s8 + $0x38] sm:$0xff]  ;;  %v273_v14 = vld [vmem:[%s18080_s0 + $0x7c0] sm:$0x33] }
 0x1eb   :  { %3824 = vmatpush1.bf16.msra.mxu0 %v15501_v57  ;;  %5469 = vmatpush1.bf16.msra.mxu1 %v14960_v1  ;;  %v15534_v1 = vld [vmem:[%s18080_s0 + $0x4a4] ss:$80 sps:$4 sm:$0xff]  }
 0x1ec   :  { %3825 = vmatprep.subr.bf16.mxu0 %v15514_v58  ;;  %5470 = vmatprep.subr.bf16.mxu1 %v14969_v5  ;;  %v10008_v5 = vld [vmem:[%s18086_s8 + $0x20] sm:$0xff] }
 0x1ee   :  { %10034 = vperm.xlu0 %12520, %v10008_v5   ;;  %10039 = vperm.xlu1 %12521, %v10009_v55   ;;  %v11808_v5 = vld [vmem:[%s18085_s7 + $0x48] sm:$0xff]  ;;  %v11272_v55 = vcombine.high %v273_v14, %v273_v14 }
 0x1ef   :  { %3826 = vmatpush1.bf16.msra.mxu0 %v15521_v56  ;;  %5471 = vmatpush1.bf16.msra.mxu1 %v14978_v9  ;;  %v15554_v9 = vld [vmem:[%s18080_s0 + $0x544] ss:$80 sps:$4 sm:$0xff]  }
 0x1f0   :  { %3827 = vmatprep.subr.bf16.mxu0 %v15534_v1  ;;  %5472 = vmatprep.subr.bf16.mxu1 %v14987_v13  ;;  %v10010_v13 = vld [vmem:[%s18086_s8 + $0x30] sm:$0xff] }
 0x1f2   :  { %10044 = vperm.xlu0 %12520, %v10010_v13   ;;  %10049 = vperm.xlu1 %12521, %v10011_v62   ;;  %v4090_v13 = vld [vmem:[%s18080_s0 + $0x7a0] sm:$0x33]  ;;  %v11810_v62 = vld [vmem:[%s18085_s7 + $0x58] sm:$0xff] }
 0x1f3   :  { %3828 = vmatpush1.bf16.msra.mxu0 %v15541_v60  ;;  %5473 = vmatpush1.bf16.msra.mxu1 %v14996_v17  ;;  %v15574_v17 = vld [vmem:[%s18080_s0 + $0x5e4] ss:$80 sps:$4 sm:$0xff]  }
 0x1f4   :  { %3829 = vmatprep.subr.bf16.mxu0 %v15554_v9  ;;  %5474 = vmatprep.subr.bf16.mxu1 %v15005_v20  ;;  %v11807_v20 = vld [vmem:[%s18085_s7 + $0x40] sm:$0xff] }
 0x1f6   :  { %10229 = vperm.xlu0 %12520, %v11807_v20   ;;  %10234 = vperm.xlu1 %12521, %v11808_v5   ;;  %v11815_v20 = vld [vmem:[%s18086_s8 + $0x40] sm:$0xff]  ;;  %v11530_v5 = vcombine.low %v4090_v13, %v4090_v13 }
 0x1f7   :  { %3830 = vmatpush1.bf16.msra.mxu0 %v15561_v33  ;;  %5475 = vmatpush1.bf16.msra.mxu1 %v15014_v22  ;;  %v15594_v22 = vld [vmem:[%s18080_s0 + $0x684] ss:$80 sps:$4 sm:$0xff]  }
 0x1f8   :  { %3831 = vmatprep.subr.bf16.mxu0 %v15574_v17  ;;  %5476 = vmatprep.subr.bf16.mxu1 %v15023_v24  ;;  %18116 = vst [vmem:[#allocation3_spill] sm:$0xff] %v15594_v22  ;;  %v11809_v24 = vld [vmem:[%s18085_s7 + $0x50] sm:$0xff] }
 0x1fa   :  { %10239 = vperm.xlu0 %12520, %v11809_v24   ;;  %v11531_v24 = vcombine.high %v4090_v13, %v4090_v13  ;;  %10244 = vperm.xlu1 %12521, %v11810_v62   ;;  %v13228_v13 = vld [vmem:[%s18080_s0 + $0x8] ss:$80 sps:$4 sm:$0xff]   ;;  %v13245_v62 = vld [vmem:[%s18080_s0 + $0x32c] ss:$80 sps:$4 sm:$0xff]  }
 0x1fb   :  { %3832 = vmatpush1.bf16.msra.mxu0 %v15581_v25  ;;  %5477 = vmatpush1.bf16.msra.mxu1 %v15032_v26  ;;  %v15614_v26 = vld [vmem:[%s18080_s0 + $0x724] ss:$80 sps:$4 sm:$0xff]  }
 0x1fc   :  { %3833 = vmatprep.subr.bf16.mxu0 %v15594_v22  ;;  %5478 = vmatprep.subr.bf16.mxu1 %v15041_v31  ;;  %v15627_v31 = vld [vmem:[%s18080_s0 + $0x720] ss:$80 sps:$4 sm:$0xff]   ;;  %v11816_v22 = vld [vmem:[%s18086_s8 + $0x48] sm:$0xff] }
 0x1fe   :  { %10294 = vperm.xlu0 %12520, %v11815_v20   ;;  %10299 = vperm.xlu1 %12521, %v11816_v22   ;;  %v13231_v22 = vld [vmem:[%s18080_s0 + $0xa8] ss:$80 sps:$4 sm:$0xff]  }
 0x1ff   :  { %3834 = vmatpush1.bf16.msra.mxu0 %v15601_v41  ;;  %5479 = vmatpush1.bf16.msra.mxu1 %v15050_v37  ;;  %v11271_v37 = vcombine.low %v273_v14, %v273_v14  ;;  %v11811_v41 = vld [vmem:[%s18085_s7 + $0x60] sm:$0xff]  ;;  %v5264_v14 = vsel %vm1654_vm1, %v11530_v5, 0  ;;  %v11814_v20 = vld [vmem:[%s18085_s7 + $0x78] sm:$0xff] }
 0x200   :  { %3835 = vmatprep.subr.bf16.mxu0 %v15614_v26  ;;  %5480 = vmatprep.subr.bf16.mxu1 %v15062_v44  ;;  %v11839_v5 = vld [vmem:[%s18085_s7 + $0x80] sm:$0xff] }
 0x201   :  { %v3384_v44 = vsel %vm1654_vm1, %v11271_v37, 0  ;;  %v13248_v37 = vld [vmem:[%s18080_s0 + $0x3cc] ss:$80 sps:$4 sm:$0xff]  }
 0x202   :  { %10249 = vperm.xlu0 %12520, %v11811_v41   ;;  %v11817_v41 = vld [vmem:[%s18086_s8 + $0x50] sm:$0xff] }
 0x203   :  { %3836 = vmatpush1.bf16.msra.mxu0 %v15627_v31  ;;  %5481 = vmatpush1.bf16.msra.mxu1 %v15079_v3  ;;  %v13230_v3 = vld [vmem:[%s18080_s0 + $0xc] ss:$80 sps:$4 sm:$0xff]  }
 0x204   :  { %11297 = vmatprep.subr.msk.bf16.mxu0 %vm1654_vm1, %v11272_v55  ;;  %11551 = vmatprep.subr.msk.bf16.mxu1 %vm1654_vm1, %v11531_v24  ;;  %v13233_v55 = vld [vmem:[%s18080_s0 + $0xac] ss:$80 sps:$4 sm:$0xff]   ;;  %v11821_v24 = vld [vmem:[%s18086_s8 + $0x70] sm:$0xff] }
 0x206   :  { %10304 = vperm.xlu0 %12520, %v11817_v41   ;;  %v13260_v41 = vld [vmem:[%s18080_s0 + $0x64c] ss:$80 sps:$4 sm:$0xff]  }
 0x207   :  { %3838 = vmatpush1.bf16.msra.mxu0 %v3384_v44  ;;  %5483 = vmatpush1.bf16.msra.mxu1 %v5264_v14  ;;  %v13251_v44 = vld [vmem:[%s18080_s0 + $0x46c] ss:$80 sps:$4 sm:$0xff]   ;;  %v11841_v14 = vld [vmem:[%s18085_s7 + $0x90] sm:$0xff] }
 0x208   :  { %5299 = vmatprep.subr.bf16.mxu0 %v13230_v3  ;;  %5564 = vmatprep.subr.bf16.mxu1 %v15102_v46  ;;  %v11812_v46 = vld [vmem:[%s18085_s7 + $0x68] sm:$0xff] }
 0x209   :  { %10254 = vperm.xlu1 %12521, %v11812_v46   ;;  %v13254_v3 = vld [vmem:[%s18080_s0 + $0x50c] ss:$80 sps:$4 sm:$0xff]   ;;  %v11849_v46 = vld [vmem:[%s18086_s8 + $0x90] sm:$0xff] }
 0x20a   :  { %5491 = vmatmul.mubr.bf16.vlgmr.msra.gmra.mrb[8].mxu1 %v15386_v63  ;;  %3846 = vmatmul.mubr.bf16.vlgmr.msra.gmra.mrb[32].mxu0 %v15122_v7  ;;  %v13236_v7 = vld [vmem:[%s18080_s0 + $0x14c] ss:$80 sps:$4 sm:$0xff]  }
 0x20b   :  { %5300 = vmatpush1.bf16.msra.mxu0 %v13228_v13  ;;  %5565 = vmatpush1.bf16.msra.mxu1 %v15107_v52  ;;  %v13234_v52 = vld [vmem:[%s18080_s0 + $0x148] ss:$80 sps:$4 sm:$0xff]   ;;  %v11847_v13 = vld [vmem:[%s18086_s8 + $0x80] sm:$0xff] }
 0x20c   :  { %5301 = vmatprep.subr.bf16.mxu0 %v13233_v55  ;;  %5566 = vmatprep.subr.bf16.mxu1 %v15117_v10  ;;  %v13239_v10 = vld [vmem:[%s18080_s0 + $0x1ec] ss:$80 sps:$4 sm:$0xff]  }
 0x20d   :  { %11553 = vmatprep.mubr.msk.bf16.mxu1 %vm1647_vm0, %v15403_v0  ;;  %11299 = vmatprep.mubr.msk.bf16.mxu0 %vm1647_vm0, %v15149_v18  ;;  %v11813_v18 = vld [vmem:[%s18085_s7 + $0x70] sm:$0xff]  ;;  %v13257_v55 = vld [vmem:[%s18080_s0 + $0x5ac] ss:$80 sps:$4 sm:$0xff]  }
 0x20e   :  { %10259 = vperm.xlu0 %12520, %v11813_v18   ;;  %v11845_v18 = vld [vmem:[%s18085_s7 + $0xb0] sm:$0xff] }
 0x20f   :  { %5302 = vmatpush1.bf16.msra.mxu0 %v13231_v22  ;;  %5567 = vmatpush1.bf16.msra.mxu1 %v15131_v30  ;;  %v13237_v30 = vld [vmem:[%s18080_s0 + $0x1e8] ss:$80 sps:$4 sm:$0xff]   ;;  %v11843_v22 = vld [vmem:[%s18085_s7 + $0xa0] sm:$0xff] }
 0x210   :  { %5303 = vmatprep.subr.bf16.mxu0 %v13236_v7  ;;  %5568 = vmatprep.subr.bf16.mxu1 %v15144_v34  ;;  %v11818_v34 = vld [vmem:[%s18086_s8 + $0x58] sm:$0xff] }
 0x211   :  { %10309 = vperm.xlu1 %12521, %v11818_v34   ;;  %v13263_v7 = vld [vmem:[%s18080_s0 + $0x6ec] ss:$80 sps:$4 sm:$0xff]  }
 0x212   :  { %5501 = vmatmul.mubr.bf16.gmra.mrb[12].mxu1 %v15434_v6  ;;  %3856 = vmatmul.mubr.bf16.gmra.mrb[36].mxu0 %v15177_v40  ;;  %v13242_v40 = vld [vmem:[%s18080_s0 + $0x28c] ss:$80 sps:$4 sm:$0xff]  }
 0x213   :  { %5304 = vmatpush1.bf16.msra.mxu0 %v13234_v52  ;;  %5569 = vmatpush1.bf16.msra.mxu1 %v15160_v36  ;;  %v13240_v36 = vld [vmem:[%s18080_s0 + $0x288] ss:$80 sps:$4 sm:$0xff]   ;;  %v4092_v52 = vld [vmem:[%s18080_s0 + $0x7b0] sm:$0x33] }
 0x214   :  { %5305 = vmatprep.subr.bf16.mxu0 %v13239_v10  ;;  %5570 = vmatprep.subr.bf16.mxu1 %v15167_v21  ;;  %v11819_v21 = vld [vmem:[%s18086_s8 + $0x60] sm:$0xff]  ;;  %v11850_v34 = vld [vmem:[%s18086_s8 + $0x98] sm:$0xff] }
 0x215   :  { %11543 = vmatprep.mubr.msk.bf16.mxu0 %vm1647_vm0, %v15172_v23  ;;  %11558 = vmatprep.mubr.msk.bf16.mxu1 %vm1647_vm0, %v15172_v23  ;;  %v18118_v10 = vld [vmem:[#allocation2_spill] sm:$0xff] }
 0x216   :  { %10314 = vperm.xlu0 %12520, %v11819_v21   ;;  %10264 = vperm.xlu1 %12521, %v11814_v20   ;;  %v11534_v21 = vcombine.low %v4092_v52, %v4092_v52  ;;  %v11851_v20 = vld [vmem:[%s18086_s8 + $0xa0] sm:$0xff] }
 0x217   :  { %5306 = vmatpush1.bf16.msra.mxu0 %v13237_v30  ;;  %5571 = vmatpush1.bf16.msra.mxu1 %v15186_v42  ;;  %v13243_v42 = vld [vmem:[%s18080_s0 + $0x328] ss:$80 sps:$4 sm:$0xff]  }
 0x218   :  { %5307 = vmatprep.subr.bf16.mxu0 %v13242_v40  ;;  %5572 = vmatprep.subr.bf16.mxu1 %v15199_v45  ;;  %v11820_v45 = vld [vmem:[%s18086_s8 + $0x68] sm:$0xff]  ;;  %v11535_v40 = vcombine.high %v4092_v52, %v4092_v52 }
 0x219   :  { %v13310_v52 = vld [vmem:[%s18080_s0 + $0x2c] ss:$80 sps:$4 sm:$0xff]  }
 0x21a   :  { %10324 = vperm.xlu0 %12520, %v11821_v24   ;;  %10319 = vperm.xlu1 %12521, %v11820_v45   ;;  %v13268_v24 = vld [vmem:[%s18080_s0 + $0x18] ss:$80 sps:$4 sm:$0xff]   ;;  %v13273_v45 = vld [vmem:[%s18080_s0 + $0xbc] ss:$80 sps:$4 sm:$0xff]  }
 0x21b   :  { %5308 = vmatpush1.bf16.msra.mxu0 %v13240_v36  ;;  %5573 = vmatpush1.bf16.msra.mxu1 %v15210_v48  ;;  %v13246_v48 = vld [vmem:[%s18080_s0 + $0x3c8] ss:$80 sps:$4 sm:$0xff]  }
 0x21c   :  { %5309 = vmatprep.subr.bf16.mxu0 %v13245_v62  ;;  %5574 = vmatprep.subr.bf16.mxu1 %v15223_v50  ;;  %v11822_v50 = vld [vmem:[%s18086_s8 + $0x78] sm:$0xff] }
 0x21d   :  { %v11846_v62 = vld [vmem:[%s18085_s7 + $0xb8] sm:$0xff] }
 0x21e   :  { %10469 = vperm.xlu0 %12520, %v11839_v5   ;;  %10329 = vperm.xlu1 %12521, %v11822_v50   ;;  %v13276_v5 = vld [vmem:[%s18080_s0 + $0x15c] ss:$80 sps:$4 sm:$0xff]   ;;  %v9932_v50 = vld [vmem:[%s18087_s10] sm:$0xff] }
 0x21f   :  { %5310 = vmatpush1.bf16.msra.mxu0 %v13243_v42  ;;  %5575 = vmatpush1.bf16.msra.mxu1 %v15230_v47  ;;  %v13249_v47 = vld [vmem:[%s18080_s0 + $0x468] ss:$80 sps:$4 sm:$0xff]   ;;  %v5276_v42 = vsel %vm1654_vm1, %v11534_v21, 0  ;;  %v18121_v21 = vmov 0  }
 0x220   :  { %5311 = vmatprep.subr.bf16.mxu0 %v13248_v37  ;;  %5576 = vmatprep.subr.bf16.mxu1 %v15243_v54  ;;  %v11840_v54 = vld [vmem:[%s18085_s7 + $0x88] sm:$0xff] }
 0x221   :  { %v13271_v37 = vld [vmem:[%s18080_s0 + $0xb8] ss:$80 sps:$4 sm:$0xff]  }
 0x222   :  { %10479 = vperm.xlu0 %12520, %v11841_v14   ;;  %10474 = vperm.xlu1 %12521, %v11840_v54   ;;  %v9936_v14 = vld [vmem:[%s18087_s10 + $0x20] sm:$0xff]  ;;  %v13288_v54 = vld [vmem:[%s18080_s0 + $0x3dc] ss:$80 sps:$4 sm:$0xff]  }
 0x223   :  { %5312 = vmatpush1.bf16.msra.mxu0 %v13246_v48  ;;  %5577 = vmatpush1.bf16.msra.mxu1 %v15250_v16  ;;  %v13252_v16 = vld [vmem:[%s18080_s0 + $0x508] ss:$80 sps:$4 sm:$0xff]   ;;  %v11853_v48 = vld [vmem:[%s18086_s8 + $0xb0] sm:$0xff] }
 0x224   :  { %5313 = vmatprep.subr.bf16.mxu0 %v13251_v44  ;;  %5578 = vmatprep.subr.bf16.mxu1 %v15263_v59  ;;  %v11842_v59 = vld [vmem:[%s18085_s7 + $0x98] sm:$0xff] }
 0x225   :  { %v13282_v44 = vld [vmem:[%s18080_s0 + $0x29c] ss:$80 sps:$4 sm:$0xff]  }
 0x226   :  { %10534 = vperm.xlu0 %12520, %v11847_v13   ;;  %10484 = vperm.xlu1 %12521, %v11842_v59   ;;  %v10711_v13 = vld [vmem:[%s18088_s12] sm:$0x3]  ;;  %v13294_v59 = vld [vmem:[%s18080_s0 + $0x51c] ss:$80 sps:$4 sm:$0xff]  }
 0x227   :  { %5314 = vmatpush1.bf16.msra.mxu0 %v13249_v47  ;;  %5579 = vmatpush1.bf16.msra.mxu1 %v15270_v28  ;;  %v13255_v28 = vld [vmem:[%s18080_s0 + $0x5a8] ss:$80 sps:$4 sm:$0xff]  }
 0x228   :  { %5315 = vmatprep.subr.bf16.mxu0 %v13254_v3  ;;  %5580 = vmatprep.subr.bf16.mxu1 %v15283_v61  ;;  %v11848_v61 = vld [vmem:[%s18086_s8 + $0x88] sm:$0xff]  ;;  %v9938_v3 = vld [vmem:[%s18087_s10 + $0x30] sm:$0xff] }
 0x229   :  { %v9933_v47 = vld [vmem:[%s18087_s10 + $0x8] sm:$0xff] }
 0x22a   :  { %10489 = vperm.xlu0 %12520, %v11843_v22   ;;  %10539 = vperm.xlu1 %12521, %v11848_v61   ;;  %v4094_v22 = vld [vmem:[%s18080_s0 + $0x7c0] sm:$0x33]  ;;  %v13301_v61 = vld [vmem:[%s18080_s0 + $0x6f8] ss:$80 sps:$4 sm:$0xff]  }
 0x22b   :  { %5316 = vmatpush1.bf16.msra.mxu0 %v13252_v16  ;;  %5581 = vmatpush1.bf16.msra.mxu1 %v15290_v39  ;;  %v13258_v39 = vld [vmem:[%s18080_s0 + $0x648] ss:$80 sps:$4 sm:$0xff]   ;;  %v13291_v16 = vld [vmem:[%s18080_s0 + $0x47c] ss:$80 sps:$4 sm:$0xff]  }
 0x22c   :  { %5317 = vmatprep.subr.bf16.mxu0 %v13257_v55  ;;  %5582 = vmatprep.subr.bf16.mxu1 %v15303_v15  ;;  %v11844_v15 = vld [vmem:[%s18085_s7 + $0xa8] sm:$0xff] }
 0x22d   :  { %v13295_v55 = vld [vmem:[%s18080_s0 + $0x5b8] ss:$80 sps:$4 sm:$0xff]  }
 0x22e   :  { %10544 = vperm.xlu0 %12520, %v11849_v46   ;;  %10494 = vperm.xlu1 %12521, %v11844_v15   ;;  %v11538_v15 = vcombine.low %v4094_v22, %v4094_v22 }
 0x22f   :  { %5318 = vmatpush1.bf16.msra.mxu0 %v13255_v28  ;;  %5583 = vmatpush1.bf16.msra.mxu1 %v15310_v38  ;;  %v4087_v38 = vld [vmem:[%s18080_s0 + $0x788] sm:$0x33] }
 0x230   :  { %5319 = vmatprep.subr.bf16.mxu0 %v13260_v41  ;;  %5584 = vmatprep.subr.bf16.mxu1 %v15323_v4  ;;  %v13261_v4 = vld [vmem:[%s18080_s0 + $0x6e8] ss:$80 sps:$4 sm:$0xff]   ;;  %v11525_v30 = vcombine.high %v4087_v38, %v4087_v38  ;;  %v11524_v36 = vcombine.low %v4087_v38, %v4087_v38  ;;  %v13303_v28 = vld [vmem:[%s18080_s0 + $0x6fc] ss:$80 sps:$4 sm:$0xff]   ;;  %v5288_v38 = vsel %vm1654_vm1, %v11538_v15, 0 }
 0x232   :  { %10499 = vperm.xlu0 %12520, %v11845_v18   ;;  %10549 = vperm.xlu1 %12521, %v11850_v34   ;;  %v13319_v18 = vld [vmem:[%s18080_s0 + $0x20c] ss:$80 sps:$4 sm:$0xff]   ;;  %v13317_v34 = vld [vmem:[%s18080_s0 + $0x208] ss:$80 sps:$4 sm:$0xff]  }
 0x233   :  { %5320 = vmatpush1.bf16.msra.mxu0 %v13258_v39  ;;  %5585 = vmatpush1.bf16.msra.mxu1 %v18118_v10  ;;  %v11539_v39 = vcombine.high %v4094_v22, %v4094_v22  ;;  %v13311_v10 = vld [vmem:[%s18080_s0 + $0xc8] ss:$80 sps:$4 sm:$0xff]   ;;  %v13360_v22 = vld [vmem:[%s18080_s0 + $0x2bc] ss:$80 sps:$4 sm:$0xff]  }
 0x234   :  { %5321 = vmatprep.subr.bf16.mxu0 %v13263_v7  ;;  %5586 = vmatprep.subr.bf16.mxu1 %v15343_v8  ;;  %v5246_v8 = vsel %vm1654_vm1, %v11524_v36, 0  ;;  %v13322_v36 = vld [vmem:[%s18080_s0 + $0x2ac] ss:$80 sps:$4 sm:$0xff]  }
 0x236   :  { %10554 = vperm.xlu0 %12520, %v11851_v20   ;;  %10504 = vperm.xlu1 %12521, %v11846_v62   ;;  %v13320_v20 = vld [vmem:[%s18080_s0 + $0x2a8] ss:$80 sps:$4 sm:$0xff]   ;;  %v13325_v62 = vld [vmem:[%s18080_s0 + $0x34c] ss:$80 sps:$4 sm:$0xff]  }
 0x237   :  { %5322 = vmatpush1.bf16.msra.mxu0 %v13261_v4  ;;  %5587 = vmatpush1.bf16.msra.mxu1 %v15356_v11  ;;  %v13270_v11 = vld [vmem:[%s18080_s0 + $0x1c] ss:$80 sps:$4 sm:$0xff]  }
 0x238   :  { %11542 = vmatprep.subr.msk.bf16.mxu0 %vm1654_vm1, %v11525_v30  ;;  %11557 = vmatprep.subr.msk.bf16.mxu1 %vm1654_vm1, %v11535_v40  ;;  %v13316_v4 = vld [vmem:[%s18080_s0 + $0x16c] ss:$80 sps:$4 sm:$0xff]   ;;  %v13314_v30 = vld [vmem:[%s18080_s0 + $0x168] ss:$80 sps:$4 sm:$0xff]  }
 0x239   :  { %v16022_v40 = vld [vmem:[%s18081_s1 + $0x44] ss:$8 sps:$4 sm:$0xff]  }
 0x23a   :  { %10564 = vperm.xlu0 %12520, %v11853_v48   ;;  %v13332_v48 = vld [vmem:[%s18080_s0 + $0x528] ss:$80 sps:$4 sm:$0xff]  }
 0x23b   :  { %5324 = vmatpush1.bf16.msra.mxu0 %v5246_v8  ;;  %5589 = vmatpush1.bf16.msra.mxu1 %v5276_v42  ;;  %v13323_v8 = vld [vmem:[%s18080_s0 + $0x348] ss:$80 sps:$4 sm:$0xff]   ;;  %v13328_v42 = vld [vmem:[%s18080_s0 + $0x3ec] ss:$80 sps:$4 sm:$0xff]  }
 0x23c   :  { %5405 = vmatprep.subr.bf16.mxu0 %v13270_v11  ;;  %5670 = vmatprep.subr.bf16.mxu1 %v15381_v19  ;;  %v11852_v19 = vld [vmem:[%s18086_s8 + $0xa8] sm:$0xff] }
 0x23d   :  { %10559 = vperm.xlu1 %12521, %v11852_v19   ;;  %v13326_v11 = vld [vmem:[%s18080_s0 + $0x3e8] ss:$80 sps:$4 sm:$0xff]   ;;  %v13337_v19 = vld [vmem:[%s18080_s0 + $0x5cc] ss:$80 sps:$4 sm:$0xff]  }
 0x23e   :  { %5332 = vmatmul.mubr.bf16.vlgmr.msra.gmra.mrb[0].mxu0 %v15386_v63  ;;  %5597 = vmatmul.mubr.bf16.vlgmr.msra.gmra.mrb[16].mxu1 %v15386_v63 }
 0x23f   :  { %5406 = vmatpush1.bf16.msra.mxu0 %v13268_v24  ;;  %5671 = vmatpush1.bf16.msra.mxu1 %v15391_v53  ;;  %v13274_v53 = vld [vmem:[%s18080_s0 + $0x158] ss:$80 sps:$4 sm:$0xff]   ;;  %v13331_v24 = vld [vmem:[%s18080_s0 + $0x48c] ss:$80 sps:$4 sm:$0xff]  }
 0x240   :  { %5407 = vmatprep.subr.bf16.mxu0 %v13273_v45  ;;  %5672 = vmatprep.subr.bf16.mxu1 %v15398_v2  ;;  %v13279_v2 = vld [vmem:[%s18080_s0 + $0x1fc] ss:$80 sps:$4 sm:$0xff]   ;;  %v13329_v45 = vld [vmem:[%s18080_s0 + $0x488] ss:$80 sps:$4 sm:$0xff]  }
 0x241   :  { %11544 = vmatprep.mubr.msk.bf16.mxu0 %vm1647_vm0, %v15403_v0  ;;  %11559 = vmatprep.mubr.msk.bf16.mxu1 %vm1647_vm0, %v15403_v0 }
 0x242   :  { %10172 = vperm.xlu0 %12520, %v9932_v50   ;;  %v4091_v50 = vld [vmem:[%s18080_s0 + $0x7a8] sm:$0x33] }
 0x243   :  { %5408 = vmatpush1.bf16.msra.mxu0 %v13271_v37  ;;  %5673 = vmatpush1.bf16.msra.mxu1 %v15412_v27  ;;  %v13277_v27 = vld [vmem:[%s18080_s0 + $0x1f8] ss:$80 sps:$4 sm:$0xff]   ;;  %v13334_v37 = vld [vmem:[%s18080_s0 + $0x52c] ss:$80 sps:$4 sm:$0xff]  }
 0x244   :  { %5409 = vmatprep.subr.bf16.mxu0 %v13276_v5  ;;  %5674 = vmatprep.subr.bf16.mxu1 %v15425_v29  ;;  %v11854_v29 = vld [vmem:[%s18086_s8 + $0xb8] sm:$0xff] }
 0x245   :  { %10569 = vperm.xlu1 %12521, %v11854_v29   ;;  %v13335_v5 = vld [vmem:[%s18080_s0 + $0x5c8] ss:$80 sps:$4 sm:$0xff]  }
 0x246   :  { %5342 = vmatmul.mubr.bf16.gmra.mrb[4].mxu0 %v15434_v6  ;;  %5607 = vmatmul.mubr.bf16.gmra.mrb[20].mxu1 %v15434_v6  ;;  %v13341_v29 = vld [vmem:[%s18080_s0 + $0x708] ss:$80 sps:$4 sm:$0xff]  }
 0x247   :  { %5410 = vmatpush1.bf16.msra.mxu0 %v13274_v53  ;;  %5675 = vmatpush1.bf16.msra.mxu1 %v15441_v32  ;;  %v13280_v32 = vld [vmem:[%s18080_s0 + $0x298] ss:$80 sps:$4 sm:$0xff]   ;;  %v13340_v53 = vld [vmem:[%s18080_s0 + $0x66c] ss:$80 sps:$4 sm:$0xff]  }
 0x248   :  { %5411 = vmatprep.subr.bf16.mxu0 %v13279_v2  ;;  %5676 = vmatprep.subr.bf16.mxu1 %v15448_v12  ;;  %v9934_v12 = vld [vmem:[%s18087_s10 + $0x10] sm:$0xff]  ;;  %v13338_v2 = vld [vmem:[%s18080_s0 + $0x668] ss:$80 sps:$4 sm:$0xff]  }
 0x249   :  { %11549 = vmatprep.mubr.msk.bf16.mxu0 %vm1647_vm0, %v15172_v23  ;;  %11564 = vmatprep.mubr.msk.bf16.mxu1 %vm1647_vm0, %v15172_v23  ;;  %v13285_v23 = vld [vmem:[%s18080_s0 + $0x33c] ss:$80 sps:$4 sm:$0xff]  }
 0x24a   :  { %10182 = vperm.xlu0 %12520, %v9934_v12   ;;  %10177 = vperm.xlu1 %12521, %v9933_v47   ;;  %v13348_v47 = vld [vmem:[%s18080_s0 + $0x3c] ss:$80 sps:$4 sm:$0xff]  }
 0x24b   :  { %5412 = vmatpush1.bf16.msra.mxu0 %v13277_v27  ;;  %5677 = vmatpush1.bf16.msra.mxu1 %v15457_v35  ;;  %v13283_v35 = vld [vmem:[%s18080_s0 + $0x338] ss:$80 sps:$4 sm:$0xff]   ;;  %v13343_v27 = vld [vmem:[%s18080_s0 + $0x70c] ss:$80 sps:$4 sm:$0xff]  }
 0x24c   :  { %5413 = vmatprep.subr.bf16.mxu0 %v13282_v44  ;;  %5678 = vmatprep.subr.bf16.mxu1 %v15470_v43  ;;  %v9935_v43 = vld [vmem:[%s18087_s10 + $0x18] sm:$0xff]  ;;  %v11533_v44 = vcombine.high %v4091_v50, %v4091_v50 }
 0x24e   :  { %10192 = vperm.xlu0 %12520, %v9936_v14   ;;  %10187 = vperm.xlu1 %12521, %v9935_v43   ;;  %v16089_v14 = vpop.permute.xlu0 %5854  ;;  %v13349_v43 = vld [vmem:[%s18080_s0 + $0xd8] ss:$80 sps:$4 sm:$0xff]  }
 0x24f   :  { %5414 = vmatpush1.bf16.msra.mxu0 %v13280_v32  ;;  %5679 = vmatpush1.bf16.msra.mxu1 %v15481_v49  ;;  %v13286_v49 = vld [vmem:[%s18080_s0 + $0x3d8] ss:$80 sps:$4 sm:$0xff]   ;;  %v11532_v32 = vcombine.low %v4091_v50, %v4091_v50 }
 0x250   :  { %5415 = vmatprep.subr.bf16.mxu0 %v13285_v23  ;;  %5680 = vmatprep.subr.bf16.mxu1 %v15494_v51  ;;  %v9937_v51 = vld [vmem:[%s18087_s10 + $0x28] sm:$0xff] }
 0x251   :  { %v5270_v12 = vsel %vm1654_vm1, %v11532_v32, 0  ;;  %v13346_v23 = vld [vmem:[%s18080_s0 + $0x38] ss:$80 sps:$4 sm:$0xff]   ;;  %v13386_v32 = vld [vmem:[%s18080_s0 + $0x4c] ss:$80 sps:$4 sm:$0xff]  }
 0x252   :  { %10202 = vperm.xlu0 %12520, %v9938_v3   ;;  %10197 = vperm.xlu1 %12521, %v9937_v51  }
 0x253   :  { %5416 = vmatpush1.bf16.msra.mxu0 %v13283_v35  ;;  %5681 = vmatpush1.bf16.msra.mxu1 %v15501_v57  ;;  %v13289_v57 = vld [vmem:[%s18080_s0 + $0x478] ss:$80 sps:$4 sm:$0xff]   ;;  %v13351_v35 = vld [vmem:[%s18080_s0 + $0xdc] ss:$80 sps:$4 sm:$0xff]  }
 0x254   :  { %5417 = vmatprep.subr.bf16.mxu0 %v13288_v54  ;;  %5682 = vmatprep.subr.bf16.mxu1 %v15514_v58  ;;  %v9939_v58 = vld [vmem:[%s18087_s10 + $0x38] sm:$0xff] }
 0x255   :  { %v13354_v54 = vld [vmem:[%s18080_s0 + $0x17c] ss:$80 sps:$4 sm:$0xff]  }
 0x256   :  { %10714 = vperm.xlu0 %12520, %v10711_v13   ;;  %10207 = vperm.xlu1 %12521, %v9939_v58  }
 0x257   :  { %5418 = vmatpush1.bf16.msra.mxu0 %v13286_v49  ;;  %5683 = vmatpush1.bf16.msra.mxu1 %v15521_v56  ;;  %v13292_v56 = vld [vmem:[%s18080_s0 + $0x518] ss:$80 sps:$4 sm:$0xff]  }
 0x258   :  { %5419 = vmatprep.subr.bf16.mxu0 %v13291_v16  ;;  %5684 = vmatprep.subr.bf16.mxu1 %v15534_v1  ;;  %v13297_v1 = vld [vmem:[%s18080_s0 + $0x5bc] ss:$80 sps:$4 sm:$0xff]   ;;  %v16101_v16 = vpop.permute.xlu0 %5859 }
 0x25b   :  { %5420 = vmatpush1.bf16.msra.mxu0 %v13289_v57  ;;  %5685 = vmatpush1.bf16.msra.mxu1 %v15541_v60  ;;  %v13300_v60 = vld [vmem:[%s18080_s0 + $0x65c] ss:$80 sps:$4 sm:$0xff]  }
 0x25c   :  { %5421 = vmatprep.subr.bf16.mxu0 %v13294_v59  ;;  %5686 = vmatprep.subr.bf16.mxu1 %v15554_v9  ;;  %v13298_v9 = vld [vmem:[%s18080_s0 + $0x658] ss:$80 sps:$4 sm:$0xff]  }
 0x25f   :  { %5422 = vmatpush1.bf16.msra.mxu0 %v13292_v56  ;;  %5687 = vmatpush1.bf16.msra.mxu1 %v15561_v33  ;;  %v18119_v33 = vld [vmem:[#allocation3_spill] sm:$0xff]  ;;  %v16111_v56 = vpop.permute.xlu1 %5864 }
 0x260   :  { %5423 = vmatprep.subr.bf16.mxu0 %v13297_v1  ;;  %5688 = vmatprep.subr.bf16.mxu1 %v15574_v17  ;;  %v4089_v17 = vld [vmem:[%s18080_s0 + $0x798] sm:$0x33] }
 0x261   :  { %v11529_v41 = vcombine.high %v4089_v17, %v4089_v17  ;;  %v11528_v46 = vcombine.low %v4089_v17, %v4089_v17 }
 0x263   :  { %5424 = vmatpush1.bf16.msra.mxu0 %v13295_v55  ;;  %5689 = vmatpush1.bf16.msra.mxu1 %v15581_v25  ;;  %v18120_v25 = vld [vmem:[#allocation4_spill] sm:$0xff]  ;;  %v5258_v7 = vsel %vm1654_vm1, %v11528_v46, 0 }
 0x264   :  { %5425 = vmatprep.subr.bf16.mxu0 %v13300_v60  ;;  %5690 = vmatprep.subr.bf16.mxu1 %v18119_v33 }
 0x267   :  { %5426 = vmatpush1.bf16.msra.mxu0 %v13298_v9  ;;  %5691 = vmatpush1.bf16.msra.mxu1 %v18120_v25 }
 0x268   :  { %5427 = vmatprep.subr.bf16.mxu0 %v13303_v28  ;;  %5692 = vmatprep.subr.bf16.mxu1 %v15614_v26  ;;  %v13308_v26 = vld [vmem:[%s18080_s0 + $0x28] ss:$80 sps:$4 sm:$0xff]  }
 0x269   :  { %v13355_v28 = vld [vmem:[%s18080_s0 + $0x218] ss:$80 sps:$4 sm:$0xff]  }
 0x26b   :  { %5428 = vmatpush1.bf16.msra.mxu0 %v13301_v61  ;;  %5693 = vmatpush1.bf16.msra.mxu1 %v15627_v31  ;;  %v13313_v31 = vld [vmem:[%s18080_s0 + $0xcc] ss:$80 sps:$4 sm:$0xff]  }
 0x26c   :  { %11548 = vmatprep.subr.msk.bf16.mxu0 %vm1654_vm1, %v11529_v41  ;;  %11563 = vmatprep.subr.msk.bf16.mxu1 %vm1654_vm1, %v11539_v39  ;;  %v16129_v39 = vpop.permute.xlu1 %5869 }
 0x26f   :  { %5430 = vmatpush1.bf16.msra.mxu0 %v5258_v7  ;;  %5695 = vmatpush1.bf16.msra.mxu1 %v5288_v38  ;;  %v13358_v7 = vld [vmem:[%s18080_s0 + $0x2b8] ss:$80 sps:$4 sm:$0xff]  }
 0x270   :  { %5511 = vmatprep.subr.bf16.mxu0 %v13310_v52 }
 0x272   :  { %5438 = vmatmul.mubr.bf16.vlgmr.msra.gmra.mrb[8].mxu0 %v15386_v63  ;;  %5703 = vmatmul.mubr.bf16.vlgmr.msra.gmra.mrb[24].mxu1 %v15386_v63 }
 0x273   :  { %5512 = vmatpush1.bf16.msra.mxu0 %v13308_v26  ;;  %11550 = vmatprep.mubr.msk.bf16.mxu0 %vm1647_vm0, %v15403_v0  ;;  %v13363_v26 = vld [vmem:[%s18080_s0 + $0x35c] ss:$80 sps:$4 sm:$0xff]  }
 0x274   :  { %5513 = vmatprep.subr.bf16.mxu0 %v13313_v31  ;;  %11565 = vmatprep.mubr.msk.bf16.mxu1 %vm1647_vm0, %v15403_v0 }
 0x277   :  { %5514 = vmatpush1.bf16.msra.mxu0 %v13311_v10 }
 0x278   :  { %5515 = vmatprep.subr.bf16.mxu0 %v13316_v4 }
 0x27a   :  { %5448 = vmatmul.mubr.bf16.gmra.mrb[12].mxu0 %v15434_v6  ;;  %5713 = vmatmul.mubr.bf16.gmra.mrb[28].mxu1 %v15434_v6 }
 0x27b   :  { %5516 = vmatpush1.bf16.msra.mxu0 %v13314_v30  ;;  %11555 = vmatprep.mubr.msk.bf16.mxu0 %vm1647_vm0, %v16022_v40 }
 0x27c   :  { %5517 = vmatprep.subr.bf16.mxu0 %v13319_v18  ;;  %6122 = vmatprep.mubr.bf16.mxu1 %v18121_v21 }
 0x27f   :  { %5518 = vmatpush1.bf16.msra.mxu0 %v13317_v34  ;;  %v13361_v34 = vld [vmem:[%s18080_s0 + $0x358] ss:$80 sps:$4 sm:$0xff]  }
 0x280   :  { %5519 = vmatprep.subr.bf16.mxu0 %v13322_v36 }
 0x283   :  { %5520 = vmatpush1.bf16.msra.mxu0 %v13320_v20  ;;  %v13366_v20 = vld [vmem:[%s18080_s0 + $0x3fc] ss:$80 sps:$4 sm:$0xff]  }
 0x284   :  { %5521 = vmatprep.subr.bf16.mxu0 %v13325_v62 }
 0x287   :  { %5522 = vmatpush1.bf16.msra.mxu0 %v13323_v8  ;;  %v13364_v8 = vld [vmem:[%s18080_s0 + $0x3f8] ss:$80 sps:$4 sm:$0xff]  }
 0x288   :  { %5523 = vmatprep.subr.bf16.mxu0 %v13328_v42  ;;  %v13369_v42 = vld [vmem:[%s18080_s0 + $0x49c] ss:$80 sps:$4 sm:$0xff]  }
 0x28b   :  { %5524 = vmatpush1.bf16.msra.mxu0 %v13326_v11  ;;  %v13367_v11 = vld [vmem:[%s18080_s0 + $0x498] ss:$80 sps:$4 sm:$0xff]  }
 0x28c   :  { %5525 = vmatprep.subr.bf16.mxu0 %v13331_v24  ;;  %v13372_v24 = vld [vmem:[%s18080_s0 + $0x53c] ss:$80 sps:$4 sm:$0xff]  }
 0x28f   :  { %5526 = vmatpush1.bf16.msra.mxu0 %v13329_v45  ;;  %v13370_v45 = vld [vmem:[%s18080_s0 + $0x538] ss:$80 sps:$4 sm:$0xff]  }
 0x290   :  { %5527 = vmatprep.subr.bf16.mxu0 %v13334_v37  ;;  %v13375_v37 = vld [vmem:[%s18080_s0 + $0x5dc] ss:$80 sps:$4 sm:$0xff]  }
 0x293   :  { %5528 = vmatpush1.bf16.msra.mxu0 %v13332_v48  ;;  %v13373_v48 = vld [vmem:[%s18080_s0 + $0x5d8] ss:$80 sps:$4 sm:$0xff]  }
 0x294   :  { %5529 = vmatprep.subr.bf16.mxu0 %v13337_v19  ;;  %v13378_v19 = vld [vmem:[%s18080_s0 + $0x67c] ss:$80 sps:$4 sm:$0xff]  }
 0x297   :  { %5530 = vmatpush1.bf16.msra.mxu0 %v13335_v5  ;;  %v13376_v5 = vld [vmem:[%s18080_s0 + $0x678] ss:$80 sps:$4 sm:$0xff]  }
 0x298   :  { %5531 = vmatprep.subr.bf16.mxu0 %v13340_v53  ;;  %v13381_v53 = vld [vmem:[%s18080_s0 + $0x71c] ss:$80 sps:$4 sm:$0xff]  }
 0x29b   :  { %5532 = vmatpush1.bf16.msra.mxu0 %v13338_v2  ;;  %v4093_v2 = vld [vmem:[%s18080_s0 + $0x7b8] sm:$0x33] }
 0x29c   :  { %5533 = vmatprep.subr.bf16.mxu0 %v13343_v27  ;;  %v13379_v27 = vld [vmem:[%s18080_s0 + $0x718] ss:$80 sps:$4 sm:$0xff]   ;;  %v11537_v50 = vcombine.high %v4093_v2, %v4093_v2 }
 0x29f   :  { %5534 = vmatpush1.bf16.msra.mxu0 %v13341_v29  ;;  %v11536_v29 = vcombine.low %v4093_v2, %v4093_v2  ;;  %v13411_v2 = vld [vmem:[%s18080_s0 + $0x5e8] ss:$80 sps:$4 sm:$0xff]  }
 0x2a0   :  { %11554 = vmatprep.subr.msk.bf16.mxu0 %vm1654_vm1, %v11533_v44 }
 0x2a1   :  { %v5282_v44 = vsel %vm1654_vm1, %v11536_v29, 0  ;;  %v13419_v29 = vld [vmem:[%s18080_s0 + $0x72c] ss:$80 sps:$4 sm:$0xff]  }
 0x2a3   :  { %5536 = vmatpush1.bf16.msra.mxu0 %v5270_v12  ;;  %v13384_v12 = vld [vmem:[%s18080_s0 + $0x48] ss:$80 sps:$4 sm:$0xff]  }
 0x2a4   :  { %5617 = vmatprep.subr.bf16.mxu0 %v13348_v47  ;;  %v13389_v47 = vld [vmem:[%s18080_s0 + $0xec] ss:$80 sps:$4 sm:$0xff]  }
 0x2a6   :  { %5544 = vmatmul.mubr.bf16.vlgmr.msra.gmra.mrb[16].mxu0 %v15386_v63  ;;  %v13352_v63 = vld [vmem:[%s18080_s0 + $0x178] ss:$80 sps:$4 sm:$0xff]  }
 0x2a7   :  { %5618 = vmatpush1.bf16.msra.mxu0 %v13346_v23  ;;  %11556 = vmatprep.mubr.msk.bf16.mxu0 %vm1647_vm0, %v15403_v0  ;;  %v13357_v0 = vld [vmem:[%s18080_s0 + $0x21c] ss:$80 sps:$4 sm:$0xff]   ;;  %v16200_v23 = vld [vmem:[%s18081_s1 + $0x40] ss:$8 sps:$4 sm:$0xff]  }
 0x2a8   :  { %5619 = vmatprep.subr.bf16.mxu0 %v13351_v35  ;;  %v13387_v35 = vld [vmem:[%s18080_s0 + $0xe8] ss:$80 sps:$4 sm:$0xff]  }
 0x2a9   :  { %v5386_v49 = vpop.f32.mrb[0].mxu1 }
 0x2aa   :  { %v5874_v3 = vadd.f32 %v16089_v14, %v5386_v49  ;;  %v5388_v51 = vpop.f32.mrb[1].mxu1 }
 0x2ab   :  { %v5875_v57 = vadd.f32 %v16089_v14, %v5388_v51  ;;  %v5390_v13 = vpop.f32.mrb[2].mxu1  ;;  %5620 = vmatpush1.bf16.msra.mxu0 %v13349_v43  ;;  %v16209_v43 = vld [vmem:[%s18081_s1 + $0x54] ss:$8 sps:$4 sm:$0xff]  }
 0x2ac   :  { %v5892_v58 = vadd.f32 %v16101_v16, %v5390_v13  ;;  %v5392_v59 = vpop.f32.mrb[3].mxu1  ;;  %5621 = vmatprep.subr.bf16.mxu0 %v13354_v54  ;;  %v5946_v55 = vmax.f32 %v5874_v3, 0.0  ;;  %v13392_v54 = vld [vmem:[%s18080_s0 + $0x18c] ss:$80 sps:$4 sm:$0xff]  }
 0x2ad   :  { %v5893_v1 = vadd.f32 %v16101_v16, %v5392_v59  ;;  %v5947_v9 = vmax.f32 %v5875_v57, 0.0 }
 0x2ae   :  { %v5964_v60 = vmax.f32 %v5892_v58, 0.0  ;;  %5554 = vmatmul.mubr.bf16.gmra.mrb[20].mxu0 %v15434_v6 }
 0x2af   :  { %v5965_v33 = vmax.f32 %v5893_v1, 0.0  ;;  %5622 = vmatpush1.bf16.msra.mxu0 %v13352_v63  ;;  %11561 = vmatprep.mubr.msk.bf16.mxu0 %vm1647_vm0, %v16022_v40  ;;  %v13390_v63 = vld [vmem:[%s18080_s0 + $0x188] ss:$80 sps:$4 sm:$0xff]  }
 0x2b0   :  { %v16120_v17 = vpack.c.bf16 %v5964_v60, %v5946_v55  ;;  %5623 = vmatprep.subr.bf16.mxu0 %v13357_v0  ;;  %v13395_v0 = vld [vmem:[%s18080_s0 + $0x22c] ss:$80 sps:$4 sm:$0xff]  }
 0x2b1   :  { %v16125_v25 = vpack.c.bf16 %v5965_v33, %v5947_v9  ;;  %v5396_v6 = vpop.f32.mrb[4].mxu1  ;;  %v16229_v9 = vld [vmem:[%s18081_s1 + $0x50] ss:$8 sps:$4 sm:$0xff]  }
 0x2b2   :  { %v5910_v61 = vadd.f32 %v16111_v56, %v5396_v6  ;;  %v5398_v41 = vpop.f32.mrb[5].mxu1  ;;  %6090 = vmatprep.subr.bf16.mxu1 %v16120_v17 }
 0x2b3   :  { %v5911_v46 = vadd.f32 %v16111_v56, %v5398_v41  ;;  %v5400_v15 = vpop.f32.mrb[6].mxu1  ;;  %5624 = vmatpush1.bf16.msra.mxu0 %v13355_v28 }
 0x2b4   :  { %v5928_v38 = vadd.f32 %v16129_v39, %v5400_v15  ;;  %v5402_v52 = vpop.f32.mrb[7].mxu1  ;;  %5625 = vmatprep.subr.bf16.mxu0 %v13360_v22  ;;  %v5982_v10 = vmax.f32 %v5910_v61, 0.0  ;;  %v13393_v22 = vld [vmem:[%s18080_s0 + $0x228] ss:$80 sps:$4 sm:$0xff]   ;;  %v13398_v61 = vld [vmem:[%s18080_s0 + $0x2cc] ss:$80 sps:$4 sm:$0xff]  }
 0x2b5   :  { %v5929_v31 = vadd.f32 %v16129_v39, %v5402_v52  ;;  %v5983_v30 = vmax.f32 %v5911_v46, 0.0 }
 0x2b6   :  { %v6000_v4 = vmax.f32 %v5928_v38, 0.0 }
 0x2b7   :  { %v6001_v18 = vmax.f32 %v5929_v31, 0.0  ;;  %5626 = vmatpush1.bf16.msra.mxu0 %v13358_v7 }
 0x2b8   :  { %v16143_v36 = vpack.c.bf16 %v6000_v4, %v5982_v10  ;;  %5627 = vmatprep.subr.bf16.mxu0 %v13363_v26  ;;  %v13401_v10 = vld [vmem:[%s18080_s0 + $0x36c] ss:$80 sps:$4 sm:$0xff]  }
 0x2b9   :  { %v16148_v62 = vpack.c.bf16 %v6001_v18, %v5983_v30 }
 0x2bb   :  { %5628 = vmatpush1.bf16.msra.mxu0 %v13361_v34 }
 0x2bc   :  { %5629 = vmatprep.subr.bf16.mxu0 %v13366_v20 }
 0x2bf   :  { %5630 = vmatpush1.bf16.msra.mxu0 %v13364_v8  ;;  %v13399_v8 = vld [vmem:[%s18080_s0 + $0x368] ss:$80 sps:$4 sm:$0xff]  }
 0x2c0   :  { %5631 = vmatprep.subr.bf16.mxu0 %v13369_v42 }
 0x2c3   :  { %5632 = vmatpush1.bf16.msra.mxu0 %v13367_v11  ;;  %v13404_v11 = vld [vmem:[%s18080_s0 + $0x40c] ss:$80 sps:$4 sm:$0xff]  }
 0x2c4   :  { %5633 = vmatprep.subr.bf16.mxu0 %v13372_v24 }
 0x2c7   :  { %5634 = vmatpush1.bf16.msra.mxu0 %v13370_v45  ;;  %v13402_v45 = vld [vmem:[%s18080_s0 + $0x408] ss:$80 sps:$4 sm:$0xff]  }
 0x2c8   :  { %5635 = vmatprep.subr.bf16.mxu0 %v13375_v37  ;;  %v13407_v37 = vld [vmem:[%s18080_s0 + $0x4ac] ss:$80 sps:$4 sm:$0xff]  }
 0x2cb   :  { %5636 = vmatpush1.bf16.msra.mxu0 %v13373_v48  ;;  %v13405_v48 = vld [vmem:[%s18080_s0 + $0x4a8] ss:$80 sps:$4 sm:$0xff]  }
 0x2cc   :  { %5637 = vmatprep.subr.bf16.mxu0 %v13378_v19  ;;  %v13410_v19 = vld [vmem:[%s18080_s0 + $0x54c] ss:$80 sps:$4 sm:$0xff]  }
 0x2cf   :  { %5638 = vmatpush1.bf16.msra.mxu0 %v13376_v5  ;;  %v13408_v5 = vld [vmem:[%s18080_s0 + $0x548] ss:$80 sps:$4 sm:$0xff]  }
 0x2d0   :  { %5639 = vmatprep.subr.bf16.mxu0 %v13381_v53  ;;  %v13413_v53 = vld [vmem:[%s18080_s0 + $0x5ec] ss:$80 sps:$4 sm:$0xff]  }
 0x2d3   :  { %5640 = vmatpush1.bf16.msra.mxu0 %v13379_v27  ;;  %v13416_v27 = vld [vmem:[%s18080_s0 + $0x68c] ss:$80 sps:$4 sm:$0xff]  }
 0x2d4   :  { %11560 = vmatprep.subr.msk.bf16.mxu0 %vm1654_vm1, %v11537_v50  ;;  %v13414_v50 = vld [vmem:[%s18080_s0 + $0x688] ss:$80 sps:$4 sm:$0xff]  }
 0x2d7   :  { %5642 = vmatpush1.bf16.msra.mxu0 %v5282_v44  ;;  %v4095_v44 = vld [vmem:[%s18080_s0 + $0x7c8] sm:$0x33] }
 0x2d8   :  { %5723 = vmatprep.subr.bf16.mxu0 %v13386_v32  ;;  %v13417_v32 = vld [vmem:[%s18080_s0 + $0x728] ss:$80 sps:$4 sm:$0xff]  }
 0x2da   :  { %5650 = vmatmul.mubr.bf16.vlgmr.msra.gmra.mrb[24].mxu0 %v16200_v23 }
 0x2db   :  { %5724 = vmatpush1.bf16.msra.mxu0 %v13384_v12  ;;  %11562 = vmatprep.mubr.msk.bf16.mxu0 %vm1647_vm0, %v16209_v43  ;;  %v11541_v12 = vcombine.high %v4095_v44, %v4095_v44 }
 0x2dc   :  { %5725 = vmatprep.subr.bf16.mxu0 %v13389_v47  ;;  %v11540_v47 = vcombine.low %v4095_v44, %v4095_v44 }
 0x2dd   :  { %v5492_v49 = vpop.f32.mrb[8].mxu1 }
 0x2de   :  { %v5878_v3 = vadd.f32 %v16089_v14, %v5492_v49  ;;  %v5494_v51 = vpop.f32.mrb[9].mxu1 }
 0x2df   :  { %v5879_v57 = vadd.f32 %v16089_v14, %v5494_v51  ;;  %v5496_v13 = vpop.f32.mrb[10].mxu1  ;;  %5726 = vmatpush1.bf16.msra.mxu0 %v13387_v35  ;;  %v5294_v35 = vsel %vm1654_vm1, %v11540_v47, 0 }
 0x2e0   :  { %v5896_v58 = vadd.f32 %v16101_v16, %v5496_v13  ;;  %v5498_v59 = vpop.f32.mrb[11].mxu1  ;;  %5727 = vmatprep.subr.bf16.mxu0 %v13392_v54  ;;  %v5950_v55 = vmax.f32 %v5878_v3, 0.0 }
 0x2e1   :  { %v5897_v1 = vadd.f32 %v16101_v16, %v5498_v59  ;;  %v5951_v33 = vmax.f32 %v5879_v57, 0.0 }
 0x2e2   :  { %v5968_v60 = vmax.f32 %v5896_v58, 0.0  ;;  %5660 = vmatmul.mubr.bf16.gmra.mrb[28].mxu0 %v16229_v9 }
 0x2e3   :  { %v5969_v28 = vmax.f32 %v5897_v1, 0.0  ;;  %5728 = vmatpush1.bf16.msra.mxu0 %v13390_v63  ;;  %11567 = vmatprep.mubr.msk.bf16.mxu0 %vm1647_vm0, %v16022_v40  ;;  %v13396_v40 = vld [vmem:[%s18080_s0 + $0x2c8] ss:$80 sps:$4 sm:$0xff]  }
 0x2e4   :  { %v16237_v6 = vpack.c.bf16 %v5968_v60, %v5950_v55  ;;  %5729 = vmatprep.subr.bf16.mxu0 %v13395_v0 }
 0x2e5   :  { %v16242_v41 = vpack.c.bf16 %v5969_v28, %v5951_v33  ;;  %v5502_v46 = vpop.f32.mrb[12].mxu1 }
 0x2e6   :  { %v5914_v15 = vadd.f32 %v16111_v56, %v5502_v46  ;;  %v5504_v7 = vpop.f32.mrb[13].mxu1 }
 0x2e7   :  { %v5915_v38 = vadd.f32 %v16111_v56, %v5504_v7  ;;  %v5506_v52 = vpop.f32.mrb[14].mxu1  ;;  %5730 = vmatpush1.bf16.msra.mxu0 %v13393_v22 }
 0x2e8   :  { %v5932_v26 = vadd.f32 %v16129_v39, %v5506_v52  ;;  %v5508_v31 = vpop.f32.mrb[15].mxu1  ;;  %5731 = vmatprep.subr.bf16.mxu0 %v13398_v61  ;;  %v5986_v30 = vmax.f32 %v5914_v15, 0.0 }
 0x2e9   :  { %v5933_v4 = vadd.f32 %v16129_v39, %v5508_v31  ;;  %v5987_v34 = vmax.f32 %v5915_v38, 0.0 }
 0x2ea   :  { %v6004_v18 = vmax.f32 %v5932_v26, 0.0 }
 0x2eb   :  { %v6005_v20 = vmax.f32 %v5933_v4, 0.0  ;;  %5732 = vmatpush1.bf16.msra.mxu0 %v13396_v40 }
 0x2ec   :  { %v16257_v42 = vpack.c.bf16 %v6004_v18, %v5986_v30  ;;  %5733 = vmatprep.subr.bf16.mxu0 %v13401_v10 }
 0x2ed   :  { %v16262_v24 = vpack.c.bf16 %v6005_v20, %v5987_v34 }
 0x2ef   :  { %5734 = vmatpush1.bf16.msra.mxu0 %v13399_v8 }
 0x2f0   :  { %5735 = vmatprep.subr.bf16.mxu0 %v13404_v11 }
 0x2f3   :  { %5736 = vmatpush1.bf16.msra.mxu0 %v13402_v45 }
 0x2f4   :  { %5737 = vmatprep.subr.bf16.mxu0 %v13407_v37 }
 0x2f7   :  { %5738 = vmatpush1.bf16.msra.mxu0 %v13405_v48 }
 0x2f8   :  { %5739 = vmatprep.subr.bf16.mxu0 %v13410_v19 }
 0x2fb   :  { %5740 = vmatpush1.bf16.msra.mxu0 %v13408_v5 }
 0x2fc   :  { %5741 = vmatprep.subr.bf16.mxu0 %v13413_v53 }
 0x2ff   :  { %5742 = vmatpush1.bf16.msra.mxu0 %v13411_v2 }
 0x300   :  { %5743 = vmatprep.subr.bf16.mxu0 %v13416_v27 }
 0x303   :  { %5744 = vmatpush1.bf16.msra.mxu0 %v13414_v50 }
 0x304   :  { %5745 = vmatprep.subr.bf16.mxu0 %v13419_v29 }
 0x307   :  { %5746 = vmatpush1.bf16.msra.mxu0 %v13417_v32 }
 0x308   :  { %11566 = vmatprep.subr.msk.bf16.mxu0 %vm1654_vm1, %v11541_v12 }
 0x30b   :  { %5748 = vmatpush1.bf16.msra.mxu0 %v5294_v35 }
 0x30e   :  { %5756 = vmatmul.mubr.bf16.vlgmr.msra.gmra.mrb[32].mxu0 %v16200_v23 }
 0x30f   :  { %11568 = vmatprep.mubr.msk.bf16.mxu0 %vm1647_vm0, %v16209_v43 }
 0x311   :  { %v5333_v54 = vpop.f32.mrb[0].mxu0  ;;  %v5598_v49 = vpop.f32.mrb[16].mxu1 }
 0x312   :  { %v5872_v3 = vadd.f32 %v16089_v14, %v5333_v54  ;;  %v5882_v51 = vadd.f32 %v16089_v14, %v5598_v49  ;;  %v5335_v57 = vpop.f32.mrb[1].mxu0  ;;  %v5600_v13 = vpop.f32.mrb[17].mxu1 }
 0x313   :  { %v5873_v63 = vadd.f32 %v16089_v14, %v5335_v57  ;;  %v5883_v58 = vadd.f32 %v16089_v14, %v5600_v13  ;;  %v5337_v59 = vpop.f32.mrb[2].mxu0  ;;  %v5602_v0 = vpop.f32.mrb[18].mxu1  ;;  %v16344_v13 = vld [vmem:[%s18089_s3 + $0x18] sm:$0xff]  }
 0x314   :  { %v5890_v1 = vadd.f32 %v16101_v16, %v5337_v59  ;;  %v5900_v23 = vadd.f32 %v16101_v16, %v5602_v0  ;;  %v5339_v55 = vpop.f32.mrb[3].mxu0  ;;  %v5604_v43 = vpop.f32.mrb[19].mxu1  ;;  %v5944_v28 = vmax.f32 %v5872_v3, 0.0  ;;  %v5954_v22 = vmax.f32 %v5882_v51, 0.0 }
 0x315   :  { %v5891_v60 = vadd.f32 %v16101_v16, %v5339_v55  ;;  %v5901_v33 = vadd.f32 %v16101_v16, %v5604_v43  ;;  %v5945_v15 = vmax.f32 %v5873_v63, 0.0  ;;  %v5955_v7 = vmax.f32 %v5883_v58, 0.0  ;;  %v16353_v63 = vld [vmem:[%s18089_s3 + $0x20] sm:$0xff]   ;;  %v16361_v58 = vld [vmem:[%s18089_s3 + $0x28] sm:$0xff]  }
 0x316   :  { %v5962_v61 = vmax.f32 %v5890_v1, 0.0  ;;  %v5972_v46 = vmax.f32 %v5900_v23, 0.0  ;;  %5766 = vmatmul.mubr.bf16.gmra.mrb[36].mxu0 %v16229_v9 }
 0x317   :  { %v5963_v38 = vmax.f32 %v5891_v60, 0.0  ;;  %v5973_v52 = vmax.f32 %v5901_v33, 0.0  ;;  %6563 = vmatprep.mubr.bf16.mxu0 %v18121_v21 }
 0x318   :  { %v16315_v40 = vpack.c.bf16 %v5962_v61, %v5944_v28  ;;  %v16317_v26 = vpack.c.bf16 %v5972_v46, %v5954_v22 }
 0x319   :  { %v16319_v31 = vpack.c.bf16 %v5963_v38, %v5945_v15  ;;  %v16321_v10 = vpack.c.bf16 %v5973_v52, %v5955_v7  ;;  %v5343_v4 = vpop.f32.mrb[4].mxu0  ;;  %v5608_v30 = vpop.f32.mrb[20].mxu1 }
 0x31a   :  { %v5908_v18 = vadd.f32 %v16111_v56, %v5343_v4  ;;  %v5918_v9 = vadd.f32 %v16111_v56, %v5608_v30  ;;  %v5345_v34 = vpop.f32.mrb[5].mxu0  ;;  %v5610_v20 = vpop.f32.mrb[21].mxu1 }
 0x31b   :  { %v5909_v8 = vadd.f32 %v16111_v56, %v5345_v34  ;;  %v5919_v11 = vadd.f32 %v16111_v56, %v5610_v20  ;;  %v5347_v45 = vpop.f32.mrb[6].mxu0  ;;  %v5612_v37 = vpop.f32.mrb[22].mxu1  ;;  %6091 = vmatpush1.bf16.msra.mxu1 %v16319_v31 }
 0x31c   :  { %v5926_v48 = vadd.f32 %v16129_v39, %v5347_v45  ;;  %v5936_v19 = vadd.f32 %v16129_v39, %v5612_v37  ;;  %v5349_v5 = vpop.f32.mrb[7].mxu0  ;;  %v5614_v53 = vpop.f32.mrb[23].mxu1  ;;  %6092 = vmatprep.subr.bf16.mxu1 %v16143_v36  ;;  %v5980_v50 = vmax.f32 %v5908_v18, 0.0  ;;  %v5990_v29 = vmax.f32 %v5918_v9, 0.0 }
 0x31d   :  { %v5927_v2 = vadd.f32 %v16129_v39, %v5349_v5  ;;  %v5937_v27 = vadd.f32 %v16129_v39, %v5614_v53  ;;  %v5981_v12 = vmax.f32 %v5909_v8, 0.0  ;;  %v5991_v47 = vmax.f32 %v5919_v11, 0.0 }
 0x31e   :  { %v5998_v44 = vmax.f32 %v5926_v48, 0.0  ;;  %v6008_v32 = vmax.f32 %v5936_v19, 0.0 }
 0x31f   :  { %v5999_v35 = vmax.f32 %v5927_v2, 0.0  ;;  %v6009_v54 = vmax.f32 %v5937_v27, 0.0 }
 0x320   :  { %v16333_v49 = vpack.c.bf16 %v5998_v44, %v5980_v50  ;;  %v16335_v3 = vpack.c.bf16 %v6008_v32, %v5990_v29 }
 0x321   :  { %v16337_v51 = vpack.c.bf16 %v5999_v35, %v5981_v12  ;;  %v16339_v57 = vpack.c.bf16 %v6009_v54, %v5991_v47 }
 0x323   :  { %6093 = vmatpush1.bf16.msra.mxu1 %v16337_v51 }
 0x326   :  { %11578 = vmatmul.mubr.msk.bf16.vlgmr.msra.gmra.mrb[32].mxu1 %vm6080_vm2, %v16344_v13 }
 0x327   :  { %6132 = vmatprep.mubr.bf16.mxu1 %v18121_v21 }
 0x32e   :  { %11579 = vmatmul.mubr.msk.bf16.gmra.mrb[36].mxu1 %vm6080_vm2, %v16353_v63 }
 0x32f   :  { %6142 = vmatprep.mubr.bf16.mxu1 %v18121_v21 }
 0x336   :  { %11580 = vmatmul.mubr.msk.bf16.gmra.mrb[40].mxu1 %vm6080_vm2, %v16361_v58 }
 0x337   :  { %6185 = vmatprep.mubr.bf16.mxu1 %v18121_v21 }
 0x345   :  { %v5439_v59 = vpop.f32.mrb[8].mxu0  ;;  %v5704_v0 = vpop.f32.mrb[24].mxu1 }
 0x346   :  { %v5876_v1 = vadd.f32 %v16089_v14, %v5439_v59  ;;  %v5886_v23 = vadd.f32 %v16089_v14, %v5704_v0  ;;  %v5441_v55 = vpop.f32.mrb[9].mxu0  ;;  %v5706_v43 = vpop.f32.mrb[25].mxu1 }
 0x347   :  { %v5877_v60 = vadd.f32 %v16089_v14, %v5441_v55  ;;  %v5887_v33 = vadd.f32 %v16089_v14, %v5706_v43  ;;  %v5443_v28 = vpop.f32.mrb[10].mxu0  ;;  %v5708_v22 = vpop.f32.mrb[26].mxu1 }
 0x348   :  { %v5894_v61 = vadd.f32 %v16101_v16, %v5443_v28  ;;  %v5904_v46 = vadd.f32 %v16101_v16, %v5708_v22  ;;  %v5445_v15 = vpop.f32.mrb[11].mxu0  ;;  %v5710_v7 = vpop.f32.mrb[27].mxu1  ;;  %v5948_v4 = vmax.f32 %v5876_v1, 0.0  ;;  %v5958_v30 = vmax.f32 %v5886_v23, 0.0 }
 0x349   :  { %v5895_v38 = vadd.f32 %v16101_v16, %v5445_v15  ;;  %v5905_v52 = vadd.f32 %v16101_v16, %v5710_v7  ;;  %v5949_v34 = vmax.f32 %v5877_v60, 0.0  ;;  %v5959_v20 = vmax.f32 %v5887_v33, 0.0 }
 0x34a   :  { %v5966_v18 = vmax.f32 %v5894_v61, 0.0  ;;  %v5976_v9 = vmax.f32 %v5904_v46, 0.0 }
 0x34b   :  { %v5967_v8 = vmax.f32 %v5895_v38, 0.0  ;;  %v5977_v11 = vmax.f32 %v5905_v52, 0.0 }
 0x34c   :  { %v16374_v45 = vpack.c.bf16 %v5966_v18, %v5948_v4  ;;  %v16376_v37 = vpack.c.bf16 %v5976_v9, %v5958_v30 }
 0x34d   :  { %v16378_v48 = vpack.c.bf16 %v5967_v8, %v5949_v34  ;;  %v16380_v19 = vpack.c.bf16 %v5977_v11, %v5959_v20  ;;  %v5449_v5 = vpop.f32.mrb[12].mxu0  ;;  %v5714_v53 = vpop.f32.mrb[28].mxu1 }
 0x34e   :  { %v5912_v2 = vadd.f32 %v16111_v56, %v5449_v5  ;;  %v5922_v27 = vadd.f32 %v16111_v56, %v5714_v53  ;;  %v5451_v50 = vpop.f32.mrb[13].mxu0  ;;  %v5716_v29 = vpop.f32.mrb[29].mxu1  ;;  %6153 = vmatprep.subr.bf16.mxu1 %v16374_v45 }
 0x34f   :  { %v5913_v44 = vadd.f32 %v16111_v56, %v5451_v50  ;;  %v5923_v32 = vadd.f32 %v16111_v56, %v5716_v29  ;;  %v5453_v12 = vpop.f32.mrb[14].mxu0  ;;  %v5718_v47 = vpop.f32.mrb[30].mxu1  ;;  %6154 = vmatpush1.bf16.msra.mxu1 %v16125_v25 }
 0x350   :  { %v5930_v35 = vadd.f32 %v16129_v39, %v5453_v12  ;;  %v5940_v54 = vadd.f32 %v16129_v39, %v5718_v47  ;;  %v5455_v59 = vpop.f32.mrb[15].mxu0  ;;  %v5720_v0 = vpop.f32.mrb[31].mxu1  ;;  %v5984_v55 = vmax.f32 %v5912_v2, 0.0  ;;  %v5994_v43 = vmax.f32 %v5922_v27, 0.0 }
 0x351   :  { %v5931_v1 = vadd.f32 %v16129_v39, %v5455_v59  ;;  %v5941_v23 = vadd.f32 %v16129_v39, %v5720_v0  ;;  %v5985_v28 = vmax.f32 %v5913_v44, 0.0  ;;  %v5995_v22 = vmax.f32 %v5923_v32, 0.0 }
 0x352   :  { %v6002_v60 = vmax.f32 %v5930_v35, 0.0  ;;  %v6012_v33 = vmax.f32 %v5940_v54, 0.0 }
 0x353   :  { %v6003_v61 = vmax.f32 %v5931_v1, 0.0  ;;  %v6013_v46 = vmax.f32 %v5941_v23, 0.0 }
 0x354   :  { %v16392_v15 = vpack.c.bf16 %v6002_v60, %v5984_v55  ;;  %v16394_v7 = vpack.c.bf16 %v6012_v33, %v5994_v43 }
 0x355   :  { %v16396_v38 = vpack.c.bf16 %v6003_v61, %v5985_v28  ;;  %v16398_v52 = vpack.c.bf16 %v6013_v46, %v5995_v22 }
 0x356   :  { %6155 = vmatprep.subr.bf16.mxu1 %v16392_v15 }
 0x357   :  { %6156 = vmatpush1.bf16.msra.mxu1 %v16148_v62 }
 0x358   :  { %6216 = vmatprep.subr.bf16.mxu1 %v16237_v6 }
 0x35a   :  { %11581 = vmatmul.mubr.msk.bf16.vlgmr.msra.gmra.mrb[44].mxu1 %vm6080_vm2, %v16344_v13 }
 0x35b   :  { %6217 = vmatpush1.bf16.msra.mxu1 %v16378_v48  ;;  %6195 = vmatprep.mubr.bf16.mxu1 %v18121_v21 }
 0x35c   :  { %6218 = vmatprep.subr.bf16.mxu1 %v16257_v42 }
 0x35f   :  { %6219 = vmatpush1.bf16.msra.mxu1 %v16396_v38 }
 0x362   :  { %11582 = vmatmul.mubr.msk.bf16.gmra.mrb[48].mxu1 %vm6080_vm2, %v16353_v63 }
 0x363   :  { %6205 = vmatprep.mubr.bf16.mxu1 %v18121_v21 }
 0x36a   :  { %11583 = vmatmul.mubr.msk.bf16.gmra.mrb[52].mxu1 %vm6080_vm2, %v16361_v58 }
 0x36b   :  { %6248 = vmatprep.mubr.bf16.mxu1 %v18121_v21 }
 0x372   :  { %11584 = vmatmul.mubr.msk.bf16.vlgmr.msra.gmra.mrb[56].mxu1 %vm6080_vm2, %v16344_v13 }
 0x373   :  { %6258 = vmatprep.mubr.bf16.mxu1 %v18121_v21 }
 0x379   :  { %v5545_v4 = vpop.f32.mrb[16].mxu0 }
 0x37a   :  { %v5880_v30 = vadd.f32 %v16089_v14, %v5545_v4  ;;  %v5547_v18 = vpop.f32.mrb[17].mxu0  ;;  %11585 = vmatmul.mubr.msk.bf16.gmra.mrb[60].mxu1 %vm6080_vm2, %v16353_v63 }
 0x37b   :  { %v5881_v9 = vadd.f32 %v16089_v14, %v5547_v18  ;;  %v5549_v34 = vpop.f32.mrb[18].mxu0  ;;  %6268 = vmatprep.mubr.bf16.mxu1 %v18121_v21 }
 0x37c   :  { %v5898_v20 = vadd.f32 %v16101_v16, %v5549_v34  ;;  %v5551_v8 = vpop.f32.mrb[19].mxu0  ;;  %v5952_v5 = vmax.f32 %v5880_v30, 0.0 }
 0x37d   :  { %v5899_v11 = vadd.f32 %v16101_v16, %v5551_v8  ;;  %v5953_v2 = vmax.f32 %v5881_v9, 0.0 }
 0x37e   :  { %v5970_v53 = vmax.f32 %v5898_v20, 0.0 }
 0x37f   :  { %v5971_v27 = vmax.f32 %v5899_v11, 0.0 }
 0x380   :  { %v16425_v50 = vpack.c.bf16 %v5970_v53, %v5952_v5 }
 0x381   :  { %v16427_v29 = vpack.c.bf16 %v5971_v27, %v5953_v2  ;;  %v5555_v44 = vpop.f32.mrb[20].mxu0 }
 0x382   :  { %v5916_v32 = vadd.f32 %v16111_v56, %v5555_v44  ;;  %v5557_v12 = vpop.f32.mrb[21].mxu0  ;;  %6279 = vmatprep.subr.bf16.mxu1 %v16425_v50  ;;  %11586 = vmatmul.mubr.msk.bf16.gmra.mrb[64].mxu1 %vm6080_vm2, %v16361_v58 }
 0x383   :  { %v5917_v47 = vadd.f32 %v16111_v56, %v5557_v12  ;;  %v5559_v35 = vpop.f32.mrb[22].mxu0  ;;  %6280 = vmatpush1.bf16.msra.mxu1 %v16242_v41  ;;  %6311 = vmatprep.mubr.bf16.mxu1 %v18121_v21 }
 0x384   :  { %v5934_v54 = vadd.f32 %v16129_v39, %v5559_v35  ;;  %v5561_v59 = vpop.f32.mrb[23].mxu0  ;;  %v5988_v1 = vmax.f32 %v5916_v32, 0.0 }
 0x385   :  { %v5935_v0 = vadd.f32 %v16129_v39, %v5561_v59  ;;  %v5989_v55 = vmax.f32 %v5917_v47, 0.0 }
 0x386   :  { %v6006_v23 = vmax.f32 %v5934_v54, 0.0 }
 0x387   :  { %v6007_v43 = vmax.f32 %v5935_v0, 0.0 }
 0x388   :  { %v16438_v60 = vpack.c.bf16 %v6006_v23, %v5988_v1 }
 0x389   :  { %v16440_v33 = vpack.c.bf16 %v6007_v43, %v5989_v55 }
 0x38a   :  { %6281 = vmatprep.subr.bf16.mxu1 %v16438_v60 }
 0x38b   :  { %6282 = vmatpush1.bf16.msra.mxu1 %v16262_v24 }
 0x38c   :  { %6342 = vmatprep.subr.bf16.mxu1 %v16317_v26 }
 0x38e   :  { %11587 = vmatmul.mubr.msk.bf16.vlgmr.msra.gmra.mrb[68].mxu1 %vm6080_vm2, %v16344_v13 }
 0x38f   :  { %6343 = vmatpush1.bf16.msra.mxu1 %v16427_v29  ;;  %6321 = vmatprep.mubr.bf16.mxu1 %v18121_v21 }
 0x390   :  { %6344 = vmatprep.subr.bf16.mxu1 %v16335_v3 }
 0x393   :  { %6345 = vmatpush1.bf16.msra.mxu1 %v16440_v33 }
 0x396   :  { %11588 = vmatmul.mubr.msk.bf16.gmra.mrb[72].mxu1 %vm6080_vm2, %v16353_v63 }
 0x397   :  { %6331 = vmatprep.mubr.bf16.mxu1 %v18121_v21 }
 0x39e   :  { %11589 = vmatmul.mubr.msk.bf16.gmra.mrb[76].mxu1 %vm6080_vm2, %v16361_v58 }
 0x39f   :  { %6374 = vmatprep.mubr.bf16.mxu1 %v18121_v21 }
 0x3a6   :  { %11590 = vmatmul.mubr.msk.bf16.vlgmr.msra.gmra.mrb[80].mxu1 %vm6080_vm2, %v16344_v13 }
 0x3a7   :  { %6384 = vmatprep.mubr.bf16.mxu1 %v18121_v21 }
 0x3ad   :  { %v5651_v28 = vpop.f32.mrb[24].mxu0 }
 0x3ae   :  { %v5884_v22 = vadd.f32 %v16089_v14, %v5651_v28  ;;  %v5653_v61 = vpop.f32.mrb[25].mxu0  ;;  %11591 = vmatmul.mubr.msk.bf16.gmra.mrb[84].mxu1 %vm6080_vm2, %v16353_v63 }
 0x3af   :  { %v5885_v46 = vadd.f32 %v16089_v14, %v5653_v61  ;;  %v5655_v4 = vpop.f32.mrb[26].mxu0  ;;  %6394 = vmatprep.mubr.bf16.mxu1 %v18121_v21 }
 0x3b0   :  { %v5902_v30 = vadd.f32 %v16101_v16, %v5655_v4  ;;  %v5657_v18 = vpop.f32.mrb[27].mxu0  ;;  %v5956_v34 = vmax.f32 %v5884_v22, 0.0 }
 0x3b1   :  { %v5903_v9 = vadd.f32 %v16101_v16, %v5657_v18  ;;  %v5957_v8 = vmax.f32 %v5885_v46, 0.0 }
 0x3b2   :  { %v5974_v20 = vmax.f32 %v5902_v30, 0.0 }
 0x3b3   :  { %v5975_v11 = vmax.f32 %v5903_v9, 0.0 }
 0x3b4   :  { %v16467_v5 = vpack.c.bf16 %v5974_v20, %v5956_v34 }
 0x3b5   :  { %v16469_v53 = vpack.c.bf16 %v5975_v11, %v5957_v8  ;;  %v5661_v2 = vpop.f32.mrb[28].mxu0 }
 0x3b6   :  { %v5920_v27 = vadd.f32 %v16111_v56, %v5661_v2  ;;  %v5663_v44 = vpop.f32.mrb[29].mxu0  ;;  %6405 = vmatprep.subr.bf16.mxu1 %v16467_v5  ;;  %11592 = vmatmul.mubr.msk.bf16.gmra.mrb[88].mxu1 %vm6080_vm2, %v16361_v58 }
 0x3b7   :  { %v5921_v32 = vadd.f32 %v16111_v56, %v5663_v44  ;;  %v5665_v12 = vpop.f32.mrb[30].mxu0  ;;  %6406 = vmatpush1.bf16.msra.mxu1 %v16321_v10  ;;  %6437 = vmatprep.mubr.bf16.mxu1 %v18121_v21 }
 0x3b8   :  { %v5938_v47 = vadd.f32 %v16129_v39, %v5665_v12  ;;  %v5667_v35 = vpop.f32.mrb[31].mxu0  ;;  %v5992_v59 = vmax.f32 %v5920_v27, 0.0 }
 0x3b9   :  { %v5939_v54 = vadd.f32 %v16129_v39, %v5667_v35  ;;  %v5993_v1 = vmax.f32 %v5921_v32, 0.0  ;;  %v16525_v35 = vld [vmem:[%s18089_s3] sm:$0xff]  }
 0x3ba   :  { %v6010_v0 = vmax.f32 %v5938_v47, 0.0 }
 0x3bb   :  { %v6011_v23 = vmax.f32 %v5939_v54, 0.0 }
 0x3bc   :  { %v16480_v55 = vpack.c.bf16 %v6010_v0, %v5992_v59 }
 0x3bd   :  { %v16482_v43 = vpack.c.bf16 %v6011_v23, %v5993_v1  ;;  %v16617_v1 = vld [vmem:[%s18089_s3 + $0x40] sm:$0xff]  }
 0x3be   :  { %6407 = vmatprep.subr.bf16.mxu1 %v16480_v55 }
 0x3bf   :  { %6408 = vmatpush1.bf16.msra.mxu1 %v16339_v57 }
 0x3c0   :  { %6468 = vmatprep.subr.bf16.mxu1 %v16376_v37 }
 0x3c2   :  { %11593 = vmatmul.mubr.msk.bf16.vlgmr.msra.gmra.mrb[92].mxu1 %vm6080_vm2, %v16344_v13 }
 0x3c3   :  { %6469 = vmatpush1.bf16.msra.mxu1 %v16469_v53  ;;  %6447 = vmatprep.mubr.bf16.mxu1 %v18121_v21 }
 0x3c4   :  { %6470 = vmatprep.subr.bf16.mxu1 %v16394_v7 }
 0x3c7   :  { %6471 = vmatpush1.bf16.msra.mxu1 %v16482_v43 }
 0x3c8   :  { %6618 = vmatprep.subr.bf16.mxu1 %v16319_v31 }
 0x3ca   :  { %11594 = vmatmul.mubr.msk.bf16.gmra.mrb[96].mxu1 %vm6080_vm2, %v16353_v63 }
 0x3cb   :  { %6457 = vmatprep.mubr.bf16.mxu1 %v18121_v21 }
 0x3d2   :  { %11595 = vmatmul.mubr.msk.bf16.gmra.mrb[100].mxu1 %vm6080_vm2, %v16361_v58 }
 0x3d3   :  { %6500 = vmatprep.mubr.bf16.mxu1 %v18121_v21 }
 0x3da   :  { %11596 = vmatmul.mubr.msk.bf16.vlgmr.msra.gmra.mrb[104].mxu1 %vm6080_vm2, %v16344_v13 }
 0x3db   :  { %6619 = vmatpush1.bf16.msra.mxu1 %v16315_v40  ;;  %6510 = vmatprep.mubr.bf16.mxu1 %v18121_v21 }
 0x3dc   :  { %6620 = vmatprep.subr.bf16.mxu1 %v16337_v51 }
 0x3df   :  { %6621 = vmatpush1.bf16.msra.mxu1 %v16333_v49 }
 0x3e0   :  { %6681 = vmatprep.subr.bf16.mxu1 %v16125_v25 }
 0x3e1   :  { %v5757_v31 = vpop.f32.mrb[32].mxu0 }
 0x3e2   :  { %v5888_v28 = vadd.f32 %v16089_v14, %v5757_v31  ;;  %v5759_v22 = vpop.f32.mrb[33].mxu0  ;;  %11597 = vmatmul.mubr.msk.bf16.gmra.mrb[108].mxu1 %vm6080_vm2, %v16353_v63 }
 0x3e3   :  { %v5889_v61 = vadd.f32 %v16089_v14, %v5759_v22  ;;  %v5761_v46 = vpop.f32.mrb[34].mxu0  ;;  %6520 = vmatprep.mubr.bf16.mxu1 %v18121_v21 }
 0x3e4   :  { %v5906_v40 = vadd.f32 %v16101_v16, %v5761_v46  ;;  %v5763_v4 = vpop.f32.mrb[35].mxu0  ;;  %v5960_v49 = vmax.f32 %v5888_v28, 0.0 }
 0x3e5   :  { %v5907_v51 = vadd.f32 %v16101_v16, %v5763_v4  ;;  %v5961_v18 = vmax.f32 %v5889_v61, 0.0 }
 0x3e6   :  { %v5978_v30 = vmax.f32 %v5906_v40, 0.0 }
 0x3e7   :  { %v5979_v9 = vmax.f32 %v5907_v51, 0.0 }
 0x3e8   :  { %v6032_v34 = vpack.c.bf16 %v5978_v30, %v5960_v49 }
 0x3e9   :  { %v6033_v20 = vpack.c.bf16 %v5979_v9, %v5961_v18  ;;  %v5767_v8 = vpop.f32.mrb[36].mxu0 }
 0x3ea   :  { %v5924_v11 = vadd.f32 %v16111_v56, %v5767_v8  ;;  %v5769_v2 = vpop.f32.mrb[37].mxu0  ;;  %11598 = vmatmul.mubr.msk.bf16.gmra.mrb[112].mxu1 %vm6080_vm2, %v16361_v58  ;;  %6531 = vmatprep.subr.bf16.mxu0 %v6032_v34 }
 0x3eb   :  { %v5925_v14 = vadd.f32 %v16111_v56, %v5769_v2  ;;  %v5771_v27 = vpop.f32.mrb[38].mxu0  ;;  %6532 = vmatpush1.bf16.msra.mxu0 %v16380_v19  ;;  %6650 = vmatprep.mubr.bf16.mxu1 %v18121_v21 }
 0x3ec   :  { %v5942_v16 = vadd.f32 %v16129_v39, %v5771_v27  ;;  %v5773_v44 = vpop.f32.mrb[39].mxu0  ;;  %v5996_v12 = vmax.f32 %v5924_v11, 0.0 }
 0x3ed   :  { %v5943_v32 = vadd.f32 %v16129_v39, %v5773_v44  ;;  %v5997_v54 = vmax.f32 %v5925_v14, 0.0  ;;  %v16539_v39 = vld [vmem:[%s18089_s3 + $0x8] sm:$0xff]  }
 0x3ee   :  { %v6014_v47 = vmax.f32 %v5942_v16, 0.0 }
 0x3ef   :  { %v6015_v59 = vmax.f32 %v5943_v32, 0.0 }
 0x3f0   :  { %v6050_v56 = vpack.c.bf16 %v6014_v47, %v5996_v12 }
 0x3f1   :  { %v6051_v0 = vpack.c.bf16 %v6015_v59, %v5997_v54 }
 0x3f2   :  { %6533 = vmatprep.subr.bf16.mxu0 %v6050_v56  ;;  %11605 = vmatmul.mubr.msk.bf16.vlgmr.msra.gmra.mrb[32].mxu1 %vm6080_vm2, %v16525_v35 }
 0x3f3   :  { %6682 = vmatpush1.bf16.msra.mxu1 %v16120_v17  ;;  %6534 = vmatpush1.bf16.msra.mxu0 %v16398_v52 }
 0x3f4   :  { %6683 = vmatprep.subr.bf16.mxu1 %v16148_v62  ;;  %7059 = vmatprep.subr.bf16.mxu0 %v16380_v19 }
 0x3f5   :  { %6660 = vmatprep.mubr.bf16.mxu1 %v18121_v21 }
 0x3f6   :  { %11599 = vmatmul.mubr.msk.bf16.vlgmr.msra.gmra.mrb[40].mxu0 %vm6080_vm2, %v16344_v13  ;;  %v16555_v13 = vld [vmem:[%s18089_s3 + $0x10] sm:$0xff]  }
 0x3f7   :  { %6684 = vmatpush1.bf16.msra.mxu1 %v16143_v36  ;;  %7060 = vmatpush1.bf16.msra.mxu0 %v16376_v37 }
 0x3f8   :  { %6744 = vmatprep.subr.bf16.mxu1 %v16378_v48  ;;  %7061 = vmatprep.subr.bf16.mxu0 %v16398_v52 }
 0x3f9   :  { %6573 = vmatprep.mubr.bf16.mxu0 %v18121_v21 }
 0x3fa   :  { %11606 = vmatmul.mubr.msk.bf16.gmra.mrb[36].mxu1 %vm6080_vm2, %v16539_v39 }
 0x3fb   :  { %7062 = vmatpush1.bf16.msra.mxu0 %v16394_v7  ;;  %6670 = vmatprep.mubr.bf16.mxu1 %v18121_v21 }
 0x3fc   :  { %7594 = vmatprep.subr.bf16.mxu0 %v6033_v20 }
 0x3fe   :  { %11600 = vmatmul.mubr.msk.bf16.gmra.mrb[44].mxu0 %vm6080_vm2, %v16353_v63  ;;  %v16591_v63 = vld [vmem:[%s18089_s3 + $0x30] sm:$0xff]  }
 0x3ff   :  { %6583 = vmatprep.mubr.bf16.mxu0 %v18121_v21 }
 0x402   :  { %11607 = vmatmul.mubr.msk.bf16.gmra.mrb[40].mxu1 %vm6080_vm2, %v16555_v13 }
 0x403   :  { %6713 = vmatprep.mubr.bf16.mxu1 %v18121_v21 }
 0x406   :  { %11601 = vmatmul.mubr.msk.bf16.gmra.mrb[48].mxu0 %vm6080_vm2, %v16361_v58  ;;  %v16606_v58 = vld [vmem:[%s18089_s3 + $0x38] sm:$0xff]  }
 0x407   :  { %7091 = vmatprep.mubr.bf16.mxu0 %v18121_v21 }
 0x40a   :  { %11608 = vmatmul.mubr.msk.bf16.vlgmr.msra.gmra.mrb[44].mxu1 %vm6080_vm2, %v16525_v35 }
 0x40b   :  { %6745 = vmatpush1.bf16.msra.mxu1 %v16374_v45  ;;  %6723 = vmatprep.mubr.bf16.mxu1 %v18121_v21 }
 0x40c   :  { %6746 = vmatprep.subr.bf16.mxu1 %v16396_v38 }
 0x40e   :  { %11626 = vmatmul.mubr.msk.bf16.vlgmr.msra.gmra.mrb[40].mxu0 %vm6080_vm2, %v16525_v35 }
 0x40f   :  { %6747 = vmatpush1.bf16.msra.mxu1 %v16392_v15  ;;  %7595 = vmatpush1.bf16.msra.mxu0 %v6032_v34 }
 0x410   :  { %6807 = vmatprep.subr.bf16.mxu1 %v16242_v41  ;;  %7596 = vmatprep.subr.bf16.mxu0 %v6051_v0 }
 0x411   :  { %7101 = vmatprep.mubr.bf16.mxu0 %v18121_v21 }
 0x412   :  { %11609 = vmatmul.mubr.msk.bf16.gmra.mrb[48].mxu1 %vm6080_vm2, %v16539_v39 }
 0x413   :  { %7597 = vmatpush1.bf16.msra.mxu0 %v6050_v56  ;;  %6733 = vmatprep.mubr.bf16.mxu1 %v18121_v21 }
 0x416   :  { %11627 = vmatmul.mubr.msk.bf16.gmra.mrb[44].mxu0 %vm6080_vm2, %v16539_v39 }
 0x417   :  { %7111 = vmatprep.mubr.bf16.mxu0 %v18121_v21 }
 0x41a   :  { %11610 = vmatmul.mubr.msk.bf16.gmra.mrb[52].mxu1 %vm6080_vm2, %v16555_v13 }
 0x41b   :  { %6776 = vmatprep.mubr.bf16.mxu1 %v18121_v21 }
 0x41e   :  { %11628 = vmatmul.mubr.msk.bf16.gmra.mrb[48].mxu0 %vm6080_vm2, %v16555_v13 }
 0x41f   :  { %7626 = vmatprep.mubr.bf16.mxu0 %v18121_v21 }
 0x422   :  { %11611 = vmatmul.mubr.msk.bf16.vlgmr.msra.gmra.mrb[56].mxu1 %vm6080_vm2, %v16525_v35 }
 0x423   :  { %6808 = vmatpush1.bf16.msra.mxu1 %v16237_v6  ;;  %6786 = vmatprep.mubr.bf16.mxu1 %v18121_v21 }
 0x424   :  { %6809 = vmatprep.subr.bf16.mxu1 %v16262_v24 }
 0x426   :  { %11659 = vmatmul.mubr.msk.bf16.vlgmr.msra.gmra.mrb[40].mxu0 %vm6080_vm2, %v16591_v63 }
 0x427   :  { %6810 = vmatpush1.bf16.msra.mxu1 %v16257_v42  ;;  %7636 = vmatprep.mubr.bf16.mxu0 %v18121_v21 }
 0x428   :  { %6870 = vmatprep.subr.bf16.mxu1 %v16427_v29 }
 0x42a   :  { %11612 = vmatmul.mubr.msk.bf16.gmra.mrb[60].mxu1 %vm6080_vm2, %v16539_v39 }
 0x42b   :  { %6796 = vmatprep.mubr.bf16.mxu1 %v18121_v21 }
 0x42e   :  { %11660 = vmatmul.mubr.msk.bf16.gmra.mrb[44].mxu0 %vm6080_vm2, %v16606_v58 }
 0x42f   :  { %7646 = vmatprep.mubr.bf16.mxu0 %v18121_v21 }
 0x432   :  { %11613 = vmatmul.mubr.msk.bf16.gmra.mrb[64].mxu1 %vm6080_vm2, %v16555_v13 }
 0x433   :  { %6839 = vmatprep.mubr.bf16.mxu1 %v18121_v21 }
 0x436   :  { %11661 = vmatmul.mubr.msk.bf16.gmra.mrb[48].mxu0 %vm6080_vm2, %v16617_v1 }
 0x437   :  { %8331 = vmatprep.mubr.bf16.mxu0 %v18121_v21 }
 0x43a   :  { %11614 = vmatmul.mubr.msk.bf16.vlgmr.msra.gmra.mrb[68].mxu1 %vm6080_vm2, %v16525_v35 }
 0x43b   :  { %6871 = vmatpush1.bf16.msra.mxu1 %v16425_v50  ;;  %6849 = vmatprep.mubr.bf16.mxu1 %v18121_v21 }
 0x43c   :  { %6872 = vmatprep.subr.bf16.mxu1 %v16440_v33 }
 0x43f   :  { %6873 = vmatpush1.bf16.msra.mxu1 %v16438_v60 }
 0x440   :  { %6933 = vmatprep.subr.bf16.mxu1 %v16321_v10 }
 0x442   :  { %11615 = vmatmul.mubr.msk.bf16.gmra.mrb[72].mxu1 %vm6080_vm2, %v16539_v39 }
 0x443   :  { %6859 = vmatprep.mubr.bf16.mxu1 %v18121_v21 }
 0x44a   :  { %11616 = vmatmul.mubr.msk.bf16.gmra.mrb[76].mxu1 %vm6080_vm2, %v16555_v13 }
 0x44b   :  { %6902 = vmatprep.mubr.bf16.mxu1 %v18121_v21 }
 0x452   :  { %11617 = vmatmul.mubr.msk.bf16.vlgmr.msra.gmra.mrb[80].mxu1 %vm6080_vm2, %v16525_v35 }
 0x453   :  { %6934 = vmatpush1.bf16.msra.mxu1 %v16317_v26  ;;  %6912 = vmatprep.mubr.bf16.mxu1 %v18121_v21 }
 0x454   :  { %6935 = vmatprep.subr.bf16.mxu1 %v16339_v57 }
 0x457   :  { %6936 = vmatpush1.bf16.msra.mxu1 %v16335_v3 }
 0x458   :  { %6996 = vmatprep.subr.bf16.mxu1 %v16469_v53 }
 0x45a   :  { %11618 = vmatmul.mubr.msk.bf16.gmra.mrb[84].mxu1 %vm6080_vm2, %v16539_v39 }
 0x45b   :  { %6922 = vmatprep.mubr.bf16.mxu1 %v18121_v21 }
 0x462   :  { %11619 = vmatmul.mubr.msk.bf16.gmra.mrb[88].mxu1 %vm6080_vm2, %v16555_v13 }
 0x463   :  { %6965 = vmatprep.mubr.bf16.mxu1 %v18121_v21 }
 0x46a   :  { %11620 = vmatmul.mubr.msk.bf16.vlgmr.msra.gmra.mrb[92].mxu1 %vm6080_vm2, %v16525_v35 }
 0x46b   :  { %6997 = vmatpush1.bf16.msra.mxu1 %v16467_v5  ;;  %6975 = vmatprep.mubr.bf16.mxu1 %v18121_v21 }
 0x46c   :  { %6998 = vmatprep.subr.bf16.mxu1 %v16482_v43 }
 0x46f   :  { %6999 = vmatpush1.bf16.msra.mxu1 %v16480_v55 }
 0x470   :  { %7153 = vmatprep.subr.bf16.mxu1 %v16125_v25 }
 0x472   :  { %11621 = vmatmul.mubr.msk.bf16.gmra.mrb[96].mxu1 %vm6080_vm2, %v16539_v39 }
 0x473   :  { %6985 = vmatprep.mubr.bf16.mxu1 %v18121_v21 }
 0x47a   :  { %11622 = vmatmul.mubr.msk.bf16.gmra.mrb[100].mxu1 %vm6080_vm2, %v16555_v13 }
 0x47b   :  { %7028 = vmatprep.mubr.bf16.mxu1 %v18121_v21 }
 0x482   :  { %11623 = vmatmul.mubr.msk.bf16.vlgmr.msra.gmra.mrb[104].mxu1 %vm6080_vm2, %v16525_v35 }
 0x483   :  { %7154 = vmatpush1.bf16.msra.mxu1 %v16120_v17  ;;  %7038 = vmatprep.mubr.bf16.mxu1 %v18121_v21 }
 0x484   :  { %7155 = vmatprep.subr.bf16.mxu1 %v16148_v62 }
 0x487   :  { %7156 = vmatpush1.bf16.msra.mxu1 %v16143_v36 }
 0x488   :  { %7216 = vmatprep.subr.bf16.mxu1 %v16378_v48 }
 0x48a   :  { %11624 = vmatmul.mubr.msk.bf16.gmra.mrb[108].mxu1 %vm6080_vm2, %v16539_v39 }
 0x48b   :  { %7048 = vmatprep.mubr.bf16.mxu1 %v18121_v21 }
 0x492   :  { %11625 = vmatmul.mubr.msk.bf16.gmra.mrb[112].mxu1 %vm6080_vm2, %v16555_v13 }
 0x493   :  { %7185 = vmatprep.mubr.bf16.mxu1 %v18121_v21 }
 0x49a   :  { %11638 = vmatmul.mubr.msk.bf16.vlgmr.msra.gmra.mrb[32].mxu1 %vm6080_vm2, %v16591_v63 }
 0x49b   :  { %7217 = vmatpush1.bf16.msra.mxu1 %v16374_v45  ;;  %7195 = vmatprep.mubr.bf16.mxu1 %v18121_v21 }
 0x49c   :  { %7218 = vmatprep.subr.bf16.mxu1 %v16396_v38 }
 0x49f   :  { %7219 = vmatpush1.bf16.msra.mxu1 %v16392_v15 }
 0x4a0   :  { %7279 = vmatprep.subr.bf16.mxu1 %v16242_v41  ;;  %v16734_v41 = vpop.permute.xlu1 %7766 }
 0x4a2   :  { %11639 = vmatmul.mubr.msk.bf16.gmra.mrb[36].mxu1 %vm6080_vm2, %v16606_v58 }
 0x4a3   :  { %7205 = vmatprep.mubr.bf16.mxu1 %v18121_v21 }
 0x4a4   :  { %v16746_v15 = vpop.permute.xlu1 %7781 }
 0x4a8   :  { %v16757_v61 = vpop.permute.xlu1 %7786 }
 0x4aa   :  { %11640 = vmatmul.mubr.msk.bf16.gmra.mrb[40].mxu1 %vm6080_vm2, %v16617_v1 }
 0x4ab   :  { %7248 = vmatprep.mubr.bf16.mxu1 %v18121_v21 }
 0x4b2   :  { %11641 = vmatmul.mubr.msk.bf16.vlgmr.msra.gmra.mrb[44].mxu1 %vm6080_vm2, %v16591_v63 }
 0x4b3   :  { %7280 = vmatpush1.bf16.msra.mxu1 %v16237_v6  ;;  %7258 = vmatprep.mubr.bf16.mxu1 %v18121_v21  ;;  %v16732_v6 = vpop.permute.xlu0 %7761 }
 0x4b4   :  { %7281 = vmatprep.subr.bf16.mxu1 %v16262_v24 }
 0x4b7   :  { %7282 = vmatpush1.bf16.msra.mxu1 %v16257_v42 }
 0x4b8   :  { %7342 = vmatprep.subr.bf16.mxu1 %v16427_v29 }
 0x4ba   :  { %11642 = vmatmul.mubr.msk.bf16.gmra.mrb[48].mxu1 %vm6080_vm2, %v16606_v58 }
 0x4bb   :  { %7268 = vmatprep.mubr.bf16.mxu1 %v18121_v21 }
 0x4c2   :  { %11643 = vmatmul.mubr.msk.bf16.gmra.mrb[52].mxu1 %vm6080_vm2, %v16617_v1 }
 0x4c3   :  { %7311 = vmatprep.mubr.bf16.mxu1 %v18121_v21 }
 0x4ca   :  { %11644 = vmatmul.mubr.msk.bf16.vlgmr.msra.gmra.mrb[56].mxu1 %vm6080_vm2, %v16591_v63 }
 0x4cb   :  { %7343 = vmatpush1.bf16.msra.mxu1 %v16425_v50  ;;  %7321 = vmatprep.mubr.bf16.mxu1 %v18121_v21 }
 0x4cc   :  { %7344 = vmatprep.subr.bf16.mxu1 %v16440_v33 }
 0x4cf   :  { %7345 = vmatpush1.bf16.msra.mxu1 %v16438_v60 }
 0x4d0   :  { %7405 = vmatprep.subr.bf16.mxu1 %v16321_v10  ;;  %v16741_v10 = vpop.permute.xlu0 %7776 }
 0x4d2   :  { %11645 = vmatmul.mubr.msk.bf16.gmra.mrb[60].mxu1 %vm6080_vm2, %v16606_v58 }
 0x4d3   :  { %7331 = vmatprep.mubr.bf16.mxu1 %v18121_v21 }
 0x4da   :  { %11646 = vmatmul.mubr.msk.bf16.gmra.mrb[64].mxu1 %vm6080_vm2, %v16617_v1 }
 0x4db   :  { %7374 = vmatprep.mubr.bf16.mxu1 %v18121_v21 }
 0x4e2   :  { %11647 = vmatmul.mubr.msk.bf16.vlgmr.msra.gmra.mrb[68].mxu1 %vm6080_vm2, %v16591_v63 }
 0x4e3   :  { %7406 = vmatpush1.bf16.msra.mxu1 %v16317_v26  ;;  %7384 = vmatprep.mubr.bf16.mxu1 %v18121_v21 }
 0x4e4   :  { %7407 = vmatprep.subr.bf16.mxu1 %v16339_v57 }
 0x4e7   :  { %7408 = vmatpush1.bf16.msra.mxu1 %v16335_v3 }
 0x4e8   :  { %7468 = vmatprep.subr.bf16.mxu1 %v16469_v53  ;;  %v16750_v53 = vpop.permute.xlu0 %7771 }
 0x4ea   :  { %11648 = vmatmul.mubr.msk.bf16.gmra.mrb[72].mxu1 %vm6080_vm2, %v16606_v58 }
 0x4eb   :  { %7394 = vmatprep.mubr.bf16.mxu1 %v18121_v21 }
 0x4f2   :  { %11649 = vmatmul.mubr.msk.bf16.gmra.mrb[76].mxu1 %vm6080_vm2, %v16617_v1 }
 0x4f3   :  { %7437 = vmatprep.mubr.bf16.mxu1 %v18121_v21 }
 0x4f9   :  { %v7628_v17 = vpop.f32.mrb[40].mxu0 }
 0x4fa   :  { %11650 = vmatmul.mubr.msk.bf16.vlgmr.msra.gmra.mrb[80].mxu1 %vm6080_vm2, %v16591_v63  ;;  %v7630_v25 = vpop.f32.mrb[41].mxu0  ;;  %v7803_v24 = vadd.f32 %v16732_v6, %v7628_v17 }
 0x4fb   :  { %7469 = vmatpush1.bf16.msra.mxu1 %v16467_v5  ;;  %v7632_v36 = vpop.f32.mrb[42].mxu0  ;;  %7447 = vmatprep.mubr.bf16.mxu1 %v18121_v21  ;;  %v7804_v3 = vadd.f32 %v16732_v6, %v7630_v25 }
 0x4fc   :  { %7470 = vmatprep.subr.bf16.mxu1 %v16482_v43  ;;  %v7634_v62 = vpop.f32.mrb[43].mxu0  ;;  %v7899_v38 = vmax.f32 %v7803_v24, 0.0  ;;  %v7819_v33 = vadd.f32 %v16734_v41, %v7632_v36 }
 0x4fd   :  { %v7900_v29 = vmax.f32 %v7804_v3, 0.0  ;;  %v7820_v23 = vadd.f32 %v16734_v41, %v7634_v62 }
 0x4fe   :  { %v7915_v49 = vmax.f32 %v7819_v33, 0.0 }
 0x4ff   :  { %7471 = vmatpush1.bf16.msra.mxu1 %v16480_v55  ;;  %v7916_v34 = vmax.f32 %v7820_v23, 0.0 }
 0x500   :  { %7531 = vmatprep.subr.bf16.mxu1 %v16380_v19 }
 0x501   :  { %v7638_v42 = vpop.f32.mrb[44].mxu0 }
 0x502   :  { %11651 = vmatmul.mubr.msk.bf16.gmra.mrb[84].mxu1 %vm6080_vm2, %v16606_v58  ;;  %v7640_v26 = vpop.f32.mrb[45].mxu0  ;;  %v7835_v31 = vadd.f32 %v16750_v53, %v7638_v42 }
 0x503   :  { %v7642_v57 = vpop.f32.mrb[46].mxu0  ;;  %7457 = vmatprep.mubr.bf16.mxu1 %v18121_v21  ;;  %v7836_v46 = vadd.f32 %v16750_v53, %v7640_v26 }
 0x504   :  { %v7851_v45 = vadd.f32 %v16741_v10, %v7642_v57  ;;  %v7644_v48 = vpop.f32.mrb[47].mxu0  ;;  %v7931_v11 = vmax.f32 %v7835_v31, 0.0 }
 0x505   :  { %v7852_v19 = vadd.f32 %v16741_v10, %v7644_v48  ;;  %v7932_v27 = vmax.f32 %v7836_v46, 0.0 }
 0x506   :  { %v7947_v50 = vmax.f32 %v7851_v45, 0.0 }
 0x507   :  { %v7948_v60 = vmax.f32 %v7852_v19, 0.0 }
 0x508   :  { %v7995_v5 = vmax.f32 %v7899_v38, %v7947_v50 }
 0x509   :  { %v7996_v55 = vmax.f32 %v7900_v29, %v7948_v60  ;;  %v7648_v43 = vpop.f32.mrb[48].mxu0 }
 0x50a   :  { %v7867_v28 = vadd.f32 %v16746_v15, %v7648_v43  ;;  %11652 = vmatmul.mubr.msk.bf16.gmra.mrb[88].mxu1 %vm6080_vm2, %v16617_v1  ;;  %v7650_v22 = vpop.f32.mrb[49].mxu0 }
 0x50b   :  { %v8050_v40 = vmax.f32 %v7995_v5, %v7996_v55  ;;  %v7868_v4 = vadd.f32 %v16746_v15, %v7650_v22  ;;  %v7652_v51 = vpop.f32.mrb[50].mxu0  ;;  %7500 = vmatprep.mubr.bf16.mxu1 %v18121_v21 }
 0x50c   :  { %v7963_v30 = vmax.f32 %v7867_v28, 0.0  ;;  %v7883_v18 = vadd.f32 %v16757_v61, %v7652_v51  ;;  %v7654_v9 = vpop.f32.mrb[51].mxu0 }
 0x50d   :  { %v7964_v20 = vmax.f32 %v7868_v4, 0.0  ;;  %v7884_v8 = vadd.f32 %v16757_v61, %v7654_v9 }
 0x50e   :  { %v8011_v2 = vmax.f32 %v7915_v49, %v7963_v30  ;;  %v7979_v14 = vmax.f32 %v7883_v18, 0.0 }
 0x50f   :  { %v8012_v16 = vmax.f32 %v7916_v34, %v7964_v20  ;;  %v7980_v44 = vmax.f32 %v7884_v8, 0.0 }
 0x510   :  { %v8027_v32 = vmax.f32 %v7931_v11, %v7979_v14 }
 0x511   :  { %v8051_v12 = vmax.f32 %v8011_v2, %v8012_v16  ;;  %v8028_v47 = vmax.f32 %v7932_v27, %v7980_v44 }
 0x512   :  { %11653 = vmatmul.mubr.msk.bf16.vlgmr.msra.gmra.mrb[92].mxu1 %vm6080_vm2, %v16591_v63 }
 0x513   :  { %v16766_v35 = vmax.f32 %v8027_v32, %v8028_v47  ;;  %7532 = vmatpush1.bf16.msra.mxu1 %v16376_v37  ;;  %7510 = vmatprep.mubr.bf16.mxu1 %v18121_v21  ;;  %v16770_v54 = vpack.c.bf16 %v8051_v12, %v8050_v40 }
 0x514   :  { %7533 = vmatprep.subr.bf16.mxu1 %v16398_v52 }
 0x517   :  { %7534 = vmatpush1.bf16.msra.mxu1 %v16394_v7 }
 0x51a   :  { %11654 = vmatmul.mubr.msk.bf16.gmra.mrb[96].mxu1 %vm6080_vm2, %v16606_v58 }
 0x51b   :  { %7520 = vmatprep.mubr.bf16.mxu1 %v18121_v21 }
 0x522   :  { %11655 = vmatmul.mubr.msk.bf16.gmra.mrb[100].mxu1 %vm6080_vm2, %v16617_v1 }
 0x523   :  { %7563 = vmatprep.mubr.bf16.mxu1 %v18121_v21 }
 0x52a   :  { %11656 = vmatmul.mubr.msk.bf16.vlgmr.msra.gmra.mrb[104].mxu1 %vm6080_vm2, %v16591_v63 }
 0x52b   :  { %7573 = vmatprep.mubr.bf16.mxu1 %v18121_v21 }
 0x532   :  { %11657 = vmatmul.mubr.msk.bf16.gmra.mrb[108].mxu1 %vm6080_vm2, %v16606_v58 }
 0x533   :  { %7583 = vmatprep.mubr.bf16.mxu1 %v18121_v21 }
 0x53a   :  { %11658 = vmatmul.mubr.msk.bf16.gmra.mrb[112].mxu1 %vm6080_vm2, %v16617_v1 }
 0x53b   :  { %8218 = vmatprep.mubr.bf16.mxu1 %v18121_v21 }
 0x56d   :  { %v7187_v37 = vpop.f32.mrb[32].mxu1 }
 0x56e   :  { %v7189_v7 = vpop.f32.mrb[33].mxu1  ;;  %v7789_v0 = vadd.f32 %v16732_v6, %v7187_v37 }
 0x56f   :  { %v7191_v52 = vpop.f32.mrb[34].mxu1  ;;  %v7790_v13 = vadd.f32 %v16732_v6, %v7189_v7 }
 0x570   :  { %v7193_v59 = vpop.f32.mrb[35].mxu1  ;;  %v7885_v36 = vmax.f32 %v7789_v0, 0.0  ;;  %v7805_v24 = vadd.f32 %v16734_v41, %v7191_v52 }
 0x571   :  { %v7886_v62 = vmax.f32 %v7790_v13, 0.0  ;;  %v7806_v3 = vadd.f32 %v16734_v41, %v7193_v59 }
 0x572   :  { %v7901_v5 = vmax.f32 %v7805_v24, 0.0 }
 0x573   :  { %v7902_v31 = vmax.f32 %v7806_v3, 0.0 }
 0x575   :  { %v7197_v56 = vpop.f32.mrb[36].mxu1 }
 0x576   :  { %v7199_v39 = vpop.f32.mrb[37].mxu1  ;;  %v7821_v48 = vadd.f32 %v16750_v53, %v7197_v56 }
 0x577   :  { %v7201_v63 = vpop.f32.mrb[38].mxu1  ;;  %v7822_v50 = vadd.f32 %v16750_v53, %v7199_v39 }
 0x578   :  { %v7837_v58 = vadd.f32 %v16741_v10, %v7201_v63  ;;  %v7203_v17 = vpop.f32.mrb[39].mxu1  ;;  %v7917_v46 = vmax.f32 %v7821_v48, 0.0 }
 0x579   :  { %v7838_v25 = vadd.f32 %v16741_v10, %v7203_v17  ;;  %v7918_v51 = vmax.f32 %v7822_v50, 0.0 }
 0x57a   :  { %v7933_v1 = vmax.f32 %v7837_v58, 0.0 }
 0x57b   :  { %v7934_v42 = vmax.f32 %v7838_v25, 0.0 }
 0x57c   :  { %v7981_v26 = vmax.f32 %v7885_v36, %v7933_v1 }
 0x57d   :  { %v7982_v57 = vmax.f32 %v7886_v62, %v7934_v42  ;;  %v7207_v45 = vpop.f32.mrb[40].mxu1 }
 0x57e   :  { %v7853_v19 = vadd.f32 %v16746_v15, %v7207_v45  ;;  %v7209_v38 = vpop.f32.mrb[41].mxu1 }
 0x57f   :  { %v8029_v29 = vmax.f32 %v7981_v26, %v7982_v57  ;;  %v7854_v60 = vadd.f32 %v16746_v15, %v7209_v38  ;;  %v7211_v33 = vpop.f32.mrb[42].mxu1 }
 0x580   :  { %v7949_v23 = vmax.f32 %v7853_v19, 0.0  ;;  %v7869_v55 = vadd.f32 %v16757_v61, %v7211_v33  ;;  %v7213_v43 = vpop.f32.mrb[43].mxu1 }
 0x581   :  { %v7950_v28 = vmax.f32 %v7854_v60, 0.0  ;;  %v7870_v22 = vadd.f32 %v16757_v61, %v7213_v43 }
 0x582   :  { %v7997_v40 = vmax.f32 %v7901_v5, %v7949_v23  ;;  %v7965_v4 = vmax.f32 %v7869_v55, 0.0 }
 0x583   :  { %v7998_v49 = vmax.f32 %v7902_v31, %v7950_v28  ;;  %v7966_v30 = vmax.f32 %v7870_v22, 0.0 }
 0x584   :  { %v8013_v18 = vmax.f32 %v7917_v46, %v7965_v4 }
 0x585   :  { %v8030_v9 = vmax.f32 %v7997_v40, %v7998_v49  ;;  %v8014_v34 = vmax.f32 %v7918_v51, %v7966_v30  ;;  %v7250_v20 = vpop.f32.mrb[44].mxu1 }
 0x586   :  { %v7252_v8 = vpop.f32.mrb[45].mxu1  ;;  %v7791_v44 = vadd.f32 %v16732_v6, %v7250_v20 }
 0x587   :  { %v16801_v11 = vpack.c.bf16 %v8030_v9, %v8029_v29  ;;  %v16803_v2 = vmax.f32 %v8013_v18, %v8014_v34  ;;  %v7254_v14 = vpop.f32.mrb[46].mxu1  ;;  %v7792_v12 = vadd.f32 %v16732_v6, %v7252_v8 }
 0x588   :  { %v7256_v27 = vpop.f32.mrb[47].mxu1  ;;  %v7887_v59 = vmax.f32 %v7791_v44, 0.0  ;;  %v7807_v13 = vadd.f32 %v16734_v41, %v7254_v14 }
 0x589   :  { %v7888_v0 = vmax.f32 %v7792_v12, 0.0  ;;  %v7808_v58 = vadd.f32 %v16734_v41, %v7256_v27 }
 0x58a   :  { %v7903_v57 = vmax.f32 %v7807_v13, 0.0 }
 0x58b   :  { %v7904_v38 = vmax.f32 %v7808_v58, 0.0 }
 0x58d   :  { %v7260_v16 = vpop.f32.mrb[48].mxu1 }
 0x58e   :  { %v7262_v32 = vpop.f32.mrb[49].mxu1  ;;  %v7823_v36 = vadd.f32 %v16750_v53, %v7260_v16 }
 0x58f   :  { %v7264_v47 = vpop.f32.mrb[50].mxu1  ;;  %v7824_v42 = vadd.f32 %v16750_v53, %v7262_v32 }
 0x590   :  { %v7839_v37 = vadd.f32 %v16741_v10, %v7264_v47  ;;  %v7266_v7 = vpop.f32.mrb[51].mxu1  ;;  %v7919_v60 = vmax.f32 %v7823_v36, 0.0 }
 0x591   :  { %v7840_v52 = vadd.f32 %v16741_v10, %v7266_v7  ;;  %v7920_v23 = vmax.f32 %v7824_v42, 0.0 }
 0x592   :  { %v7935_v56 = vmax.f32 %v7839_v37, 0.0 }
 0x593   :  { %v7936_v39 = vmax.f32 %v7840_v52, 0.0 }
 0x594   :  { %v7983_v63 = vmax.f32 %v7887_v59, %v7935_v56 }
 0x595   :  { %v7984_v17 = vmax.f32 %v7888_v0, %v7936_v39  ;;  %v7270_v25 = vpop.f32.mrb[52].mxu1 }
 0x596   :  { %v7855_v1 = vadd.f32 %v16746_v15, %v7270_v25  ;;  %v7272_v62 = vpop.f32.mrb[53].mxu1 }
 0x597   :  { %v8032_v24 = vmax.f32 %v7983_v63, %v7984_v17  ;;  %v7856_v26 = vadd.f32 %v16746_v15, %v7272_v62  ;;  %v7274_v3 = vpop.f32.mrb[54].mxu1 }
 0x598   :  { %v7951_v45 = vmax.f32 %v7855_v1, 0.0  ;;  %v7871_v48 = vadd.f32 %v16757_v61, %v7274_v3  ;;  %v7276_v19 = vpop.f32.mrb[55].mxu1 }
 0x599   :  { %v7952_v50 = vmax.f32 %v7856_v26, 0.0  ;;  %v7872_v29 = vadd.f32 %v16757_v61, %v7276_v19 }
 0x59a   :  { %v7999_v33 = vmax.f32 %v7903_v57, %v7951_v45  ;;  %v7967_v5 = vmax.f32 %v7871_v48, 0.0 }
 0x59b   :  { %v8000_v55 = vmax.f32 %v7904_v38, %v7952_v50  ;;  %v7968_v43 = vmax.f32 %v7872_v29, 0.0 }
 0x59c   :  { %v8015_v31 = vmax.f32 %v7919_v60, %v7967_v5 }
 0x59d   :  { %v8033_v28 = vmax.f32 %v7999_v33, %v8000_v55  ;;  %v8016_v22 = vmax.f32 %v7920_v23, %v7968_v43  ;;  %v7313_v46 = vpop.f32.mrb[56].mxu1 }
 0x59e   :  { %v7315_v40 = vpop.f32.mrb[57].mxu1  ;;  %v7793_v9 = vadd.f32 %v16732_v6, %v7313_v46 }
 0x59f   :  { %v16817_v4 = vpack.c.bf16 %v8033_v28, %v8032_v24  ;;  %v8034_v51 = vmax.f32 %v8015_v31, %v8016_v22  ;;  %v7317_v49 = vpop.f32.mrb[58].mxu1  ;;  %v7794_v20 = vadd.f32 %v16732_v6, %v7315_v40 }
 0x5a0   :  { %v7319_v30 = vpop.f32.mrb[59].mxu1  ;;  %v7889_v44 = vmax.f32 %v7793_v9, 0.0  ;;  %v7809_v37 = vadd.f32 %v16734_v41, %v7317_v49 }
 0x5a1   :  { %v7890_v12 = vmax.f32 %v7794_v20, 0.0  ;;  %v7810_v52 = vadd.f32 %v16734_v41, %v7319_v30  ;;  %v16836_v46 = vpack.c.bf16 %v8034_v51, %v8034_v51  ;;  %v16846_v30 = vld [vmem:[%s18090_s5 + $0x40] sm:$0xff]  }
 0x5a2   :  { %v7905_v36 = vmax.f32 %v7809_v37, 0.0 }
 0x5a3   :  { %v7906_v24 = vmax.f32 %v7810_v52, 0.0  ;;  %v8169_v49 = vsel %vm8167_vm3, %v16836_v46, 0 }
 0x5a5   :  { %v7323_v18 = vpop.f32.mrb[60].mxu1 }
 0x5a6   :  { %v7325_v34 = vpop.f32.mrb[61].mxu1  ;;  %v7825_v0 = vadd.f32 %v16750_v53, %v7323_v18 }
 0x5a7   :  { %v7327_v8 = vpop.f32.mrb[62].mxu1  ;;  %v7826_v63 = vadd.f32 %v16750_v53, %v7325_v34 }
 0x5a8   :  { %v7841_v14 = vadd.f32 %v16741_v10, %v7327_v8  ;;  %v7329_v27 = vpop.f32.mrb[63].mxu1  ;;  %v7921_v57 = vmax.f32 %v7825_v0, 0.0 }
 0x5a9   :  { %v7842_v16 = vadd.f32 %v16741_v10, %v7329_v27  ;;  %v7922_v19 = vmax.f32 %v7826_v63, 0.0 }
 0x5aa   :  { %v7937_v32 = vmax.f32 %v7841_v14, 0.0 }
 0x5ab   :  { %v7938_v47 = vmax.f32 %v7842_v16, 0.0 }
 0x5ac   :  { %v7985_v7 = vmax.f32 %v7889_v44, %v7937_v32 }
 0x5ad   :  { %v7986_v59 = vmax.f32 %v7890_v12, %v7938_v47  ;;  %v7333_v56 = vpop.f32.mrb[64].mxu1 }
 0x5ae   :  { %v7857_v39 = vadd.f32 %v16746_v15, %v7333_v56  ;;  %v7335_v13 = vpop.f32.mrb[65].mxu1 }
 0x5af   :  { %v8035_v58 = vmax.f32 %v7985_v7, %v7986_v59  ;;  %v7858_v17 = vadd.f32 %v16746_v15, %v7335_v13  ;;  %v7337_v25 = vpop.f32.mrb[66].mxu1 }
 0x5b0   :  { %v7953_v1 = vmax.f32 %v7857_v39, 0.0  ;;  %v7873_v62 = vadd.f32 %v16757_v61, %v7337_v25  ;;  %v7339_v42 = vpop.f32.mrb[67].mxu1 }
 0x5b1   :  { %v7954_v26 = vmax.f32 %v7858_v17, 0.0  ;;  %v7874_v3 = vadd.f32 %v16757_v61, %v7339_v42  ;;  %v16864_v17 = vld [vmem:[%s18090_s5 + $0x48] sm:$0xff]  }
 0x5b2   :  { %v8001_v45 = vmax.f32 %v7905_v36, %v7953_v1  ;;  %v7969_v48 = vmax.f32 %v7873_v62, 0.0 }
 0x5b3   :  { %v8002_v38 = vmax.f32 %v7906_v24, %v7954_v26  ;;  %v7970_v50 = vmax.f32 %v7874_v3, 0.0 }
 0x5b4   :  { %v8017_v29 = vmax.f32 %v7921_v57, %v7969_v48 }
 0x5b5   :  { %v8036_v60 = vmax.f32 %v8001_v45, %v8002_v38  ;;  %v8018_v33 = vmax.f32 %v7922_v19, %v7970_v50  ;;  %v7376_v5 = vpop.f32.mrb[68].mxu1 }
 0x5b6   :  { %v7378_v23 = vpop.f32.mrb[69].mxu1  ;;  %v7795_v18 = vadd.f32 %v16732_v6, %v7376_v5 }
 0x5b7   :  { %v8037_v55 = vmax.f32 %v8017_v29, %v8018_v33  ;;  %v7380_v43 = vpop.f32.mrb[70].mxu1  ;;  %v16831_v31 = vpack.c.bf16 %v8036_v60, %v8035_v58  ;;  %v7796_v51 = vadd.f32 %v16732_v6, %v7378_v23 }
 0x5b8   :  { %v7382_v28 = vpop.f32.mrb[71].mxu1  ;;  %v7891_v27 = vmax.f32 %v7795_v18, 0.0  ;;  %v7811_v12 = vadd.f32 %v16734_v41, %v7380_v43 }
 0x5b9   :  { %v16833_v22 = vpack.c.bf16 %v8037_v55, %v8037_v55  ;;  %8186 = vmatprep.subr.bf16.mxu1 %v16831_v31  ;;  %v7892_v44 = vmax.f32 %v7796_v51, 0.0  ;;  %v7812_v37 = vadd.f32 %v16734_v41, %v7382_v28  ;;  %v16876_v28 = vld [vmem:[%s18090_s5 + $0x50] sm:$0xff]  }
 0x5ba   :  { %8187 = vmatpush1.bf16.msra.mxu1 %v16817_v4  ;;  %v7907_v25 = vmax.f32 %v7811_v12, 0.0 }
 0x5bb   :  { %11686 = vmatprep.subr.msk.bf16.mxu1 %vm8167_vm3, %v16833_v22  ;;  %v7908_v42 = vmax.f32 %v7812_v37, 0.0 }
 0x5bd   :  { %v7386_v40 = vpop.f32.mrb[72].mxu1 }
 0x5be   :  { %v7388_v9 = vpop.f32.mrb[73].mxu1  ;;  %8189 = vmatpush1.bf16.msra.mxu1 %v8169_v49  ;;  %v7827_v59 = vadd.f32 %v16750_v53, %v7386_v40 }
 0x5bf   :  { %v7390_v34 = vpop.f32.mrb[74].mxu1  ;;  %v7828_v39 = vadd.f32 %v16750_v53, %v7388_v9 }
 0x5c0   :  { %v7843_v20 = vadd.f32 %v16741_v10, %v7390_v34  ;;  %v7392_v8 = vpop.f32.mrb[75].mxu1  ;;  %v7923_v3 = vmax.f32 %v7827_v59, 0.0 }
 0x5c1   :  { %v7844_v14 = vadd.f32 %v16741_v10, %v7392_v8  ;;  %11687 = vmatmul.mubr.msk.bf16.vlgmr.msra.gmra.mrb[116].mxu1 %vm8142_vm4, %v16846_v30  ;;  %v7924_v48 = vmax.f32 %v7828_v39, 0.0 }
 0x5c2   :  { %v7939_v16 = vmax.f32 %v7843_v20, 0.0  ;;  %8228 = vmatprep.mubr.bf16.mxu1 %v18121_v21  ;;  %v16886_v20 = vld [vmem:[%s18090_s5 + $0x58] sm:$0xff]  }
 0x5c3   :  { %v7940_v32 = vmax.f32 %v7844_v14, 0.0 }
 0x5c4   :  { %v7987_v47 = vmax.f32 %v7891_v27, %v7939_v16 }
 0x5c5   :  { %v7988_v7 = vmax.f32 %v7892_v44, %v7940_v32  ;;  %v7396_v52 = vpop.f32.mrb[76].mxu1 }
 0x5c6   :  { %v7859_v56 = vadd.f32 %v16746_v15, %v7396_v52  ;;  %v7398_v0 = vpop.f32.mrb[77].mxu1 }
 0x5c7   :  { %v8038_v13 = vmax.f32 %v7987_v47, %v7988_v7  ;;  %v7860_v63 = vadd.f32 %v16746_v15, %v7398_v0  ;;  %v7400_v58 = vpop.f32.mrb[78].mxu1 }
 0x5c8   :  { %v7955_v36 = vmax.f32 %v7859_v56, 0.0  ;;  %v7875_v1 = vadd.f32 %v16757_v61, %v7400_v58  ;;  %v7402_v62 = vpop.f32.mrb[79].mxu1 }
 0x5c9   :  { %v7956_v24 = vmax.f32 %v7860_v63, 0.0  ;;  %v7876_v26 = vadd.f32 %v16757_v61, %v7402_v62  ;;  %11688 = vmatmul.mubr.msk.bf16.gmra.mrb[120].mxu1 %vm8142_vm4, %v16864_v17 }
 0x5ca   :  { %v8003_v57 = vmax.f32 %v7907_v25, %v7955_v36  ;;  %v7971_v45 = vmax.f32 %v7875_v1, 0.0  ;;  %8238 = vmatprep.mubr.bf16.mxu1 %v18121_v21  ;;  %v16902_v36 = vld [vmem:[%s18090_s5 + $0x60] sm:$0xff]  }
 0x5cb   :  { %v8004_v19 = vmax.f32 %v7908_v42, %v7956_v24  ;;  %v7972_v38 = vmax.f32 %v7876_v26, 0.0 }
 0x5cc   :  { %v8019_v50 = vmax.f32 %v7923_v3, %v7971_v45 }
 0x5cd   :  { %v8039_v29 = vmax.f32 %v8003_v57, %v8004_v19  ;;  %v8020_v60 = vmax.f32 %v7924_v48, %v7972_v38  ;;  %v7439_v33 = vpop.f32.mrb[80].mxu1 }
 0x5ce   :  { %v7441_v5 = vpop.f32.mrb[81].mxu1  ;;  %v7797_v18 = vadd.f32 %v16732_v6, %v7439_v33 }
 0x5cf   :  { %v16871_v23 = vpack.c.bf16 %v8039_v29, %v8038_v13  ;;  %v8040_v55 = vmax.f32 %v8019_v50, %v8020_v60  ;;  %v7443_v43 = vpop.f32.mrb[82].mxu1  ;;  %v7798_v51 = vadd.f32 %v16732_v6, %v7441_v5 }
 0x5d0   :  { %v7445_v40 = vpop.f32.mrb[83].mxu1  ;;  %v7893_v16 = vmax.f32 %v7797_v18, 0.0  ;;  %v7813_v47 = vadd.f32 %v16734_v41, %v7443_v43 }
 0x5d1   :  { %11689 = vmatmul.mubr.msk.bf16.gmra.mrb[124].mxu1 %vm8142_vm4, %v16876_v28  ;;  %v7894_v32 = vmax.f32 %v7798_v51, 0.0  ;;  %v7814_v7 = vadd.f32 %v16734_v41, %v7445_v40 }
 0x5d2   :  { %8248 = vmatprep.mubr.bf16.mxu1 %v18121_v21  ;;  %v7909_v1 = vmax.f32 %v7813_v47, 0.0 }
 0x5d3   :  { %v7910_v26 = vmax.f32 %v7814_v7, 0.0 }
 0x5d5   :  { %v7449_v49 = vpop.f32.mrb[84].mxu1 }
 0x5d6   :  { %v7451_v9 = vpop.f32.mrb[85].mxu1  ;;  %v7829_v56 = vadd.f32 %v16750_v53, %v7449_v49 }
 0x5d7   :  { %v7453_v34 = vpop.f32.mrb[86].mxu1  ;;  %v7830_v13 = vadd.f32 %v16750_v53, %v7451_v9 }
 0x5d8   :  { %v7845_v8 = vadd.f32 %v16741_v10, %v7453_v34  ;;  %v7455_v14 = vpop.f32.mrb[87].mxu1  ;;  %v7925_v45 = vmax.f32 %v7829_v56, 0.0  ;;  %v16911_v34 = vpack.c.bf16 %v8040_v55, %v8040_v55  ;;  %v16943_v56 = vld [vmem:[%s18090_s5 + $0x70] sm:$0xff]  }
 0x5d9   :  { %v7846_v27 = vadd.f32 %v16741_v10, %v7455_v14  ;;  %11690 = vmatmul.mubr.msk.bf16.gmra.mrb[128].mxu1 %vm8142_vm4, %v16886_v20  ;;  %v7926_v38 = vmax.f32 %v7830_v13, 0.0  ;;  %v16922_v14 = vld [vmem:[%s18090_s5 + $0x68] sm:$0xff]  }
 0x5da   :  { %v7941_v44 = vmax.f32 %v7845_v8, 0.0  ;;  %8258 = vmatprep.mubr.bf16.mxu1 %v18121_v21 }
 0x5db   :  { %v7942_v12 = vmax.f32 %v7846_v27, 0.0  ;;  %v8175_v27 = vsel %vm8167_vm3, %v16911_v34, 0 }
 0x5dc   :  { %v7989_v37 = vmax.f32 %v7893_v16, %v7941_v44 }
 0x5dd   :  { %v7990_v52 = vmax.f32 %v7894_v32, %v7942_v12  ;;  %v7459_v59 = vpop.f32.mrb[88].mxu1 }
 0x5de   :  { %v7861_v0 = vadd.f32 %v16746_v15, %v7459_v59  ;;  %v7461_v39 = vpop.f32.mrb[89].mxu1 }
 0x5df   :  { %v8041_v63 = vmax.f32 %v7989_v37, %v7990_v52  ;;  %v7862_v58 = vadd.f32 %v16746_v15, %v7461_v39  ;;  %v7463_v25 = vpop.f32.mrb[90].mxu1 }
 0x5e0   :  { %v7957_v62 = vmax.f32 %v7861_v0, 0.0  ;;  %v7877_v42 = vadd.f32 %v16757_v61, %v7463_v25  ;;  %v7465_v24 = vpop.f32.mrb[91].mxu1 }
 0x5e1   :  { %v7958_v3 = vmax.f32 %v7862_v58, 0.0  ;;  %v7878_v57 = vadd.f32 %v16757_v61, %v7465_v24  ;;  %11691 = vmatmul.mubr.msk.bf16.gmra.mrb[132].mxu1 %vm8142_vm4, %v16902_v36 }
 0x5e2   :  { %v8005_v48 = vmax.f32 %v7909_v1, %v7957_v62  ;;  %v7973_v19 = vmax.f32 %v7877_v42, 0.0  ;;  %8268 = vmatprep.mubr.bf16.mxu1 %v18121_v21 }
 0x5e3   :  { %v8006_v50 = vmax.f32 %v7910_v26, %v7958_v3  ;;  %v7974_v29 = vmax.f32 %v7878_v57, 0.0 }
 0x5e4   :  { %v8021_v60 = vmax.f32 %v7925_v45, %v7973_v19 }
 0x5e5   :  { %v8042_v33 = vmax.f32 %v8005_v48, %v8006_v50  ;;  %v8022_v5 = vmax.f32 %v7926_v38, %v7974_v29  ;;  %v7502_v43 = vpop.f32.mrb[92].mxu1 }
 0x5e6   :  { %v7504_v40 = vpop.f32.mrb[93].mxu1  ;;  %v7799_v16 = vadd.f32 %v16732_v6, %v7502_v43 }
 0x5e7   :  { %v16909_v49 = vpack.c.bf16 %v8042_v33, %v8041_v63  ;;  %v8043_v18 = vmax.f32 %v8021_v60, %v8022_v5  ;;  %v7506_v9 = vpop.f32.mrb[94].mxu1  ;;  %v7800_v32 = vadd.f32 %v16732_v6, %v7504_v40 }
 0x5e8   :  { %v7508_v51 = vpop.f32.mrb[95].mxu1  ;;  %v7895_v52 = vmax.f32 %v7799_v16, 0.0  ;;  %v7815_v13 = vadd.f32 %v16734_v41, %v7506_v9 }
 0x5e9   :  { %v16913_v8 = vpack.c.bf16 %v8043_v18, %v8043_v18  ;;  %8299 = vmatprep.subr.bf16.mxu0 %v16909_v49  ;;  %11961 = vmatprep.subr.bf16.mxu1 %v16909_v49  ;;  %v7896_v0 = vmax.f32 %v7800_v32, 0.0  ;;  %v7816_v58 = vadd.f32 %v16734_v41, %v7508_v51  ;;  %v16959_v18 = vld [vmem:[%s18090_s5 + $0x78] sm:$0xff]  }
 0x5ea   :  { %8300 = vmatpush1.bf16.msra.mxu0 %v16871_v23  ;;  %11963 = vmatpush1.bf16.msra.mxu1 %v16871_v23  ;;  %v7911_v48 = vmax.f32 %v7815_v13, 0.0 }
 0x5eb   :  { %11695 = vmatprep.subr.msk.bf16.mxu0 %vm8167_vm3, %v16913_v8  ;;  %11962 = vmatprep.subr.msk.bf16.mxu1 %vm8167_vm3, %v16913_v8  ;;  %v7912_v29 = vmax.f32 %v7816_v58, 0.0 }
 0x5ec   :  { %11692 = vmatmul.mubr.msk.bf16.gmra.mrb[136].mxu1 %vm8142_vm4, %v16922_v14 }
 0x5ed   :  { %v7512_v55 = vpop.f32.mrb[96].mxu1  ;;  %8278 = vmatprep.mubr.bf16.mxu1 %v18121_v21 }
 0x5ee   :  { %v7514_v44 = vpop.f32.mrb[97].mxu1  ;;  %8302 = vmatpush1.bf16.msra.mxu0 %v8175_v27  ;;  %11964 = vmatpush1.bf16.msra.mxu1 %v8175_v27  ;;  %v7831_v62 = vadd.f32 %v16750_v53, %v7512_v55 }
 0x5ef   :  { %v7516_v12 = vpop.f32.mrb[98].mxu1  ;;  %v7832_v26 = vadd.f32 %v16750_v53, %v7514_v44 }
 0x5f0   :  { %v7847_v47 = vadd.f32 %v16741_v10, %v7516_v12  ;;  %v7518_v37 = vpop.f32.mrb[99].mxu1  ;;  %v7927_v5 = vmax.f32 %v7831_v62, 0.0 }
 0x5f1   :  { %v7848_v7 = vadd.f32 %v16741_v10, %v7518_v37  ;;  %11696 = vmatmul.mubr.msk.bf16.vlgmr.msra.gmra.mrb[52].mxu0 %vm8142_vm4, %v16846_v30  ;;  %v7928_v9 = vmax.f32 %v7832_v26, 0.0 }
 0x5f2   :  { %v7943_v59 = vmax.f32 %v7847_v47, 0.0  ;;  %8444 = vmatprep.mubr.bf16.mxu0 %v18121_v21 }
 0x5f3   :  { %v7944_v39 = vmax.f32 %v7848_v7, 0.0 }
 0x5f4   :  { %v7991_v63 = vmax.f32 %v7895_v52, %v7943_v59  ;;  %11693 = vmatmul.mubr.msk.bf16.gmra.mrb[140].mxu1 %vm8142_vm4, %v16943_v56 }
 0x5f5   :  { %v7992_v25 = vmax.f32 %v7896_v0, %v7944_v39  ;;  %v7522_v1 = vpop.f32.mrb[100].mxu1  ;;  %8288 = vmatprep.mubr.bf16.mxu1 %v18121_v21 }
 0x5f6   :  { %v7863_v42 = vadd.f32 %v16746_v15, %v7522_v1  ;;  %v7524_v24 = vpop.f32.mrb[101].mxu1 }
 0x5f7   :  { %v8044_v3 = vmax.f32 %v7991_v63, %v7992_v25  ;;  %v7864_v57 = vadd.f32 %v16746_v15, %v7524_v24  ;;  %v7526_v45 = vpop.f32.mrb[102].mxu1 }
 0x5f8   :  { %v7959_v19 = vmax.f32 %v7863_v42, 0.0  ;;  %v7879_v38 = vadd.f32 %v16757_v61, %v7526_v45  ;;  %v7528_v50 = vpop.f32.mrb[103].mxu1 }
 0x5f9   :  { %v7960_v60 = vmax.f32 %v7864_v57, 0.0  ;;  %v7880_v33 = vadd.f32 %v16757_v61, %v7528_v50 }
 0x5fa   :  { %v8007_v43 = vmax.f32 %v7911_v48, %v7959_v19  ;;  %v7975_v40 = vmax.f32 %v7879_v38, 0.0 }
 0x5fb   :  { %v8008_v51 = vmax.f32 %v7912_v29, %v7960_v60  ;;  %v7976_v55 = vmax.f32 %v7880_v33, 0.0 }
 0x5fc   :  { %v8023_v27 = vmax.f32 %v7927_v5, %v7975_v40  ;;  %11694 = vmatmul.mubr.msk.bf16.gmra.mrb[144].mxu1 %vm8142_vm4, %v16959_v18 }
 0x5fd   :  { %v8045_v16 = vmax.f32 %v8007_v43, %v8008_v51  ;;  %v8024_v44 = vmax.f32 %v7928_v9, %v7976_v55  ;;  %v7565_v32 = vpop.f32.mrb[104].mxu1  ;;  %8341 = vmatprep.mubr.bf16.mxu1 %v18121_v21 }
 0x5fe   :  { %v7567_v12 = vpop.f32.mrb[105].mxu1  ;;  %v7801_v0 = vadd.f32 %v16732_v6, %v7565_v32 }
 0x5ff   :  { %v16964_v47 = vpack.c.bf16 %v8045_v16, %v8044_v3  ;;  %v8046_v37 = vmax.f32 %v8023_v27, %v8024_v44  ;;  %v7569_v7 = vpop.f32.mrb[106].mxu1  ;;  %v7802_v13 = vadd.f32 %v16732_v6, %v7567_v12 }
 0x600   :  { %v7571_v52 = vpop.f32.mrb[107].mxu1  ;;  %v7897_v62 = vmax.f32 %v7801_v0, 0.0  ;;  %v7817_v3 = vadd.f32 %v16734_v41, %v7569_v7 }
 0x601   :  { %v7898_v24 = vmax.f32 %v7802_v13, 0.0  ;;  %v7818_v45 = vadd.f32 %v16734_v41, %v7571_v52 }
 0x602   :  { %v7913_v5 = vmax.f32 %v7817_v3, 0.0 }
 0x603   :  { %v7914_v9 = vmax.f32 %v7818_v45, 0.0 }
 0x604   :  { %11697 = vmatmul.mubr.msk.bf16.vlgmr.msra.gmra.mrb[148].mxu1 %vm8142_vm4, %v16864_v17 }
 0x605   :  { %v7575_v59 = vpop.f32.mrb[108].mxu1  ;;  %8351 = vmatprep.mubr.bf16.mxu1 %v18121_v21 }
 0x606   :  { %v7577_v39 = vpop.f32.mrb[109].mxu1  ;;  %v7833_v19 = vadd.f32 %v16750_v53, %v7575_v59 }
 0x607   :  { %v7579_v63 = vpop.f32.mrb[110].mxu1  ;;  %v7834_v50 = vadd.f32 %v16750_v53, %v7577_v39  ;;  %v16989_v39 = vpack.c.bf16 %v8046_v37, %v8046_v37  ;;  %v8061_v37 = vpack.c.bf16 %v16803_v2, %v16803_v2  ;;  %v8172_v2 = vsel %vm8167_vm3, %v16833_v22, 0  ;;  %v13442_v22 = vld [vmem:[%s18090_s5 + $0x18] sm:$0xff]  }
 0x608   :  { %v7849_v58 = vadd.f32 %v16741_v10, %v7579_v63  ;;  %v7581_v25 = vpop.f32.mrb[111].mxu1  ;;  %v7929_v27 = vmax.f32 %v7833_v19, 0.0 }
 0x609   :  { %v7850_v1 = vadd.f32 %v16741_v10, %v7581_v25  ;;  %v7930_v32 = vmax.f32 %v7834_v50, 0.0  ;;  %v8181_v13 = vsel %vm8167_vm3, %v16989_v39, 0  ;;  %v8590_v63 = vsel %vm8167_vm3, %v8061_v37, 0 }
 0x60a   :  { %v7945_v42 = vmax.f32 %v7849_v58, 0.0 }
 0x60b   :  { %v7946_v26 = vmax.f32 %v7850_v1, 0.0 }
 0x60c   :  { %v7993_v57 = vmax.f32 %v7897_v62, %v7945_v42  ;;  %11698 = vmatmul.mubr.msk.bf16.gmra.mrb[152].mxu1 %vm8142_vm4, %v16876_v28 }
 0x60d   :  { %v7994_v48 = vmax.f32 %v7898_v24, %v7946_v26  ;;  %v7585_v6 = vpop.f32.mrb[112].mxu1  ;;  %8361 = vmatprep.mubr.bf16.mxu1 %v18121_v21 }
 0x60e   :  { %v7865_v10 = vadd.f32 %v16746_v15, %v7585_v6  ;;  %v7587_v38 = vpop.f32.mrb[113].mxu1 }
 0x60f   :  { %v8047_v29 = vmax.f32 %v7993_v57, %v7994_v48  ;;  %v7866_v60 = vadd.f32 %v16746_v15, %v7587_v38  ;;  %v7589_v33 = vpop.f32.mrb[114].mxu1 }
 0x610   :  { %v7961_v43 = vmax.f32 %v7865_v10, 0.0  ;;  %v7881_v40 = vadd.f32 %v16757_v61, %v7589_v33  ;;  %v7591_v41 = vpop.f32.mrb[115].mxu1 }
 0x611   :  { %v7962_v51 = vmax.f32 %v7866_v60, 0.0  ;;  %v7882_v55 = vadd.f32 %v16757_v61, %v7591_v41 }
 0x612   :  { %v8009_v16 = vmax.f32 %v7913_v5, %v7961_v43  ;;  %v7977_v44 = vmax.f32 %v7881_v40, 0.0 }
 0x613   :  { %v8010_v12 = vmax.f32 %v7914_v9, %v7962_v51  ;;  %v7978_v7 = vmax.f32 %v7882_v55, 0.0 }
 0x614   :  { %v8025_v53 = vmax.f32 %v7929_v27, %v7977_v44  ;;  %11699 = vmatmul.mubr.msk.bf16.gmra.mrb[156].mxu1 %vm8142_vm4, %v16886_v20 }
 0x615   :  { %v8048_v15 = vmax.f32 %v8009_v16, %v8010_v12  ;;  %v8026_v52 = vmax.f32 %v7930_v32, %v7978_v7  ;;  %8371 = vmatprep.mubr.bf16.mxu1 %v18121_v21 }
 0x617   :  { %v8049_v59 = vmax.f32 %v8025_v53, %v8026_v52  ;;  %v16987_v0 = vpack.c.bf16 %v8048_v15, %v8047_v29 }
 0x619   :  { %v16991_v61 = vpack.c.bf16 %v8049_v59, %v8049_v59  ;;  %8412 = vmatprep.subr.bf16.mxu0 %v16987_v0 }
 0x61a   :  { %8413 = vmatpush1.bf16.msra.mxu0 %v16964_v47 }
 0x61b   :  { %11704 = vmatprep.subr.msk.bf16.mxu0 %vm8167_vm3, %v16991_v61  ;;  %v8184_v58 = vsel %vm8167_vm3, %v16991_v61, 0 }
 0x61c   :  { %11700 = vmatmul.mubr.msk.bf16.gmra.mrb[160].mxu1 %vm8142_vm4, %v16902_v36 }
 0x61d   :  { %8381 = vmatprep.mubr.bf16.mxu1 %v18121_v21 }
 0x61e   :  { %8415 = vmatpush1.bf16.msra.mxu0 %v8181_v13 }
 0x61f   :  { %8592 = vmatprep.subr.bf16.mxu0 %v16817_v4  ;;  %v13440_v4 = vld [vmem:[%s18090_s5 + $0x8] sm:$0xff]  }
 0x621   :  { %11705 = vmatmul.mubr.msk.bf16.vlgmr.msra.gmra.mrb[56].mxu0 %vm8142_vm4, %v16846_v30  ;;  %v13443_v30 = vld [vmem:[%s18090_s5 + $0x20] sm:$0xff]  }
 0x622   :  { %8593 = vmatpush1.bf16.msra.mxu0 %v16801_v11  ;;  %8454 = vmatprep.mubr.bf16.mxu0 %v18121_v21  ;;  %v13439_v11 = vld [vmem:[%s18090_s5] sm:$0xff]  }
 0x623   :  { %11721 = vmatprep.subr.msk.bf16.mxu0 %vm8167_vm3, %v16836_v46  ;;  %v13441_v46 = vld [vmem:[%s18090_s5 + $0x10] sm:$0xff]  }
 0x624   :  { %11701 = vmatmul.mubr.msk.bf16.gmra.mrb[164].mxu1 %vm8142_vm4, %v16922_v14 }
 0x625   :  { %8391 = vmatprep.mubr.bf16.mxu1 %v18121_v21 }
 0x626   :  { %8595 = vmatpush1.bf16.msra.mxu0 %v8590_v63 }
 0x627   :  { %8705 = vmatprep.subr.bf16.mxu0 %v16871_v23 }
 0x629   :  { %11706 = vmatmul.mubr.msk.bf16.gmra.mrb[60].mxu0 %vm8142_vm4, %v16864_v17  ;;  %v13444_v17 = vld [vmem:[%s18090_s5 + $0x28] sm:$0xff]  }
 0x62a   :  { %8464 = vmatprep.mubr.bf16.mxu0 %v18121_v21 }
 0x62c   :  { %11702 = vmatmul.mubr.msk.bf16.gmra.mrb[168].mxu1 %vm8142_vm4, %v16943_v56 }
 0x62d   :  { %8401 = vmatprep.mubr.bf16.mxu1 %v18121_v21 }
 0x631   :  { %11707 = vmatmul.mubr.msk.bf16.gmra.mrb[64].mxu0 %vm8142_vm4, %v16876_v28  ;;  %v13445_v28 = vld [vmem:[%s18090_s5 + $0x30] sm:$0xff]  }
 0x632   :  { %8474 = vmatprep.mubr.bf16.mxu0 %v18121_v21 }
 0x634   :  { %11703 = vmatmul.mubr.msk.bf16.gmra.mrb[172].mxu1 %vm8142_vm4, %v16959_v18 }
 0x639   :  { %11708 = vmatmul.mubr.msk.bf16.gmra.mrb[68].mxu0 %vm8142_vm4, %v16886_v20  ;;  %v13446_v20 = vld [vmem:[%s18090_s5 + $0x38] sm:$0xff]  }
 0x63a   :  { %8484 = vmatprep.mubr.bf16.mxu0 %v18121_v21 }
 0x641   :  { %11709 = vmatmul.mubr.msk.bf16.gmra.mrb[72].mxu0 %vm8142_vm4, %v16902_v36  ;;  %v8178_v36 = vsel %vm8167_vm3, %v16913_v8, 0  ;;  %v17177_v8 = vld [vmem:[%s18090_s5 + $0xa8] sm:$0xff]  }
 0x642   :  { %8494 = vmatprep.mubr.bf16.mxu0 %v18121_v21 }
 0x649   :  { %11710 = vmatmul.mubr.msk.bf16.gmra.mrb[76].mxu0 %vm8142_vm4, %v16922_v14  ;;  %v17185_v14 = vld [vmem:[%s18090_s5 + $0xb0] sm:$0xff]  }
 0x64a   :  { %8504 = vmatprep.mubr.bf16.mxu0 %v18121_v21 }
 0x651   :  { %11711 = vmatmul.mubr.msk.bf16.gmra.mrb[80].mxu0 %vm8142_vm4, %v16943_v56  ;;  %v17193_v56 = vld [vmem:[%s18090_s5 + $0xb8] sm:$0xff]  }
 0x652   :  { %8514 = vmatprep.mubr.bf16.mxu0 %v18121_v21 }
 0x659   :  { %11712 = vmatmul.mubr.msk.bf16.gmra.mrb[84].mxu0 %vm8142_vm4, %v16959_v18 }
 0x65a   :  { %8624 = vmatprep.mubr.bf16.mxu0 %v18121_v21 }
 0x661   :  { %11722 = vmatmul.mubr.msk.bf16.vlgmr.msra.gmra.mrb[88].mxu0 %vm8142_vm4, %v13439_v11 }
 0x662   :  { %8706 = vmatpush1.bf16.msra.mxu0 %v16831_v31  ;;  %8634 = vmatprep.mubr.bf16.mxu0 %v18121_v21 }
 0x663   :  { %11730 = vmatprep.subr.msk.bf16.mxu0 %vm8167_vm3, %v16911_v34 }
 0x666   :  { %8708 = vmatpush1.bf16.msra.mxu0 %v8172_v2 }
 0x667   :  { %8818 = vmatprep.subr.bf16.mxu0 %v16964_v47 }
 0x669   :  { %11723 = vmatmul.mubr.msk.bf16.gmra.mrb[92].mxu0 %vm8142_vm4, %v13440_v4 }
 0x66a   :  { %8644 = vmatprep.mubr.bf16.mxu0 %v18121_v21 }
 0x671   :  { %11724 = vmatmul.mubr.msk.bf16.gmra.mrb[96].mxu0 %vm8142_vm4, %v13441_v46 }
 0x672   :  { %8654 = vmatprep.mubr.bf16.mxu0 %v18121_v21 }
 0x679   :  { %11725 = vmatmul.mubr.msk.bf16.gmra.mrb[100].mxu0 %vm8142_vm4, %v13442_v22 }
 0x67a   :  { %8664 = vmatprep.mubr.bf16.mxu0 %v18121_v21 }
 0x681   :  { %11726 = vmatmul.mubr.msk.bf16.gmra.mrb[104].mxu0 %vm8142_vm4, %v13443_v30 }
 0x682   :  { %8674 = vmatprep.mubr.bf16.mxu0 %v18121_v21 }
 0x689   :  { %11727 = vmatmul.mubr.msk.bf16.gmra.mrb[108].mxu0 %vm8142_vm4, %v13444_v17 }
 0x68a   :  { %8684 = vmatprep.mubr.bf16.mxu0 %v18121_v21 }
 0x691   :  { %11728 = vmatmul.mubr.msk.bf16.gmra.mrb[112].mxu0 %vm8142_vm4, %v13445_v28 }
 0x692   :  { %8694 = vmatprep.mubr.bf16.mxu0 %v18121_v21 }
 0x694   :  { %v17197_v18 = vpop.f32.mrb[116].mxu1 }
 0x699   :  { %11729 = vmatmul.mubr.msk.bf16.gmra.mrb[116].mxu0 %vm8142_vm4, %v13446_v20 }
 0x69a   :  { %8737 = vmatprep.mubr.bf16.mxu0 %v18121_v21 }
 0x6a1   :  { %11731 = vmatmul.mubr.msk.bf16.vlgmr.msra.gmra.mrb[52].mxu0 %vm8142_vm4, %v13439_v11 }
 0x6a2   :  { %8819 = vmatpush1.bf16.msra.mxu0 %v16909_v49  ;;  %8747 = vmatprep.mubr.bf16.mxu0 %v18121_v21 }
 0x6a3   :  { %11739 = vmatprep.subr.msk.bf16.mxu0 %vm8167_vm3, %v16989_v39 }
 0x6a6   :  { %8821 = vmatpush1.bf16.msra.mxu0 %v8178_v36 }
 0x6a7   :  { %9015 = vmatprep.subr.bf16.mxu0 %v16871_v23  ;;  %v17144_v23 = vld [vmem:[%s18090_s5 + $0x88] sm:$0xff]  }
 0x6a9   :  { %11732 = vmatmul.mubr.msk.bf16.gmra.mrb[120].mxu0 %vm8142_vm4, %v13440_v4 }
 0x6aa   :  { %8757 = vmatprep.mubr.bf16.mxu0 %v18121_v21 }
 0x6b1   :  { %11733 = vmatmul.mubr.msk.bf16.gmra.mrb[124].mxu0 %vm8142_vm4, %v13441_v46 }
 0x6b2   :  { %8767 = vmatprep.mubr.bf16.mxu0 %v18121_v21 }
 0x6b9   :  { %11734 = vmatmul.mubr.msk.bf16.gmra.mrb[128].mxu0 %vm8142_vm4, %v13442_v22 }
 0x6ba   :  { %8777 = vmatprep.mubr.bf16.mxu0 %v18121_v21 }
 0x6c1   :  { %11735 = vmatmul.mubr.msk.bf16.gmra.mrb[132].mxu0 %vm8142_vm4, %v13443_v30 }
 0x6c2   :  { %8787 = vmatprep.mubr.bf16.mxu0 %v18121_v21 }
 0x6c9   :  { %11736 = vmatmul.mubr.msk.bf16.gmra.mrb[136].mxu0 %vm8142_vm4, %v13444_v17 }
 0x6ca   :  { %8797 = vmatprep.mubr.bf16.mxu0 %v18121_v21 }
 0x6d1   :  { %11737 = vmatmul.mubr.msk.bf16.gmra.mrb[140].mxu0 %vm8142_vm4, %v13445_v28 }
 0x6d2   :  { %8807 = vmatprep.mubr.bf16.mxu0 %v18121_v21 }
 0x6d9   :  { %11738 = vmatmul.mubr.msk.bf16.gmra.mrb[144].mxu0 %vm8142_vm4, %v13446_v20 }
 0x6da   :  { %8850 = vmatprep.mubr.bf16.mxu0 %v18121_v21 }
 0x6e1   :  { %11740 = vmatmul.mubr.msk.bf16.vlgmr.msra.gmra.mrb[56].mxu0 %vm8142_vm4, %v13439_v11 }
 0x6e2   :  { %9016 = vmatpush1.bf16.msra.mxu0 %v16831_v31  ;;  %8860 = vmatprep.mubr.bf16.mxu0 %v18121_v21  ;;  %v17133_v31 = vld [vmem:[%s18090_s5 + $0x80] sm:$0xff]  }
 0x6e3   :  { %11772 = vmatprep.subr.msk.bf16.mxu0 %vm8167_vm3, %v16911_v34  ;;  %v17161_v34 = vld [vmem:[%s18090_s5 + $0x98] sm:$0xff]  }
 0x6e6   :  { %9018 = vmatpush1.bf16.msra.mxu0 %v8172_v2 }
 0x6e7   :  { %9128 = vmatprep.subr.bf16.mxu0 %v16964_v47  ;;  %v8068_v47 = vpack.c.bf16 %v16766_v35, %v16766_v35  ;;  %v17215_v35 = vpop.f32.mrb[117].mxu1 }
 0x6e8   :  { %v17217_v25 = vpop.f32.mrb[118].mxu1 }
 0x6e9   :  { %11741 = vmatmul.mubr.msk.bf16.gmra.mrb[60].mxu0 %vm8142_vm4, %v13440_v4  ;;  %v17219_v1 = vpop.f32.mrb[119].mxu1 }
 0x6ea   :  { %8870 = vmatprep.mubr.bf16.mxu0 %v18121_v21  ;;  %v17224_v62 = vpop.f32.mrb[120].mxu1 }
 0x6eb   :  { %v17226_v42 = vpop.f32.mrb[121].mxu1 }
 0x6ec   :  { %v17228_v24 = vpop.f32.mrb[122].mxu1 }
 0x6ed   :  { %v17230_v26 = vpop.f32.mrb[123].mxu1 }
 0x6ee   :  { %v17235_v3 = vpop.f32.mrb[124].mxu1 }
 0x6ef   :  { %v17237_v57 = vpop.f32.mrb[125].mxu1 }
 0x6f0   :  { %v17239_v45 = vpop.f32.mrb[126].mxu1 }
 0x6f1   :  { %11742 = vmatmul.mubr.msk.bf16.gmra.mrb[64].mxu0 %vm8142_vm4, %v13441_v46  ;;  %v17241_v48 = vpop.f32.mrb[127].mxu1 }
 0x6f2   :  { %8880 = vmatprep.mubr.bf16.mxu0 %v18121_v21  ;;  %v17246_v6 = vpop.f32.mrb[128].mxu1 }
 0x6f3   :  { %v17248_v19 = vpop.f32.mrb[129].mxu1 }
 0x6f4   :  { %v17250_v10 = vpop.f32.mrb[130].mxu1 }
 0x6f5   :  { %v17252_v38 = vpop.f32.mrb[131].mxu1 }
 0x6f6   :  { %v17257_v50 = vpop.f32.mrb[132].mxu1 }
 0x6f7   :  { %v17259_v29 = vpop.f32.mrb[133].mxu1 }
 0x6f8   :  { %v17261_v60 = vpop.f32.mrb[134].mxu1 }
 0x6f9   :  { %11743 = vmatmul.mubr.msk.bf16.gmra.mrb[68].mxu0 %vm8142_vm4, %v13442_v22  ;;  %v17263_v33 = vpop.f32.mrb[135].mxu1 }
 0x6fa   :  { %8890 = vmatprep.mubr.bf16.mxu0 %v18121_v21  ;;  %v17268_v5 = vpop.f32.mrb[136].mxu1 }
 0x6fb   :  { %v17270_v43 = vpop.f32.mrb[137].mxu1 }
 0x6fc   :  { %v17272_v40 = vpop.f32.mrb[138].mxu1 }
 0x6fd   :  { %v17274_v41 = vpop.f32.mrb[139].mxu1 }
 0x6fe   :  { %v17279_v9 = vpop.f32.mrb[140].mxu1 }
 0x6ff   :  { %v17281_v51 = vpop.f32.mrb[141].mxu1 }
 0x700   :  { %v17283_v55 = vpop.f32.mrb[142].mxu1 }
 0x701   :  { %11744 = vmatmul.mubr.msk.bf16.gmra.mrb[72].mxu0 %vm8142_vm4, %v13443_v30  ;;  %v17285_v27 = vpop.f32.mrb[143].mxu1 }
 0x702   :  { %8900 = vmatprep.mubr.bf16.mxu0 %v18121_v21  ;;  %v17290_v16 = vpop.f32.mrb[144].mxu1 }
 0x703   :  { %v17292_v44 = vpop.f32.mrb[145].mxu1 }
 0x704   :  { %v17294_v32 = vpop.f32.mrb[146].mxu1 }
 0x705   :  { %v17296_v12 = vpop.f32.mrb[147].mxu1 }
 0x706   :  { %v17304_v7 = vpop.f32.mrb[148].mxu1 }
 0x707   :  { %v17306_v53 = vpop.f32.mrb[149].mxu1 }
 0x708   :  { %v17308_v15 = vpop.f32.mrb[150].mxu1 }
 0x709   :  { %11745 = vmatmul.mubr.msk.bf16.gmra.mrb[76].mxu0 %vm8142_vm4, %v13444_v17  ;;  %v17310_v52 = vpop.f32.mrb[151].mxu1 }
 0x70a   :  { %8910 = vmatprep.mubr.bf16.mxu0 %v18121_v21  ;;  %v17315_v59 = vpop.f32.mrb[152].mxu1 }
 0x711   :  { %11746 = vmatmul.mubr.msk.bf16.gmra.mrb[80].mxu0 %vm8142_vm4, %v13445_v28 }
 0x712   :  { %8920 = vmatprep.mubr.bf16.mxu0 %v18121_v21 }
 0x719   :  { %11747 = vmatmul.mubr.msk.bf16.gmra.mrb[84].mxu0 %vm8142_vm4, %v13446_v20 }
 0x71a   :  { %9047 = vmatprep.mubr.bf16.mxu0 %v18121_v21 }
 0x721   :  { %11773 = vmatmul.mubr.msk.bf16.vlgmr.msra.gmra.mrb[88].mxu0 %vm8142_vm4, %v17133_v31 }
 0x722   :  { %9129 = vmatpush1.bf16.msra.mxu0 %v16909_v49  ;;  %9057 = vmatprep.mubr.bf16.mxu0 %v18121_v21  ;;  %v17153_v49 = vld [vmem:[%s18090_s5 + $0x90] sm:$0xff]  }
 0x723   :  { %11781 = vmatprep.subr.msk.bf16.mxu0 %vm8167_vm3, %v16989_v39 }
 0x726   :  { %9131 = vmatpush1.bf16.msra.mxu0 %v8178_v36 }
 0x727   :  { %9241 = vmatprep.subr.bf16.mxu0 %v16770_v54  ;;  %v17169_v54 = vld [vmem:[%s18090_s5 + $0xa0] sm:$0xff]  }
 0x729   :  { %11774 = vmatmul.mubr.msk.bf16.gmra.mrb[92].mxu0 %vm8142_vm4, %v17144_v23 }
 0x72a   :  { %9067 = vmatprep.mubr.bf16.mxu0 %v18121_v21 }
 0x731   :  { %11775 = vmatmul.mubr.msk.bf16.gmra.mrb[96].mxu0 %vm8142_vm4, %v17153_v49 }
 0x732   :  { %9077 = vmatprep.mubr.bf16.mxu0 %v18121_v21 }
 0x739   :  { %11776 = vmatmul.mubr.msk.bf16.gmra.mrb[100].mxu0 %vm8142_vm4, %v17161_v34 }
 0x73a   :  { %9087 = vmatprep.mubr.bf16.mxu0 %v18121_v21 }
 0x741   :  { %11777 = vmatmul.mubr.msk.bf16.gmra.mrb[104].mxu0 %vm8142_vm4, %v17169_v54 }
 0x742   :  { %9097 = vmatprep.mubr.bf16.mxu0 %v18121_v21 }
 0x749   :  { %11778 = vmatmul.mubr.msk.bf16.gmra.mrb[108].mxu0 %vm8142_vm4, %v17177_v8 }
 0x74a   :  { %9107 = vmatprep.mubr.bf16.mxu0 %v18121_v21 }
 0x751   :  { %11779 = vmatmul.mubr.msk.bf16.gmra.mrb[112].mxu0 %vm8142_vm4, %v17185_v14 }
 0x752   :  { %9117 = vmatprep.mubr.bf16.mxu0 %v18121_v21 }
 0x759   :  { %11780 = vmatmul.mubr.msk.bf16.gmra.mrb[116].mxu0 %vm8142_vm4, %v17193_v56 }
 0x75a   :  { %9160 = vmatprep.mubr.bf16.mxu0 %v18121_v21 }
 0x761   :  { %11782 = vmatmul.mubr.msk.bf16.vlgmr.msra.gmra.mrb[52].mxu0 %vm8142_vm4, %v17133_v31 }
 0x762   :  { %9242 = vmatpush1.bf16.msra.mxu0 %v16987_v0  ;;  %9170 = vmatprep.mubr.bf16.mxu0 %v18121_v21  ;;  %v17317_v0 = vpop.f32.mrb[153].mxu1 }
 0x763   :  { %11790 = vmatprep.subr.msk.bf16.mxu0 %vm8167_vm3, %v8068_v47  ;;  %v17319_v39 = vpop.f32.mrb[154].mxu1 }
 0x764   :  { %v17321_v61 = vpop.f32.mrb[155].mxu1 }
 0x765   :  { %v17326_v13 = vpop.f32.mrb[156].mxu1 }
 0x766   :  { %9244 = vmatpush1.bf16.msra.mxu0 %v8184_v58  ;;  %v17328_v37 = vpop.f32.mrb[157].mxu1 }
 0x767   :  { %18122 = vst [vmem:[#allocation2_spill] sm:$0xff] %v17328_v37  ;;  %v17330_v63 = vpop.f32.mrb[158].mxu1 }
 0x768   :  { %18123 = vst [vmem:[#allocation3_spill] sm:$0xff] %v17330_v63  ;;  %v17332_v11 = vpop.f32.mrb[159].mxu1 }
 0x769   :  { %11783 = vmatmul.mubr.msk.bf16.gmra.mrb[120].mxu0 %vm8142_vm4, %v17144_v23  ;;  %18124 = vst [vmem:[#allocation4_spill] sm:$0xff] %v17332_v11  ;;  %v17337_v2 = vpop.f32.mrb[160].mxu1 }
 0x76a   :  { %9180 = vmatprep.mubr.bf16.mxu0 %v18121_v21  ;;  %18125 = vst [vmem:[#allocation5_spill] sm:$0xff] %v17337_v2  ;;  %v17339_v4 = vpop.f32.mrb[161].mxu1 }
 0x76b   :  { %18126 = vst [vmem:[#allocation6_spill] sm:$0xff] %v17339_v4  ;;  %v17341_v46 = vpop.f32.mrb[162].mxu1 }
 0x76c   :  { %18127 = vst [vmem:[#allocation7_spill] sm:$0xff] %v17341_v46  ;;  %v17343_v22 = vpop.f32.mrb[163].mxu1 }
 0x76d   :  { %18128 = vst [vmem:[#allocation8_spill] sm:$0xff] %v17343_v22  ;;  %v17347_v30 = vpop.f32.mrb[164].mxu1 }
 0x76e   :  { %18129 = vst [vmem:[#allocation9_spill] sm:$0xff] %v17347_v30  ;;  %v17349_v17 = vpop.f32.mrb[165].mxu1 }
 0x76f   :  { %18130 = vst [vmem:[#allocation10_spill] sm:$0xff] %v17349_v17  ;;  %v17351_v28 = vpop.f32.mrb[166].mxu1 }
 0x770   :  { %18131 = vst [vmem:[#allocation11_spill] sm:$0xff] %v17351_v28  ;;  %v17353_v20 = vpop.f32.mrb[167].mxu1 }
 0x771   :  { %11784 = vmatmul.mubr.msk.bf16.gmra.mrb[124].mxu0 %vm8142_vm4, %v17153_v49  ;;  %18132 = vst [vmem:[#allocation12_spill] sm:$0xff] %v17353_v20 }
 0x772   :  { %9190 = vmatprep.mubr.bf16.mxu0 %v18121_v21 }
 0x779   :  { %11785 = vmatmul.mubr.msk.bf16.gmra.mrb[128].mxu0 %vm8142_vm4, %v17161_v34 }
 0x77a   :  { %9200 = vmatprep.mubr.bf16.mxu0 %v18121_v21 }
 0x781   :  { %11786 = vmatmul.mubr.msk.bf16.gmra.mrb[132].mxu0 %vm8142_vm4, %v17169_v54 }
 0x782   :  { %9210 = vmatprep.mubr.bf16.mxu0 %v18121_v21 }
 0x789   :  { %11787 = vmatmul.mubr.msk.bf16.gmra.mrb[136].mxu0 %vm8142_vm4, %v17177_v8 }
 0x78a   :  { %9220 = vmatprep.mubr.bf16.mxu0 %v18121_v21 }
 0x791   :  { %11788 = vmatmul.mubr.msk.bf16.gmra.mrb[140].mxu0 %vm8142_vm4, %v17185_v14 }
 0x792   :  { %9230 = vmatprep.mubr.bf16.mxu0 %v18121_v21 }
 0x799   :  { %11789 = vmatmul.mubr.msk.bf16.gmra.mrb[144].mxu0 %vm8142_vm4, %v17193_v56 }
 0x79a   :  { %9273 = vmatprep.mubr.bf16.mxu0 %v18121_v21 }
 0x7a1   :  { %11791 = vmatmul.mubr.msk.bf16.vlgmr.msra.gmra.mrb[56].mxu0 %vm8142_vm4, %v17133_v31 }
 0x7a2   :  { %9283 = vmatprep.mubr.bf16.mxu0 %v18121_v21 }
 0x7a9   :  { %11792 = vmatmul.mubr.msk.bf16.gmra.mrb[60].mxu0 %vm8142_vm4, %v17144_v23 }
 0x7aa   :  { %9293 = vmatprep.mubr.bf16.mxu0 %v18121_v21 }
 0x7b1   :  { %11793 = vmatmul.mubr.msk.bf16.gmra.mrb[64].mxu0 %vm8142_vm4, %v17153_v49 }
 0x7b2   :  { %9303 = vmatprep.mubr.bf16.mxu0 %v18121_v21 }
 0x7b9   :  { %11794 = vmatmul.mubr.msk.bf16.gmra.mrb[68].mxu0 %vm8142_vm4, %v17161_v34 }
 0x7ba   :  { %9313 = vmatprep.mubr.bf16.mxu0 %v18121_v21 }
 0x7c1   :  { %11795 = vmatmul.mubr.msk.bf16.gmra.mrb[72].mxu0 %vm8142_vm4, %v17169_v54 }
 0x7c2   :  { %9323 = vmatprep.mubr.bf16.mxu0 %v18121_v21 }
 0x7c9   :  { %11796 = vmatmul.mubr.msk.bf16.gmra.mrb[76].mxu0 %vm8142_vm4, %v17177_v8 }
 0x7ca   :  { %9333 = vmatprep.mubr.bf16.mxu0 %v18121_v21 }
 0x7d1   :  { %11797 = vmatmul.mubr.msk.bf16.gmra.mrb[80].mxu0 %vm8142_vm4, %v17185_v14 }
 0x7d2   :  { %9343 = vmatprep.mubr.bf16.mxu0 %v18121_v21  ;;  %v17355_v21 = vpop.f32.mrb[168].mxu1 }
 0x7d3   :  { %18133 = vst [vmem:[#allocation13_spill] sm:$0xff] %v17355_v21  ;;  %v17357_v36 = vpop.f32.mrb[169].mxu1 }
 0x7d4   :  { %18134 = vst [vmem:[#allocation14_spill] sm:$0xff] %v17357_v36  ;;  %v17359_v31 = vpop.f32.mrb[170].mxu1 }
 0x7d5   :  { %18135 = vst [vmem:[#allocation15_spill] sm:$0xff] %v17359_v31  ;;  %v17361_v23 = vpop.f32.mrb[171].mxu1 }
 0x7d6   :  { %18136 = vst [vmem:[#allocation16_spill] sm:$0xff] %v17361_v23  ;;  %v17363_v49 = vpop.f32.mrb[172].mxu1 }
 0x7d7   :  { %18137 = vst [vmem:[#allocation17_spill] sm:$0xff] %v17363_v49  ;;  %v17365_v34 = vpop.f32.mrb[173].mxu1 }
 0x7d8   :  { %18138 = vst [vmem:[#allocation18_spill] sm:$0xff] %v17365_v34  ;;  %v17367_v54 = vpop.f32.mrb[174].mxu1 }
 0x7d9   :  { %11798 = vmatmul.mubr.msk.bf16.gmra.mrb[84].mxu0 %vm8142_vm4, %v17193_v56  ;;  %18139 = vst [vmem:[#allocation19_spill] sm:$0xff] %v17367_v54  ;;  %v17369_v8 = vpop.f32.mrb[175].mxu1 }
 0x7da   :  { %18140 = vst [vmem:[#allocation20_spill] sm:$0xff] %v17369_v8 }
 0x7f4   :  { %v9049_v14 = vpop.f32.mrb[88].mxu0 }
 0x7f5   :  { %v11965_v56 = vadd.f32 %v9049_v14, %v17197_v18  ;;  %v9051_v47 = vpop.f32.mrb[89].mxu0 }
 0x7f6   :  { %v11966_v58 = vadd.f32 %v9051_v47, %v17215_v35  ;;  %v9053_v21 = vpop.f32.mrb[90].mxu0  ;;  %v17383_v35 = vpop.permute.xlu0 %9468 }
 0x7f7   :  { %v11967_v36 = vadd.f32 %v9053_v21, %v17217_v25  ;;  %v9055_v31 = vpop.f32.mrb[91].mxu0  ;;  %18141 = vst [vmem:[#allocation21_spill] sm:$0xff] %v17383_v35 }
 0x7f8   :  { %v11968_v23 = vadd.f32 %v9055_v31, %v17219_v1  ;;  %v17388_v31 = vpop.permute.xlu1 %9473 }
 0x7f9   :  { %18142 = vst [vmem:[#allocation22_spill] sm:$0xff] %v17388_v31  ;;  %v9552_v22 = vadd.f32 %v11967_v36, %v17388_v31 }
 0x7fc   :  { %v9059_v20 = vpop.f32.mrb[92].mxu0 }
 0x7fd   :  { %v11969_v49 = vadd.f32 %v9059_v20, %v17224_v62  ;;  %v9061_v34 = vpop.f32.mrb[93].mxu0  ;;  %v17399_v20 = vpop.permute.xlu0 %9508 }
 0x7fe   :  { %v11970_v54 = vadd.f32 %v9061_v34, %v17226_v42  ;;  %v9063_v28 = vpop.f32.mrb[94].mxu0  ;;  %v17401_v34 = vpop.permute.xlu1 %9513 }
 0x7ff   :  { %v17378_v8 = vadd.f32 %v9063_v28, %v17228_v24  ;;  %v9065_v18 = vpop.f32.mrb[95].mxu0 }
 0x800   :  { %v17381_v14 = vadd.f32 %v9065_v18, %v17230_v26 }
 0x804   :  { %v9069_v25 = vpop.f32.mrb[96].mxu0 }
 0x805   :  { %v17386_v21 = vadd.f32 %v9069_v25, %v17235_v3  ;;  %v9071_v1 = vpop.f32.mrb[97].mxu0 }
 0x806   :  { %v17391_v62 = vadd.f32 %v9071_v1, %v17237_v57  ;;  %v9073_v42 = vpop.f32.mrb[98].mxu0 }
 0x807   :  { %v17394_v24 = vadd.f32 %v9073_v42, %v17239_v45  ;;  %v9075_v28 = vpop.f32.mrb[99].mxu0  ;;  %v17412_v42 = vpop.permute.xlu0 %9478 }
 0x808   :  { %v17397_v26 = vadd.f32 %v9075_v28, %v17241_v48  ;;  %v17417_v28 = vpop.permute.xlu1 %9518 }
 0x80c   :  { %v9079_v3 = vpop.f32.mrb[100].mxu0  ;;  %v17428_v4 = vpop.permute.xlu1 %9523 }
 0x80d   :  { %v17404_v47 = vadd.f32 %v9079_v3, %v17246_v6  ;;  %v9081_v18 = vpop.f32.mrb[101].mxu0  ;;  %v9546_v6 = vadd.f32 %v11965_v56, %v17383_v35  ;;  %v9553_v56 = vadd.f32 %v11968_v23, %v17388_v31 }
 0x80e   :  { %v17407_v57 = vadd.f32 %v9081_v18, %v17248_v19  ;;  %v9083_v25 = vpop.f32.mrb[102].mxu0  ;;  %v17421_v19 = vpop.permute.xlu0 %9483  ;;  %v9547_v18 = vadd.f32 %v11966_v58, %v17383_v35 }
 0x80f   :  { %v17410_v45 = vadd.f32 %v9083_v25, %v17250_v10  ;;  %v9085_v1 = vpop.f32.mrb[103].mxu0  ;;  %v9642_v2 = vmax.f32 %v9546_v6, 0.0  ;;  %v9649_v63 = vmax.f32 %v9553_v56, 0.0 }
 0x810   :  { %v17415_v48 = vadd.f32 %v9085_v1, %v17252_v38 }
 0x814   :  { %v9089_v17 = vpop.f32.mrb[104].mxu0 }
 0x815   :  { %v11981_v3 = vadd.f32 %v9089_v17, %v17257_v50  ;;  %v9091_v30 = vpop.f32.mrb[105].mxu0 }
 0x816   :  { %v11982_v10 = vadd.f32 %v9091_v30, %v17259_v29  ;;  %v9093_v25 = vpop.f32.mrb[106].mxu0  ;;  %v9643_v30 = vmax.f32 %v9547_v18, 0.0  ;;  %v9559_v18 = vadd.f32 %v11970_v54, %v17412_v42 }
 0x817   :  { %v9594_v38 = vadd.f32 %v11981_v3, %v17399_v20  ;;  %v11983_v1 = vadd.f32 %v9093_v25, %v17261_v60  ;;  %v9095_v46 = vpop.f32.mrb[107].mxu0  ;;  %v9648_v3 = vmax.f32 %v9552_v22, 0.0  ;;  %v17435_v25 = vpop.permute.xlu0 %9488 }
 0x818   :  { %v9595_v50 = vadd.f32 %v11982_v10, %v17399_v20  ;;  %v11984_v17 = vadd.f32 %v9095_v46, %v17263_v33  ;;  %v9558_v10 = vadd.f32 %v11969_v49, %v17412_v42 }
 0x819   :  { %v9690_v58 = vmax.f32 %v9594_v38, 0.0  ;;  %v9600_v29 = vadd.f32 %v11983_v1, %v17401_v34  ;;  %v17439_v38 = vpop.permute.xlu1 %9528 }
 0x81a   :  { %v9691_v35 = vmax.f32 %v9595_v50, 0.0  ;;  %v9601_v36 = vadd.f32 %v11984_v17, %v17401_v34 }
 0x81b   :  { %v9738_v11 = vmax.f32 %v9642_v2, %v9690_v58  ;;  %v9696_v60 = vmax.f32 %v9600_v29, 0.0  ;;  %v17456_v58 = vpop.permute.xlu0 %9493 }
 0x81c   :  { %v9739_v37 = vmax.f32 %v9643_v30, %v9691_v35  ;;  %v9697_v23 = vmax.f32 %v9601_v36, 0.0  ;;  %v9099_v31 = vpop.f32.mrb[108].mxu0  ;;  %v9564_v35 = vadd.f32 %v17378_v8, %v17421_v19  ;;  %v9655_v8 = vmax.f32 %v9559_v18, 0.0 }
 0x81d   :  { %v9744_v33 = vmax.f32 %v9648_v3, %v9696_v60  ;;  %v11985_v46 = vadd.f32 %v9099_v31, %v17268_v5  ;;  %v9101_v6 = vpop.f32.mrb[109].mxu0  ;;  %v9565_v5 = vadd.f32 %v17381_v14, %v17421_v19  ;;  %v17459_v14 = vpop.permute.xlu1 %9533  ;;  %v9571_v18 = vadd.f32 %v17391_v62, %v17435_v25 }
 0x81e   :  { %v17442_v1 = vmax.f32 %v9738_v11, %v9739_v37  ;;  %v9745_v2 = vmax.f32 %v9649_v63, %v9697_v23  ;;  %v11986_v22 = vadd.f32 %v9101_v6, %v17270_v43  ;;  %v9103_v50 = vpop.f32.mrb[110].mxu0  ;;  %v9654_v11 = vmax.f32 %v9558_v10, 0.0 }
 0x81f   :  { %v9606_v56 = vadd.f32 %v11985_v46, %v17417_v28  ;;  %v11987_v49 = vadd.f32 %v9103_v50, %v17272_v40  ;;  %v9105_v17 = vpop.f32.mrb[111].mxu0  ;;  %v9660_v30 = vmax.f32 %v9564_v35, 0.0  ;;  %v9661_v60 = vmax.f32 %v9565_v5, 0.0 }
 0x820   :  { %v17451_v31 = vmax.f32 %v9744_v33, %v9745_v2  ;;  %v9607_v37 = vadd.f32 %v11986_v22, %v17417_v28  ;;  %v11988_v63 = vadd.f32 %v9105_v17, %v17274_v41  ;;  %v9570_v41 = vadd.f32 %v17386_v21, %v17435_v25 }
 0x821   :  { %v9702_v43 = vmax.f32 %v9606_v56, 0.0  ;;  %v9612_v54 = vadd.f32 %v11987_v49, %v17428_v4  ;;  %v9576_v49 = vadd.f32 %v17394_v24, %v17456_v58 }
 0x822   :  { %v9703_v29 = vmax.f32 %v9607_v37, 0.0  ;;  %v9613_v40 = vadd.f32 %v11988_v63, %v17428_v4  ;;  %v17473_v37 = vpop.permute.xlu0 %9498 }
 0x823   :  { %v9750_v36 = vmax.f32 %v9654_v11, %v9702_v43  ;;  %v9708_v3 = vmax.f32 %v9612_v54, 0.0  ;;  %v9666_v11 = vmax.f32 %v9570_v41, 0.0  ;;  %v17482_v54 = vpop.permute.xlu1 %9538 }
 0x824   :  { %v9751_v23 = vmax.f32 %v9655_v8, %v9703_v29  ;;  %v9709_v33 = vmax.f32 %v9613_v40, 0.0  ;;  %v9109_v46 = vpop.f32.mrb[112].mxu0  ;;  %v9667_v8 = vmax.f32 %v9571_v18, 0.0  ;;  %v9672_v40 = vmax.f32 %v9576_v49, 0.0 }
 0x825   :  { %v9756_v10 = vmax.f32 %v9660_v30, %v9708_v3  ;;  %v11989_v6 = vadd.f32 %v9109_v46, %v17279_v9  ;;  %v9111_v2 = vpop.f32.mrb[113].mxu0  ;;  %v9577_v9 = vadd.f32 %v17397_v26, %v17456_v58 }
 0x826   :  { %v17466_v22 = vmax.f32 %v9750_v36, %v9751_v23  ;;  %v9757_v50 = vmax.f32 %v9661_v60, %v9709_v33  ;;  %v11990_v35 = vadd.f32 %v9111_v2, %v17281_v51  ;;  %v9113_v56 = vpop.f32.mrb[114].mxu0 }
 0x827   :  { %v9618_v17 = vadd.f32 %v11989_v6, %v17439_v38  ;;  %v11991_v21 = vadd.f32 %v9113_v56, %v17283_v55  ;;  %v9115_v5 = vpop.f32.mrb[115].mxu0  ;;  %v9673_v26 = vmax.f32 %v9577_v9, 0.0  ;;  %v9583_v6 = vadd.f32 %v17407_v57, %v17473_v37 }
 0x828   :  { %v17477_v62 = vmax.f32 %v9756_v10, %v9757_v50  ;;  %v9619_v63 = vadd.f32 %v11990_v35, %v17439_v38  ;;  %v11992_v51 = vadd.f32 %v9115_v5, %v17285_v27  ;;  %v9582_v27 = vadd.f32 %v17404_v47, %v17473_v37  ;;  %v17488_v10 = vpop.permute.xlu0 %9503 }
 0x829   :  { %v9714_v43 = vmax.f32 %v9618_v17, 0.0  ;;  %v9624_v24 = vadd.f32 %v11991_v21, %v17459_v14  ;;  %v9588_v56 = vadd.f32 %v17410_v45, %v17488_v10  ;;  %v17499_v17 = vpop.permute.xlu1 %9543  ;;  %v9589_v21 = vadd.f32 %v17415_v48, %v17488_v10 }
 0x82a   :  { %v9715_v55 = vmax.f32 %v9619_v63, 0.0  ;;  %v9625_v29 = vadd.f32 %v11992_v51, %v17459_v14  ;;  %v9678_v9 = vmax.f32 %v9582_v27, 0.0  ;;  %v9679_v51 = vmax.f32 %v9583_v6, 0.0 }
 0x82b   :  { %v9762_v30 = vmax.f32 %v9666_v11, %v9714_v43  ;;  %v9720_v36 = vmax.f32 %v9624_v24, 0.0  ;;  %v9684_v43 = vmax.f32 %v9588_v56, 0.0 }
 0x82c   :  { %v9763_v3 = vmax.f32 %v9667_v8, %v9715_v55  ;;  %v9721_v60 = vmax.f32 %v9625_v29, 0.0  ;;  %v9119_v23 = vpop.f32.mrb[116].mxu0  ;;  %v9685_v55 = vmax.f32 %v9589_v21, 0.0 }
 0x82d   :  { %v9768_v33 = vmax.f32 %v9672_v40, %v9720_v36  ;;  %v11993_v46 = vadd.f32 %v9119_v23, %v17290_v16  ;;  %v9121_v41 = vpop.f32.mrb[117].mxu0 }
 0x82e   :  { %v17492_v2 = vmax.f32 %v9762_v30, %v9763_v3  ;;  %v9769_v18 = vmax.f32 %v9673_v26, %v9721_v60  ;;  %v11994_v50 = vadd.f32 %v9121_v41, %v17292_v44  ;;  %v9123_v35 = vpop.f32.mrb[118].mxu0 }
 0x82f   :  { %v9630_v47 = vadd.f32 %v11993_v46, %v17482_v54  ;;  %v11995_v49 = vadd.f32 %v9123_v35, %v17294_v32  ;;  %v9125_v16 = vpop.f32.mrb[119].mxu0 }
 0x830   :  { %v17503_v57 = vmax.f32 %v9768_v33, %v9769_v18  ;;  %v9631_v5 = vadd.f32 %v11994_v50, %v17482_v54  ;;  %v11996_v44 = vadd.f32 %v9125_v16, %v17296_v12 }
 0x831   :  { %v9726_v63 = vmax.f32 %v9630_v47, 0.0  ;;  %v9636_v45 = vadd.f32 %v11995_v49, %v17499_v17 }
 0x832   :  { %18143 = vst [vmem:[#allocation23_spill] sm:$0xff] %v17503_v57  ;;  %v9727_v11 = vmax.f32 %v9631_v5, 0.0  ;;  %v9637_v32 = vadd.f32 %v11996_v44, %v17499_v17 }
 0x833   :  { %v9774_v24 = vmax.f32 %v9678_v9, %v9726_v63  ;;  %v9732_v8 = vmax.f32 %v9636_v45, 0.0  ;;  %v18145_v9 = vld [vmem:[#allocation2_spill] sm:$0xff]  ;;  %v18146_v45 = vld [vmem:[#allocation3_spill] sm:$0xff] }
 0x834   :  { %v9775_v29 = vmax.f32 %v9679_v51, %v9727_v11  ;;  %v9733_v48 = vmax.f32 %v9637_v32, 0.0  ;;  %v9162_v40 = vpop.f32.mrb[52].mxu0  ;;  %v18147_v11 = vld [vmem:[#allocation4_spill] sm:$0xff] }
 0x835   :  { %v9780_v30 = vmax.f32 %v9684_v43, %v9732_v8  ;;  %v9164_v36 = vpop.f32.mrb[53].mxu0  ;;  %v18148_v43 = vld [vmem:[#allocation21_spill] sm:$0xff] }
 0x836   :  { %v17509_v26 = vmax.f32 %v9774_v24, %v9775_v29  ;;  %v9781_v12 = vmax.f32 %v9685_v55, %v9733_v48  ;;  %v9166_v3 = vpop.f32.mrb[54].mxu0  ;;  %v18149_v24 = vld [vmem:[#allocation5_spill] sm:$0xff]  ;;  %v18150_v29 = vld [vmem:[#allocation6_spill] sm:$0xff] }
 0x837   :  { %v9168_v60 = vpop.f32.mrb[55].mxu0 }
 0x838   :  { %18144 = vst [vmem:[#allocation24_spill] sm:$0xff] %v17509_v26  ;;  %v17511_v23 = vmax.f32 %v9780_v30, %v9781_v12  ;;  %v18151_v12 = vld [vmem:[#allocation22_spill] sm:$0xff] }
 0x83c   :  { %v9172_v27 = vpop.f32.mrb[120].mxu0 }
 0x83d   :  { %v11997_v33 = vadd.f32 %v9172_v27, %v17304_v7  ;;  %v9174_v46 = vpop.f32.mrb[121].mxu0  ;;  %v9554_v27 = vadd.f32 %v18151_v12, %v9166_v3 }
 0x83e   :  { %v11998_v41 = vadd.f32 %v9174_v46, %v17306_v53  ;;  %v9176_v6 = vpop.f32.mrb[122].mxu0 }
 0x83f   :  { %v11999_v18 = vadd.f32 %v9176_v6, %v17308_v15  ;;  %v9178_v50 = vpop.f32.mrb[123].mxu0  ;;  %v18152_v6 = vld [vmem:[#allocation7_spill] sm:$0xff]  ;;  %v9650_v3 = vmax.f32 %v9554_v27, 0.0 }
 0x840   :  { %v12000_v35 = vadd.f32 %v9178_v50, %v17310_v52 }
 0x844   :  { %v9182_v56 = vpop.f32.mrb[124].mxu0 }
 0x845   :  { %v17518_v47 = vadd.f32 %v9182_v56, %v17315_v59  ;;  %v9184_v49 = vpop.f32.mrb[125].mxu0 }
 0x846   :  { %v17521_v16 = vadd.f32 %v9184_v49, %v17317_v0  ;;  %v9186_v21 = vpop.f32.mrb[126].mxu0  ;;  %v9555_v49 = vadd.f32 %v18151_v12, %v9168_v60  ;;  %v9560_v60 = vadd.f32 %v11997_v33, %v17412_v42 }
 0x847   :  { %v17524_v7 = vadd.f32 %v9186_v21, %v17319_v39  ;;  %v9188_v5 = vpop.f32.mrb[127].mxu0 }
 0x848   :  { %v17527_v53 = vadd.f32 %v9188_v5, %v17321_v61  ;;  %v9548_v61 = vadd.f32 %v18148_v43, %v9162_v40  ;;  %v18153_v40 = vld [vmem:[#allocation8_spill] sm:$0xff] }
 0x84c   :  { %v9192_v15 = vpop.f32.mrb[128].mxu0 }
 0x84d   :  { %v17530_v44 = vadd.f32 %v9192_v15, %v17326_v13  ;;  %v9194_v52 = vpop.f32.mrb[129].mxu0  ;;  %v9549_v13 = vadd.f32 %v18148_v43, %v9164_v36  ;;  %v9644_v15 = vmax.f32 %v9548_v61, 0.0 }
 0x84e   :  { %v17533_v59 = vadd.f32 %v9194_v52, %v18145_v9  ;;  %v9196_v63 = vpop.f32.mrb[130].mxu0 }
 0x84f   :  { %v17536_v0 = vadd.f32 %v9196_v63, %v18146_v45  ;;  %v9198_v51 = vpop.f32.mrb[131].mxu0  ;;  %v9645_v9 = vmax.f32 %v9549_v13, 0.0 }
 0x850   :  { %v17539_v39 = vadd.f32 %v9198_v51, %v18147_v11 }
 0x854   :  { %v9202_v32 = vpop.f32.mrb[132].mxu0 }
 0x855   :  { %v12009_v8 = vadd.f32 %v9202_v32, %v18149_v24  ;;  %v9204_v55 = vpop.f32.mrb[133].mxu0  ;;  %v9651_v32 = vmax.f32 %v9555_v49, 0.0  ;;  %v9567_v49 = vadd.f32 %v12000_v35, %v17421_v19 }
 0x856   :  { %v12010_v48 = vadd.f32 %v9204_v55, %v18150_v29  ;;  %v9206_v30 = vpop.f32.mrb[134].mxu0 }
 0x857   :  { %v9596_v46 = vadd.f32 %v12009_v8, %v17399_v20  ;;  %v12011_v50 = vadd.f32 %v9206_v30, %v18152_v6  ;;  %v9208_v56 = vpop.f32.mrb[135].mxu0 }
 0x858   :  { %v9597_v21 = vadd.f32 %v12010_v48, %v17399_v20  ;;  %v12012_v5 = vadd.f32 %v9208_v56, %v18153_v40  ;;  %v18154_v48 = vld [vmem:[#allocation9_spill] sm:$0xff] }
 0x859   :  { %v9692_v52 = vmax.f32 %v9596_v46, 0.0  ;;  %v9602_v36 = vadd.f32 %v12011_v50, %v17401_v34  ;;  %v9561_v46 = vadd.f32 %v11998_v41, %v17412_v42  ;;  %v18156_v50 = vld [vmem:[#allocation10_spill] sm:$0xff]  ;;  %v18159_v41 = vld [vmem:[#allocation12_spill] sm:$0xff] }
 0x85a   :  { %v9693_v63 = vmax.f32 %v9597_v21, 0.0  ;;  %v9603_v45 = vadd.f32 %v12012_v5, %v17401_v34  ;;  %v9566_v21 = vadd.f32 %v11999_v18, %v17421_v19  ;;  %v18157_v5 = vld [vmem:[#allocation11_spill] sm:$0xff] }
 0x85b   :  { %v9740_v51 = vmax.f32 %v9644_v15, %v9692_v52  ;;  %v9698_v11 = vmax.f32 %v9602_v36, 0.0  ;;  %v9657_v35 = vmax.f32 %v9561_v46, 0.0 }
 0x85c   :  { %v9741_v24 = vmax.f32 %v9645_v9, %v9693_v63  ;;  %v9699_v8 = vmax.f32 %v9603_v45, 0.0  ;;  %v9212_v55 = vpop.f32.mrb[136].mxu0  ;;  %v9656_v45 = vmax.f32 %v9560_v60, 0.0  ;;  %v9572_v60 = vadd.f32 %v17518_v47, %v17435_v25 }
 0x85d   :  { %v9746_v29 = vmax.f32 %v9650_v3, %v9698_v11  ;;  %v12013_v30 = vadd.f32 %v9212_v55, %v18154_v48  ;;  %v9214_v61 = vpop.f32.mrb[137].mxu0 }
 0x85e   :  { %v17556_v6 = vmax.f32 %v9740_v51, %v9741_v24  ;;  %v9747_v13 = vmax.f32 %v9651_v32, %v9699_v8  ;;  %v12014_v56 = vadd.f32 %v9214_v61, %v18156_v50  ;;  %v9216_v27 = vpop.f32.mrb[138].mxu0  ;;  %v9662_v24 = vmax.f32 %v9566_v21, 0.0  ;;  %v18160_v50 = vld [vmem:[#allocation13_spill] sm:$0xff]  ;;  %v18162_v21 = vld [vmem:[#allocation14_spill] sm:$0xff] }
 0x85f   :  { %v9608_v40 = vadd.f32 %v12013_v30, %v17417_v28  ;;  %v12015_v33 = vadd.f32 %v9216_v27, %v18157_v5  ;;  %v9218_v15 = vpop.f32.mrb[139].mxu0  ;;  %v9573_v27 = vadd.f32 %v17521_v16, %v17435_v25 }
 0x860   :  { %18155 = vst [vmem:[#allocation2_spill] sm:$0xff] %v17556_v6  ;;  %v17563_v52 = vmax.f32 %v9746_v29, %v9747_v13  ;;  %v9609_v36 = vadd.f32 %v12014_v56, %v17417_v28  ;;  %v12016_v9 = vadd.f32 %v9218_v15, %v18159_v41  ;;  %v17569_v63 = vadd.f32 %v17556_v6, %v17442_v1  ;;  %v18163_v41 = vld [vmem:[#allocation15_spill] sm:$0xff] }
 0x861   :  { %v9704_v3 = vmax.f32 %v9608_v40, 0.0  ;;  %v9614_v18 = vadd.f32 %v12015_v33, %v17428_v4  ;;  %v9663_v29 = vmax.f32 %v9567_v49, 0.0  ;;  %v9578_v49 = vadd.f32 %v17524_v7, %v17456_v58 }
 0x862   :  { %18158 = vst [vmem:[#allocation3_spill] sm:$0xff] %v17563_v52  ;;  %v9705_v51 = vmax.f32 %v9609_v36, 0.0  ;;  %v9615_v11 = vadd.f32 %v12016_v9, %v17428_v4  ;;  %v17575_v32 = vadd.f32 %v17563_v52, %v17451_v31  ;;  %v9579_v36 = vadd.f32 %v17527_v53, %v17456_v58 }
 0x863   :  { %v9752_v8 = vmax.f32 %v9656_v45, %v9704_v3  ;;  %v9710_v55 = vmax.f32 %v9614_v18, 0.0  ;;  %v18165_v18 = vld [vmem:[#allocation16_spill] sm:$0xff]  ;;  %v9669_v53 = vmax.f32 %v9573_v27, 0.0 }
 0x864   :  { %v9753_v48 = vmax.f32 %v9657_v35, %v9705_v51  ;;  %v9711_v30 = vmax.f32 %v9615_v11, 0.0  ;;  %v9222_v61 = vpop.f32.mrb[140].mxu0  ;;  %v9668_v11 = vmax.f32 %v9572_v60, 0.0  ;;  %v9584_v60 = vadd.f32 %v17530_v44, %v17473_v37 }
 0x865   :  { %v9758_v13 = vmax.f32 %v9662_v24, %v9710_v55  ;;  %v12017_v46 = vadd.f32 %v9222_v61, %v18160_v50  ;;  %v9224_v56 = vpop.f32.mrb[141].mxu0 }
 0x866   :  { %v17582_v40 = vmax.f32 %v9752_v8, %v9753_v48  ;;  %v9759_v5 = vmax.f32 %v9663_v29, %v9711_v30  ;;  %v12018_v33 = vadd.f32 %v9224_v56, %v18162_v21  ;;  %v9226_v15 = vpop.f32.mrb[142].mxu0  ;;  %v9674_v48 = vmax.f32 %v9578_v49, 0.0  ;;  %v18166_v21 = vld [vmem:[#allocation17_spill] sm:$0xff]  ;;  %v18168_v49 = vld [vmem:[#allocation18_spill] sm:$0xff] }
 0x867   :  { %v9620_v47 = vadd.f32 %v12017_v46, %v17439_v38  ;;  %v12019_v9 = vadd.f32 %v9226_v15, %v18163_v41  ;;  %v9228_v45 = vpop.f32.mrb[143].mxu0  ;;  %v9585_v15 = vadd.f32 %v17533_v59, %v17473_v37 }
 0x868   :  { %18161 = vst [vmem:[#allocation4_spill] sm:$0xff] %v17582_v40  ;;  %v17591_v3 = vmax.f32 %v9758_v13, %v9759_v5  ;;  %v9621_v16 = vadd.f32 %v12018_v33, %v17439_v38  ;;  %v12020_v35 = vadd.f32 %v9228_v45, %v18165_v18  ;;  %v17597_v51 = vadd.f32 %v17582_v40, %v17466_v22  ;;  %v18169_v18 = vld [vmem:[#allocation19_spill] sm:$0xff] }
 0x869   :  { %v9716_v7 = vmax.f32 %v9620_v47, 0.0  ;;  %v9626_v24 = vadd.f32 %v12019_v9, %v17459_v14  ;;  %v9675_v13 = vmax.f32 %v9579_v36, 0.0  ;;  %v9590_v36 = vadd.f32 %v17536_v0, %v17488_v10 }
 0x86a   :  { %18164 = vst [vmem:[#allocation21_spill] sm:$0xff] %v17591_v3  ;;  %v9717_v8 = vmax.f32 %v9621_v16, 0.0  ;;  %v9627_v55 = vadd.f32 %v12020_v35, %v17459_v14  ;;  %v17603_v29 = vadd.f32 %v17591_v3, %v17477_v62  ;;  %v9591_v16 = vadd.f32 %v17539_v39, %v17488_v10 }
 0x86b   :  { %v9764_v30 = vmax.f32 %v9668_v11, %v9716_v7  ;;  %v9722_v61 = vmax.f32 %v9626_v24, 0.0  ;;  %v18171_v24 = vld [vmem:[#allocation20_spill] sm:$0xff]  ;;  %v9681_v39 = vmax.f32 %v9585_v15, 0.0 }
 0x86c   :  { %v9765_v50 = vmax.f32 %v9669_v53, %v9717_v8  ;;  %v9723_v46 = vmax.f32 %v9627_v55, 0.0  ;;  %v9232_v56 = vpop.f32.mrb[144].mxu0  ;;  %v9680_v55 = vmax.f32 %v9584_v60, 0.0 }
 0x86d   :  { %v9770_v5 = vmax.f32 %v9674_v48, %v9722_v61  ;;  %v12021_v27 = vadd.f32 %v9232_v56, %v18166_v21  ;;  %v9234_v33 = vpop.f32.mrb[145].mxu0 }
 0x86e   :  { %v17610_v47 = vmax.f32 %v9764_v30, %v9765_v50  ;;  %v9771_v41 = vmax.f32 %v9675_v13, %v9723_v46  ;;  %v12022_v9 = vadd.f32 %v9234_v33, %v18168_v49  ;;  %v9236_v45 = vpop.f32.mrb[146].mxu0  ;;  %v9686_v50 = vmax.f32 %v9590_v36, 0.0 }
 0x86f   :  { %v9632_v44 = vadd.f32 %v12021_v27, %v17482_v54  ;;  %v12023_v35 = vadd.f32 %v9236_v45, %v18169_v18  ;;  %v9238_v11 = vpop.f32.mrb[147].mxu0 }
 0x870   :  { %18167 = vst [vmem:[#allocation5_spill] sm:$0xff] %v17610_v47  ;;  %v17619_v7 = vmax.f32 %v9770_v5, %v9771_v41  ;;  %v9633_v59 = vadd.f32 %v12022_v9, %v17482_v54  ;;  %v12024_v53 = vadd.f32 %v9238_v11, %v18171_v24  ;;  %v17625_v8 = vadd.f32 %v17610_v47, %v17492_v2  ;;  %v17667_v47 = vpop.permute.xlu0 %9950 }
 0x871   :  { %v9728_v0 = vmax.f32 %v9632_v44, 0.0  ;;  %v9638_v48 = vadd.f32 %v12023_v35, %v17499_v17  ;;  %v9687_v5 = vmax.f32 %v9591_v16, 0.0  ;;  %18174 = vst [vmem:[#allocation8_spill] sm:$0xff] %v17667_v47 }
 0x872   :  { %18170 = vst [vmem:[#allocation6_spill] sm:$0xff] %v17619_v7  ;;  %v9729_v30 = vmax.f32 %v9633_v59, 0.0  ;;  %v9639_v61 = vadd.f32 %v12024_v53, %v17499_v17  ;;  %v17631_v13 = vadd.f32 %v17619_v7, %v17503_v57 }
 0x873   :  { %v9776_v46 = vmax.f32 %v9680_v55, %v9728_v0  ;;  %v9734_v56 = vmax.f32 %v9638_v48, 0.0 }
 0x874   :  { %v9777_v21 = vmax.f32 %v9681_v39, %v9729_v30  ;;  %v9735_v27 = vmax.f32 %v9639_v61, 0.0  ;;  %v9275_v33 = vpop.f32.mrb[56].mxu0 }
 0x875   :  { %v9782_v41 = vmax.f32 %v9686_v50, %v9734_v56  ;;  %v9277_v60 = vpop.f32.mrb[57].mxu0  ;;  %v17659_v50 = vpop.permute.xlu1 %9955 }
 0x876   :  { %v17633_v49 = vmax.f32 %v9776_v46, %v9777_v21  ;;  %v9783_v9 = vmax.f32 %v9687_v5, %v9735_v27  ;;  %v9279_v15 = vpop.f32.mrb[58].mxu0  ;;  %18173 = vst [vmem:[#allocation7_spill] sm:$0xff] %v17659_v50  ;;  %v9550_v46 = vadd.f32 %v18148_v43, %v9275_v33  ;;  %v9551_v56 = vadd.f32 %v18148_v43, %v9277_v60 }
 0x877   :  { %v9281_v45 = vpop.f32.mrb[59].mxu0  ;;  %v9556_v21 = vadd.f32 %v18151_v12, %v9279_v15 }
 0x878   :  { %18172 = vst [vmem:[#allocation22_spill] sm:$0xff] %v17633_v49  ;;  %v17635_v44 = vmax.f32 %v9782_v41, %v9783_v9  ;;  %v17639_v18 = vadd.f32 %v17633_v49, %v17509_v26  ;;  %v9557_v9 = vadd.f32 %v18151_v12, %v9281_v45  ;;  %v9646_v3 = vmax.f32 %v9550_v46, 0.0 }
 0x879   :  { %v17670_v52 = vpop.permute.xlu1 %9965  ;;  %v9647_v43 = vmax.f32 %v9551_v56, 0.0 }
 0x87a   :  { %v17643_v36 = vadd.f32 %v17635_v44, %v17511_v23  ;;  %18175 = vst [vmem:[#allocation9_spill] sm:$0xff] %v17670_v52  ;;  %v9653_v12 = vmax.f32 %v9557_v9, 0.0  ;;  %v17677_v52 = vpop.permute.xlu0 %9960 }
 0x87c   :  { %v9285_v16 = vpop.f32.mrb[60].mxu0 }
 0x87d   :  { %v9287_v35 = vpop.f32.mrb[61].mxu0 }
 0x87e   :  { %v9289_v11 = vpop.f32.mrb[62].mxu0  ;;  %v9563_v46 = vadd.f32 %v17412_v42, %v9287_v35 }
 0x87f   :  { %v9291_v59 = vpop.f32.mrb[63].mxu0 }
 0x880   :  { %v9659_v9 = vmax.f32 %v9563_v46, 0.0 }
 0x884   :  { %v9295_v24 = vpop.f32.mrb[64].mxu0 }
 0x885   :  { %v17645_v53 = vpop.f32.mrb[65].mxu0 }
 0x886   :  { %v17647_v55 = vpop.f32.mrb[66].mxu0 }
 0x887   :  { %v17649_v0 = vpop.f32.mrb[67].mxu0 }
 0x88c   :  { %v17651_v48 = vpop.f32.mrb[68].mxu0 }
 0x88d   :  { %v17653_v39 = vpop.f32.mrb[69].mxu0 }
 0x88e   :  { %v17655_v30 = vpop.f32.mrb[70].mxu0 }
 0x88f   :  { %v17657_v61 = vpop.f32.mrb[71].mxu0 }
 0x894   :  { %v9315_v5 = vpop.f32.mrb[72].mxu0 }
 0x895   :  { %v9598_v27 = vadd.f32 %v17399_v20, %v9315_v5  ;;  %v9317_v41 = vpop.f32.mrb[73].mxu0  ;;  %v9652_v5 = vmax.f32 %v9556_v21, 0.0 }
 0x896   :  { %v9599_v49 = vadd.f32 %v17399_v20, %v9317_v41  ;;  %v9319_v7 = vpop.f32.mrb[74].mxu0  ;;  %v9562_v41 = vadd.f32 %v17412_v42, %v9285_v16 }
 0x897   :  { %v9694_v40 = vmax.f32 %v9598_v27, 0.0  ;;  %v9604_v50 = vadd.f32 %v17401_v34, %v9319_v7  ;;  %v9321_v33 = vpop.f32.mrb[75].mxu0 }
 0x898   :  { %v9695_v60 = vmax.f32 %v9599_v49, 0.0  ;;  %v9605_v15 = vadd.f32 %v17401_v34, %v9321_v33  ;;  %v9568_v49 = vadd.f32 %v17421_v19, %v9289_v11  ;;  %v9658_v35 = vmax.f32 %v9562_v41, 0.0 }
 0x899   :  { %v9742_v6 = vmax.f32 %v9646_v3, %v9694_v40  ;;  %v9700_v26 = vmax.f32 %v9604_v50, 0.0  ;;  %v17681_v3 = vpop.permute.xlu1 %10019  ;;  %v9569_v50 = vadd.f32 %v17421_v19, %v9291_v59 }
 0x89a   :  { %v9743_v45 = vmax.f32 %v9647_v43, %v9695_v60  ;;  %v9701_v20 = vmax.f32 %v9605_v15, 0.0  ;;  %18176 = vst [vmem:[#allocation10_spill] sm:$0xff] %v17681_v3  ;;  %v9664_v59 = vmax.f32 %v9568_v49, 0.0 }
 0x89b   :  { %v9748_v47 = vmax.f32 %v9652_v5, %v9700_v26  ;;  %v9665_v60 = vmax.f32 %v9569_v50, 0.0 }
 0x89c   :  { %v17675_v27 = vmax.f32 %v9742_v6, %v9743_v45  ;;  %v9749_v7 = vmax.f32 %v9653_v12, %v9701_v20  ;;  %v9325_v57 = vpop.f32.mrb[76].mxu0  ;;  %v17694_v12 = vpop.permute.xlu0 %10014  ;;  %v9575_v45 = vadd.f32 %v17435_v25, %v17645_v53 }
 0x89d   :  { %v9610_v34 = vadd.f32 %v17417_v28, %v9325_v57  ;;  %v9327_v40 = vpop.f32.mrb[77].mxu0  ;;  %18177 = vst [vmem:[#allocation11_spill] sm:$0xff] %v17694_v12  ;;  %v17698_v41 = vpop.permute.xlu1 %9975 }
 0x89e   :  { %v9818_v26 = vadd.f32 %v17569_v63, %v17675_v27  ;;  %v17686_v16 = vmax.f32 %v9748_v47, %v9749_v7  ;;  %v9611_v42 = vadd.f32 %v17417_v28, %v9327_v40  ;;  %v9329_v6 = vpop.f32.mrb[78].mxu0  ;;  %v9574_v63 = vadd.f32 %v17435_v25, %v9295_v24 }
 0x89f   :  { %v9706_v56 = vmax.f32 %v9610_v34, 0.0  ;;  %v9616_v21 = vadd.f32 %v17428_v4, %v9329_v6  ;;  %v9331_v11 = vpop.f32.mrb[79].mxu0  ;;  %v9580_v24 = vadd.f32 %v17456_v58, %v17647_v55  ;;  %v9581_v40 = vadd.f32 %v17456_v58, %v17649_v0 }
 0x8a0   :  { %v9819_v57 = vadd.f32 %v17575_v32, %v17686_v16  ;;  %v9707_v33 = vmax.f32 %v9611_v42, 0.0  ;;  %v9617_v19 = vadd.f32 %v17428_v4, %v9331_v11  ;;  %v9670_v7 = vmax.f32 %v9574_v63, 0.0  ;;  %v17718_v11 = vpop.permute.xlu0 %9970 }
 0x8a1   :  { %v9754_v47 = vmax.f32 %v9658_v35, %v9706_v56  ;;  %v9712_v43 = vmax.f32 %v9616_v21, 0.0  ;;  %v9671_v42 = vmax.f32 %v9575_v45, 0.0  ;;  %v9586_v6 = vadd.f32 %v17473_v37, %v17651_v48  ;;  %v17722_v48 = vpop.permute.xlu1 %10029 }
 0x8a2   :  { %v9826_v28 = vadd.f32 %v9819_v57, %v9818_v26  ;;  %v9755_v15 = vmax.f32 %v9659_v9, %v9707_v33  ;;  %v9713_v5 = vmax.f32 %v9617_v19, 0.0  ;;  %v9676_v9 = vmax.f32 %v9580_v24, 0.0  ;;  %18178 = vst [vmem:[#allocation12_spill] sm:$0xff] %v17722_v48 }
 0x8a3   :  { %v9760_v20 = vmax.f32 %v9664_v59, %v9712_v43  ;;  %v9677_v19 = vmax.f32 %v9581_v40, 0.0  ;;  %v9682_v43 = vmax.f32 %v9586_v6, 0.0 }
 0x8a4   :  { %v17700_v32 = vmax.f32 %v9754_v47, %v9755_v15  ;;  %v9761_v4 = vmax.f32 %v9665_v60, %v9713_v5  ;;  %v9335_v46 = vpop.f32.mrb[80].mxu0  ;;  %v13455_v15 = vld [vmem:[%s18091_s9] sm:$0xff]  }
 0x8a5   :  { %v9622_v49 = vadd.f32 %v17439_v38, %v9335_v46  ;;  %v9337_v34 = vpop.f32.mrb[81].mxu0  ;;  %11909 = vmatprep.mubr.msk.bf16.mxu1 %vm10092_vm5, %v13455_v15 }
 0x8a6   :  { %v9820_v25 = vadd.f32 %v17597_v51, %v17700_v32  ;;  %v17709_v53 = vmax.f32 %v9760_v20, %v9761_v4  ;;  %v9623_v50 = vadd.f32 %v17439_v38, %v9337_v34  ;;  %v9339_v26 = vpop.f32.mrb[82].mxu0  ;;  %v9587_v38 = vadd.f32 %v17473_v37, %v17653_v39 }
 0x8a7   :  { %v9718_v35 = vmax.f32 %v9622_v49, 0.0  ;;  %v9628_v55 = vadd.f32 %v17459_v14, %v9339_v26  ;;  %v9341_v56 = vpop.f32.mrb[83].mxu0  ;;  %v9592_v39 = vadd.f32 %v17488_v10, %v17655_v30  ;;  %v9593_v20 = vadd.f32 %v17488_v10, %v17657_v61  ;;  %v17740_v49 = vpop.permute.xlu0 %10024 }
 0x8a8   :  { %v9827_v21 = vadd.f32 %v9826_v28, %v9820_v25  ;;  %v9821_v58 = vadd.f32 %v17603_v29, %v17709_v53  ;;  %v9719_v0 = vmax.f32 %v9623_v50, 0.0  ;;  %v9629_v51 = vadd.f32 %v17459_v14, %v9341_v56  ;;  %18179 = vst [vmem:[#allocation13_spill] sm:$0xff] %v17740_v49  ;;  %v17743_v25 = vpop.permute.xlu1 %9985 }
 0x8a9   :  { %v9766_v57 = vmax.f32 %v9670_v7, %v9718_v35  ;;  %v9724_v33 = vmax.f32 %v9628_v55, 0.0  ;;  %v9683_v37 = vmax.f32 %v9587_v38, 0.0  ;;  %v9688_v26 = vmax.f32 %v9592_v39, 0.0 }
 0x8aa   :  { %v9828_v59 = vadd.f32 %v9827_v21, %v9821_v58  ;;  %v9767_v63 = vmax.f32 %v9671_v42, %v9719_v0  ;;  %v9725_v47 = vmax.f32 %v9629_v51, 0.0  ;;  %v9689_v6 = vmax.f32 %v9593_v20, 0.0 }
 0x8ab   :  { %v9772_v60 = vmax.f32 %v9676_v9, %v9724_v33  ;;  %v17748_v51 = vpop.permute.xlu0 %9980 }
 0x8ac   :  { %v17724_v29 = vmax.f32 %v9766_v57, %v9767_v63  ;;  %v9773_v14 = vmax.f32 %v9677_v19, %v9725_v47  ;;  %v9345_v28 = vpop.f32.mrb[84].mxu0  ;;  %v17750_v9 = vpop.permute.xlu1 %10039 }
 0x8ad   :  { %v9634_v5 = vadd.f32 %v17482_v54, %v9345_v28  ;;  %v9347_v45 = vpop.f32.mrb[85].mxu0  ;;  %18180 = vst [vmem:[#allocation14_spill] sm:$0xff] %v17750_v9 }
 0x8ae   :  { %v9822_v4 = vadd.f32 %v17625_v8, %v17724_v29  ;;  %v17736_v46 = vmax.f32 %v9772_v60, %v9773_v14  ;;  %v9635_v7 = vadd.f32 %v17482_v54, %v9347_v45  ;;  %v9349_v24 = vpop.f32.mrb[86].mxu0 }
 0x8af   :  { %v9730_v34 = vmax.f32 %v9634_v5, 0.0  ;;  %v9640_v30 = vadd.f32 %v17499_v17, %v9349_v24  ;;  %v9351_v40 = vpop.f32.mrb[87].mxu0  ;;  %v17754_v19 = vpop.permute.xlu0 %10034 }
 0x8b0   :  { %v9829_v50 = vadd.f32 %v9828_v59, %v9822_v4  ;;  %v9823_v10 = vadd.f32 %v17631_v13, %v17736_v46  ;;  %v9731_v8 = vmax.f32 %v9635_v7, 0.0  ;;  %v9641_v61 = vadd.f32 %v17499_v17, %v9351_v40  ;;  %18181 = vst [vmem:[#allocation15_spill] sm:$0xff] %v17754_v19  ;;  %v17756_v59 = vpop.permute.xlu1 %10049 }
 0x8b1   :  { %v9778_v54 = vmax.f32 %v9682_v43, %v9730_v34  ;;  %v9736_v42 = vmax.f32 %v9640_v30, 0.0  ;;  %18182 = vst [vmem:[#allocation16_spill] sm:$0xff] %v17756_v59 }
 0x8b2   :  { %v9830_v35 = vadd.f32 %v9829_v50, %v9823_v10  ;;  %v9779_v55 = vmax.f32 %v9683_v37, %v9731_v8  ;;  %v9737_v56 = vmax.f32 %v9641_v61, 0.0  ;;  %v18187_v8 = vld [vmem:[#allocation3_spill] sm:$0xff] }
 0x8b3   :  { %v9784_v21 = vmax.f32 %v9688_v26, %v9736_v42  ;;  %v17758_v60 = vpop.permute.xlu0 %10044  ;;  %v18189_v42 = vld [vmem:[#allocation4_spill] sm:$0xff] }
 0x8b4   :  { %v9808_v58 = vmax.f32 %v9778_v54, %v9779_v55  ;;  %v9785_v0 = vmax.f32 %v9689_v6, %v9737_v56  ;;  %18183 = vst [vmem:[#allocation17_spill] sm:$0xff] %v17758_v60  ;;  %v17760_v14 = vpop.permute.xlu1 %10234  ;;  %v18191_v56 = vld [vmem:[#allocation5_spill] sm:$0xff] }
 0x8b6   :  { %v9824_v38 = vadd.f32 %v17639_v18, %v9808_v58  ;;  %v9809_v13 = vmax.f32 %v9784_v21, %v9785_v0  ;;  %v18192_v0 = vld [vmem:[#allocation6_spill] sm:$0xff] }
 0x8b7   :  { %v17762_v18 = vpop.permute.xlu0 %10229 }
 0x8b8   :  { %v9831_v57 = vadd.f32 %v9830_v35, %v9824_v38  ;;  %v9825_v17 = vadd.f32 %v17643_v36, %v9809_v13  ;;  %v17764_v39 = vpop.permute.xlu1 %10244  ;;  %v18190_v35 = vld [vmem:[#allocation21_spill] sm:$0xff] }
 0x8ba   :  { %v9832_v33 = vadd.f32 %v9831_v57, %v9825_v17 }
 0x8bb   :  { %v17805_v30 = vpop.permute.xlu0 %10239 }
 0x8bc   :  { %v9833_v63 = vrot.slane %v9832_v33, 4  ;;  %v17823_v26 = vpop.permute.xlu1 %10299 }
 0x8bd   :  { %18188 = vst [vmem:[#allocation18_spill] sm:$0xff] %v17823_v26 }
 0x8be   :  { %v9834_v47 = vadd.f32 %v9833_v63, %v9832_v33 }
 0x8c0   :  { %v9835_v43 = vrot.slane %v9834_v47, 2 }
 0x8c2   :  { %v9836_v28 = vadd.f32 %v9835_v43, %v9834_v47 }
 0x8c4   :  { %v9837_v15 = vrot.slane %v9836_v28, 1 }
 0x8c6   :  { %v9838_v37 = vadd.f32 %v9837_v15, %v9836_v28 }
 0x8c8   :  { %v17766_v36 = vmul.f32 0.0055555557, %v9838_v37 }
 0x8ca   :  { %v17770_v5 = vsub.f32 %v17511_v23, %v17766_v36  ;;  %v17774_v45 = vsub.f32 %v17635_v44, %v17766_v36  ;;  %v17777_v20 = vsub.f32 %v9809_v13, %v17766_v36  ;;  %v17781_v4 = vsub.f32 %v17442_v1, %v17766_v36  ;;  %v18193_v13 = vld [vmem:[#allocation22_spill] sm:$0xff] }
 0x8cb   :  { %v17785_v7 = vsub.f32 %v17451_v31, %v17766_v36  ;;  %v17789_v24 = vsub.f32 %v17466_v22, %v17766_v36  ;;  %v17793_v23 = vsub.f32 %v17477_v62, %v17766_v36  ;;  %v17797_v44 = vsub.f32 %v17492_v2, %v17766_v36  ;;  %v18184_v22 = vld [vmem:[#allocation23_spill] sm:$0xff]  ;;  %v18185_v62 = vld [vmem:[#allocation24_spill] sm:$0xff]  ;;  %v18186_v2 = vld [vmem:[#allocation2_spill] sm:$0xff] }
 0x8cc   :  { %v9871_v1 = vmul.f32 %v17770_v5, %v17770_v5  ;;  %v9879_v34 = vmul.f32 %v17774_v45, %v17774_v45  ;;  %v9895_v31 = vmul.f32 %v17777_v20, %v17777_v20  ;;  %v17809_v40 = vsub.f32 %v18184_v22, %v17766_v36 }
 0x8cd   :  { %v17813_v50 = vsub.f32 %v18185_v62, %v17766_v36  ;;  %v17817_v10 = vsub.f32 %v18186_v2, %v17766_v36  ;;  %v17821_v61 = vsub.f32 %v18187_v8, %v17766_v36  ;;  %v17827_v6 = vsub.f32 %v18189_v42, %v17766_v36  ;;  %v17894_v62 = vpop.permute.xlu1 %10254 }
 0x8ce   :  { %v9887_v54 = vadd.f32 %v9879_v34, %v9871_v1  ;;  %v17831_v55 = vsub.f32 %v18190_v35, %v17766_v36  ;;  %v17835_v21 = vsub.f32 %v18191_v56, %v17766_v36  ;;  %v17839_v38 = vsub.f32 %v18192_v0, %v17766_v36 }
 0x8cf   :  { %v17843_v57 = vsub.f32 %v18193_v13, %v17766_v36  ;;  %v17847_v17 = vsub.f32 %v17675_v27, %v17766_v36  ;;  %v17851_v33 = vsub.f32 %v17686_v16, %v17766_v36  ;;  %v17855_v47 = vsub.f32 %v17700_v32, %v17766_v36 }
 0x8d0   :  { %v9903_v63 = vadd.f32 %v9895_v31, %v9887_v54  ;;  %v17859_v43 = vsub.f32 %v17709_v53, %v17766_v36  ;;  %v17863_v28 = vsub.f32 %v17724_v29, %v17766_v36  ;;  %v17867_v27 = vsub.f32 %v17736_v46, %v17766_v36 }
 0x8d1   :  { %v17870_v16 = vsub.f32 %v9808_v58, %v17766_v36  ;;  %v9864_v15 = vmul.f32 %v17781_v4, %v17781_v4  ;;  %v9865_v32 = vmul.f32 %v17785_v7, %v17785_v7  ;;  %v9866_v53 = vmul.f32 %v17789_v24, %v17789_v24  ;;  %v17884_v58 = vpop.permute.xlu0 %10294 }
 0x8d2   :  { %18194 = vst [vmem:[#allocation19_spill] sm:$0xff] %v17863_v28  ;;  %18195 = vst [vmem:[#allocation20_spill] sm:$0xff] %v17867_v27  ;;  %v9867_v29 = vmul.f32 %v17793_v23, %v17793_v23  ;;  %v9868_v37 = vmul.f32 %v17797_v44, %v17797_v44  ;;  %v9869_v46 = vmul.f32 %v17809_v40, %v17809_v40 }
 0x8d3   :  { %18196 = vst [vmem:[#allocation23_spill] sm:$0xff] %v17870_v16  ;;  %18197 = vst [vmem:[#allocation24_spill] sm:$0xff] %v17884_v58  ;;  %v9870_v1 = vmul.f32 %v17813_v50, %v17813_v50  ;;  %v9872_v34 = vmul.f32 %v17817_v10, %v17817_v10  ;;  %v9873_v31 = vmul.f32 %v17821_v61, %v17821_v61 }
 0x8d4   :  { %v9874_v22 = vmul.f32 %v17827_v6, %v17827_v6  ;;  %v9875_v2 = vmul.f32 %v17831_v55, %v17831_v55  ;;  %v9876_v8 = vmul.f32 %v17835_v21, %v17835_v21  ;;  %v9877_v54 = vmul.f32 %v17839_v38, %v17839_v38 }
 0x8d5   :  { %v9878_v42 = vmul.f32 %v17843_v57, %v17843_v57  ;;  %v9880_v35 = vadd.f32 %v9872_v34, %v9864_v15  ;;  %v9881_v56 = vadd.f32 %v9873_v31, %v9865_v32  ;;  %v9888_v13 = vmul.f32 %v17847_v17, %v17847_v17 }
 0x8d6   :  { %v9882_v0 = vadd.f32 %v9874_v22, %v9866_v53  ;;  %v9883_v26 = vadd.f32 %v9875_v2, %v9867_v29  ;;  %v9884_v58 = vadd.f32 %v9876_v8, %v9868_v37  ;;  %v9885_v59 = vadd.f32 %v9877_v54, %v9869_v46  ;;  %v17918_v37 = vpop.permute.xlu0 %10249  ;;  %v17920_v22 = vpop.permute.xlu1 %10309 }
 0x8d7   :  { %v9886_v60 = vadd.f32 %v9878_v42, %v9870_v1  ;;  %v9889_v9 = vmul.f32 %v17851_v33, %v17851_v33  ;;  %v9890_v19 = vmul.f32 %v17855_v47, %v17855_v47  ;;  %v9891_v48 = vmul.f32 %v17859_v43, %v17859_v43 }
 0x8d8   :  { %v9892_v15 = vmul.f32 %v17863_v28, %v17863_v28  ;;  %v9893_v32 = vmul.f32 %v17867_v27, %v17867_v27  ;;  %v9894_v53 = vmul.f32 %v17870_v16, %v17870_v16  ;;  %v9896_v29 = vadd.f32 %v9888_v13, %v9880_v35 }
 0x8d9   :  { %v9897_v46 = vadd.f32 %v9889_v9, %v9881_v56  ;;  %v9898_v1 = vadd.f32 %v9890_v19, %v9882_v0  ;;  %v9899_v34 = vadd.f32 %v9891_v48, %v9883_v26  ;;  %v9917_v56 = vmul.f32 12.0, %v17766_v36 }
 0x8da   :  { %v9900_v31 = vadd.f32 %v9892_v15, %v9884_v58  ;;  %v9901_v2 = vadd.f32 %v9893_v32, %v9885_v59  ;;  %v9902_v8 = vadd.f32 %v9894_v53, %v9886_v60  ;;  %v17922_v49 = vpop.permute.xlu0 %10304  ;;  %v10265_v12 = vpop.permute.xlu1 %10264 }
 0x8db   :  { %v9904_v54 = vadd.f32 %v9897_v46, %v9896_v29 }
 0x8dd   :  { %v9905_v42 = vadd.f32 %v9904_v54, %v9898_v1 }
 0x8de   :  { %v10260_v16 = vpop.permute.xlu0 %10259  ;;  %v17924_v13 = vpop.permute.xlu1 %10319 }
 0x8df   :  { %v9906_v3 = vadd.f32 %v9905_v42, %v9899_v34 }
 0x8e1   :  { %v9907_v27 = vadd.f32 %v9906_v3, %v9900_v31 }
 0x8e2   :  { %v17926_v48 = vpop.permute.xlu0 %10314  ;;  %v17928_v58 = vpop.permute.xlu1 %10329 }
 0x8e3   :  { %v9908_v28 = vadd.f32 %v9907_v27, %v9901_v2 }
 0x8e5   :  { %v9909_v35 = vadd.f32 %v9908_v28, %v9902_v8  ;;  %v9918_v28 = vmul.f32 %v9917_v56, %v17766_v36 }
 0x8e6   :  { %v17931_v0 = vpop.permute.xlu0 %10324  ;;  %v10475_v3 = vpop.permute.xlu1 %10474 }
 0x8e7   :  { %v9910_v9 = vadd.f32 %v9909_v35, %v9903_v63 }
 0x8e9   :  { %v9911_v19 = vrot.slane %v9910_v9, 4 }
 0x8ea   :  { %v10470_v53 = vpop.permute.xlu0 %10469  ;;  %v10485_v29 = vpop.permute.xlu1 %10484 }
 0x8eb   :  { %v9912_v26 = vadd.f32 %v9911_v19, %v9910_v9 }
 0x8ed   :  { %v9913_v59 = vrot.slane %v9912_v26, 2 }
 0x8ee   :  { %v10480_v1 = vpop.permute.xlu0 %10479  ;;  %v17934_v34 = vpop.permute.xlu1 %10539 }
 0x8ef   :  { %v9914_v60 = vadd.f32 %v9913_v59, %v9912_v26 }
 0x8f1   :  { %v9915_v15 = vrot.slane %v9914_v60, 1 }
 0x8f2   :  { %v17936_v31 = vpop.permute.xlu0 %10534  ;;  %v10495_v2 = vpop.permute.xlu1 %10494 }
 0x8f3   :  { %v9916_v27 = vadd.f32 %v9915_v15, %v9914_v60  ;;  %v18198_v15 = vld [vmem:[#allocation8_spill] sm:$0xff] }
 0x8f5   :  { %v9919_v32 = vsub.f32 %v9916_v27, %v9918_v28  ;;  %v9988_v27 = vmul.f32 %v18198_v15, %v17781_v4  ;;  %v18199_v28 = vld [vmem:[#allocation7_spill] sm:$0xff]  ;;  %v9995_v4 = vmul.f32 %v17743_v25, %v17770_v5  ;;  %v10273_v25 = vmul.f32 %v10260_v16, %v17843_v57  ;;  %v18211_v15 = vld [vmem:[#allocation16_spill] sm:$0xff] }
 0x8f6   :  { %v10490_v9 = vpop.permute.xlu0 %10489  ;;  %v17938_v19 = vpop.permute.xlu1 %10549 }
 0x8f7   :  { %v9920_v63 = vmul.f32 0.005586592, %v9919_v32  ;;  %v9989_v32 = vmul.f32 %v18199_v28, %v17785_v7  ;;  %v10267_v7 = vmul.f32 %v17762_v18, %v17817_v10  ;;  %v10274_v18 = vmul.f32 %v10265_v12, %v17774_v45  ;;  %v18202_v10 = vld [vmem:[#allocation20_spill] sm:$0xff] }
 0x8f9   :  { %v9921_v46 = vmax.f32 %v9920_v63, 0.0  ;;  %v9990_v63 = vmul.f32 %v17677_v52, %v17789_v24  ;;  %v10268_v52 = vmul.f32 %v17760_v14, %v17821_v61  ;;  %v10269_v24 = vmul.f32 %v17805_v30, %v17827_v6  ;;  %v18203_v6 = vld [vmem:[#allocation23_spill] sm:$0xff] }
 0x8fa   :  { %v17940_v59 = vpop.permute.xlu0 %10544  ;;  %v10505_v60 = vpop.permute.xlu1 %10504  ;;  %v10508_v14 = vmul.f32 %v10475_v3, %v17851_v33  ;;  %v10512_v61 = vmul.f32 %v10495_v2, %v18202_v10  ;;  %v18206_v3 = vld [vmem:[#allocation13_spill] sm:$0xff]  ;;  %v18208_v2 = vld [vmem:[#allocation15_spill] sm:$0xff] }
 0x8fb   :  { %13467 = vrsqrt.f32 %v9921_v46  ;;  %vm9924_vm6 = vcmp.eq.f32.partialorder %v9921_v46, inf  ;;  %v9927_v42 = vand.u32 2147483648, %v9921_v46  ;;  %vm9926_vm7 = vcmp.eq.f32.partialorder %v9921_v46, 0.0 }
 0x8fc   :  { %v17943_v56 = vmul.f32 %v10505_v60, %v17777_v20  ;;  %v9994_v20 = vmul.f32 %v17748_v51, %v17813_v50  ;;  %v10272_v51 = vmul.f32 %v17894_v62, %v17839_v38  ;;  %v18205_v62 = vld [vmem:[#allocation10_spill] sm:$0xff] }
 0x8fe   :  { %v10500_v5 = vpop.permute.xlu0 %10499 }
 0x905   :  { %v13468_v8 = vpop.eup %13467 }
 0x906   :  { %v9923_v54 = vmul.f32 %v13468_v8, %v9921_v46 }
 0x908   :  { %v9925_v35 = vsel %vm9924_vm6, %v9921_v46, %v9923_v54  ;;  %v18200_v46 = vld [vmem:[#allocation9_spill] sm:$0xff]  ;;  %v9992_v54 = vmul.f32 %v17718_v11, %v17797_v44  ;;  %v10270_v11 = vmul.f32 %v17764_v39, %v17831_v55  ;;  %v10509_v44 = vmul.f32 %v10480_v1, %v17855_v47 }
 0x909   :  { %v9928_v36 = vsel %vm9926_vm7, %v9927_v42, %v9925_v35  ;;  %v9991_v8 = vmul.f32 %v18200_v46, %v17793_v23  ;;  %v9993_v42 = vmul.f32 %v17698_v41, %v17809_v40  ;;  %v10271_v41 = vmul.f32 %v17918_v37, %v17835_v21  ;;  %v18201_v40 = vld [vmem:[#allocation19_spill] sm:$0xff] }
 0x90a   :  { %v9929_v26 = vadd.f32 1e-09, %v9928_v36  ;;  %v10507_v23 = vmul.f32 %v10470_v53, %v17847_v17  ;;  %v10510_v39 = vmul.f32 %v10485_v29, %v17859_v43  ;;  %v10511_v50 = vmul.f32 %v10490_v9, %v18201_v40  ;;  %v18204_v43 = vld [vmem:[#allocation11_spill] sm:$0xff]  ;;  %v18207_v29 = vld [vmem:[#allocation12_spill] sm:$0xff]  ;;  %v18209_v9 = vld [vmem:[#allocation14_spill] sm:$0xff] }
 0x90b   :  { %v10513_v55 = vmul.f32 %v10500_v5, %v18203_v6  ;;  %v18213_v40 = vld [vmem:[#allocation18_spill] sm:$0xff] }
 0x90c   :  { %13469 = vrcp.f32 %v9929_v26  ;;  %v18210_v26 = vld [vmem:[#allocation17_spill] sm:$0xff] }
 0x916   :  { %v17978_v30 = vpop.eup %13469 }
 0x917   :  { %v9996_v21 = vmul.f32 %v17978_v30, %v9988_v27  ;;  %v9997_v12 = vmul.f32 %v17978_v30, %v9989_v32  ;;  %v9998_v45 = vmul.f32 %v17978_v30, %v9990_v63  ;;  %v9999_v38 = vmul.f32 %v17978_v30, %v9991_v8 }
 0x918   :  { %v10000_v57 = vmul.f32 %v17978_v30, %v9992_v54  ;;  %v10001_v17 = vmul.f32 %v17978_v30, %v9993_v42  ;;  %v10002_v33 = vmul.f32 %v17978_v30, %v9994_v20  ;;  %v10003_v47 = vmul.f32 %v17978_v30, %v9995_v4  ;;  %v18212_v4 = vld [vmem:[#allocation24_spill] sm:$0xff] }
 0x919   :  { %v10052_v16 = vadd.f32 %v18204_v43, %v9996_v21  ;;  %v10053_v37 = vadd.f32 %v18205_v62, %v9997_v12  ;;  %v10054_v53 = vadd.f32 %v18206_v3, %v9998_v45  ;;  %v10055_v1 = vadd.f32 %v18207_v29, %v9999_v38  ;;  %v10555_v12 = vpop.permute.xlu0 %10554  ;;  %v10560_v45 = vpop.permute.xlu1 %10559 }
 0x91a   :  { %v10056_v35 = vadd.f32 %v18208_v2, %v10000_v57  ;;  %v10057_v36 = vadd.f32 %v18209_v9, %v10001_v17  ;;  %v10058_v60 = vadd.f32 %v18210_v26, %v10002_v33  ;;  %v10059_v27 = vadd.f32 %v18211_v15, %v10003_v47  ;;  %v13462_v2 = vld [vmem:[%s18091_s9 + $0x38] sm:$0xff]   ;;  %v13464_v9 = vld [vmem:[%s18091_s9 + $0x48] sm:$0xff]  }
 0x91b   :  { %v10060_v28 = vpack.c.bf16 %v10053_v37, %v10052_v16  ;;  %v10061_v32 = vpack.c.bf16 %v10055_v1, %v10054_v53  ;;  %v10275_v63 = vmul.f32 %v17978_v30, %v10267_v7  ;;  %v10276_v46 = vmul.f32 %v17978_v30, %v10268_v52  ;;  %v13461_v1 = vld [vmem:[%s18091_s9 + $0x30] sm:$0xff]   ;;  %v13466_v26 = vld [vmem:[%s18091_s9 + $0x58] sm:$0xff]  }
 0x91c   :  { %v10062_v8 = vpack.c.bf16 %v10057_v36, %v10056_v35  ;;  %v10063_v54 = vpack.c.bf16 %v10059_v27, %v10058_v60  ;;  %v10277_v42 = vmul.f32 %v17978_v30, %v10269_v24  ;;  %v10278_v20 = vmul.f32 %v17978_v30, %v10270_v11  ;;  %v13463_v35 = vld [vmem:[%s18091_s9 + $0x40] sm:$0xff]   ;;  %v13465_v36 = vld [vmem:[%s18091_s9 + $0x50] sm:$0xff]  }
 0x91d   :  { %11901 = vmatprep.subr.bf16.mxu1 %v10060_v28  ;;  %v10332_v5 = vadd.f32 %v18212_v4, %v10275_v63  ;;  %v10333_v10 = vadd.f32 %v18213_v40, %v10276_v46  ;;  %v10279_v6 = vmul.f32 %v17978_v30, %v10271_v41  ;;  %v10280_v21 = vmul.f32 %v17978_v30, %v10272_v51 }
 0x91e   :  { %11902 = vmatpush3.bf16.msra.mxu1 %v10060_v28  ;;  %v10334_v7 = vadd.f32 %v17922_v49, %v10277_v42  ;;  %v10335_v52 = vadd.f32 %v17920_v22, %v10278_v20  ;;  %v10281_v24 = vmul.f32 %v17978_v30, %v10273_v25  ;;  %v10282_v11 = vmul.f32 %v17978_v30, %v10274_v18 }
 0x91f   :  { %11903 = vmatprep.subr.bf16.mxu1 %v10061_v32  ;;  %v10340_v38 = vpack.c.bf16 %v10333_v10, %v10332_v5  ;;  %v10336_v57 = vadd.f32 %v17926_v48, %v10279_v6  ;;  %v10337_v17 = vadd.f32 %v17924_v13, %v10280_v21  ;;  %v10515_v41 = vmul.f32 %v17978_v30, %v10507_v23 }
 0x920   :  { %v10341_v51 = vpack.c.bf16 %v10335_v52, %v10334_v7  ;;  %v10338_v33 = vadd.f32 %v17931_v0, %v10281_v24  ;;  %v10339_v47 = vadd.f32 %v17928_v58, %v10282_v11  ;;  %v10516_v49 = vmul.f32 %v17978_v30, %v10508_v14 }
 0x921   :  { %v10342_v22 = vpack.c.bf16 %v10337_v17, %v10336_v57  ;;  %v10572_v25 = vadd.f32 %v17936_v31, %v10515_v41  ;;  %v10517_v18 = vmul.f32 %v17978_v30, %v10509_v44  ;;  %v10518_v43 = vmul.f32 %v17978_v30, %v10510_v39  ;;  %v10565_v44 = vpop.permute.xlu0 %10564  ;;  %v10570_v39 = vpop.permute.xlu1 %10569 }
 0x922   :  { %11904 = vmatpush3.bf16.msra.mxu1 %v10061_v32  ;;  %v10343_v48 = vpack.c.bf16 %v10339_v47, %v10338_v33  ;;  %v10573_v13 = vadd.f32 %v17934_v34, %v10516_v49  ;;  %v10519_v23 = vmul.f32 %v17978_v30, %v10511_v50  ;;  %v10520_v16 = vmul.f32 %v17978_v30, %v10512_v61 }
 0x923   :  { %11905 = vmatprep.subr.bf16.mxu1 %v10062_v8  ;;  %v10574_v58 = vadd.f32 %v17940_v59, %v10517_v18  ;;  %v10575_v0 = vadd.f32 %v17938_v19, %v10518_v43  ;;  %v10521_v14 = vmul.f32 %v17978_v30, %v10513_v55  ;;  %v10522_v31 = vmul.f32 %v17978_v30, %v17943_v56  ;;  %v13456_v19 = vld [vmem:[%s18091_s9 + $0x8] sm:$0xff]   ;;  %v13457_v59 = vld [vmem:[%s18091_s9 + $0x10] sm:$0xff]   ;;  %v13458_v56 = vld [vmem:[%s18091_s9 + $0x18] sm:$0xff]  }
 0x924   :  { %v10580_v62 = vpack.c.bf16 %v10573_v13, %v10572_v25  ;;  %v10576_v37 = vadd.f32 %v10555_v12, %v10519_v23  ;;  %v10577_v3 = vadd.f32 %v10560_v45, %v10520_v16  ;;  %v13459_v30 = vld [vmem:[%s18091_s9 + $0x20] sm:$0xff]   ;;  %v13460_v55 = vld [vmem:[%s18091_s9 + $0x28] sm:$0xff]   ;;  %v13484_v60 = vmov 0.0  }
 0x925   :  { %v10581_v34 = vpack.c.bf16 %v10575_v0, %v10574_v58  ;;  %v10578_v53 = vadd.f32 %v10565_v44, %v10521_v14  ;;  %v10579_v50 = vadd.f32 %v10570_v39, %v10522_v31  ;;  %v10173_v15 = vpop.permute.xlu0 %10172  ;;  %v10178_v27 = vpop.permute.xlu1 %10177  ;;  %v10710_v23 = vld [vmem:[%s18092_s11] sm:$0x1] }
 0x926   :  { %11906 = vmatpush3.bf16.msra.mxu1 %v10062_v8  ;;  %v10582_v61 = vpack.c.bf16 %v10577_v3, %v10576_v37 }
 0x927   :  { %11907 = vmatprep.subr.bf16.mxu1 %v10063_v54  ;;  %v10583_v29 = vpack.c.bf16 %v10579_v50, %v10578_v53 }
 0x929   :  { %v10183_v28 = vpop.permute.xlu0 %10182  ;;  %v10188_v32 = vpop.permute.xlu1 %10187 }
 0x92a   :  { %11908 = vmatpush3.bf16.msra.mxu1 %v10063_v54 }
 0x92b   :  { %11917 = vmatprep.subr.bf16.mxu1 %v10340_v38 }
 0x92d   :  { %11910 = vmatmul.mubr.msk.bf16.vlgmr.msra.gmra.mrb[176].mxu1 %vm10092_vm5, %v13456_v19  ;;  %v10193_v54 = vpop.permute.xlu0 %10192  ;;  %v10198_v40 = vpop.permute.xlu1 %10197 }
 0x92e   :  { %11918 = vmatpush3.bf16.msra.mxu1 %v10340_v38  ;;  %11913 = vmatprep.mubr.msk.bf16.mxu1 %vm10092_vm5, %v13457_v59 }
 0x92f   :  { %11919 = vmatprep.subr.bf16.mxu1 %v10341_v51 }
 0x931   :  { %v10203_v52 = vpop.permute.xlu0 %10202  ;;  %v10208_v17 = vpop.permute.xlu1 %10207 }
 0x932   :  { %11920 = vmatpush3.bf16.msra.mxu1 %v10341_v51 }
 0x933   :  { %11921 = vmatprep.subr.bf16.mxu1 %v10342_v22 }
 0x935   :  { %11914 = vmatmul.mubr.msk.bf16.gmra.mrb[180].mxu1 %vm10092_vm5, %v13458_v56  ;;  %v10715_v16 = vpop.permute.xlu0 %10714 }
 0x936   :  { %11922 = vmatpush3.bf16.msra.mxu1 %v10342_v22  ;;  %11925 = vmatprep.mubr.msk.bf16.mxu1 %vm10092_vm5, %v13459_v30 }
 0x937   :  { %11923 = vmatprep.subr.bf16.mxu1 %v10343_v48 }
 0x93a   :  { %11924 = vmatpush3.bf16.msra.mxu1 %v10343_v48 }
 0x93b   :  { %11933 = vmatprep.subr.bf16.mxu1 %v10580_v62 }
 0x93d   :  { %11926 = vmatmul.mubr.msk.bf16.vlgmr.msra.gmra.mrb[176].mxu1 %vm10092_vm5, %v13460_v55 }
 0x93e   :  { %11934 = vmatpush3.bf16.msra.mxu1 %v10580_v62  ;;  %11929 = vmatprep.mubr.msk.bf16.mxu1 %vm10092_vm5, %v13461_v1 }
 0x93f   :  { %11935 = vmatprep.subr.bf16.mxu1 %v10581_v34 }
 0x942   :  { %11936 = vmatpush3.bf16.msra.mxu1 %v10581_v34 }
 0x943   :  { %11937 = vmatprep.subr.bf16.mxu1 %v10582_v61 }
 0x945   :  { %11930 = vmatmul.mubr.msk.bf16.gmra.mrb[180].mxu1 %vm10092_vm5, %v13462_v2 }
 0x946   :  { %11938 = vmatpush3.bf16.msra.mxu1 %v10582_v61  ;;  %11941 = vmatprep.mubr.msk.bf16.mxu1 %vm10092_vm5, %v13463_v35 }
 0x947   :  { %11939 = vmatprep.subr.bf16.mxu1 %v10583_v29 }
 0x94a   :  { %11940 = vmatpush3.bf16.msra.mxu1 %v10583_v29 }
 0x94b   :  { %11949 = vmatprep.subr.bf16.mxu1 %v13484_v60 }
 0x94d   :  { %11942 = vmatmul.mubr.msk.bf16.vlgmr.msra.gmra.mrb[176].mxu1 %vm10092_vm5, %v13464_v9 }
 0x94e   :  { %11945 = vmatprep.mubr.msk.bf16.mxu1 %vm10092_vm5, %v13465_v36 }
 0x955   :  { %11946 = vmatmul.mubr.msk.bf16.gmra.mrb[180].mxu1 %vm10092_vm5, %v13466_v26 }
 0x956   :  { %11957 = vmatprep.mubr.msk.bf16.mxu1 %vm13485_vm8, %v13484_v60 }
 0xa20   :  { %v11943_v63 = vpop.f32.mrb[176].mxu1 }
 0xa21   :  { %v12025_v46 = vadd.f32 %v11943_v63, %v10183_v28  ;;  %v10659_v8 = vpop.f32.mrb[177].mxu1 }
 0xa22   :  { %v12026_v42 = vadd.f32 %v10659_v8, %v10173_v15  ;;  %v11944_v20 = vpop.f32.mrb[178].mxu1 }
 0xa23   :  { %v12027_v4 = vadd.f32 %v11944_v20, %v10188_v32  ;;  %v10662_v5 = vpop.f32.mrb[179].mxu1  ;;  %v10700_v6 = vmax.f32 %v12025_v46, 0.0 }
 0xa24   :  { %v12028_v10 = vadd.f32 %v10662_v5, %v10178_v27  ;;  %v10698_v12 = vmax.f32 %v12026_v42, 0.0 }
 0xa25   :  { %v10701_v21 = vmax.f32 %v12027_v4, 0.0 }
 0xa26   :  { %v10699_v45 = vmax.f32 %v12028_v10, 0.0 }
 0xa27   :  { %v10707_v7 = vpack.c.bf16 %v10701_v21, %v10700_v6 }
 0xa28   :  { %v10706_v24 = vpack.c.bf16 %v10699_v45, %v10698_v12  ;;  %v11947_v11 = vpop.f32.mrb[180].mxu1 }
 0xa29   :  { %v12029_v38 = vadd.f32 %v11947_v11, %v10203_v52  ;;  %v10675_v57 = vpop.f32.mrb[181].mxu1 }
 0xa2a   :  { %v12030_v41 = vadd.f32 %v10675_v57, %v10193_v54  ;;  %v11948_v51 = vpop.f32.mrb[182].mxu1  ;;  %11950 = vmatpush3.bf16.msra.mxu1 %v10706_v24 }
 0xa2b   :  { %v12031_v33 = vadd.f32 %v11948_v51, %v10208_v17  ;;  %v10678_v47 = vpop.f32.mrb[183].mxu1  ;;  %11951 = vmatprep.subr.bf16.mxu1 %v13484_v60  ;;  %v10704_v22 = vmax.f32 %v12029_v38, 0.0 }
 0xa2c   :  { %v12032_v49 = vadd.f32 %v10678_v47, %v10198_v40  ;;  %v10702_v18 = vmax.f32 %v12030_v41, 0.0 }
 0xa2d   :  { %v10705_v25 = vmax.f32 %v12031_v33, 0.0 }
 0xa2e   :  { %v10703_v43 = vmax.f32 %v12032_v49, 0.0  ;;  %11952 = vmatpush3.bf16.msra.mxu1 %v10707_v7 }
 0xa2f   :  { %v10709_v48 = vpack.c.bf16 %v10705_v25, %v10704_v22  ;;  %11953 = vmatprep.subr.bf16.mxu1 %v13484_v60 }
 0xa30   :  { %v10708_v13 = vpack.c.bf16 %v10703_v43, %v10702_v18 }
 0xa32   :  { %11954 = vmatpush3.bf16.msra.mxu1 %v10708_v13 }
 0xa33   :  { %11955 = vmatprep.subr.bf16.mxu1 %v13484_v60 }
 0xa36   :  { %11956 = vmatpush3.bf16.msra.mxu1 %v10709_v48 }
 0xa39   :  { %11958 = vmatmul.mubr.msk.bf16.vlgmr.msra.gmra.mrb[184].mxu1 %vm10092_vm5, %v10710_v23 }
 0xb0c   :  { %v10754_v58 = vpop.f32.mrb[184].mxu1 }
 0xb0d   :  { %v10755_v0 = vadd.f32 %v10754_v58, %v10715_v16  ;;  %v11959_v14 = vpop.f32.mrb[185].mxu1 }
 0xb0e   :  { %v10757_v31 = vpop.f32.mrb[186].mxu1 }
 0xb0f   :  { %v10760_v44 = vmax.f32 %v10755_v0, 0.0  ;;  %v11960_v39 = vpop.f32.mrb[187].mxu1 }
 0xb11   :  { %10761 = vst [vmem:[%s18093_s13] sm:$0x3] %v10760_v44 }

</bundles_post_ra>
